<compile_context>
chip_gen: v7x
topology: tpu7x:2x2x1
jax: 0.10.0
libtpu: 0.0.40
codegen_flags: <defaults>
</compile_context>

<pallas_src>
import numpy as np
import jax
import jax.numpy as jnp
from jax.experimental import pallas as pl
from jax.experimental.pallas import tpu as pltpu

C1, C2, K = 4, 8, 5      # conv channel counts / kernel size (static, from __init__)
NROW = 8                 # sublane-padded row count of the final output tile


def _model_kernel(x_ref, w1_ref, b1_ref, w2_ref, b2_ref,
                  w3s_ref, b3_ref, w4p_ref, b4p_ref, out_ref):
    x = x_ref[...]                         # (Lp, TB): sequence in sublanes, batch in lanes
    Lp, TB = x.shape

    def shift(a, s):
        # Upward sublane shift by s (cyclic rotate on the XLU). Wrapped-in rows
        # only land on don't-care positions, which w3s neutralizes.
        return a if s == 0 else pltpu.roll(a, Lp - s, axis=0)

    # --- Conv1d(1 -> 4, k=5) + ReLU + MaxPool(2,2) kept "in place" -----------
    xs = [shift(x, k) for k in range(K)]               # hoisted shifted views
    m1 = []
    for c in range(C1):
        a = w1_ref[c * K] * xs[0]
        for k in range(1, K):
            a = a + w1_ref[c * K + k] * xs[k]
        a = jnp.maximum(a + b1_ref[c], 0.0)             # relu(conv1); valid rows [0, L1)
        # pooled value j lives at row 2j; other rows are don't-care
        m1.append(jnp.maximum(a, shift(a, 1)))

    # --- Conv1d(4 -> 8, k=5) + ReLU + MaxPool(2,2) on the stride-2 lattice ----
    # conv2 output t lives at row 2t (uses m1 rows 2t+2k); pooled output u at row 4u.
    m1s = [[shift(m1[c], 2 * k) for k in range(K)] for c in range(C1)]

    # --- Dense head (MXU): flatten == sum of per-channel dots ------------------
    h = b3_ref[...]                                     # (32, 1), broadcasts over lanes
    for d in range(C2):
        a = w2_ref[d * C1 * K] * m1s[0][0]
        for c in range(C1):
            for k in range(K):
                if c == 0 and k == 0:
                    continue
                a = a + w2_ref[(d * C1 + c) * K + k] * m1s[c][k]
        a = jnp.maximum(a + b2_ref[d], 0.0)             # relu(conv2)
        m2 = jnp.maximum(a, shift(a, 2))                # pooled value u at row 4u
        # w3s[d] has the true w3 columns scattered to cols 4u and zeros elsewhere,
        # so the don't-care rows of m2 contribute exactly zero.
        h = h + jnp.dot(w3s_ref[d], m2, preferred_element_type=jnp.float32)

    h = jnp.maximum(h, 0.0)                             # (32, TB)
    # TODO(synk): Dropout(p=0.5) is identity in eval/inference mode; training-mode mask not implemented.
    out_ref[...] = (jnp.dot(w4p_ref[...], h, preferred_element_type=jnp.float32)
                    + b4p_ref[...])                     # (NROW, TB), full-tile store


def model_forward(x, params):
    """x: (B, 1, L) float32 (PyTorch NCW). Returns (B, 2) float32."""
    w1, b1, w2, b2, w3, b3, w4, b4 = params
    B, cin, L = x.shape
    assert cin == 1
    L1 = L - (K - 1)
    P1 = L1 // 2
    L2 = P1 - (K - 1)
    P2 = L2 // 2
    sz = C2 * P2
    assert w3.shape == (32, sz), (w3.shape, sz)

    Lp = -(-L // 8) * 8                                 # sublane-pad the sequence axis

    # Batch lives in the lane dim: tiles are multiples of 128 lanes.  Aim for a
    # grid of >=2 programs once the batch needs >1 lane block (v7x megacore);
    # use 1024-lane tiles for very large batches (amortize per-step overhead).
    nb = -(-B // 128)                                   # 128-lane blocks needed
    if nb <= 1:
        tb_blk = 1
    elif nb <= 16:
        tb_blk = -(-nb // 2)
    else:
        tb_blk = 8
    TB = 128 * tb_blk
    Bp = -(-B // TB) * TB

    # (B,1,L) -> (Lp, Bp): sequence in sublanes, batch in lanes, zero padded.
    xt = jnp.zeros((Lp, Bp), jnp.float32).at[:L, :B].set(
        jnp.transpose(x.reshape(B, L).astype(jnp.float32)))

    # Scatter w3 columns to the stride-4 row lattice used by the in-place pooled
    # activations (channel-major flatten: flat index = d*P2 + u, matching
    # torch's .view(-1, sz)). Zero columns neutralize the don't-care rows.
    w3r = w3.astype(jnp.float32).reshape(32, C2, P2)            # (32, C2, P2)
    w3s = jnp.zeros((C2, 32, Lp), jnp.float32).at[:, :, 0:4 * (P2 - 1) + 1:4].set(
        jnp.transpose(w3r, (1, 0, 2)))                          # (C2, 32, Lp)

    # Row-pad the final linear so the output store is a full (8, TB) tile.
    w4p = jnp.zeros((NROW, 32), jnp.float32).at[:2, :].set(w4.astype(jnp.float32))
    b4p = jnp.zeros((NROW, 1), jnp.float32).at[:2, 0].set(b4.astype(jnp.float32))
    b3c = b3.astype(jnp.float32).reshape(32, 1)

    vmem = pl.BlockSpec(memory_space=pltpu.MemorySpace.VMEM)
    smem = pl.BlockSpec(memory_space=pltpu.MemorySpace.SMEM)

    out = pl.pallas_call(
        _model_kernel,
        out_shape=jax.ShapeDtypeStruct((NROW, Bp), jnp.float32),
        grid=(Bp // TB,),
        in_specs=[pl.BlockSpec((Lp, TB), lambda i: (0, i)),   # x, tiled along batch lanes
                  smem, smem,                                 # w1 flat (20,), b1 (4,)
                  smem, smem,                                 # w2 flat (160,), b2 (8,)
                  vmem, vmem,                                 # w3s (8,32,Lp), b3 (32,1)
                  vmem, vmem],                                # w4 pad (8,32), b4 pad (8,1)
        out_specs=pl.BlockSpec((NROW, TB), lambda i: (0, i)),
        compiler_params=pltpu.CompilerParams(dimension_semantics=("parallel",)),
    )(xt,
      w1.reshape(-1).astype(jnp.float32), b1.astype(jnp.float32),
      w2.reshape(-1).astype(jnp.float32), b2.astype(jnp.float32),
      w3s, b3c, w4p, b4p)

    return jnp.transpose(out[:2, :B])


def _reference_numpy(x, params):
    """Pure-numpy reference of the PyTorch forward (eval mode)."""
    w1, b1, w2, b2, w3, b3, w4, b4 = [np.asarray(p, np.float64) for p in params]
    x = np.asarray(x, np.float64)[:, 0, :]
    B, L = x.shape
    L1 = L - 4
    y1 = np.zeros((B, C1, L1))
    for co in range(C1):
        for k in range(K):
            y1[:, co, :] += w1[co, k] * x[:, k:k + L1]
        y1[:, co, :] += b1[co]
    y1 = np.maximum(y1, 0.0)
    P1 = L1 // 2
    y1 = y1[:, :, :2 * P1].reshape(B, C1, P1, 2).max(-1)
    L2 = P1 - 4
    y2 = np.zeros((B, C2, L2))
    for co in range(C2):
        for ci in range(C1):
            for k in range(K):
                y2[:, co, :] += w2[co, ci, k] * y1[:, ci, k:k + L2]
        y2[:, co, :] += b2[co]
    y2 = np.maximum(y2, 0.0)
    P2 = L2 // 2
    y2 = y2[:, :, :2 * P2].reshape(B, C2, P2, 2).max(-1)
    flat = y2.reshape(B, -1)
    h = np.maximum(flat @ w3.T + b3, 0.0)
    return h @ w4.T + b4


if __name__ == "__main__":
    B, L = 2, 64
    sz = 8 * (((L - 4) // 2 - 4) // 2)   # 104, matches self.sz in the module

    key = jax.random.PRNGKey(0)
    ks = jax.random.split(key, 10)
    w1 = 0.2 * jax.random.normal(ks[0], (C1, K), jnp.float32)        # Conv1d(1,4,5) weight (squeezed)
    b1 = 0.1 * jax.random.normal(ks[1], (C1,), jnp.float32)
    w2 = 0.1 * jax.random.normal(ks[2], (C2, C1, K), jnp.float32)    # Conv1d(4,8,5) weight
    b2 = 0.1 * jax.random.normal(ks[3], (C2,), jnp.float32)
    w3 = 0.1 * jax.random.normal(ks[4], (32, sz), jnp.float32)       # Linear(sz,32)
    b3 = 0.1 * jax.random.normal(ks[5], (32,), jnp.float32)
    w4 = 0.1 * jax.random.normal(ks[6], (2, 32), jnp.float32)        # Linear(32,2)
    b4 = 0.1 * jax.random.normal(ks[7], (2,), jnp.float32)
    params = (w1, b1, w2, b2, w3, b3, w4, b4)

    # Primary check: tiny batch (single-program grid).
    x = jax.random.normal(ks[8], (B, 1, L), jnp.float32)
    out = jax.block_until_ready(model_forward(x, params))
    ref = _reference_numpy(x, params)
    assert out.shape == (B, 2), out.shape
    assert np.allclose(np.asarray(out), ref, atol=1e-3, rtol=1e-3), (out, ref)

    # Secondary check: batch large enough to produce a 2-program grid
    # (exercises the batch-lane tiling / megacore path).
    B2 = 130
    x2 = jax.random.normal(ks[9], (B2, 1, L), jnp.float32)
    out2 = jax.block_until_ready(model_forward(x2, params))
    ref2 = _reference_numpy(x2, params)
    assert out2.shape == (B2, 2), out2.shape
    assert np.allclose(np.asarray(out2), ref2, atol=1e-3, rtol=1e-3)

    print("KERNEL_OK")
</pallas_src>

<mosaic_0001>
module attributes {stable_mosaic.version = 11 : i64} {
  func.func @_model_kernel(%arg0: i32, %arg1: memref<64x128xf32, #tpu.memory_space<vmem>>, %arg2: memref<20xf32, #tpu.memory_space<smem>>, %arg3: memref<4xf32, #tpu.memory_space<smem>>, %arg4: memref<160xf32, #tpu.memory_space<smem>>, %arg5: memref<8xf32, #tpu.memory_space<smem>>, %arg6: memref<8x32x64xf32, #tpu.memory_space<vmem>>, %arg7: memref<32x1xf32, #tpu.memory_space<vmem>>, %arg8: memref<8x32xf32, #tpu.memory_space<vmem>>, %arg9: memref<8x1xf32, #tpu.memory_space<vmem>>, %arg10: memref<8x128xf32, #tpu.memory_space<vmem>>) attributes {dimension_semantics = [#tpu.dimension_semantics<parallel>], iteration_bounds = array<i64: 1>, scalar_prefetch = 0 : i64, scratch_operands = 0 : i64, tpu.core_type = #tpu.core_type<tc>, window_params = [{transform_indices = @transform_0, window_bounds = array<i64: 64, 128>}, {transform_indices = @transform_1, window_bounds = array<i64: 20>}, {transform_indices = @transform_2, window_bounds = array<i64: 4>}, {transform_indices = @transform_3, window_bounds = array<i64: 160>}, {transform_indices = @transform_4, window_bounds = array<i64: 8>}, {pipeline_mode = #tpu.pipeline_mode<synchronous>, transform_indices = @transform_5, window_bounds = array<i64: 8, 32, 64>}, {pipeline_mode = #tpu.pipeline_mode<synchronous>, transform_indices = @transform_6, window_bounds = array<i64: 32, 1>}, {pipeline_mode = #tpu.pipeline_mode<synchronous>, transform_indices = @transform_7, window_bounds = array<i64: 8, 32>}, {pipeline_mode = #tpu.pipeline_mode<synchronous>, transform_indices = @transform_8, window_bounds = array<i64: 8, 1>}, {transform_indices = @transform_9, window_bounds = array<i64: 8, 128>}]} {
    %c0 = arith.constant 0 : index
    %c0_0 = arith.constant 0 : index
    %0 = vector.load %arg1[%c0, %c0_0] : memref<64x128xf32, #tpu.memory_space<vmem>>, vector<64x128xf32>
    %c63_i32 = arith.constant 63 : i32
    %1 = tpu.dynamic_rotate %0 by %c63_i32 dim 0 : vector<64x128xf32>, i32 -> vector<64x128xf32>
    %c62_i32 = arith.constant 62 : i32
    %2 = tpu.dynamic_rotate %0 by %c62_i32 dim 0 : vector<64x128xf32>, i32 -> vector<64x128xf32>
    %c61_i32 = arith.constant 61 : i32
    %3 = tpu.dynamic_rotate %0 by %c61_i32 dim 0 : vector<64x128xf32>, i32 -> vector<64x128xf32>
    %c60_i32 = arith.constant 60 : i32
    %4 = tpu.dynamic_rotate %0 by %c60_i32 dim 0 : vector<64x128xf32>, i32 -> vector<64x128xf32>
    %c0_1 = arith.constant 0 : index
    %5 = memref.load %arg2[%c0_1] : memref<20xf32, #tpu.memory_space<smem>>
    %6 = vector.broadcast %5 : f32 to vector<64x128xf32>
    %7 = arith.mulf %6, %0 : vector<64x128xf32>
    %c1 = arith.constant 1 : index
    %8 = memref.load %arg2[%c1] : memref<20xf32, #tpu.memory_space<smem>>
    %9 = vector.broadcast %8 : f32 to vector<64x128xf32>
    %10 = arith.mulf %9, %1 : vector<64x128xf32>
    %11 = arith.addf %7, %10 : vector<64x128xf32>
    %c2 = arith.constant 2 : index
    %12 = memref.load %arg2[%c2] : memref<20xf32, #tpu.memory_space<smem>>
    %13 = vector.broadcast %12 : f32 to vector<64x128xf32>
    %14 = arith.mulf %13, %2 : vector<64x128xf32>
    %15 = arith.addf %11, %14 : vector<64x128xf32>
    %c3 = arith.constant 3 : index
    %16 = memref.load %arg2[%c3] : memref<20xf32, #tpu.memory_space<smem>>
    %17 = vector.broadcast %16 : f32 to vector<64x128xf32>
    %18 = arith.mulf %17, %3 : vector<64x128xf32>
    %19 = arith.addf %15, %18 : vector<64x128xf32>
    %c4 = arith.constant 4 : index
    %20 = memref.load %arg2[%c4] : memref<20xf32, #tpu.memory_space<smem>>
    %21 = vector.broadcast %20 : f32 to vector<64x128xf32>
    %22 = arith.mulf %21, %4 : vector<64x128xf32>
    %23 = arith.addf %19, %22 : vector<64x128xf32>
    %c0_2 = arith.constant 0 : index
    %24 = memref.load %arg3[%c0_2] : memref<4xf32, #tpu.memory_space<smem>>
    %25 = vector.broadcast %24 : f32 to vector<64x128xf32>
    %26 = arith.addf %23, %25 : vector<64x128xf32>
    %cst = arith.constant 0.000000e+00 : f32
    %27 = vector.broadcast %cst : f32 to vector<64x128xf32>
    %28 = arith.maximumf %26, %27 : vector<64x128xf32>
    %c63_i32_3 = arith.constant 63 : i32
    %29 = tpu.dynamic_rotate %28 by %c63_i32_3 dim 0 : vector<64x128xf32>, i32 -> vector<64x128xf32>
    %30 = arith.maximumf %28, %29 : vector<64x128xf32>
    %c5 = arith.constant 5 : index
    %31 = memref.load %arg2[%c5] : memref<20xf32, #tpu.memory_space<smem>>
    %32 = vector.broadcast %31 : f32 to vector<64x128xf32>
    %33 = arith.mulf %32, %0 : vector<64x128xf32>
    %c6 = arith.constant 6 : index
    %34 = memref.load %arg2[%c6] : memref<20xf32, #tpu.memory_space<smem>>
    %35 = vector.broadcast %34 : f32 to vector<64x128xf32>
    %36 = arith.mulf %35, %1 : vector<64x128xf32>
    %37 = arith.addf %33, %36 : vector<64x128xf32>
    %c7 = arith.constant 7 : index
    %38 = memref.load %arg2[%c7] : memref<20xf32, #tpu.memory_space<smem>>
    %39 = vector.broadcast %38 : f32 to vector<64x128xf32>
    %40 = arith.mulf %39, %2 : vector<64x128xf32>
    %41 = arith.addf %37, %40 : vector<64x128xf32>
    %c8 = arith.constant 8 : index
    %42 = memref.load %arg2[%c8] : memref<20xf32, #tpu.memory_space<smem>>
    %43 = vector.broadcast %42 : f32 to vector<64x128xf32>
    %44 = arith.mulf %43, %3 : vector<64x128xf32>
    %45 = arith.addf %41, %44 : vector<64x128xf32>
    %c9 = arith.constant 9 : index
    %46 = memref.load %arg2[%c9] : memref<20xf32, #tpu.memory_space<smem>>
    %47 = vector.broadcast %46 : f32 to vector<64x128xf32>
    %48 = arith.mulf %47, %4 : vector<64x128xf32>
    %49 = arith.addf %45, %48 : vector<64x128xf32>
    %c1_4 = arith.constant 1 : index
    %50 = memref.load %arg3[%c1_4] : memref<4xf32, #tpu.memory_space<smem>>
    %51 = vector.broadcast %50 : f32 to vector<64x128xf32>
    %52 = arith.addf %49, %51 : vector<64x128xf32>
    %cst_5 = arith.constant 0.000000e+00 : f32
    %53 = vector.broadcast %cst_5 : f32 to vector<64x128xf32>
    %54 = arith.maximumf %52, %53 : vector<64x128xf32>
    %c63_i32_6 = arith.constant 63 : i32
    %55 = tpu.dynamic_rotate %54 by %c63_i32_6 dim 0 : vector<64x128xf32>, i32 -> vector<64x128xf32>
    %56 = arith.maximumf %54, %55 : vector<64x128xf32>
    %c10 = arith.constant 10 : index
    %57 = memref.load %arg2[%c10] : memref<20xf32, #tpu.memory_space<smem>>
    %58 = vector.broadcast %57 : f32 to vector<64x128xf32>
    %59 = arith.mulf %58, %0 : vector<64x128xf32>
    %c11 = arith.constant 11 : index
    %60 = memref.load %arg2[%c11] : memref<20xf32, #tpu.memory_space<smem>>
    %61 = vector.broadcast %60 : f32 to vector<64x128xf32>
    %62 = arith.mulf %61, %1 : vector<64x128xf32>
    %63 = arith.addf %59, %62 : vector<64x128xf32>
    %c12 = arith.constant 12 : index
    %64 = memref.load %arg2[%c12] : memref<20xf32, #tpu.memory_space<smem>>
    %65 = vector.broadcast %64 : f32 to vector<64x128xf32>
    %66 = arith.mulf %65, %2 : vector<64x128xf32>
    %67 = arith.addf %63, %66 : vector<64x128xf32>
    %c13 = arith.constant 13 : index
    %68 = memref.load %arg2[%c13] : memref<20xf32, #tpu.memory_space<smem>>
    %69 = vector.broadcast %68 : f32 to vector<64x128xf32>
    %70 = arith.mulf %69, %3 : vector<64x128xf32>
    %71 = arith.addf %67, %70 : vector<64x128xf32>
    %c14 = arith.constant 14 : index
    %72 = memref.load %arg2[%c14] : memref<20xf32, #tpu.memory_space<smem>>
    %73 = vector.broadcast %72 : f32 to vector<64x128xf32>
    %74 = arith.mulf %73, %4 : vector<64x128xf32>
    %75 = arith.addf %71, %74 : vector<64x128xf32>
    %c2_7 = arith.constant 2 : index
    %76 = memref.load %arg3[%c2_7] : memref<4xf32, #tpu.memory_space<smem>>
    %77 = vector.broadcast %76 : f32 to vector<64x128xf32>
    %78 = arith.addf %75, %77 : vector<64x128xf32>
    %cst_8 = arith.constant 0.000000e+00 : f32
    %79 = vector.broadcast %cst_8 : f32 to vector<64x128xf32>
    %80 = arith.maximumf %78, %79 : vector<64x128xf32>
    %c63_i32_9 = arith.constant 63 : i32
    %81 = tpu.dynamic_rotate %80 by %c63_i32_9 dim 0 : vector<64x128xf32>, i32 -> vector<64x128xf32>
    %82 = arith.maximumf %80, %81 : vector<64x128xf32>
    %c15 = arith.constant 15 : index
    %83 = memref.load %arg2[%c15] : memref<20xf32, #tpu.memory_space<smem>>
    %84 = vector.broadcast %83 : f32 to vector<64x128xf32>
    %85 = arith.mulf %84, %0 : vector<64x128xf32>
    %c16 = arith.constant 16 : index
    %86 = memref.load %arg2[%c16] : memref<20xf32, #tpu.memory_space<smem>>
    %87 = vector.broadcast %86 : f32 to vector<64x128xf32>
    %88 = arith.mulf %87, %1 : vector<64x128xf32>
    %89 = arith.addf %85, %88 : vector<64x128xf32>
    %c17 = arith.constant 17 : index
    %90 = memref.load %arg2[%c17] : memref<20xf32, #tpu.memory_space<smem>>
    %91 = vector.broadcast %90 : f32 to vector<64x128xf32>
    %92 = arith.mulf %91, %2 : vector<64x128xf32>
    %93 = arith.addf %89, %92 : vector<64x128xf32>
    %c18 = arith.constant 18 : index
    %94 = memref.load %arg2[%c18] : memref<20xf32, #tpu.memory_space<smem>>
    %95 = vector.broadcast %94 : f32 to vector<64x128xf32>
    %96 = arith.mulf %95, %3 : vector<64x128xf32>
    %97 = arith.addf %93, %96 : vector<64x128xf32>
    %c19 = arith.constant 19 : index
    %98 = memref.load %arg2[%c19] : memref<20xf32, #tpu.memory_space<smem>>
    %99 = vector.broadcast %98 : f32 to vector<64x128xf32>
    %100 = arith.mulf %99, %4 : vector<64x128xf32>
    %101 = arith.addf %97, %100 : vector<64x128xf32>
    %c3_10 = arith.constant 3 : index
    %102 = memref.load %arg3[%c3_10] : memref<4xf32, #tpu.memory_space<smem>>
    %103 = vector.broadcast %102 : f32 to vector<64x128xf32>
    %104 = arith.addf %101, %103 : vector<64x128xf32>
    %cst_11 = arith.constant 0.000000e+00 : f32
    %105 = vector.broadcast %cst_11 : f32 to vector<64x128xf32>
    %106 = arith.maximumf %104, %105 : vector<64x128xf32>
    %c63_i32_12 = arith.constant 63 : i32
    %107 = tpu.dynamic_rotate %106 by %c63_i32_12 dim 0 : vector<64x128xf32>, i32 -> vector<64x128xf32>
    %108 = arith.maximumf %106, %107 : vector<64x128xf32>
    %c62_i32_13 = arith.constant 62 : i32
    %109 = tpu.dynamic_rotate %30 by %c62_i32_13 dim 0 : vector<64x128xf32>, i32 -> vector<64x128xf32>
    %c60_i32_14 = arith.constant 60 : i32
    %110 = tpu.dynamic_rotate %30 by %c60_i32_14 dim 0 : vector<64x128xf32>, i32 -> vector<64x128xf32>
    %c58_i32 = arith.constant 58 : i32
    %111 = tpu.dynamic_rotate %30 by %c58_i32 dim 0 : vector<64x128xf32>, i32 -> vector<64x128xf32>
    %c56_i32 = arith.constant 56 : i32
    %112 = tpu.dynamic_rotate %30 by %c56_i32 dim 0 : vector<64x128xf32>, i32 -> vector<64x128xf32>
    %c62_i32_15 = arith.constant 62 : i32
    %113 = tpu.dynamic_rotate %56 by %c62_i32_15 dim 0 : vector<64x128xf32>, i32 -> vector<64x128xf32>
    %c60_i32_16 = arith.constant 60 : i32
    %114 = tpu.dynamic_rotate %56 by %c60_i32_16 dim 0 : vector<64x128xf32>, i32 -> vector<64x128xf32>
    %c58_i32_17 = arith.constant 58 : i32
    %115 = tpu.dynamic_rotate %56 by %c58_i32_17 dim 0 : vector<64x128xf32>, i32 -> vector<64x128xf32>
    %c56_i32_18 = arith.constant 56 : i32
    %116 = tpu.dynamic_rotate %56 by %c56_i32_18 dim 0 : vector<64x128xf32>, i32 -> vector<64x128xf32>
    %c62_i32_19 = arith.constant 62 : i32
    %117 = tpu.dynamic_rotate %82 by %c62_i32_19 dim 0 : vector<64x128xf32>, i32 -> vector<64x128xf32>
    %c60_i32_20 = arith.constant 60 : i32
    %118 = tpu.dynamic_rotate %82 by %c60_i32_20 dim 0 : vector<64x128xf32>, i32 -> vector<64x128xf32>
    %c58_i32_21 = arith.constant 58 : i32
    %119 = tpu.dynamic_rotate %82 by %c58_i32_21 dim 0 : vector<64x128xf32>, i32 -> vector<64x128xf32>
    %c56_i32_22 = arith.constant 56 : i32
    %120 = tpu.dynamic_rotate %82 by %c56_i32_22 dim 0 : vector<64x128xf32>, i32 -> vector<64x128xf32>
    %c62_i32_23 = arith.constant 62 : i32
    %121 = tpu.dynamic_rotate %108 by %c62_i32_23 dim 0 : vector<64x128xf32>, i32 -> vector<64x128xf32>
    %c60_i32_24 = arith.constant 60 : i32
    %122 = tpu.dynamic_rotate %108 by %c60_i32_24 dim 0 : vector<64x128xf32>, i32 -> vector<64x128xf32>
    %c58_i32_25 = arith.constant 58 : i32
    %123 = tpu.dynamic_rotate %108 by %c58_i32_25 dim 0 : vector<64x128xf32>, i32 -> vector<64x128xf32>
    %c56_i32_26 = arith.constant 56 : i32
    %124 = tpu.dynamic_rotate %108 by %c56_i32_26 dim 0 : vector<64x128xf32>, i32 -> vector<64x128xf32>
    %c0_27 = arith.constant 0 : index
    %c0_28 = arith.constant 0 : index
    %125 = vector.load %arg7[%c0_27, %c0_28] : memref<32x1xf32, #tpu.memory_space<vmem>>, vector<32x1xf32>
    %c0_29 = arith.constant 0 : index
    %126 = memref.load %arg4[%c0_29] : memref<160xf32, #tpu.memory_space<smem>>
    %127 = vector.broadcast %126 : f32 to vector<64x128xf32>
    %128 = arith.mulf %127, %30 : vector<64x128xf32>
    %c1_30 = arith.constant 1 : index
    %129 = memref.load %arg4[%c1_30] : memref<160xf32, #tpu.memory_space<smem>>
    %130 = vector.broadcast %129 : f32 to vector<64x128xf32>
    %131 = arith.mulf %130, %109 : vector<64x128xf32>
    %132 = arith.addf %128, %131 : vector<64x128xf32>
    %c2_31 = arith.constant 2 : index
    %133 = memref.load %arg4[%c2_31] : memref<160xf32, #tpu.memory_space<smem>>
    %134 = vector.broadcast %133 : f32 to vector<64x128xf32>
    %135 = arith.mulf %134, %110 : vector<64x128xf32>
    %136 = arith.addf %132, %135 : vector<64x128xf32>
    %c3_32 = arith.constant 3 : index
    %137 = memref.load %arg4[%c3_32] : memref<160xf32, #tpu.memory_space<smem>>
    %138 = vector.broadcast %137 : f32 to vector<64x128xf32>
    %139 = arith.mulf %138, %111 : vector<64x128xf32>
    %140 = arith.addf %136, %139 : vector<64x128xf32>
    %c4_33 = arith.constant 4 : index
    %141 = memref.load %arg4[%c4_33] : memref<160xf32, #tpu.memory_space<smem>>
    %142 = vector.broadcast %141 : f32 to vector<64x128xf32>
    %143 = arith.mulf %142, %112 : vector<64x128xf32>
    %144 = arith.addf %140, %143 : vector<64x128xf32>
    %c5_34 = arith.constant 5 : index
    %145 = memref.load %arg4[%c5_34] : memref<160xf32, #tpu.memory_space<smem>>
    %146 = vector.broadcast %145 : f32 to vector<64x128xf32>
    %147 = arith.mulf %146, %56 : vector<64x128xf32>
    %148 = arith.addf %144, %147 : vector<64x128xf32>
    %c6_35 = arith.constant 6 : index
    %149 = memref.load %arg4[%c6_35] : memref<160xf32, #tpu.memory_space<smem>>
    %150 = vector.broadcast %149 : f32 to vector<64x128xf32>
    %151 = arith.mulf %150, %113 : vector<64x128xf32>
    %152 = arith.addf %148, %151 : vector<64x128xf32>
    %c7_36 = arith.constant 7 : index
    %153 = memref.load %arg4[%c7_36] : memref<160xf32, #tpu.memory_space<smem>>
    %154 = vector.broadcast %153 : f32 to vector<64x128xf32>
    %155 = arith.mulf %154, %114 : vector<64x128xf32>
    %156 = arith.addf %152, %155 : vector<64x128xf32>
    %c8_37 = arith.constant 8 : index
    %157 = memref.load %arg4[%c8_37] : memref<160xf32, #tpu.memory_space<smem>>
    %158 = vector.broadcast %157 : f32 to vector<64x128xf32>
    %159 = arith.mulf %158, %115 : vector<64x128xf32>
    %160 = arith.addf %156, %159 : vector<64x128xf32>
    %c9_38 = arith.constant 9 : index
    %161 = memref.load %arg4[%c9_38] : memref<160xf32, #tpu.memory_space<smem>>
    %162 = vector.broadcast %161 : f32 to vector<64x128xf32>
    %163 = arith.mulf %162, %116 : vector<64x128xf32>
    %164 = arith.addf %160, %163 : vector<64x128xf32>
    %c10_39 = arith.constant 10 : index
    %165 = memref.load %arg4[%c10_39] : memref<160xf32, #tpu.memory_space<smem>>
    %166 = vector.broadcast %165 : f32 to vector<64x128xf32>
    %167 = arith.mulf %166, %82 : vector<64x128xf32>
    %168 = arith.addf %164, %167 : vector<64x128xf32>
    %c11_40 = arith.constant 11 : index
    %169 = memref.load %arg4[%c11_40] : memref<160xf32, #tpu.memory_space<smem>>
    %170 = vector.broadcast %169 : f32 to vector<64x128xf32>
    %171 = arith.mulf %170, %117 : vector<64x128xf32>
    %172 = arith.addf %168, %171 : vector<64x128xf32>
    %c12_41 = arith.constant 12 : index
    %173 = memref.load %arg4[%c12_41] : memref<160xf32, #tpu.memory_space<smem>>
    %174 = vector.broadcast %173 : f32 to vector<64x128xf32>
    %175 = arith.mulf %174, %118 : vector<64x128xf32>
    %176 = arith.addf %172, %175 : vector<64x128xf32>
    %c13_42 = arith.constant 13 : index
    %177 = memref.load %arg4[%c13_42] : memref<160xf32, #tpu.memory_space<smem>>
    %178 = vector.broadcast %177 : f32 to vector<64x128xf32>
    %179 = arith.mulf %178, %119 : vector<64x128xf32>
    %180 = arith.addf %176, %179 : vector<64x128xf32>
    %c14_43 = arith.constant 14 : index
    %181 = memref.load %arg4[%c14_43] : memref<160xf32, #tpu.memory_space<smem>>
    %182 = vector.broadcast %181 : f32 to vector<64x128xf32>
    %183 = arith.mulf %182, %120 : vector<64x128xf32>
    %184 = arith.addf %180, %183 : vector<64x128xf32>
    %c15_44 = arith.constant 15 : index
    %185 = memref.load %arg4[%c15_44] : memref<160xf32, #tpu.memory_space<smem>>
    %186 = vector.broadcast %185 : f32 to vector<64x128xf32>
    %187 = arith.mulf %186, %108 : vector<64x128xf32>
    %188 = arith.addf %184, %187 : vector<64x128xf32>
    %c16_45 = arith.constant 16 : index
    %189 = memref.load %arg4[%c16_45] : memref<160xf32, #tpu.memory_space<smem>>
    %190 = vector.broadcast %189 : f32 to vector<64x128xf32>
    %191 = arith.mulf %190, %121 : vector<64x128xf32>
    %192 = arith.addf %188, %191 : vector<64x128xf32>
    %c17_46 = arith.constant 17 : index
    %193 = memref.load %arg4[%c17_46] : memref<160xf32, #tpu.memory_space<smem>>
    %194 = vector.broadcast %193 : f32 to vector<64x128xf32>
    %195 = arith.mulf %194, %122 : vector<64x128xf32>
    %196 = arith.addf %192, %195 : vector<64x128xf32>
    %c18_47 = arith.constant 18 : index
    %197 = memref.load %arg4[%c18_47] : memref<160xf32, #tpu.memory_space<smem>>
    %198 = vector.broadcast %197 : f32 to vector<64x128xf32>
    %199 = arith.mulf %198, %123 : vector<64x128xf32>
    %200 = arith.addf %196, %199 : vector<64x128xf32>
    %c19_48 = arith.constant 19 : index
    %201 = memref.load %arg4[%c19_48] : memref<160xf32, #tpu.memory_space<smem>>
    %202 = vector.broadcast %201 : f32 to vector<64x128xf32>
    %203 = arith.mulf %202, %124 : vector<64x128xf32>
    %204 = arith.addf %200, %203 : vector<64x128xf32>
    %c0_49 = arith.constant 0 : index
    %205 = memref.load %arg5[%c0_49] : memref<8xf32, #tpu.memory_space<smem>>
    %206 = vector.broadcast %205 : f32 to vector<64x128xf32>
    %207 = arith.addf %204, %206 : vector<64x128xf32>
    %cst_50 = arith.constant 0.000000e+00 : f32
    %208 = vector.broadcast %cst_50 : f32 to vector<64x128xf32>
    %209 = arith.maximumf %207, %208 : vector<64x128xf32>
    %c62_i32_51 = arith.constant 62 : i32
    %210 = tpu.dynamic_rotate %209 by %c62_i32_51 dim 0 : vector<64x128xf32>, i32 -> vector<64x128xf32>
    %211 = arith.maximumf %209, %210 : vector<64x128xf32>
    %c0_52 = arith.constant 0 : index
    %c0_53 = arith.constant 0 : index
    %c0_54 = arith.constant 0 : index
    %212 = vector.load %arg6[%c0_52, %c0_53, %c0_54] : memref<8x32x64xf32, #tpu.memory_space<vmem>>, vector<1x32x64xf32>
    %213 = vector.shape_cast %212 : vector<1x32x64xf32> to vector<32x64xf32>
    %cst_55 = arith.constant dense<0.000000e+00> : vector<32x128xf32>
    %214 = tpu.matmul %213, %211, %cst_55 {dimension_numbers = #tpu.dot_dimension_numbers<[1], [0], [0], [1], [0, 0, 1, 1], [], []>} : vector<32x64xf32>, vector<64x128xf32>, vector<32x128xf32> -> vector<32x128xf32>
    %215 = vector.broadcast %125 : vector<32x1xf32> to vector<32x128xf32>
    %216 = arith.addf %215, %214 : vector<32x128xf32>
    %c20 = arith.constant 20 : index
    %217 = memref.load %arg4[%c20] : memref<160xf32, #tpu.memory_space<smem>>
    %218 = vector.broadcast %217 : f32 to vector<64x128xf32>
    %219 = arith.mulf %218, %30 : vector<64x128xf32>
    %c21 = arith.constant 21 : index
    %220 = memref.load %arg4[%c21] : memref<160xf32, #tpu.memory_space<smem>>
    %221 = vector.broadcast %220 : f32 to vector<64x128xf32>
    %222 = arith.mulf %221, %109 : vector<64x128xf32>
    %223 = arith.addf %219, %222 : vector<64x128xf32>
    %c22 = arith.constant 22 : index
    %224 = memref.load %arg4[%c22] : memref<160xf32, #tpu.memory_space<smem>>
    %225 = vector.broadcast %224 : f32 to vector<64x128xf32>
    %226 = arith.mulf %225, %110 : vector<64x128xf32>
    %227 = arith.addf %223, %226 : vector<64x128xf32>
    %c23 = arith.constant 23 : index
    %228 = memref.load %arg4[%c23] : memref<160xf32, #tpu.memory_space<smem>>
    %229 = vector.broadcast %228 : f32 to vector<64x128xf32>
    %230 = arith.mulf %229, %111 : vector<64x128xf32>
    %231 = arith.addf %227, %230 : vector<64x128xf32>
    %c24 = arith.constant 24 : index
    %232 = memref.load %arg4[%c24] : memref<160xf32, #tpu.memory_space<smem>>
    %233 = vector.broadcast %232 : f32 to vector<64x128xf32>
    %234 = arith.mulf %233, %112 : vector<64x128xf32>
    %235 = arith.addf %231, %234 : vector<64x128xf32>
    %c25 = arith.constant 25 : index
    %236 = memref.load %arg4[%c25] : memref<160xf32, #tpu.memory_space<smem>>
    %237 = vector.broadcast %236 : f32 to vector<64x128xf32>
    %238 = arith.mulf %237, %56 : vector<64x128xf32>
    %239 = arith.addf %235, %238 : vector<64x128xf32>
    %c26 = arith.constant 26 : index
    %240 = memref.load %arg4[%c26] : memref<160xf32, #tpu.memory_space<smem>>
    %241 = vector.broadcast %240 : f32 to vector<64x128xf32>
    %242 = arith.mulf %241, %113 : vector<64x128xf32>
    %243 = arith.addf %239, %242 : vector<64x128xf32>
    %c27 = arith.constant 27 : index
    %244 = memref.load %arg4[%c27] : memref<160xf32, #tpu.memory_space<smem>>
    %245 = vector.broadcast %244 : f32 to vector<64x128xf32>
    %246 = arith.mulf %245, %114 : vector<64x128xf32>
    %247 = arith.addf %243, %246 : vector<64x128xf32>
    %c28 = arith.constant 28 : index
    %248 = memref.load %arg4[%c28] : memref<160xf32, #tpu.memory_space<smem>>
    %249 = vector.broadcast %248 : f32 to vector<64x128xf32>
    %250 = arith.mulf %249, %115 : vector<64x128xf32>
    %251 = arith.addf %247, %250 : vector<64x128xf32>
    %c29 = arith.constant 29 : index
    %252 = memref.load %arg4[%c29] : memref<160xf32, #tpu.memory_space<smem>>
    %253 = vector.broadcast %252 : f32 to vector<64x128xf32>
    %254 = arith.mulf %253, %116 : vector<64x128xf32>
    %255 = arith.addf %251, %254 : vector<64x128xf32>
    %c30 = arith.constant 30 : index
    %256 = memref.load %arg4[%c30] : memref<160xf32, #tpu.memory_space<smem>>
    %257 = vector.broadcast %256 : f32 to vector<64x128xf32>
    %258 = arith.mulf %257, %82 : vector<64x128xf32>
    %259 = arith.addf %255, %258 : vector<64x128xf32>
    %c31 = arith.constant 31 : index
    %260 = memref.load %arg4[%c31] : memref<160xf32, #tpu.memory_space<smem>>
    %261 = vector.broadcast %260 : f32 to vector<64x128xf32>
    %262 = arith.mulf %261, %117 : vector<64x128xf32>
    %263 = arith.addf %259, %262 : vector<64x128xf32>
    %c32 = arith.constant 32 : index
    %264 = memref.load %arg4[%c32] : memref<160xf32, #tpu.memory_space<smem>>
    %265 = vector.broadcast %264 : f32 to vector<64x128xf32>
    %266 = arith.mulf %265, %118 : vector<64x128xf32>
    %267 = arith.addf %263, %266 : vector<64x128xf32>
    %c33 = arith.constant 33 : index
    %268 = memref.load %arg4[%c33] : memref<160xf32, #tpu.memory_space<smem>>
    %269 = vector.broadcast %268 : f32 to vector<64x128xf32>
    %270 = arith.mulf %269, %119 : vector<64x128xf32>
    %271 = arith.addf %267, %270 : vector<64x128xf32>
    %c34 = arith.constant 34 : index
    %272 = memref.load %arg4[%c34] : memref<160xf32, #tpu.memory_space<smem>>
    %273 = vector.broadcast %272 : f32 to vector<64x128xf32>
    %274 = arith.mulf %273, %120 : vector<64x128xf32>
    %275 = arith.addf %271, %274 : vector<64x128xf32>
    %c35 = arith.constant 35 : index
    %276 = memref.load %arg4[%c35] : memref<160xf32, #tpu.memory_space<smem>>
    %277 = vector.broadcast %276 : f32 to vector<64x128xf32>
    %278 = arith.mulf %277, %108 : vector<64x128xf32>
    %279 = arith.addf %275, %278 : vector<64x128xf32>
    %c36 = arith.constant 36 : index
    %280 = memref.load %arg4[%c36] : memref<160xf32, #tpu.memory_space<smem>>
    %281 = vector.broadcast %280 : f32 to vector<64x128xf32>
    %282 = arith.mulf %281, %121 : vector<64x128xf32>
    %283 = arith.addf %279, %282 : vector<64x128xf32>
    %c37 = arith.constant 37 : index
    %284 = memref.load %arg4[%c37] : memref<160xf32, #tpu.memory_space<smem>>
    %285 = vector.broadcast %284 : f32 to vector<64x128xf32>
    %286 = arith.mulf %285, %122 : vector<64x128xf32>
    %287 = arith.addf %283, %286 : vector<64x128xf32>
    %c38 = arith.constant 38 : index
    %288 = memref.load %arg4[%c38] : memref<160xf32, #tpu.memory_space<smem>>
    %289 = vector.broadcast %288 : f32 to vector<64x128xf32>
    %290 = arith.mulf %289, %123 : vector<64x128xf32>
    %291 = arith.addf %287, %290 : vector<64x128xf32>
    %c39 = arith.constant 39 : index
    %292 = memref.load %arg4[%c39] : memref<160xf32, #tpu.memory_space<smem>>
    %293 = vector.broadcast %292 : f32 to vector<64x128xf32>
    %294 = arith.mulf %293, %124 : vector<64x128xf32>
    %295 = arith.addf %291, %294 : vector<64x128xf32>
    %c1_56 = arith.constant 1 : index
    %296 = memref.load %arg5[%c1_56] : memref<8xf32, #tpu.memory_space<smem>>
    %297 = vector.broadcast %296 : f32 to vector<64x128xf32>
    %298 = arith.addf %295, %297 : vector<64x128xf32>
    %cst_57 = arith.constant 0.000000e+00 : f32
    %299 = vector.broadcast %cst_57 : f32 to vector<64x128xf32>
    %300 = arith.maximumf %298, %299 : vector<64x128xf32>
    %c62_i32_58 = arith.constant 62 : i32
    %301 = tpu.dynamic_rotate %300 by %c62_i32_58 dim 0 : vector<64x128xf32>, i32 -> vector<64x128xf32>
    %302 = arith.maximumf %300, %301 : vector<64x128xf32>
    %c1_59 = arith.constant 1 : index
    %c0_60 = arith.constant 0 : index
    %c0_61 = arith.constant 0 : index
    %303 = vector.load %arg6[%c1_59, %c0_60, %c0_61] : memref<8x32x64xf32, #tpu.memory_space<vmem>>, vector<1x32x64xf32>
    %304 = vector.shape_cast %303 : vector<1x32x64xf32> to vector<32x64xf32>
    %cst_62 = arith.constant dense<0.000000e+00> : vector<32x128xf32>
    %305 = tpu.matmul %304, %302, %cst_62 {dimension_numbers = #tpu.dot_dimension_numbers<[1], [0], [0], [1], [0, 0, 1, 1], [], []>} : vector<32x64xf32>, vector<64x128xf32>, vector<32x128xf32> -> vector<32x128xf32>
    %306 = arith.addf %216, %305 : vector<32x128xf32>
    %c40 = arith.constant 40 : index
    %307 = memref.load %arg4[%c40] : memref<160xf32, #tpu.memory_space<smem>>
    %308 = vector.broadcast %307 : f32 to vector<64x128xf32>
    %309 = arith.mulf %308, %30 : vector<64x128xf32>
    %c41 = arith.constant 41 : index
    %310 = memref.load %arg4[%c41] : memref<160xf32, #tpu.memory_space<smem>>
    %311 = vector.broadcast %310 : f32 to vector<64x128xf32>
    %312 = arith.mulf %311, %109 : vector<64x128xf32>
    %313 = arith.addf %309, %312 : vector<64x128xf32>
    %c42 = arith.constant 42 : index
    %314 = memref.load %arg4[%c42] : memref<160xf32, #tpu.memory_space<smem>>
    %315 = vector.broadcast %314 : f32 to vector<64x128xf32>
    %316 = arith.mulf %315, %110 : vector<64x128xf32>
    %317 = arith.addf %313, %316 : vector<64x128xf32>
    %c43 = arith.constant 43 : index
    %318 = memref.load %arg4[%c43] : memref<160xf32, #tpu.memory_space<smem>>
    %319 = vector.broadcast %318 : f32 to vector<64x128xf32>
    %320 = arith.mulf %319, %111 : vector<64x128xf32>
    %321 = arith.addf %317, %320 : vector<64x128xf32>
    %c44 = arith.constant 44 : index
    %322 = memref.load %arg4[%c44] : memref<160xf32, #tpu.memory_space<smem>>
    %323 = vector.broadcast %322 : f32 to vector<64x128xf32>
    %324 = arith.mulf %323, %112 : vector<64x128xf32>
    %325 = arith.addf %321, %324 : vector<64x128xf32>
    %c45 = arith.constant 45 : index
    %326 = memref.load %arg4[%c45] : memref<160xf32, #tpu.memory_space<smem>>
    %327 = vector.broadcast %326 : f32 to vector<64x128xf32>
    %328 = arith.mulf %327, %56 : vector<64x128xf32>
    %329 = arith.addf %325, %328 : vector<64x128xf32>
    %c46 = arith.constant 46 : index
    %330 = memref.load %arg4[%c46] : memref<160xf32, #tpu.memory_space<smem>>
    %331 = vector.broadcast %330 : f32 to vector<64x128xf32>
    %332 = arith.mulf %331, %113 : vector<64x128xf32>
    %333 = arith.addf %329, %332 : vector<64x128xf32>
    %c47 = arith.constant 47 : index
    %334 = memref.load %arg4[%c47] : memref<160xf32, #tpu.memory_space<smem>>
    %335 = vector.broadcast %334 : f32 to vector<64x128xf32>
    %336 = arith.mulf %335, %114 : vector<64x128xf32>
    %337 = arith.addf %333, %336 : vector<64x128xf32>
    %c48 = arith.constant 48 : index
    %338 = memref.load %arg4[%c48] : memref<160xf32, #tpu.memory_space<smem>>
    %339 = vector.broadcast %338 : f32 to vector<64x128xf32>
    %340 = arith.mulf %339, %115 : vector<64x128xf32>
    %341 = arith.addf %337, %340 : vector<64x128xf32>
    %c49 = arith.constant 49 : index
    %342 = memref.load %arg4[%c49] : memref<160xf32, #tpu.memory_space<smem>>
    %343 = vector.broadcast %342 : f32 to vector<64x128xf32>
    %344 = arith.mulf %343, %116 : vector<64x128xf32>
    %345 = arith.addf %341, %344 : vector<64x128xf32>
    %c50 = arith.constant 50 : index
    %346 = memref.load %arg4[%c50] : memref<160xf32, #tpu.memory_space<smem>>
    %347 = vector.broadcast %346 : f32 to vector<64x128xf32>
    %348 = arith.mulf %347, %82 : vector<64x128xf32>
    %349 = arith.addf %345, %348 : vector<64x128xf32>
    %c51 = arith.constant 51 : index
    %350 = memref.load %arg4[%c51] : memref<160xf32, #tpu.memory_space<smem>>
    %351 = vector.broadcast %350 : f32 to vector<64x128xf32>
    %352 = arith.mulf %351, %117 : vector<64x128xf32>
    %353 = arith.addf %349, %352 : vector<64x128xf32>
    %c52 = arith.constant 52 : index
    %354 = memref.load %arg4[%c52] : memref<160xf32, #tpu.memory_space<smem>>
    %355 = vector.broadcast %354 : f32 to vector<64x128xf32>
    %356 = arith.mulf %355, %118 : vector<64x128xf32>
    %357 = arith.addf %353, %356 : vector<64x128xf32>
    %c53 = arith.constant 53 : index
    %358 = memref.load %arg4[%c53] : memref<160xf32, #tpu.memory_space<smem>>
    %359 = vector.broadcast %358 : f32 to vector<64x128xf32>
    %360 = arith.mulf %359, %119 : vector<64x128xf32>
    %361 = arith.addf %357, %360 : vector<64x128xf32>
    %c54 = arith.constant 54 : index
    %362 = memref.load %arg4[%c54] : memref<160xf32, #tpu.memory_space<smem>>
    %363 = vector.broadcast %362 : f32 to vector<64x128xf32>
    %364 = arith.mulf %363, %120 : vector<64x128xf32>
    %365 = arith.addf %361, %364 : vector<64x128xf32>
    %c55 = arith.constant 55 : index
    %366 = memref.load %arg4[%c55] : memref<160xf32, #tpu.memory_space<smem>>
    %367 = vector.broadcast %366 : f32 to vector<64x128xf32>
    %368 = arith.mulf %367, %108 : vector<64x128xf32>
    %369 = arith.addf %365, %368 : vector<64x128xf32>
    %c56 = arith.constant 56 : index
    %370 = memref.load %arg4[%c56] : memref<160xf32, #tpu.memory_space<smem>>
    %371 = vector.broadcast %370 : f32 to vector<64x128xf32>
    %372 = arith.mulf %371, %121 : vector<64x128xf32>
    %373 = arith.addf %369, %372 : vector<64x128xf32>
    %c57 = arith.constant 57 : index
    %374 = memref.load %arg4[%c57] : memref<160xf32, #tpu.memory_space<smem>>
    %375 = vector.broadcast %374 : f32 to vector<64x128xf32>
    %376 = arith.mulf %375, %122 : vector<64x128xf32>
    %377 = arith.addf %373, %376 : vector<64x128xf32>
    %c58 = arith.constant 58 : index
    %378 = memref.load %arg4[%c58] : memref<160xf32, #tpu.memory_space<smem>>
    %379 = vector.broadcast %378 : f32 to vector<64x128xf32>
    %380 = arith.mulf %379, %123 : vector<64x128xf32>
    %381 = arith.addf %377, %380 : vector<64x128xf32>
    %c59 = arith.constant 59 : index
    %382 = memref.load %arg4[%c59] : memref<160xf32, #tpu.memory_space<smem>>
    %383 = vector.broadcast %382 : f32 to vector<64x128xf32>
    %384 = arith.mulf %383, %124 : vector<64x128xf32>
    %385 = arith.addf %381, %384 : vector<64x128xf32>
    %c2_63 = arith.constant 2 : index
    %386 = memref.load %arg5[%c2_63] : memref<8xf32, #tpu.memory_space<smem>>
    %387 = vector.broadcast %386 : f32 to vector<64x128xf32>
    %388 = arith.addf %385, %387 : vector<64x128xf32>
    %cst_64 = arith.constant 0.000000e+00 : f32
    %389 = vector.broadcast %cst_64 : f32 to vector<64x128xf32>
    %390 = arith.maximumf %388, %389 : vector<64x128xf32>
    %c62_i32_65 = arith.constant 62 : i32
    %391 = tpu.dynamic_rotate %390 by %c62_i32_65 dim 0 : vector<64x128xf32>, i32 -> vector<64x128xf32>
    %392 = arith.maximumf %390, %391 : vector<64x128xf32>
    %c2_66 = arith.constant 2 : index
    %c0_67 = arith.constant 0 : index
    %c0_68 = arith.constant 0 : index
    %393 = vector.load %arg6[%c2_66, %c0_67, %c0_68] : memref<8x32x64xf32, #tpu.memory_space<vmem>>, vector<1x32x64xf32>
    %394 = vector.shape_cast %393 : vector<1x32x64xf32> to vector<32x64xf32>
    %cst_69 = arith.constant dense<0.000000e+00> : vector<32x128xf32>
    %395 = tpu.matmul %394, %392, %cst_69 {dimension_numbers = #tpu.dot_dimension_numbers<[1], [0], [0], [1], [0, 0, 1, 1], [], []>} : vector<32x64xf32>, vector<64x128xf32>, vector<32x128xf32> -> vector<32x128xf32>
    %396 = arith.addf %306, %395 : vector<32x128xf32>
    %c60 = arith.constant 60 : index
    %397 = memref.load %arg4[%c60] : memref<160xf32, #tpu.memory_space<smem>>
    %398 = vector.broadcast %397 : f32 to vector<64x128xf32>
    %399 = arith.mulf %398, %30 : vector<64x128xf32>
    %c61 = arith.constant 61 : index
    %400 = memref.load %arg4[%c61] : memref<160xf32, #tpu.memory_space<smem>>
    %401 = vector.broadcast %400 : f32 to vector<64x128xf32>
    %402 = arith.mulf %401, %109 : vector<64x128xf32>
    %403 = arith.addf %399, %402 : vector<64x128xf32>
    %c62 = arith.constant 62 : index
    %404 = memref.load %arg4[%c62] : memref<160xf32, #tpu.memory_space<smem>>
    %405 = vector.broadcast %404 : f32 to vector<64x128xf32>
    %406 = arith.mulf %405, %110 : vector<64x128xf32>
    %407 = arith.addf %403, %406 : vector<64x128xf32>
    %c63 = arith.constant 63 : index
    %408 = memref.load %arg4[%c63] : memref<160xf32, #tpu.memory_space<smem>>
    %409 = vector.broadcast %408 : f32 to vector<64x128xf32>
    %410 = arith.mulf %409, %111 : vector<64x128xf32>
    %411 = arith.addf %407, %410 : vector<64x128xf32>
    %c64 = arith.constant 64 : index
    %412 = memref.load %arg4[%c64] : memref<160xf32, #tpu.memory_space<smem>>
    %413 = vector.broadcast %412 : f32 to vector<64x128xf32>
    %414 = arith.mulf %413, %112 : vector<64x128xf32>
    %415 = arith.addf %411, %414 : vector<64x128xf32>
    %c65 = arith.constant 65 : index
    %416 = memref.load %arg4[%c65] : memref<160xf32, #tpu.memory_space<smem>>
    %417 = vector.broadcast %416 : f32 to vector<64x128xf32>
    %418 = arith.mulf %417, %56 : vector<64x128xf32>
    %419 = arith.addf %415, %418 : vector<64x128xf32>
    %c66 = arith.constant 66 : index
    %420 = memref.load %arg4[%c66] : memref<160xf32, #tpu.memory_space<smem>>
    %421 = vector.broadcast %420 : f32 to vector<64x128xf32>
    %422 = arith.mulf %421, %113 : vector<64x128xf32>
    %423 = arith.addf %419, %422 : vector<64x128xf32>
    %c67 = arith.constant 67 : index
    %424 = memref.load %arg4[%c67] : memref<160xf32, #tpu.memory_space<smem>>
    %425 = vector.broadcast %424 : f32 to vector<64x128xf32>
    %426 = arith.mulf %425, %114 : vector<64x128xf32>
    %427 = arith.addf %423, %426 : vector<64x128xf32>
    %c68 = arith.constant 68 : index
    %428 = memref.load %arg4[%c68] : memref<160xf32, #tpu.memory_space<smem>>
    %429 = vector.broadcast %428 : f32 to vector<64x128xf32>
    %430 = arith.mulf %429, %115 : vector<64x128xf32>
    %431 = arith.addf %427, %430 : vector<64x128xf32>
    %c69 = arith.constant 69 : index
    %432 = memref.load %arg4[%c69] : memref<160xf32, #tpu.memory_space<smem>>
    %433 = vector.broadcast %432 : f32 to vector<64x128xf32>
    %434 = arith.mulf %433, %116 : vector<64x128xf32>
    %435 = arith.addf %431, %434 : vector<64x128xf32>
    %c70 = arith.constant 70 : index
    %436 = memref.load %arg4[%c70] : memref<160xf32, #tpu.memory_space<smem>>
    %437 = vector.broadcast %436 : f32 to vector<64x128xf32>
    %438 = arith.mulf %437, %82 : vector<64x128xf32>
    %439 = arith.addf %435, %438 : vector<64x128xf32>
    %c71 = arith.constant 71 : index
    %440 = memref.load %arg4[%c71] : memref<160xf32, #tpu.memory_space<smem>>
    %441 = vector.broadcast %440 : f32 to vector<64x128xf32>
    %442 = arith.mulf %441, %117 : vector<64x128xf32>
    %443 = arith.addf %439, %442 : vector<64x128xf32>
    %c72 = arith.constant 72 : index
    %444 = memref.load %arg4[%c72] : memref<160xf32, #tpu.memory_space<smem>>
    %445 = vector.broadcast %444 : f32 to vector<64x128xf32>
    %446 = arith.mulf %445, %118 : vector<64x128xf32>
    %447 = arith.addf %443, %446 : vector<64x128xf32>
    %c73 = arith.constant 73 : index
    %448 = memref.load %arg4[%c73] : memref<160xf32, #tpu.memory_space<smem>>
    %449 = vector.broadcast %448 : f32 to vector<64x128xf32>
    %450 = arith.mulf %449, %119 : vector<64x128xf32>
    %451 = arith.addf %447, %450 : vector<64x128xf32>
    %c74 = arith.constant 74 : index
    %452 = memref.load %arg4[%c74] : memref<160xf32, #tpu.memory_space<smem>>
    %453 = vector.broadcast %452 : f32 to vector<64x128xf32>
    %454 = arith.mulf %453, %120 : vector<64x128xf32>
    %455 = arith.addf %451, %454 : vector<64x128xf32>
    %c75 = arith.constant 75 : index
    %456 = memref.load %arg4[%c75] : memref<160xf32, #tpu.memory_space<smem>>
    %457 = vector.broadcast %456 : f32 to vector<64x128xf32>
    %458 = arith.mulf %457, %108 : vector<64x128xf32>
    %459 = arith.addf %455, %458 : vector<64x128xf32>
    %c76 = arith.constant 76 : index
    %460 = memref.load %arg4[%c76] : memref<160xf32, #tpu.memory_space<smem>>
    %461 = vector.broadcast %460 : f32 to vector<64x128xf32>
    %462 = arith.mulf %461, %121 : vector<64x128xf32>
    %463 = arith.addf %459, %462 : vector<64x128xf32>
    %c77 = arith.constant 77 : index
    %464 = memref.load %arg4[%c77] : memref<160xf32, #tpu.memory_space<smem>>
    %465 = vector.broadcast %464 : f32 to vector<64x128xf32>
    %466 = arith.mulf %465, %122 : vector<64x128xf32>
    %467 = arith.addf %463, %466 : vector<64x128xf32>
    %c78 = arith.constant 78 : index
    %468 = memref.load %arg4[%c78] : memref<160xf32, #tpu.memory_space<smem>>
    %469 = vector.broadcast %468 : f32 to vector<64x128xf32>
    %470 = arith.mulf %469, %123 : vector<64x128xf32>
    %471 = arith.addf %467, %470 : vector<64x128xf32>
    %c79 = arith.constant 79 : index
    %472 = memref.load %arg4[%c79] : memref<160xf32, #tpu.memory_space<smem>>
    %473 = vector.broadcast %472 : f32 to vector<64x128xf32>
    %474 = arith.mulf %473, %124 : vector<64x128xf32>
    %475 = arith.addf %471, %474 : vector<64x128xf32>
    %c3_70 = arith.constant 3 : index
    %476 = memref.load %arg5[%c3_70] : memref<8xf32, #tpu.memory_space<smem>>
    %477 = vector.broadcast %476 : f32 to vector<64x128xf32>
    %478 = arith.addf %475, %477 : vector<64x128xf32>
    %cst_71 = arith.constant 0.000000e+00 : f32
    %479 = vector.broadcast %cst_71 : f32 to vector<64x128xf32>
    %480 = arith.maximumf %478, %479 : vector<64x128xf32>
    %c62_i32_72 = arith.constant 62 : i32
    %481 = tpu.dynamic_rotate %480 by %c62_i32_72 dim 0 : vector<64x128xf32>, i32 -> vector<64x128xf32>
    %482 = arith.maximumf %480, %481 : vector<64x128xf32>
    %c3_73 = arith.constant 3 : index
    %c0_74 = arith.constant 0 : index
    %c0_75 = arith.constant 0 : index
    %483 = vector.load %arg6[%c3_73, %c0_74, %c0_75] : memref<8x32x64xf32, #tpu.memory_space<vmem>>, vector<1x32x64xf32>
    %484 = vector.shape_cast %483 : vector<1x32x64xf32> to vector<32x64xf32>
    %cst_76 = arith.constant dense<0.000000e+00> : vector<32x128xf32>
    %485 = tpu.matmul %484, %482, %cst_76 {dimension_numbers = #tpu.dot_dimension_numbers<[1], [0], [0], [1], [0, 0, 1, 1], [], []>} : vector<32x64xf32>, vector<64x128xf32>, vector<32x128xf32> -> vector<32x128xf32>
    %486 = arith.addf %396, %485 : vector<32x128xf32>
    %c80 = arith.constant 80 : index
    %487 = memref.load %arg4[%c80] : memref<160xf32, #tpu.memory_space<smem>>
    %488 = vector.broadcast %487 : f32 to vector<64x128xf32>
    %489 = arith.mulf %488, %30 : vector<64x128xf32>
    %c81 = arith.constant 81 : index
    %490 = memref.load %arg4[%c81] : memref<160xf32, #tpu.memory_space<smem>>
    %491 = vector.broadcast %490 : f32 to vector<64x128xf32>
    %492 = arith.mulf %491, %109 : vector<64x128xf32>
    %493 = arith.addf %489, %492 : vector<64x128xf32>
    %c82 = arith.constant 82 : index
    %494 = memref.load %arg4[%c82] : memref<160xf32, #tpu.memory_space<smem>>
    %495 = vector.broadcast %494 : f32 to vector<64x128xf32>
    %496 = arith.mulf %495, %110 : vector<64x128xf32>
    %497 = arith.addf %493, %496 : vector<64x128xf32>
    %c83 = arith.constant 83 : index
    %498 = memref.load %arg4[%c83] : memref<160xf32, #tpu.memory_space<smem>>
    %499 = vector.broadcast %498 : f32 to vector<64x128xf32>
    %500 = arith.mulf %499, %111 : vector<64x128xf32>
    %501 = arith.addf %497, %500 : vector<64x128xf32>
    %c84 = arith.constant 84 : index
    %502 = memref.load %arg4[%c84] : memref<160xf32, #tpu.memory_space<smem>>
    %503 = vector.broadcast %502 : f32 to vector<64x128xf32>
    %504 = arith.mulf %503, %112 : vector<64x128xf32>
    %505 = arith.addf %501, %504 : vector<64x128xf32>
    %c85 = arith.constant 85 : index
    %506 = memref.load %arg4[%c85] : memref<160xf32, #tpu.memory_space<smem>>
    %507 = vector.broadcast %506 : f32 to vector<64x128xf32>
    %508 = arith.mulf %507, %56 : vector<64x128xf32>
    %509 = arith.addf %505, %508 : vector<64x128xf32>
    %c86 = arith.constant 86 : index
    %510 = memref.load %arg4[%c86] : memref<160xf32, #tpu.memory_space<smem>>
    %511 = vector.broadcast %510 : f32 to vector<64x128xf32>
    %512 = arith.mulf %511, %113 : vector<64x128xf32>
    %513 = arith.addf %509, %512 : vector<64x128xf32>
    %c87 = arith.constant 87 : index
    %514 = memref.load %arg4[%c87] : memref<160xf32, #tpu.memory_space<smem>>
    %515 = vector.broadcast %514 : f32 to vector<64x128xf32>
    %516 = arith.mulf %515, %114 : vector<64x128xf32>
    %517 = arith.addf %513, %516 : vector<64x128xf32>
    %c88 = arith.constant 88 : index
    %518 = memref.load %arg4[%c88] : memref<160xf32, #tpu.memory_space<smem>>
    %519 = vector.broadcast %518 : f32 to vector<64x128xf32>
    %520 = arith.mulf %519, %115 : vector<64x128xf32>
    %521 = arith.addf %517, %520 : vector<64x128xf32>
    %c89 = arith.constant 89 : index
    %522 = memref.load %arg4[%c89] : memref<160xf32, #tpu.memory_space<smem>>
    %523 = vector.broadcast %522 : f32 to vector<64x128xf32>
    %524 = arith.mulf %523, %116 : vector<64x128xf32>
    %525 = arith.addf %521, %524 : vector<64x128xf32>
    %c90 = arith.constant 90 : index
    %526 = memref.load %arg4[%c90] : memref<160xf32, #tpu.memory_space<smem>>
    %527 = vector.broadcast %526 : f32 to vector<64x128xf32>
    %528 = arith.mulf %527, %82 : vector<64x128xf32>
    %529 = arith.addf %525, %528 : vector<64x128xf32>
    %c91 = arith.constant 91 : index
    %530 = memref.load %arg4[%c91] : memref<160xf32, #tpu.memory_space<smem>>
    %531 = vector.broadcast %530 : f32 to vector<64x128xf32>
    %532 = arith.mulf %531, %117 : vector<64x128xf32>
    %533 = arith.addf %529, %532 : vector<64x128xf32>
    %c92 = arith.constant 92 : index
    %534 = memref.load %arg4[%c92] : memref<160xf32, #tpu.memory_space<smem>>
    %535 = vector.broadcast %534 : f32 to vector<64x128xf32>
    %536 = arith.mulf %535, %118 : vector<64x128xf32>
    %537 = arith.addf %533, %536 : vector<64x128xf32>
    %c93 = arith.constant 93 : index
    %538 = memref.load %arg4[%c93] : memref<160xf32, #tpu.memory_space<smem>>
    %539 = vector.broadcast %538 : f32 to vector<64x128xf32>
    %540 = arith.mulf %539, %119 : vector<64x128xf32>
    %541 = arith.addf %537, %540 : vector<64x128xf32>
    %c94 = arith.constant 94 : index
    %542 = memref.load %arg4[%c94] : memref<160xf32, #tpu.memory_space<smem>>
    %543 = vector.broadcast %542 : f32 to vector<64x128xf32>
    %544 = arith.mulf %543, %120 : vector<64x128xf32>
    %545 = arith.addf %541, %544 : vector<64x128xf32>
    %c95 = arith.constant 95 : index
    %546 = memref.load %arg4[%c95] : memref<160xf32, #tpu.memory_space<smem>>
    %547 = vector.broadcast %546 : f32 to vector<64x128xf32>
    %548 = arith.mulf %547, %108 : vector<64x128xf32>
    %549 = arith.addf %545, %548 : vector<64x128xf32>
    %c96 = arith.constant 96 : index
    %550 = memref.load %arg4[%c96] : memref<160xf32, #tpu.memory_space<smem>>
    %551 = vector.broadcast %550 : f32 to vector<64x128xf32>
    %552 = arith.mulf %551, %121 : vector<64x128xf32>
    %553 = arith.addf %549, %552 : vector<64x128xf32>
    %c97 = arith.constant 97 : index
    %554 = memref.load %arg4[%c97] : memref<160xf32, #tpu.memory_space<smem>>
    %555 = vector.broadcast %554 : f32 to vector<64x128xf32>
    %556 = arith.mulf %555, %122 : vector<64x128xf32>
    %557 = arith.addf %553, %556 : vector<64x128xf32>
    %c98 = arith.constant 98 : index
    %558 = memref.load %arg4[%c98] : memref<160xf32, #tpu.memory_space<smem>>
    %559 = vector.broadcast %558 : f32 to vector<64x128xf32>
    %560 = arith.mulf %559, %123 : vector<64x128xf32>
    %561 = arith.addf %557, %560 : vector<64x128xf32>
    %c99 = arith.constant 99 : index
    %562 = memref.load %arg4[%c99] : memref<160xf32, #tpu.memory_space<smem>>
    %563 = vector.broadcast %562 : f32 to vector<64x128xf32>
    %564 = arith.mulf %563, %124 : vector<64x128xf32>
    %565 = arith.addf %561, %564 : vector<64x128xf32>
    %c4_77 = arith.constant 4 : index
    %566 = memref.load %arg5[%c4_77] : memref<8xf32, #tpu.memory_space<smem>>
    %567 = vector.broadcast %566 : f32 to vector<64x128xf32>
    %568 = arith.addf %565, %567 : vector<64x128xf32>
    %cst_78 = arith.constant 0.000000e+00 : f32
    %569 = vector.broadcast %cst_78 : f32 to vector<64x128xf32>
    %570 = arith.maximumf %568, %569 : vector<64x128xf32>
    %c62_i32_79 = arith.constant 62 : i32
    %571 = tpu.dynamic_rotate %570 by %c62_i32_79 dim 0 : vector<64x128xf32>, i32 -> vector<64x128xf32>
    %572 = arith.maximumf %570, %571 : vector<64x128xf32>
    %c4_80 = arith.constant 4 : index
    %c0_81 = arith.constant 0 : index
    %c0_82 = arith.constant 0 : index
    %573 = vector.load %arg6[%c4_80, %c0_81, %c0_82] : memref<8x32x64xf32, #tpu.memory_space<vmem>>, vector<1x32x64xf32>
    %574 = vector.shape_cast %573 : vector<1x32x64xf32> to vector<32x64xf32>
    %cst_83 = arith.constant dense<0.000000e+00> : vector<32x128xf32>
    %575 = tpu.matmul %574, %572, %cst_83 {dimension_numbers = #tpu.dot_dimension_numbers<[1], [0], [0], [1], [0, 0, 1, 1], [], []>} : vector<32x64xf32>, vector<64x128xf32>, vector<32x128xf32> -> vector<32x128xf32>
    %576 = arith.addf %486, %575 : vector<32x128xf32>
    %c100 = arith.constant 100 : index
    %577 = memref.load %arg4[%c100] : memref<160xf32, #tpu.memory_space<smem>>
    %578 = vector.broadcast %577 : f32 to vector<64x128xf32>
    %579 = arith.mulf %578, %30 : vector<64x128xf32>
    %c101 = arith.constant 101 : index
    %580 = memref.load %arg4[%c101] : memref<160xf32, #tpu.memory_space<smem>>
    %581 = vector.broadcast %580 : f32 to vector<64x128xf32>
    %582 = arith.mulf %581, %109 : vector<64x128xf32>
    %583 = arith.addf %579, %582 : vector<64x128xf32>
    %c102 = arith.constant 102 : index
    %584 = memref.load %arg4[%c102] : memref<160xf32, #tpu.memory_space<smem>>
    %585 = vector.broadcast %584 : f32 to vector<64x128xf32>
    %586 = arith.mulf %585, %110 : vector<64x128xf32>
    %587 = arith.addf %583, %586 : vector<64x128xf32>
    %c103 = arith.constant 103 : index
    %588 = memref.load %arg4[%c103] : memref<160xf32, #tpu.memory_space<smem>>
    %589 = vector.broadcast %588 : f32 to vector<64x128xf32>
    %590 = arith.mulf %589, %111 : vector<64x128xf32>
    %591 = arith.addf %587, %590 : vector<64x128xf32>
    %c104 = arith.constant 104 : index
    %592 = memref.load %arg4[%c104] : memref<160xf32, #tpu.memory_space<smem>>
    %593 = vector.broadcast %592 : f32 to vector<64x128xf32>
    %594 = arith.mulf %593, %112 : vector<64x128xf32>
    %595 = arith.addf %591, %594 : vector<64x128xf32>
    %c105 = arith.constant 105 : index
    %596 = memref.load %arg4[%c105] : memref<160xf32, #tpu.memory_space<smem>>
    %597 = vector.broadcast %596 : f32 to vector<64x128xf32>
    %598 = arith.mulf %597, %56 : vector<64x128xf32>
    %599 = arith.addf %595, %598 : vector<64x128xf32>
    %c106 = arith.constant 106 : index
    %600 = memref.load %arg4[%c106] : memref<160xf32, #tpu.memory_space<smem>>
    %601 = vector.broadcast %600 : f32 to vector<64x128xf32>
    %602 = arith.mulf %601, %113 : vector<64x128xf32>
    %603 = arith.addf %599, %602 : vector<64x128xf32>
    %c107 = arith.constant 107 : index
    %604 = memref.load %arg4[%c107] : memref<160xf32, #tpu.memory_space<smem>>
    %605 = vector.broadcast %604 : f32 to vector<64x128xf32>
    %606 = arith.mulf %605, %114 : vector<64x128xf32>
    %607 = arith.addf %603, %606 : vector<64x128xf32>
    %c108 = arith.constant 108 : index
    %608 = memref.load %arg4[%c108] : memref<160xf32, #tpu.memory_space<smem>>
    %609 = vector.broadcast %608 : f32 to vector<64x128xf32>
    %610 = arith.mulf %609, %115 : vector<64x128xf32>
    %611 = arith.addf %607, %610 : vector<64x128xf32>
    %c109 = arith.constant 109 : index
    %612 = memref.load %arg4[%c109] : memref<160xf32, #tpu.memory_space<smem>>
    %613 = vector.broadcast %612 : f32 to vector<64x128xf32>
    %614 = arith.mulf %613, %116 : vector<64x128xf32>
    %615 = arith.addf %611, %614 : vector<64x128xf32>
    %c110 = arith.constant 110 : index
    %616 = memref.load %arg4[%c110] : memref<160xf32, #tpu.memory_space<smem>>
    %617 = vector.broadcast %616 : f32 to vector<64x128xf32>
    %618 = arith.mulf %617, %82 : vector<64x128xf32>
    %619 = arith.addf %615, %618 : vector<64x128xf32>
    %c111 = arith.constant 111 : index
    %620 = memref.load %arg4[%c111] : memref<160xf32, #tpu.memory_space<smem>>
    %621 = vector.broadcast %620 : f32 to vector<64x128xf32>
    %622 = arith.mulf %621, %117 : vector<64x128xf32>
    %623 = arith.addf %619, %622 : vector<64x128xf32>
    %c112 = arith.constant 112 : index
    %624 = memref.load %arg4[%c112] : memref<160xf32, #tpu.memory_space<smem>>
    %625 = vector.broadcast %624 : f32 to vector<64x128xf32>
    %626 = arith.mulf %625, %118 : vector<64x128xf32>
    %627 = arith.addf %623, %626 : vector<64x128xf32>
    %c113 = arith.constant 113 : index
    %628 = memref.load %arg4[%c113] : memref<160xf32, #tpu.memory_space<smem>>
    %629 = vector.broadcast %628 : f32 to vector<64x128xf32>
    %630 = arith.mulf %629, %119 : vector<64x128xf32>
    %631 = arith.addf %627, %630 : vector<64x128xf32>
    %c114 = arith.constant 114 : index
    %632 = memref.load %arg4[%c114] : memref<160xf32, #tpu.memory_space<smem>>
    %633 = vector.broadcast %632 : f32 to vector<64x128xf32>
    %634 = arith.mulf %633, %120 : vector<64x128xf32>
    %635 = arith.addf %631, %634 : vector<64x128xf32>
    %c115 = arith.constant 115 : index
    %636 = memref.load %arg4[%c115] : memref<160xf32, #tpu.memory_space<smem>>
    %637 = vector.broadcast %636 : f32 to vector<64x128xf32>
    %638 = arith.mulf %637, %108 : vector<64x128xf32>
    %639 = arith.addf %635, %638 : vector<64x128xf32>
    %c116 = arith.constant 116 : index
    %640 = memref.load %arg4[%c116] : memref<160xf32, #tpu.memory_space<smem>>
    %641 = vector.broadcast %640 : f32 to vector<64x128xf32>
    %642 = arith.mulf %641, %121 : vector<64x128xf32>
    %643 = arith.addf %639, %642 : vector<64x128xf32>
    %c117 = arith.constant 117 : index
    %644 = memref.load %arg4[%c117] : memref<160xf32, #tpu.memory_space<smem>>
    %645 = vector.broadcast %644 : f32 to vector<64x128xf32>
    %646 = arith.mulf %645, %122 : vector<64x128xf32>
    %647 = arith.addf %643, %646 : vector<64x128xf32>
    %c118 = arith.constant 118 : index
    %648 = memref.load %arg4[%c118] : memref<160xf32, #tpu.memory_space<smem>>
    %649 = vector.broadcast %648 : f32 to vector<64x128xf32>
    %650 = arith.mulf %649, %123 : vector<64x128xf32>
    %651 = arith.addf %647, %650 : vector<64x128xf32>
    %c119 = arith.constant 119 : index
    %652 = memref.load %arg4[%c119] : memref<160xf32, #tpu.memory_space<smem>>
    %653 = vector.broadcast %652 : f32 to vector<64x128xf32>
    %654 = arith.mulf %653, %124 : vector<64x128xf32>
    %655 = arith.addf %651, %654 : vector<64x128xf32>
    %c5_84 = arith.constant 5 : index
    %656 = memref.load %arg5[%c5_84] : memref<8xf32, #tpu.memory_space<smem>>
    %657 = vector.broadcast %656 : f32 to vector<64x128xf32>
    %658 = arith.addf %655, %657 : vector<64x128xf32>
    %cst_85 = arith.constant 0.000000e+00 : f32
    %659 = vector.broadcast %cst_85 : f32 to vector<64x128xf32>
    %660 = arith.maximumf %658, %659 : vector<64x128xf32>
    %c62_i32_86 = arith.constant 62 : i32
    %661 = tpu.dynamic_rotate %660 by %c62_i32_86 dim 0 : vector<64x128xf32>, i32 -> vector<64x128xf32>
    %662 = arith.maximumf %660, %661 : vector<64x128xf32>
    %c5_87 = arith.constant 5 : index
    %c0_88 = arith.constant 0 : index
    %c0_89 = arith.constant 0 : index
    %663 = vector.load %arg6[%c5_87, %c0_88, %c0_89] : memref<8x32x64xf32, #tpu.memory_space<vmem>>, vector<1x32x64xf32>
    %664 = vector.shape_cast %663 : vector<1x32x64xf32> to vector<32x64xf32>
    %cst_90 = arith.constant dense<0.000000e+00> : vector<32x128xf32>
    %665 = tpu.matmul %664, %662, %cst_90 {dimension_numbers = #tpu.dot_dimension_numbers<[1], [0], [0], [1], [0, 0, 1, 1], [], []>} : vector<32x64xf32>, vector<64x128xf32>, vector<32x128xf32> -> vector<32x128xf32>
    %666 = arith.addf %576, %665 : vector<32x128xf32>
    %c120 = arith.constant 120 : index
    %667 = memref.load %arg4[%c120] : memref<160xf32, #tpu.memory_space<smem>>
    %668 = vector.broadcast %667 : f32 to vector<64x128xf32>
    %669 = arith.mulf %668, %30 : vector<64x128xf32>
    %c121 = arith.constant 121 : index
    %670 = memref.load %arg4[%c121] : memref<160xf32, #tpu.memory_space<smem>>
    %671 = vector.broadcast %670 : f32 to vector<64x128xf32>
    %672 = arith.mulf %671, %109 : vector<64x128xf32>
    %673 = arith.addf %669, %672 : vector<64x128xf32>
    %c122 = arith.constant 122 : index
    %674 = memref.load %arg4[%c122] : memref<160xf32, #tpu.memory_space<smem>>
    %675 = vector.broadcast %674 : f32 to vector<64x128xf32>
    %676 = arith.mulf %675, %110 : vector<64x128xf32>
    %677 = arith.addf %673, %676 : vector<64x128xf32>
    %c123 = arith.constant 123 : index
    %678 = memref.load %arg4[%c123] : memref<160xf32, #tpu.memory_space<smem>>
    %679 = vector.broadcast %678 : f32 to vector<64x128xf32>
    %680 = arith.mulf %679, %111 : vector<64x128xf32>
    %681 = arith.addf %677, %680 : vector<64x128xf32>
    %c124 = arith.constant 124 : index
    %682 = memref.load %arg4[%c124] : memref<160xf32, #tpu.memory_space<smem>>
    %683 = vector.broadcast %682 : f32 to vector<64x128xf32>
    %684 = arith.mulf %683, %112 : vector<64x128xf32>
    %685 = arith.addf %681, %684 : vector<64x128xf32>
    %c125 = arith.constant 125 : index
    %686 = memref.load %arg4[%c125] : memref<160xf32, #tpu.memory_space<smem>>
    %687 = vector.broadcast %686 : f32 to vector<64x128xf32>
    %688 = arith.mulf %687, %56 : vector<64x128xf32>
    %689 = arith.addf %685, %688 : vector<64x128xf32>
    %c126 = arith.constant 126 : index
    %690 = memref.load %arg4[%c126] : memref<160xf32, #tpu.memory_space<smem>>
    %691 = vector.broadcast %690 : f32 to vector<64x128xf32>
    %692 = arith.mulf %691, %113 : vector<64x128xf32>
    %693 = arith.addf %689, %692 : vector<64x128xf32>
    %c127 = arith.constant 127 : index
    %694 = memref.load %arg4[%c127] : memref<160xf32, #tpu.memory_space<smem>>
    %695 = vector.broadcast %694 : f32 to vector<64x128xf32>
    %696 = arith.mulf %695, %114 : vector<64x128xf32>
    %697 = arith.addf %693, %696 : vector<64x128xf32>
    %c128 = arith.constant 128 : index
    %698 = memref.load %arg4[%c128] : memref<160xf32, #tpu.memory_space<smem>>
    %699 = vector.broadcast %698 : f32 to vector<64x128xf32>
    %700 = arith.mulf %699, %115 : vector<64x128xf32>
    %701 = arith.addf %697, %700 : vector<64x128xf32>
    %c129 = arith.constant 129 : index
    %702 = memref.load %arg4[%c129] : memref<160xf32, #tpu.memory_space<smem>>
    %703 = vector.broadcast %702 : f32 to vector<64x128xf32>
    %704 = arith.mulf %703, %116 : vector<64x128xf32>
    %705 = arith.addf %701, %704 : vector<64x128xf32>
    %c130 = arith.constant 130 : index
    %706 = memref.load %arg4[%c130] : memref<160xf32, #tpu.memory_space<smem>>
    %707 = vector.broadcast %706 : f32 to vector<64x128xf32>
    %708 = arith.mulf %707, %82 : vector<64x128xf32>
    %709 = arith.addf %705, %708 : vector<64x128xf32>
    %c131 = arith.constant 131 : index
    %710 = memref.load %arg4[%c131] : memref<160xf32, #tpu.memory_space<smem>>
    %711 = vector.broadcast %710 : f32 to vector<64x128xf32>
    %712 = arith.mulf %711, %117 : vector<64x128xf32>
    %713 = arith.addf %709, %712 : vector<64x128xf32>
    %c132 = arith.constant 132 : index
    %714 = memref.load %arg4[%c132] : memref<160xf32, #tpu.memory_space<smem>>
    %715 = vector.broadcast %714 : f32 to vector<64x128xf32>
    %716 = arith.mulf %715, %118 : vector<64x128xf32>
    %717 = arith.addf %713, %716 : vector<64x128xf32>
    %c133 = arith.constant 133 : index
    %718 = memref.load %arg4[%c133] : memref<160xf32, #tpu.memory_space<smem>>
    %719 = vector.broadcast %718 : f32 to vector<64x128xf32>
    %720 = arith.mulf %719, %119 : vector<64x128xf32>
    %721 = arith.addf %717, %720 : vector<64x128xf32>
    %c134 = arith.constant 134 : index
    %722 = memref.load %arg4[%c134] : memref<160xf32, #tpu.memory_space<smem>>
    %723 = vector.broadcast %722 : f32 to vector<64x128xf32>
    %724 = arith.mulf %723, %120 : vector<64x128xf32>
    %725 = arith.addf %721, %724 : vector<64x128xf32>
    %c135 = arith.constant 135 : index
    %726 = memref.load %arg4[%c135] : memref<160xf32, #tpu.memory_space<smem>>
    %727 = vector.broadcast %726 : f32 to vector<64x128xf32>
    %728 = arith.mulf %727, %108 : vector<64x128xf32>
    %729 = arith.addf %725, %728 : vector<64x128xf32>
    %c136 = arith.constant 136 : index
    %730 = memref.load %arg4[%c136] : memref<160xf32, #tpu.memory_space<smem>>
    %731 = vector.broadcast %730 : f32 to vector<64x128xf32>
    %732 = arith.mulf %731, %121 : vector<64x128xf32>
    %733 = arith.addf %729, %732 : vector<64x128xf32>
    %c137 = arith.constant 137 : index
    %734 = memref.load %arg4[%c137] : memref<160xf32, #tpu.memory_space<smem>>
    %735 = vector.broadcast %734 : f32 to vector<64x128xf32>
    %736 = arith.mulf %735, %122 : vector<64x128xf32>
    %737 = arith.addf %733, %736 : vector<64x128xf32>
    %c138 = arith.constant 138 : index
    %738 = memref.load %arg4[%c138] : memref<160xf32, #tpu.memory_space<smem>>
    %739 = vector.broadcast %738 : f32 to vector<64x128xf32>
    %740 = arith.mulf %739, %123 : vector<64x128xf32>
    %741 = arith.addf %737, %740 : vector<64x128xf32>
    %c139 = arith.constant 139 : index
    %742 = memref.load %arg4[%c139] : memref<160xf32, #tpu.memory_space<smem>>
    %743 = vector.broadcast %742 : f32 to vector<64x128xf32>
    %744 = arith.mulf %743, %124 : vector<64x128xf32>
    %745 = arith.addf %741, %744 : vector<64x128xf32>
    %c6_91 = arith.constant 6 : index
    %746 = memref.load %arg5[%c6_91] : memref<8xf32, #tpu.memory_space<smem>>
    %747 = vector.broadcast %746 : f32 to vector<64x128xf32>
    %748 = arith.addf %745, %747 : vector<64x128xf32>
    %cst_92 = arith.constant 0.000000e+00 : f32
    %749 = vector.broadcast %cst_92 : f32 to vector<64x128xf32>
    %750 = arith.maximumf %748, %749 : vector<64x128xf32>
    %c62_i32_93 = arith.constant 62 : i32
    %751 = tpu.dynamic_rotate %750 by %c62_i32_93 dim 0 : vector<64x128xf32>, i32 -> vector<64x128xf32>
    %752 = arith.maximumf %750, %751 : vector<64x128xf32>
    %c6_94 = arith.constant 6 : index
    %c0_95 = arith.constant 0 : index
    %c0_96 = arith.constant 0 : index
    %753 = vector.load %arg6[%c6_94, %c0_95, %c0_96] : memref<8x32x64xf32, #tpu.memory_space<vmem>>, vector<1x32x64xf32>
    %754 = vector.shape_cast %753 : vector<1x32x64xf32> to vector<32x64xf32>
    %cst_97 = arith.constant dense<0.000000e+00> : vector<32x128xf32>
    %755 = tpu.matmul %754, %752, %cst_97 {dimension_numbers = #tpu.dot_dimension_numbers<[1], [0], [0], [1], [0, 0, 1, 1], [], []>} : vector<32x64xf32>, vector<64x128xf32>, vector<32x128xf32> -> vector<32x128xf32>
    %756 = arith.addf %666, %755 : vector<32x128xf32>
    %c140 = arith.constant 140 : index
    %757 = memref.load %arg4[%c140] : memref<160xf32, #tpu.memory_space<smem>>
    %758 = vector.broadcast %757 : f32 to vector<64x128xf32>
    %759 = arith.mulf %758, %30 : vector<64x128xf32>
    %c141 = arith.constant 141 : index
    %760 = memref.load %arg4[%c141] : memref<160xf32, #tpu.memory_space<smem>>
    %761 = vector.broadcast %760 : f32 to vector<64x128xf32>
    %762 = arith.mulf %761, %109 : vector<64x128xf32>
    %763 = arith.addf %759, %762 : vector<64x128xf32>
    %c142 = arith.constant 142 : index
    %764 = memref.load %arg4[%c142] : memref<160xf32, #tpu.memory_space<smem>>
    %765 = vector.broadcast %764 : f32 to vector<64x128xf32>
    %766 = arith.mulf %765, %110 : vector<64x128xf32>
    %767 = arith.addf %763, %766 : vector<64x128xf32>
    %c143 = arith.constant 143 : index
    %768 = memref.load %arg4[%c143] : memref<160xf32, #tpu.memory_space<smem>>
    %769 = vector.broadcast %768 : f32 to vector<64x128xf32>
    %770 = arith.mulf %769, %111 : vector<64x128xf32>
    %771 = arith.addf %767, %770 : vector<64x128xf32>
    %c144 = arith.constant 144 : index
    %772 = memref.load %arg4[%c144] : memref<160xf32, #tpu.memory_space<smem>>
    %773 = vector.broadcast %772 : f32 to vector<64x128xf32>
    %774 = arith.mulf %773, %112 : vector<64x128xf32>
    %775 = arith.addf %771, %774 : vector<64x128xf32>
    %c145 = arith.constant 145 : index
    %776 = memref.load %arg4[%c145] : memref<160xf32, #tpu.memory_space<smem>>
    %777 = vector.broadcast %776 : f32 to vector<64x128xf32>
    %778 = arith.mulf %777, %56 : vector<64x128xf32>
    %779 = arith.addf %775, %778 : vector<64x128xf32>
    %c146 = arith.constant 146 : index
    %780 = memref.load %arg4[%c146] : memref<160xf32, #tpu.memory_space<smem>>
    %781 = vector.broadcast %780 : f32 to vector<64x128xf32>
    %782 = arith.mulf %781, %113 : vector<64x128xf32>
    %783 = arith.addf %779, %782 : vector<64x128xf32>
    %c147 = arith.constant 147 : index
    %784 = memref.load %arg4[%c147] : memref<160xf32, #tpu.memory_space<smem>>
    %785 = vector.broadcast %784 : f32 to vector<64x128xf32>
    %786 = arith.mulf %785, %114 : vector<64x128xf32>
    %787 = arith.addf %783, %786 : vector<64x128xf32>
    %c148 = arith.constant 148 : index
    %788 = memref.load %arg4[%c148] : memref<160xf32, #tpu.memory_space<smem>>
    %789 = vector.broadcast %788 : f32 to vector<64x128xf32>
    %790 = arith.mulf %789, %115 : vector<64x128xf32>
    %791 = arith.addf %787, %790 : vector<64x128xf32>
    %c149 = arith.constant 149 : index
    %792 = memref.load %arg4[%c149] : memref<160xf32, #tpu.memory_space<smem>>
    %793 = vector.broadcast %792 : f32 to vector<64x128xf32>
    %794 = arith.mulf %793, %116 : vector<64x128xf32>
    %795 = arith.addf %791, %794 : vector<64x128xf32>
    %c150 = arith.constant 150 : index
    %796 = memref.load %arg4[%c150] : memref<160xf32, #tpu.memory_space<smem>>
    %797 = vector.broadcast %796 : f32 to vector<64x128xf32>
    %798 = arith.mulf %797, %82 : vector<64x128xf32>
    %799 = arith.addf %795, %798 : vector<64x128xf32>
    %c151 = arith.constant 151 : index
    %800 = memref.load %arg4[%c151] : memref<160xf32, #tpu.memory_space<smem>>
    %801 = vector.broadcast %800 : f32 to vector<64x128xf32>
    %802 = arith.mulf %801, %117 : vector<64x128xf32>
    %803 = arith.addf %799, %802 : vector<64x128xf32>
    %c152 = arith.constant 152 : index
    %804 = memref.load %arg4[%c152] : memref<160xf32, #tpu.memory_space<smem>>
    %805 = vector.broadcast %804 : f32 to vector<64x128xf32>
    %806 = arith.mulf %805, %118 : vector<64x128xf32>
    %807 = arith.addf %803, %806 : vector<64x128xf32>
    %c153 = arith.constant 153 : index
    %808 = memref.load %arg4[%c153] : memref<160xf32, #tpu.memory_space<smem>>
    %809 = vector.broadcast %808 : f32 to vector<64x128xf32>
    %810 = arith.mulf %809, %119 : vector<64x128xf32>
    %811 = arith.addf %807, %810 : vector<64x128xf32>
    %c154 = arith.constant 154 : index
    %812 = memref.load %arg4[%c154] : memref<160xf32, #tpu.memory_space<smem>>
    %813 = vector.broadcast %812 : f32 to vector<64x128xf32>
    %814 = arith.mulf %813, %120 : vector<64x128xf32>
    %815 = arith.addf %811, %814 : vector<64x128xf32>
    %c155 = arith.constant 155 : index
    %816 = memref.load %arg4[%c155] : memref<160xf32, #tpu.memory_space<smem>>
    %817 = vector.broadcast %816 : f32 to vector<64x128xf32>
    %818 = arith.mulf %817, %108 : vector<64x128xf32>
    %819 = arith.addf %815, %818 : vector<64x128xf32>
    %c156 = arith.constant 156 : index
    %820 = memref.load %arg4[%c156] : memref<160xf32, #tpu.memory_space<smem>>
    %821 = vector.broadcast %820 : f32 to vector<64x128xf32>
    %822 = arith.mulf %821, %121 : vector<64x128xf32>
    %823 = arith.addf %819, %822 : vector<64x128xf32>
    %c157 = arith.constant 157 : index
    %824 = memref.load %arg4[%c157] : memref<160xf32, #tpu.memory_space<smem>>
    %825 = vector.broadcast %824 : f32 to vector<64x128xf32>
    %826 = arith.mulf %825, %122 : vector<64x128xf32>
    %827 = arith.addf %823, %826 : vector<64x128xf32>
    %c158 = arith.constant 158 : index
    %828 = memref.load %arg4[%c158] : memref<160xf32, #tpu.memory_space<smem>>
    %829 = vector.broadcast %828 : f32 to vector<64x128xf32>
    %830 = arith.mulf %829, %123 : vector<64x128xf32>
    %831 = arith.addf %827, %830 : vector<64x128xf32>
    %c159 = arith.constant 159 : index
    %832 = memref.load %arg4[%c159] : memref<160xf32, #tpu.memory_space<smem>>
    %833 = vector.broadcast %832 : f32 to vector<64x128xf32>
    %834 = arith.mulf %833, %124 : vector<64x128xf32>
    %835 = arith.addf %831, %834 : vector<64x128xf32>
    %c7_98 = arith.constant 7 : index
    %836 = memref.load %arg5[%c7_98] : memref<8xf32, #tpu.memory_space<smem>>
    %837 = vector.broadcast %836 : f32 to vector<64x128xf32>
    %838 = arith.addf %835, %837 : vector<64x128xf32>
    %cst_99 = arith.constant 0.000000e+00 : f32
    %839 = vector.broadcast %cst_99 : f32 to vector<64x128xf32>
    %840 = arith.maximumf %838, %839 : vector<64x128xf32>
    %c62_i32_100 = arith.constant 62 : i32
    %841 = tpu.dynamic_rotate %840 by %c62_i32_100 dim 0 : vector<64x128xf32>, i32 -> vector<64x128xf32>
    %842 = arith.maximumf %840, %841 : vector<64x128xf32>
    %c7_101 = arith.constant 7 : index
    %c0_102 = arith.constant 0 : index
    %c0_103 = arith.constant 0 : index
    %843 = vector.load %arg6[%c7_101, %c0_102, %c0_103] : memref<8x32x64xf32, #tpu.memory_space<vmem>>, vector<1x32x64xf32>
    %844 = vector.shape_cast %843 : vector<1x32x64xf32> to vector<32x64xf32>
    %cst_104 = arith.constant dense<0.000000e+00> : vector<32x128xf32>
    %845 = tpu.matmul %844, %842, %cst_104 {dimension_numbers = #tpu.dot_dimension_numbers<[1], [0], [0], [1], [0, 0, 1, 1], [], []>} : vector<32x64xf32>, vector<64x128xf32>, vector<32x128xf32> -> vector<32x128xf32>
    %846 = arith.addf %756, %845 : vector<32x128xf32>
    %cst_105 = arith.constant 0.000000e+00 : f32
    %847 = vector.broadcast %cst_105 : f32 to vector<32x128xf32>
    %848 = arith.maximumf %846, %847 : vector<32x128xf32>
    %c0_106 = arith.constant 0 : index
    %c0_107 = arith.constant 0 : index
    %849 = vector.load %arg8[%c0_106, %c0_107] : memref<8x32xf32, #tpu.memory_space<vmem>>, vector<8x32xf32>
    %cst_108 = arith.constant dense<0.000000e+00> : vector<8x128xf32>
    %850 = tpu.matmul %849, %848, %cst_108 {dimension_numbers = #tpu.dot_dimension_numbers<[1], [0], [0], [1], [0, 0, 1, 1], [], []>} : vector<8x32xf32>, vector<32x128xf32>, vector<8x128xf32> -> vector<8x128xf32>
    %c0_109 = arith.constant 0 : index
    %c0_110 = arith.constant 0 : index
    %851 = vector.load %arg9[%c0_109, %c0_110] : memref<8x1xf32, #tpu.memory_space<vmem>>, vector<8x1xf32>
    %852 = vector.broadcast %851 : vector<8x1xf32> to vector<8x128xf32>
    %853 = arith.addf %850, %852 : vector<8x128xf32>
    %c0_111 = arith.constant 0 : index
    %c0_112 = arith.constant 0 : index
    %854 = vector.load %arg10[%c0_111, %c0_112] : memref<8x128xf32, #tpu.memory_space<vmem>>, vector<8x128xf32>
    tpu.vector_store %arg10[%c0_111, %c0_112], %853 {strides = array<i32>} : memref<8x128xf32, #tpu.memory_space<vmem>>, vector<8x128xf32>,
    return
  }
  func.func @transform_0(%arg0: i32) -> (i32, i32) {
    %c0_i32 = arith.constant 0 : i32
    %c0_i32_0 = arith.constant 0 : i32
    return %c0_i32, %arg0 : i32, i32
  }
  func.func @transform_1(%arg0: i32) -> i32 {
    %c0_i32 = arith.constant 0 : i32
    %c0_i32_0 = arith.constant 0 : i32
    return %c0_i32 : i32
  }
  func.func @transform_2(%arg0: i32) -> i32 {
    %c0_i32 = arith.constant 0 : i32
    %c0_i32_0 = arith.constant 0 : i32
    return %c0_i32 : i32
  }
  func.func @transform_3(%arg0: i32) -> i32 {
    %c0_i32 = arith.constant 0 : i32
    %c0_i32_0 = arith.constant 0 : i32
    return %c0_i32 : i32
  }
  func.func @transform_4(%arg0: i32) -> i32 {
    %c0_i32 = arith.constant 0 : i32
    %c0_i32_0 = arith.constant 0 : i32
    return %c0_i32 : i32
  }
  func.func @transform_5(%arg0: i32) -> (i32, i32, i32) {
    %c0_i32 = arith.constant 0 : i32
    %c0_i32_0 = arith.constant 0 : i32
    %c0_i32_1 = arith.constant 0 : i32
    %c0_i32_2 = arith.constant 0 : i32
    return %c0_i32, %c0_i32_0, %c0_i32_1 : i32, i32, i32
  }
  func.func @transform_6(%arg0: i32) -> (i32, i32) {
    %c0_i32 = arith.constant 0 : i32
    %c0_i32_0 = arith.constant 0 : i32
    %c0_i32_1 = arith.constant 0 : i32
    return %c0_i32, %c0_i32_0 : i32, i32
  }
  func.func @transform_7(%arg0: i32) -> (i32, i32) {
    %c0_i32 = arith.constant 0 : i32
    %c0_i32_0 = arith.constant 0 : i32
    %c0_i32_1 = arith.constant 0 : i32
    return %c0_i32, %c0_i32_0 : i32, i32
  }
  func.func @transform_8(%arg0: i32) -> (i32, i32) {
    %c0_i32 = arith.constant 0 : i32
    %c0_i32_0 = arith.constant 0 : i32
    %c0_i32_1 = arith.constant 0 : i32
    return %c0_i32, %c0_i32_0 : i32, i32
  }
  func.func @transform_9(%arg0: i32) -> (i32, i32) {
    %c0_i32 = arith.constant 0 : i32
    %c0_i32_0 = arith.constant 0 : i32
    return %c0_i32, %arg0 : i32, i32
  }
}

</mosaic_0001>

<bundles_post_ra>
// kernel: tpu_custom_call.1
= control target key start
LH: loop header
LB: loop body
LE: loop exit
PB: predicated region body
PF: predicated region fallthrough
CT: control target
= control target key end

     0   :  { %14 = vsyncpa [#allocation3], 0  ;;  %s11990_s0 = inlined_call_operand.hbm [shape: f32[64,128], index: 0, kind: input, shape index: {}]   ;;  %s11991_s1 = inlined_call_operand.vmem [shape: f32[20], index: 1, kind: input, shape index: {}]   ;;  %s11992_s2 = inlined_call_operand.vmem [shape: f32[4], index: 2, kind: input, shape index: {}]   ;;  %s11993_s3 = inlined_call_operand.vmem [shape: f32[160], index: 3, kind: input, shape index: {}]   ;;  %s11994_s4 = inlined_call_operand.vmem [shape: f32[8], index: 4, kind: input, shape index: {}]   ;;  %s11995_s5 = inlined_call_operand.hbm [shape: f32[8,32,64], index: 5, kind: input, shape index: {}]   ;;  %s11996_s6 = inlined_call_operand.vmem [shape: f32[32,1], index: 6, kind: input, shape index: {}]   ;;  %s11997_s7 = inlined_call_operand.vmem [shape: f32[8,32], index: 7, kind: input, shape index: {}]   ;;  %s11998_s8 = inlined_call_operand.vmem [shape: f32[8,1], index: 8, kind: input, shape index: {}]   ;;  %s11999_s9 = inlined_call_operand.hbm [shape: f32[8,128], index: 9, kind: output, shape index: {}]  }
   0x1   :  { %15 = vsyncpa [#allocation5], 0 }
   0x2   :  { %16 = vsyncpa [#allocation8], 0 }
   0x3   :  { %17 = vsyncpa [#allocation11], 0 }
   0x4   :  { %18 = vsyncpa [#allocation13], 0  ;;  %s48_s11 = sshll.u32 %s11992_s2, 4  ;;  %s49_s11 = int_to_ptr.vmem [resolvable:$true] %s48_s11 }
   0x5   :  { %19 = vsyncpa [#allocation4], 0  ;;  %s5696_s12 = scalar_lea.vmem %s49_s11, 16  ;;  %p5701_p1 = scmp.lt.s32.totalorder %s49_s11, %s49_s11 }
   0x6   :  { %p5697_p0 = scmp.ne.s32.totalorder %s49_s11, %s5696_s12  ;;  %p5702_p2 = scmp.lt.s32.totalorder %s5696_s12, %s5696_s12 }
   0x8   :  { %p5703_p3 = por %p5702_p2, %p5701_p1 }
   0xa   :  { %p5704_p4 = pnand %p5703_p3, %p5697_p0 }
   0xc   :  { %5707 = shalt.err (!%p5704_p4)
}
   0xd   :  { %s5822_s13 = smov [#allocation7]   ;;  %s5823_s14 = smov [#allocation2]  }
   0xe   :  { %51 = dma.vmem_to_smem %s49_s11, 16, %s5822_s13, [#allocation8]  }
   0xf   :  { %s25_s15 = sshll.u32 %s5823_s14, 4  ;;  %s5708_s18 = scalar_lea.hbm %s11990_s0, 1024  ;;  %s26_s15 = int_to_ptr.vmem [resolvable:$true] %s25_s15 }
  0x10   :  { %p5709_p5 = scmp.ne.s32.totalorder %s11990_s0, %s5708_s18  ;;  %p5712_p6 = scmp.lt.u32.totalorder %s5708_s18, %s11990_s0 }
  0x12   :  { %p5714_p7 = pnand %p5712_p6, %p5709_p5 }
  0x14   :  { %5717 = shalt.err (!%p5714_p7)
}
  0x15   :  { %s5718_s22 = scalar_lea.vmem %s26_s15, 1024  ;;  %p5723_p9 = scmp.lt.s32.totalorder %s26_s15, %s26_s15 }
  0x16   :  { %p5719_p8 = scmp.ne.s32.totalorder %s26_s15, %s5718_s22  ;;  %p5724_p10 = scmp.lt.s32.totalorder %s5718_s22, %s5718_s22 }
  0x18   :  { %p5725_p11 = por %p5724_p10, %p5723_p9 }
  0x1a   :  { %p5726_p12 = pnand %p5725_p11, %p5719_p8 }
  0x1c   :  { %5729 = shalt.err (!%p5726_p12)
}
  0x1d   :  { %s5824_s23 = smov 128   ;;  %s5825_s24 = smov 8  }
  0x1e   :  { %31 = dma.hbm_to_vmem [thread:$0]  %s11990_s0, 1024, %s26_s15, [#allocation3], %s5824_s23, %s5824_s23, %s5825_s24  }
  0x1f   :  { %s38_s29 = sshll.u32 %s11991_s1, 4  ;;  %s58_s11 = sshll.u32 %s11993_s3, 4  ;;  %s39_s29 = int_to_ptr.vmem [resolvable:$true] %s38_s29  ;;  %s59_s11 = int_to_ptr.vmem [resolvable:$true] %s58_s11 }
  0x20   :  { %s5730_s12 = scalar_lea.vmem %s39_s29, 16  ;;  %p5735_p0 = scmp.lt.s32.totalorder %s39_s29, %s39_s29 }
  0x21   :  { %p5731_p13 = scmp.ne.s32.totalorder %s39_s29, %s5730_s12  ;;  %p5736_p1 = scmp.lt.s32.totalorder %s5730_s12, %s5730_s12 }
  0x23   :  { %p5737_p2 = por %p5736_p1, %p5735_p0 }
  0x25   :  { %p5738_p3 = pnand %p5737_p2, %p5731_p13 }
  0x27   :  { %5741 = shalt.err (!%p5738_p3)
}
  0x28   :  { %s5826_s13 = smov [#allocation6]   ;;  %s5742_s0 = scalar_lea.vmem %s59_s11, 32 }
  0x29   :  { %41 = dma.vmem_to_smem %s39_s29, 16, %s5826_s13, [#allocation5]  }
  0x2a   :  { %p5743_p4 = scmp.ne.s32.totalorder %s59_s11, %s5742_s0  ;;  %p5747_p5 = scmp.lt.s32.totalorder %s59_s11, %s59_s11 }
  0x2b   :  { %p5748_p6 = scmp.lt.s32.totalorder %s5742_s0, %s5742_s0 }
  0x2d   :  { %p5749_p7 = por %p5748_p6, %p5747_p5 }
  0x2f   :  { %p5750_p8 = pnand %p5749_p7, %p5743_p4 }
  0x31   :  { %5753 = shalt.err (!%p5750_p8)
}
  0x32   :  { %s5827_s1 = smov [#allocation9]   ;;  %s68_s15 = sshll.u32 %s11994_s4, 4  ;;  %s69_s15 = int_to_ptr.vmem [resolvable:$true] %s68_s15 }
  0x33   :  { %61 = dma.vmem_to_smem %s59_s11, 32, %s5827_s1, [#allocation8]  }
  0x34   :  { %s5754_s16 = scalar_lea.vmem %s69_s15, 16  ;;  %p5759_p10 = scmp.lt.s32.totalorder %s69_s15, %s69_s15 }
  0x35   :  { %p5755_p9 = scmp.ne.s32.totalorder %s69_s15, %s5754_s16  ;;  %p5760_p11 = scmp.lt.s32.totalorder %s5754_s16, %s5754_s16 }
  0x37   :  { %p5761_p12 = por %p5760_p11, %p5759_p10 }
  0x39   :  { %p5762_p13 = pnand %p5761_p12, %p5755_p9 }
  0x3b   :  { %5765 = shalt.err (!%p5762_p13)
}
  0x3c   :  { %s5828_s17 = smov [#allocation10]   ;;  %s5829_s18 = smov [#allocation12]  }
  0x3d   :  { %71 = dma.vmem_to_smem %s69_s15, 16, %s5828_s17, [#allocation11]  }
  0x3e   :  { %s77_s19 = sshll.u32 %s5829_s18, 4  ;;  %s5766_s21 = scalar_lea.hbm %s11995_s5, 4096  ;;  %s78_s19 = int_to_ptr.vmem [resolvable:$true] %s77_s19 }
  0x3f   :  { %p5767_p0 = scmp.ne.s32.totalorder %s11995_s5, %s5766_s21  ;;  %p5770_p1 = scmp.lt.u32.totalorder %s5766_s21, %s11995_s5 }
  0x41   :  { %p5772_p2 = pnand %p5770_p1, %p5767_p0 }
  0x43   :  { %5775 = shalt.err (!%p5772_p2)
}
  0x44   :  { %s5776_s27 = scalar_lea.vmem %s78_s19, 4096  ;;  %p5781_p4 = scmp.lt.s32.totalorder %s78_s19, %s78_s19 }
  0x45   :  { %p5777_p3 = scmp.ne.s32.totalorder %s78_s19, %s5776_s27  ;;  %p5782_p5 = scmp.lt.s32.totalorder %s5776_s27, %s5776_s27 }
  0x47   :  { %p5783_p6 = por %p5782_p5, %p5781_p4 }
  0x49   :  { %p5784_p7 = pnand %p5783_p6, %p5777_p3 }
  0x4b   :  { %5787 = shalt.err (!%p5784_p7)
}
  0x4c   :  { %83 = dma.hbm_to_vmem [thread:$0]  %s11995_s5, 4096, %s78_s19, [#allocation13], %s5824_s23, %s5824_s23, %s5825_s24  }
  0x4d   :  { %5810 = dma.done.wait [#allocation3], 1024  }
  0x4e   :  { %5811 = vsyncadd [#allocation3], 4294966272 }
  0x4f   :  { %5812 = dma.done.wait [#allocation5], 16  }
  0x50   :  { %5813 = vsyncadd [#allocation5], 4294967280 }
  0x51   :  { %5814 = dma.done.wait [#allocation8], 48  }
  0x52   :  { %5815 = vsyncadd [#allocation8], 4294967248 }
  0x53   :  { %5816 = dma.done.wait [#allocation11], 16  }
  0x54   :  { %5817 = vsyncadd [#allocation11], 4294967280 }
  0x55   :  { %5818 = dma.done.wait [#allocation13], 4096  }
  0x56   :  { %5819 = vsyncadd [#allocation13], 4294963200 }
  0x57   :  { %108 = sfence }
  0x58   :  { %v5927_v0 = vld [vmem:[#allocation2] sm:$0xff]  ;;  %v5929_v1 = vld [vmem:[#allocation2 + $0x8] sm:$0xff]  ;;  %v5931_v2 = vld [vmem:[#allocation2 + $0x10] sm:$0xff]  ;;  %v125_v3 = vlaneseq  ;;  %s5947_s5 = sld [smem:[#allocation6]]  ;;  %s5953_s23 = sld [smem:[#allocation6 + $0x1]]  ;;  %vm1278_vm5 = vcmask 523264  }
  0x59   :  { %13234 = vst [vmem:[#allocation21_spill] sm:$0xff] %v5927_v0  ;;  %v5933_v4 = vld [vmem:[#allocation2 + $0x18] sm:$0xff]  ;;  %v5935_v5 = vld [vmem:[#allocation2 + $0x20] sm:$0xff]  ;;  %v5937_v6 = vld [vmem:[#allocation2 + $0x28] sm:$0xff]  ;;  %v12003_v7 = vrot.slane %v5927_v0, 1  ;;  %v118_v8 = vrot.slane %v5929_v1, 1 }
  0x5a   :  { %13235 = vst [vmem:[#allocation22_spill] sm:$0xff] %v5937_v6  ;;  %v119_v9 = vrot.slane %v5931_v2, 1  ;;  %v120_v10 = vrot.slane %v5933_v4, 1  ;;  %v121_v11 = vrot.slane %v5935_v5, 1  ;;  %v12008_v12 = vrot.slane %v5937_v6, 1  ;;  %s5959_s24 = sld [smem:[#allocation6 + $0x2]] }
  0x5b   :  { %v5945_v13 = vshrl.u32 %v125_v3, 7  ;;  %v12002_v14 = vrot.slane %v5927_v0, 2  ;;  %v137_v15 = vrot.slane %v5929_v1, 2  ;;  %v138_v16 = vrot.slane %v5931_v2, 2  ;;  %s6046_s30 = sld [smem:[#allocation6 + $0x3]]  ;;  %s6088_s10 = sld [smem:[#allocation6 + $0x4]] }
  0x5c   :  { %v139_v17 = vrot.slane %v5933_v4, 2  ;;  %v140_v18 = vrot.slane %v5935_v5, 2  ;;  %v12007_v19 = vrot.slane %v5937_v6, 2  ;;  %v12001_v30 = vrot.slane %v5927_v0, 3  ;;  %s6090_s11 = sld [smem:[#allocation7]]  ;;  %s6108_s12 = sld [smem:[#allocation6 + $0x5]] }
  0x5d   :  { %13236 = vst [vmem:[#allocation23_spill] sm:$0xff] %v5945_v13  ;;  %vm127_vm0 = vcmp.lt.s32.totalorder %v5945_v13, 7  ;;  %vm144_vm1 = vcmp.lt.s32.totalorder %v5945_v13, 6  ;;  %v154_v31 = vrot.slane %v5929_v1, 3  ;;  %v155_v32 = vrot.slane %v5931_v2, 3  ;;  %s6114_s13 = sld [smem:[#allocation6 + $0x6]] }
  0x5e   :  { %v5965_v20 = vsel %vm127_vm0, %v121_v11, %v12008_v12  ;;  %v5969_v21 = vsel %vm127_vm0, %v120_v10, %v121_v11  ;;  %v5973_v22 = vsel %vm127_vm0, %v119_v9, %v120_v10  ;;  %v5977_v23 = vsel %vm127_vm0, %v118_v8, %v119_v9  ;;  %s6116_s0 = sld [smem:[#allocation6 + $0x7]]  ;;  %s6179_s1 = sld [smem:[#allocation6 + $0x8]] }
  0x5f   :  { %v5983_v24 = vsel %vm127_vm0, %v12003_v7, %v118_v8  ;;  %v5989_v25 = vsel %vm144_vm1, %v140_v18, %v12007_v19  ;;  %v5993_v26 = vsel %vm144_vm1, %v139_v17, %v140_v18  ;;  %v5997_v27 = vsel %vm144_vm1, %v138_v16, %v139_v17  ;;  %s6194_s3 = sld [smem:[#allocation6 + $0x9]]  ;;  %s6200_s15 = sld [smem:[#allocation6 + $0xa]] }
  0x60   :  { %v6001_v28 = vsel %vm144_vm1, %v137_v15, %v138_v16  ;;  %v6007_v29 = vsel %vm144_vm1, %v12002_v14, %v137_v15  ;;  %v156_v33 = vrot.slane %v5933_v4, 3  ;;  %v157_v34 = vrot.slane %v5935_v5, 3  ;;  %s6198_s14 = sld [smem:[#allocation7 + $0x1]]  ;;  %s6237_s16 = sld [smem:[#allocation6 + $0xb]] }
  0x61   :  { %v12006_v35 = vrot.slane %v5937_v6, 3  ;;  %vm161_vm2 = vcmp.lt.s32.totalorder %v5945_v13, 5  ;;  %v12000_v36 = vrot.slane %v5927_v0, 4  ;;  %v171_v37 = vrot.slane %v5929_v1, 4  ;;  %s6279_s17 = sld [smem:[#allocation6 + $0xc]]  ;;  %s6288_s18 = sld [smem:[#allocation6 + $0xd]] }
  0x62   :  { %v172_v38 = vrot.slane %v5931_v2, 4  ;;  %v6027_v40 = vsel %vm161_vm2, %v156_v33, %v157_v34  ;;  %v6031_v41 = vsel %vm161_vm2, %v155_v32, %v156_v33  ;;  %v6035_v42 = vsel %vm161_vm2, %v154_v31, %v155_v32  ;;  %s6294_s19 = sld [smem:[#allocation6 + $0xe]]  ;;  %s6296_s2 = sld [smem:[#allocation7 + $0x2]] }
  0x63   :  { %v6023_v39 = vsel %vm161_vm2, %v157_v34, %v12006_v35  ;;  %v6041_v43 = vsel %vm161_vm2, %v12001_v30, %v154_v31  ;;  %v173_v44 = vrot.slane %v5933_v4, 4  ;;  %v174_v45 = vrot.slane %v5935_v5, 4  ;;  %s6330_s20 = sld [smem:[#allocation6 + $0xf]]  ;;  %s6357_s21 = sld [smem:[#allocation6 + $0x10]] }
  0x64   :  { %v12004_v46 = vrot.slane %v5937_v6, 4  ;;  %vm178_vm3 = vcmp.lt.s32.totalorder %v5945_v13, 4  ;;  %v6050_v47 = vstv %s5947_s5  ;;  %v6053_v48 = vstv %s5953_s23  ;;  %s6385_s22 = sld [smem:[#allocation6 + $0x11]]  ;;  %s6395_s25 = sld [smem:[#allocation6 + $0x12]] }
  0x65   :  { %13237 = vst [vmem:[#allocation24_spill] sm:$0xff] %v6050_v47  ;;  %13238 = vst [vmem:[#allocation25_spill] sm:$0xff] %v6053_v48  ;;  %v6056_v49 = vstv %s5959_s24  ;;  %v6066_v51 = vsel %vm178_vm3, %v173_v44, %v174_v45  ;;  %v6070_v52 = vsel %vm178_vm3, %v172_v38, %v173_v44  ;;  %v6074_v53 = vsel %vm178_vm3, %v171_v37, %v172_v38  ;;  %s6397_s4 = sld [smem:[#allocation6 + $0x13]]  ;;  %s6637_s27 = sld [smem:[#allocation9]] }
  0x66   :  { %13239 = vst [vmem:[#allocation26_spill] sm:$0xff] %v6056_v49  ;;  %v6062_v50 = vsel %vm178_vm3, %v174_v45, %v12004_v46  ;;  %v6080_v54 = vsel %vm178_vm3, %v12000_v36, %v171_v37  ;;  %v189_v55 = vmul.f32 %v6050_v47, %v5927_v0  ;;  %v190_v56 = vmul.f32 %v6050_v47, %v5929_v1  ;;  %s6437_s26 = sld [smem:[#allocation7 + $0x3]]  ;;  %s6648_s28 = sld [smem:[#allocation9 + $0x1]] }
  0x67   :  { %v191_v57 = vmul.f32 %v6050_v47, %v5931_v2  ;;  %v192_v58 = vmul.f32 %v6050_v47, %v5933_v4  ;;  %v193_v59 = vmul.f32 %v6050_v47, %v5935_v5  ;;  %v199_v60 = vmul.f32 %v6053_v48, %v5983_v24  ;;  %s6657_s29 = sld [smem:[#allocation9 + $0x2]]  ;;  %s6697_s5 = sld [smem:[#allocation9 + $0x3]] }
  0x68   :  { %v200_v61 = vmul.f32 %v6053_v48, %v5977_v23  ;;  %v201_v62 = vmul.f32 %v6053_v48, %v5973_v22  ;;  %v202_v63 = vmul.f32 %v6053_v48, %v5969_v21  ;;  %v203_v3 = vmul.f32 %v6053_v48, %v5965_v20  ;;  %s6720_s23 = sld [smem:[#allocation9 + $0x4]]  ;;  %s6722_s24 = sld [smem:[#allocation9 + $0x5]] }
  0x69   :  { %v217_v8 = vmul.f32 %v6056_v49, %v6007_v29  ;;  %v207_v9 = vadd.f32 %v199_v60, %v189_v55  ;;  %v218_v11 = vmul.f32 %v6056_v49, %v6001_v28  ;;  %v219_v15 = vmul.f32 %v6056_v49, %v5997_v27 }
  0x6a   :  { %v208_v10 = vadd.f32 %v200_v61, %v190_v56  ;;  %v209_v16 = vadd.f32 %v201_v62, %v191_v57  ;;  %v210_v17 = vadd.f32 %v202_v63, %v192_v58  ;;  %v211_v18 = vadd.f32 %v203_v3, %v193_v59 }
  0x6b   :  { %v220_v31 = vmul.f32 %v6056_v49, %v5993_v26  ;;  %v221_v32 = vmul.f32 %v6056_v49, %v5989_v25  ;;  %v225_v33 = vadd.f32 %v217_v8, %v207_v9  ;;  %v6123_v37 = vstv %s6046_s30  ;;  %s6765_s30 = sld [smem:[#allocation9 + $0x6]] }
  0x6c   :  { %v226_v34 = vadd.f32 %v218_v11, %v208_v10  ;;  %13240 = vst [vmem:[#allocation27_spill] sm:$0xff] %v6123_v37  ;;  %v227_v38 = vadd.f32 %v219_v15, %v209_v16  ;;  %v235_v45 = vmul.f32 %v6123_v37, %v6041_v43  ;;  %v236_v55 = vmul.f32 %v6123_v37, %v6035_v42 }
  0x6d   :  { %v228_v44 = vadd.f32 %v220_v31, %v210_v17  ;;  %v229_v56 = vadd.f32 %v221_v32, %v211_v18  ;;  %v237_v57 = vmul.f32 %v6123_v37, %v6031_v41  ;;  %v238_v58 = vmul.f32 %v6123_v37, %v6027_v40 }
  0x6e   :  { %v239_v59 = vmul.f32 %v6123_v37, %v6023_v39  ;;  %v243_v60 = vadd.f32 %v235_v45, %v225_v33  ;;  %v244_v61 = vadd.f32 %v236_v55, %v226_v34  ;;  %v6136_v62 = vstv %s6088_s10  ;;  %s6767_s10 = sld [smem:[#allocation9 + $0x7]] }
  0x6f   :  { %13241 = vst [vmem:[#allocation28_spill] sm:$0xff] %v6136_v62  ;;  %v6139_v63 = vstv %s6090_s11  ;;  %v245_v3 = vadd.f32 %v237_v57, %v227_v38  ;;  %v246_v8 = vadd.f32 %v238_v58, %v228_v44  ;;  %v253_v10 = vmul.f32 %v6136_v62, %v6080_v54  ;;  %s6783_s11 = sld [smem:[#allocation9 + $0x8]] }
  0x70   :  { %13242 = vst [vmem:[#allocation29_spill] sm:$0xff] %v6139_v63  ;;  %v247_v9 = vadd.f32 %v239_v59, %v229_v56  ;;  %v254_v11 = vmul.f32 %v6136_v62, %v6074_v53  ;;  %v255_v15 = vmul.f32 %v6136_v62, %v6070_v52  ;;  %v256_v16 = vmul.f32 %v6136_v62, %v6066_v51 }
  0x71   :  { %v257_v17 = vmul.f32 %v6136_v62, %v6062_v50  ;;  %v261_v18 = vadd.f32 %v253_v10, %v243_v60  ;;  %v6152_v31 = vstv %s6108_s12  ;;  %v6155_v32 = vstv %s6114_s13  ;;  %s6785_s12 = sld [smem:[#allocation9 + $0x9]]  ;;  %s6818_s13 = sld [smem:[#allocation9 + $0xa]] }
  0x72   :  { %13243 = vst [vmem:[#allocation30_spill] sm:$0xff] %v6152_v31  ;;  %13244 = vst [vmem:[#allocation31_spill] sm:$0xff] %v6155_v32  ;;  %v6158_v33 = vstv %s6116_s0  ;;  %v262_v34 = vadd.f32 %v254_v11, %v244_v61  ;;  %v263_v38 = vadd.f32 %v255_v15, %v245_v3  ;;  %v264_v44 = vadd.f32 %v256_v16, %v246_v8  ;;  %s6828_s0 = sld [smem:[#allocation9 + $0xb]] }
  0x73   :  { %13245 = vst [vmem:[#allocation32_spill] sm:$0xff] %v6158_v33  ;;  %v265_v45 = vadd.f32 %v257_v17, %v247_v9  ;;  %v271_v55 = vadd.f32 %v6139_v63, %v261_v18  ;;  %v313_v56 = vmul.f32 %v6152_v31, %v5927_v0  ;;  %v314_v57 = vmul.f32 %v6152_v31, %v5929_v1 }
  0x74   :  { %v315_v58 = vmul.f32 %v6152_v31, %v5931_v2  ;;  %v272_v59 = vadd.f32 %v6139_v63, %v262_v34  ;;  %v273_v60 = vadd.f32 %v6139_v63, %v263_v38  ;;  %v274_v61 = vadd.f32 %v6139_v63, %v264_v44 }
  0x75   :  { %v6171_v3 = vadd.f32 %v6139_v63, %v265_v45  ;;  %v279_v8 = vmax.f32 %v271_v55, 0.0  ;;  %v316_v9 = vmul.f32 %v6152_v31, %v5933_v4  ;;  %v317_v10 = vmul.f32 %v6152_v31, %v5935_v5 }
  0x76   :  { %v323_v11 = vmul.f32 %v6155_v32, %v5983_v24  ;;  %v280_v15 = vmax.f32 %v272_v59, 0.0  ;;  %v281_v16 = vmax.f32 %v273_v60, 0.0  ;;  %v282_v17 = vmax.f32 %v274_v61, 0.0 }
  0x77   :  { %13246 = vst [vmem:[#allocation33_spill] sm:$0xff] %v6171_v3  ;;  %v12005_v18 = vmax.f32 %v6171_v3, 0.0  ;;  %v6182_v34 = vrot.slane %v279_v8, 1  ;;  %v324_v38 = vmul.f32 %v6155_v32, %v5977_v23  ;;  %v325_v44 = vmul.f32 %v6155_v32, %v5973_v22 }
  0x78   :  { %v326_v45 = vmul.f32 %v6155_v32, %v5969_v21  ;;  %v288_v55 = vrot.slane %v280_v15, 1  ;;  %v289_v36 = vrot.slane %v281_v16, 1  ;;  %v290_v30 = vrot.slane %v282_v17, 1 }
  0x79   :  { %13247 = vst [vmem:[#allocation34_spill] sm:$0xff] %v6182_v34  ;;  %v6192_v59 = vrot.slane %v12005_v18, 1  ;;  %v327_v60 = vmul.f32 %v6155_v32, %v5965_v20  ;;  %v331_v61 = vadd.f32 %v323_v11, %v313_v56  ;;  %v332_v14 = vadd.f32 %v324_v38, %v314_v57 }
  0x7a   :  { %v333_v7 = vadd.f32 %v325_v44, %v315_v58  ;;  %v299_v18 = vsel %vm127_vm0, %v289_v36, %v290_v30  ;;  %v300_v35 = vsel %vm127_vm0, %v288_v55, %v289_v36  ;;  %v301_v56 = vsel %vm127_vm0, %v6182_v34, %v288_v55 }
  0x7b   :  { %13248 = vst [vmem:[#allocation35_spill] sm:$0xff] %v6192_v59  ;;  %v298_v46 = vsel %vm127_vm0, %v290_v30, %v6192_v59  ;;  %v6212_v57 = vmax.f32 %v279_v8, %v301_v56  ;;  %v6214_v58 = vmax.f32 %v280_v15, %v300_v35  ;;  %v6216_v11 = vmax.f32 %v281_v16, %v299_v18 }
  0x7c   :  { %v6218_v38 = vmax.f32 %v282_v17, %v298_v46  ;;  %v334_v44 = vadd.f32 %v326_v45, %v316_v9  ;;  %v335_v19 = vadd.f32 %v327_v60, %v317_v10  ;;  %v341_v30 = vmul.f32 %v6158_v33, %v6007_v29 }
  0x7d   :  { %13249 = vst [vmem:[#allocation36_spill] sm:$0xff] %v6212_v57  ;;  %13250 = vst [vmem:[#allocation37_spill] sm:$0xff] %v6214_v58  ;;  %v342_v36 = vmul.f32 %v6158_v33, %v6001_v28  ;;  %v343_v12 = vmul.f32 %v6158_v33, %v5997_v27  ;;  %v344_v8 = vmul.f32 %v6158_v33, %v5993_v26  ;;  %v6231_v46 = vstv %s6179_s1  ;;  %s6830_s1 = sld [smem:[#allocation9 + $0xc]] }
  0x7e   :  { %13251 = vst [vmem:[#allocation38_spill] sm:$0xff] %v6216_v11  ;;  %13252 = vst [vmem:[#allocation39_spill] sm:$0xff] %v6218_v38  ;;  %v345_v35 = vmul.f32 %v6158_v33, %v5989_v25  ;;  %v349_v9 = vadd.f32 %v341_v30, %v331_v61  ;;  %v359_v15 = vmul.f32 %v6231_v46, %v6041_v43  ;;  %v6249_v34 = vstv %s6198_s14  ;;  %s6868_s14 = sld [smem:[#allocation9 + $0xe]] }
  0x7f   :  { %13253 = vst [vmem:[#allocation40_spill] sm:$0xff] %v6231_v46  ;;  %v350_v10 = vadd.f32 %v342_v36, %v332_v14  ;;  %v360_v16 = vmul.f32 %v6231_v46, %v6035_v42  ;;  %v351_v17 = vadd.f32 %v343_v12, %v333_v7  ;;  %v352_v18 = vadd.f32 %v344_v8, %v334_v44 }
  0x80   :  { %v353_v45 = vadd.f32 %v345_v35, %v335_v19  ;;  %v361_v55 = vmul.f32 %v6231_v46, %v6031_v41  ;;  %v362_v60 = vmul.f32 %v6231_v46, %v6027_v40  ;;  %v363_v14 = vmul.f32 %v6231_v46, %v6023_v39  ;;  %13255 = vst [vmem:[#allocation42_spill] sm:$0xff] %v6249_v34 }
  0x81   :  { %v367_v61 = vadd.f32 %v359_v15, %v349_v9  ;;  %v368_v56 = vadd.f32 %v360_v16, %v350_v10  ;;  %v6246_v36 = vstv %s6194_s3  ;;  %v6252_v3 = vstv %s6200_s15  ;;  %s6856_s3 = sld [smem:[#allocation9 + $0xd]]  ;;  %s6870_s15 = sld [smem:[#allocation9 + $0xf]] }
  0x82   :  { %v369_v30 = vadd.f32 %v361_v55, %v351_v17  ;;  %13254 = vst [vmem:[#allocation41_spill] sm:$0xff] %v6246_v36  ;;  %13256 = vst [vmem:[#allocation43_spill] sm:$0xff] %v6252_v3  ;;  %v370_v7 = vadd.f32 %v362_v60, %v352_v18  ;;  %v371_v12 = vadd.f32 %v363_v14, %v353_v45  ;;  %v6374_v37 = vstv %s6330_s20  ;;  %s6938_s20 = sld [smem:[#allocation9 + $0x50]] }
  0x83   :  { %v377_v19 = vmul.f32 %v6246_v36, %v6080_v54  ;;  %v378_v44 = vmul.f32 %v6246_v36, %v6074_v53  ;;  %v379_v8 = vmul.f32 %v6246_v36, %v6070_v52  ;;  %v380_v35 = vmul.f32 %v6246_v36, %v6066_v51  ;;  %13269 = vst [vmem:[#allocation56_spill] sm:$0xff] %v6374_v37 }
  0x84   :  { %v381_v9 = vmul.f32 %v6246_v36, %v6062_v50  ;;  %v437_v10 = vmul.f32 %v6252_v3, %v5927_v0  ;;  %v438_v17 = vmul.f32 %v6252_v3, %v5929_v1  ;;  %v439_v18 = vmul.f32 %v6252_v3, %v5931_v2 }
  0x85   :  { %v385_v15 = vadd.f32 %v377_v19, %v367_v61  ;;  %v386_v16 = vadd.f32 %v378_v44, %v368_v56  ;;  %v387_v45 = vadd.f32 %v379_v8, %v369_v30  ;;  %v388_v55 = vadd.f32 %v380_v35, %v370_v7 }
  0x86   :  { %v389_v60 = vadd.f32 %v381_v9, %v371_v12  ;;  %v440_v14 = vmul.f32 %v6252_v3, %v5933_v4  ;;  %v441_v61 = vmul.f32 %v6252_v3, %v5935_v5  ;;  %v6277_v56 = vstv %s6237_s16  ;;  %s6887_s16 = sld [smem:[#allocation9 + $0x10]] }
  0x87   :  { %v395_v59 = vadd.f32 %v6249_v34, %v385_v15  ;;  %v396_v36 = vadd.f32 %v6249_v34, %v386_v16  ;;  %13257 = vst [vmem:[#allocation44_spill] sm:$0xff] %v6277_v56  ;;  %v397_v19 = vadd.f32 %v6249_v34, %v387_v45  ;;  %v398_v30 = vadd.f32 %v6249_v34, %v388_v55 }
  0x88   :  { %v6284_v7 = vadd.f32 %v6249_v34, %v389_v60  ;;  %v447_v12 = vmul.f32 %v6277_v56, %v5983_v24  ;;  %v448_v35 = vmul.f32 %v6277_v56, %v5977_v23  ;;  %v449_v9 = vmul.f32 %v6277_v56, %v5973_v22 }
  0x89   :  { %v403_v44 = vmax.f32 %v395_v59, 0.0  ;;  %v404_v8 = vmax.f32 %v396_v36, 0.0  ;;  %v405_v15 = vmax.f32 %v397_v19, 0.0  ;;  %v406_v16 = vmax.f32 %v398_v30, 0.0 }
  0x8a   :  { %13258 = vst [vmem:[#allocation45_spill] sm:$0xff] %v6284_v7  ;;  %v12028_v45 = vmax.f32 %v6284_v7, 0.0  ;;  %v450_v55 = vmul.f32 %v6277_v56, %v5969_v21  ;;  %v451_v36 = vmul.f32 %v6277_v56, %v5965_v20  ;;  %v455_v34 = vadd.f32 %v447_v12, %v437_v10 }
  0x8b   :  { %v6301_v60 = vrot.slane %v403_v44, 1  ;;  %v412_v59 = vrot.slane %v404_v8, 1  ;;  %v413_v3 = vrot.slane %v405_v15, 1  ;;  %v414_v46 = vrot.slane %v406_v16, 1 }
  0x8c   :  { %v6307_v63 = vrot.slane %v12028_v45, 1  ;;  %v456_v19 = vadd.f32 %v448_v35, %v438_v17  ;;  %v457_v33 = vadd.f32 %v449_v9, %v439_v18  ;;  %v458_v32 = vadd.f32 %v450_v55, %v440_v14 }
  0x8d   :  { %13259 = vst [vmem:[#allocation46_spill] sm:$0xff] %v6301_v60  ;;  %v425_v30 = vsel %vm127_vm0, %v6301_v60, %v412_v59  ;;  %v459_v31 = vadd.f32 %v451_v36, %v441_v61  ;;  %v423_v12 = vsel %vm127_vm0, %v413_v3, %v414_v46  ;;  %v424_v17 = vsel %vm127_vm0, %v412_v59, %v413_v3 }
  0x8e   :  { %13260 = vst [vmem:[#allocation47_spill] sm:$0xff] %v6307_v63  ;;  %v422_v10 = vsel %vm127_vm0, %v414_v46, %v6307_v63  ;;  %v6319_v35 = vmax.f32 %v403_v44, %v425_v30  ;;  %v6321_v45 = vmax.f32 %v404_v8, %v424_v17  ;;  %v6323_v18 = vmax.f32 %v405_v15, %v423_v12 }
  0x8f   :  { %v6325_v14 = vmax.f32 %v406_v16, %v422_v10  ;;  %v6328_v61 = vstv %s6279_s17  ;;  %v6343_v15 = vstv %s6288_s18  ;;  %v6346_v16 = vstv %s6294_s19  ;;  %s6889_s17 = sld [smem:[#allocation9 + $0x11]]  ;;  %s6899_s18 = sld [smem:[#allocation9 + $0x12]] }
  0x90   :  { %13261 = vst [vmem:[#allocation48_spill] sm:$0xff] %v6319_v35  ;;  %13262 = vst [vmem:[#allocation49_spill] sm:$0xff] %v6321_v45  ;;  %v465_v9 = vmul.f32 %v6328_v61, %v6007_v29  ;;  %v466_v46 = vmul.f32 %v6328_v61, %v6001_v28  ;;  %v467_v3 = vmul.f32 %v6328_v61, %v5997_v27  ;;  %v6349_v55 = vstv %s6296_s2  ;;  %s6901_s19 = sld [smem:[#allocation9 + $0x13]]  ;;  %s6928_s2 = sld [smem:[#allocation10]] }
  0x91   :  { %13263 = vst [vmem:[#allocation50_spill] sm:$0xff] %v6323_v18  ;;  %13264 = vst [vmem:[#allocation51_spill] sm:$0xff] %v6325_v14  ;;  %v468_v44 = vmul.f32 %v6328_v61, %v5993_v26  ;;  %v469_v8 = vmul.f32 %v6328_v61, %v5989_v25  ;;  %v483_v17 = vmul.f32 %v6343_v15, %v6041_v43  ;;  %vm723_vm4 = vcmp.lt.s32.totalorder %v5945_v13, 2 }
  0x92   :  { %13265 = vst [vmem:[#allocation52_spill] sm:$0xff] %v6328_v61  ;;  %13266 = vst [vmem:[#allocation53_spill] sm:$0xff] %v6343_v15  ;;  %v473_v59 = vadd.f32 %v465_v9, %v455_v34  ;;  %v474_v36 = vadd.f32 %v466_v46, %v456_v19  ;;  %v475_v30 = vadd.f32 %v467_v3, %v457_v33  ;;  %vm5832_vm6 = vmmov 0  }
  0x93   :  { %13267 = vst [vmem:[#allocation54_spill] sm:$0xff] %v6346_v16  ;;  %13268 = vst [vmem:[#allocation55_spill] sm:$0xff] %v6349_v55  ;;  %v476_v10 = vadd.f32 %v468_v44, %v458_v32  ;;  %v477_v12 = vadd.f32 %v469_v8, %v459_v31  ;;  %v484_v60 = vmul.f32 %v6343_v15, %v6035_v42  ;;  %vm4911_vm7 = vcmask 261120  }
  0x94   :  { %v485_v7 = vmul.f32 %v6343_v15, %v6031_v41  ;;  %v486_v63 = vmul.f32 %v6343_v15, %v6027_v40  ;;  %v487_v33 = vmul.f32 %v6343_v15, %v6023_v39  ;;  %v501_v31 = vmul.f32 %v6346_v16, %v6080_v54 }
  0x95   :  { %v502_v32 = vmul.f32 %v6346_v16, %v6074_v53  ;;  %v491_v34 = vadd.f32 %v483_v17, %v473_v59  ;;  %v492_v19 = vadd.f32 %v484_v60, %v474_v36  ;;  %v503_v46 = vmul.f32 %v6346_v16, %v6070_v52 }
  0x96   :  { %v493_v9 = vadd.f32 %v485_v7, %v475_v30  ;;  %v494_v3 = vadd.f32 %v486_v63, %v476_v10  ;;  %v495_v44 = vadd.f32 %v487_v33, %v477_v12  ;;  %v504_v8 = vmul.f32 %v6346_v16, %v6066_v51 }
  0x97   :  { %v505_v15 = vmul.f32 %v6346_v16, %v6062_v50  ;;  %v509_v61 = vadd.f32 %v501_v31, %v491_v34  ;;  %v510_v56 = vadd.f32 %v502_v32, %v492_v19  ;;  %v561_v7 = vmul.f32 %v6374_v37, %v5927_v0 }
  0x98   :  { %v511_v62 = vadd.f32 %v503_v46, %v493_v9  ;;  %v512_v49 = vadd.f32 %v504_v8, %v494_v3  ;;  %v562_v63 = vmul.f32 %v6374_v37, %v5929_v1  ;;  %v563_v10 = vmul.f32 %v6374_v37, %v5931_v2 }
  0x99   :  { %v513_v59 = vadd.f32 %v505_v15, %v495_v44  ;;  %v519_v60 = vadd.f32 %v6349_v55, %v509_v61  ;;  %v520_v36 = vadd.f32 %v6349_v55, %v510_v56  ;;  %v564_v17 = vmul.f32 %v6374_v37, %v5933_v4 }
  0x9a   :  { %v521_v30 = vadd.f32 %v6349_v55, %v511_v62  ;;  %v522_v15 = vadd.f32 %v6349_v55, %v512_v49  ;;  %v565_v1 = vmul.f32 %v6374_v37, %v5935_v5  ;;  %v6400_v61 = vstv %s6357_s21  ;;  %s6940_s21 = sld [smem:[#allocation9 + $0x51]] }
  0x9b   :  { %v6389_v12 = vadd.f32 %v6349_v55, %v513_v59  ;;  %v527_v62 = vmax.f32 %v519_v60, 0.0  ;;  %v528_v56 = vmax.f32 %v520_v36, 0.0  ;;  %13271 = vst [vmem:[#allocation58_spill] sm:$0xff] %v6400_v61  ;;  %v571_v31 = vmul.f32 %v6400_v61, %v5983_v24 }
  0x9c   :  { %v529_v2 = vmax.f32 %v521_v30, 0.0  ;;  %v530_v33 = vmax.f32 %v522_v15, 0.0  ;;  %v572_v4 = vmul.f32 %v6400_v61, %v5977_v23  ;;  %v573_v19 = vmul.f32 %v6400_v61, %v5973_v22 }
  0x9d   :  { %13270 = vst [vmem:[#allocation57_spill] sm:$0xff] %v6389_v12  ;;  %v12044_v49 = vmax.f32 %v6389_v12, 0.0  ;;  %v6407_v32 = vrot.slane %v527_v62, 1  ;;  %v536_v5 = vrot.slane %v528_v56, 1  ;;  %v574_v3 = vmul.f32 %v6400_v61, %v5969_v21 }
  0x9e   :  { %v537_v34 = vrot.slane %v529_v2, 1  ;;  %v538_v9 = vrot.slane %v530_v33, 1  ;;  %v575_v24 = vmul.f32 %v6400_v61, %v5965_v20  ;;  %v579_v44 = vadd.f32 %v571_v31, %v561_v7 }
  0x9f   :  { %13272 = vst [vmem:[#allocation59_spill] sm:$0xff] %v6407_v32  ;;  %v6413_v46 = vrot.slane %v12044_v49, 1  ;;  %v549_v22 = vsel %vm127_vm0, %v6407_v32, %v536_v5  ;;  %v580_v8 = vadd.f32 %v572_v4, %v562_v63  ;;  %v581_v15 = vadd.f32 %v573_v19, %v563_v10 }
  0xa0   :  { %v548_v23 = vsel %vm127_vm0, %v536_v5, %v537_v34  ;;  %v547_v21 = vsel %vm127_vm0, %v537_v34, %v538_v9  ;;  %v6429_v60 = vmax.f32 %v527_v62, %v549_v22  ;;  %v582_v49 = vadd.f32 %v574_v3, %v564_v17 }
  0xa1   :  { %13273 = vst [vmem:[#allocation60_spill] sm:$0xff] %v6413_v46  ;;  %v546_v59 = vsel %vm127_vm0, %v538_v9, %v6413_v46  ;;  %v6431_v20 = vmax.f32 %v528_v56, %v548_v23  ;;  %v6433_v36 = vmax.f32 %v529_v2, %v547_v21  ;;  %v583_v7 = vadd.f32 %v575_v24, %v565_v1 }
  0xa2   :  { %13274 = vst [vmem:[#allocation61_spill] sm:$0xff] %v6429_v60  ;;  %v6435_v30 = vmax.f32 %v530_v33, %v546_v59  ;;  %v6440_v63 = vstv %s6385_s22  ;;  %v6443_v31 = vstv %s6395_s25  ;;  %v6446_v4 = vstv %s6397_s4  ;;  %s6966_s22 = sld [smem:[#allocation9 + $0x52]]  ;;  %s6968_s25 = sld [smem:[#allocation9 + $0x53]] }
  0xa3   :  { %13275 = vst [vmem:[#allocation62_spill] sm:$0xff] %v6431_v20  ;;  %13276 = vst [vmem:[#allocation63_spill] sm:$0xff] %v6433_v36  ;;  %v589_v62 = vmul.f32 %v6440_v63, %v6007_v29  ;;  %v590_v56 = vmul.f32 %v6440_v63, %v6001_v28  ;;  %v591_v2 = vmul.f32 %v6440_v63, %v5997_v27  ;;  %v12048_v21 = vrot.slane %v6212_v57, 2  ;;  %s6995_s4 = sld [smem:[#allocation9 + $0x54]] }
  0xa4   :  { %13277 = vst [vmem:[#allocation64_spill] sm:$0xff] %v6435_v30  ;;  %13278 = vst [vmem:[#allocation65_spill] sm:$0xff] %v6440_v63  ;;  %v592_v10 = vmul.f32 %v6440_v63, %v5993_v26  ;;  %v593_v17 = vmul.f32 %v6440_v63, %v5989_v25  ;;  %v607_v1 = vmul.f32 %v6443_v31, %v6041_v43  ;;  %v6757_v61 = vstv %s6637_s27  ;;  %s7015_s27 = sld [smem:[#allocation9 + $0x56]] }
  0xa5   :  { %13279 = vst [vmem:[#allocation66_spill] sm:$0xff] %v6443_v31  ;;  %13280 = vst [vmem:[#allocation67_spill] sm:$0xff] %v6446_v4  ;;  %v608_v33 = vmul.f32 %v6443_v31, %v6035_v42  ;;  %v609_v29 = vmul.f32 %v6443_v31, %v6031_v41  ;;  %v597_v5 = vadd.f32 %v589_v62, %v579_v44  ;;  %v6760_v37 = vstv %s6648_s28  ;;  %s7032_s28 = sld [smem:[#allocation9 + $0x57]] }
  0xa6   :  { %v598_v28 = vadd.f32 %v590_v56, %v580_v8  ;;  %v599_v34 = vadd.f32 %v591_v2, %v581_v15  ;;  %v600_v19 = vadd.f32 %v592_v10, %v582_v49  ;;  %v601_v27 = vadd.f32 %v593_v17, %v583_v7  ;;  %13328 = vst [vmem:[#allocation110_spill] sm:$0xff] %v6757_v61 }
  0xa7   :  { %v610_v26 = vmul.f32 %v6443_v31, %v6027_v40  ;;  %v611_v25 = vmul.f32 %v6443_v31, %v6023_v39  ;;  %v625_v43 = vmul.f32 %v6446_v4, %v6080_v54  ;;  %v615_v9 = vadd.f32 %v607_v1, %v597_v5  ;;  %13329 = vst [vmem:[#allocation111_spill] sm:$0xff] %v6760_v37 }
  0xa8   :  { %v616_v42 = vadd.f32 %v608_v33, %v598_v28  ;;  %v617_v3 = vadd.f32 %v609_v29, %v599_v34  ;;  %v626_v41 = vmul.f32 %v6446_v4, %v6074_v53  ;;  %v627_v49 = vmul.f32 %v6446_v4, %v6070_v52 }
  0xa9   :  { %v618_v24 = vadd.f32 %v610_v26, %v600_v19  ;;  %v619_v23 = vadd.f32 %v611_v25, %v601_v27  ;;  %v628_v40 = vmul.f32 %v6446_v4, %v6066_v51  ;;  %v629_v39 = vmul.f32 %v6446_v4, %v6062_v50 }
  0xaa   :  { %v633_v22 = vadd.f32 %v625_v43, %v615_v9  ;;  %v634_v44 = vadd.f32 %v626_v41, %v616_v42  ;;  %v6479_v54 = vstv %s6437_s26  ;;  %v635_v8 = vadd.f32 %v627_v49, %v617_v3  ;;  %s7013_s26 = sld [smem:[#allocation9 + $0x55]] }
  0xab   :  { %13281 = vst [vmem:[#allocation68_spill] sm:$0xff] %v6479_v54  ;;  %v636_v59 = vadd.f32 %v628_v40, %v618_v24  ;;  %v684_v53 = vrot.slane %v6214_v58, 2  ;;  %v637_v15 = vadd.f32 %v629_v39, %v619_v23  ;;  %v685_v51 = vrot.slane %v6216_v11, 2 }
  0xac   :  { %v643_v7 = vadd.f32 %v6479_v54, %v633_v22  ;;  %v644_v52 = vadd.f32 %v6479_v54, %v634_v44  ;;  %v645_v62 = vadd.f32 %v6479_v54, %v635_v8  ;;  %v12057_v56 = vrot.slane %v6218_v38, 2 }
  0xad   :  { %v646_v50 = vadd.f32 %v6479_v54, %v636_v59  ;;  %v6493_v2 = vsel %vm144_vm1, %v12048_v21, %v684_v53  ;;  %v6496_v10 = vadd.f32 %v6479_v54, %v637_v15  ;;  %v6500_v33 = vsel %vm144_vm1, %v684_v53, %v685_v51 }
  0xae   :  { %13282 = vst [vmem:[#allocation69_spill] sm:$0xff] %v6493_v2  ;;  %v651_v17 = vmax.f32 %v643_v7, 0.0  ;;  %v652_v1 = vmax.f32 %v644_v52, 0.0  ;;  %13284 = vst [vmem:[#allocation71_spill] sm:$0xff] %v6500_v33  ;;  %v653_v29 = vmax.f32 %v645_v62, 0.0  ;;  %v6506_v28 = vsel %vm144_vm1, %v685_v51, %v12057_v56 }
  0xaf   :  { %13283 = vst [vmem:[#allocation70_spill] sm:$0xff] %v6496_v10  ;;  %v654_v5 = vmax.f32 %v646_v50, 0.0  ;;  %13285 = vst [vmem:[#allocation72_spill] sm:$0xff] %v6506_v28  ;;  %v12047_v34 = vrot.slane %v6212_v57, 4  ;;  %v12050_v19 = vmax.f32 %v6496_v10, 0.0  ;;  %v700_v25 = vrot.slane %v6214_v58, 4 }
  0xb0   :  { %v6510_v27 = vrot.slane %v651_v17, 1  ;;  %v660_v26 = vrot.slane %v652_v1, 1  ;;  %v661_v43 = vrot.slane %v653_v29, 1  ;;  %v701_v42 = vrot.slane %v6216_v11, 4 }
  0xb1   :  { %v662_v9 = vrot.slane %v654_v5, 1  ;;  %v12056_v3 = vrot.slane %v6218_v38, 4  ;;  %v6517_v41 = vrot.slane %v12050_v19, 1  ;;  %v6526_v23 = vsel %vm178_vm3, %v12047_v34, %v700_v25 }
  0xb2   :  { %13286 = vst [vmem:[#allocation73_spill] sm:$0xff] %v6510_v27  ;;  %v673_v24 = vsel %vm127_vm0, %v6510_v27, %v660_v26  ;;  %13288 = vst [vmem:[#allocation75_spill] sm:$0xff] %v6526_v23  ;;  %v12046_v49 = vrot.slane %v6212_v57, 6  ;;  %v672_v39 = vsel %vm127_vm0, %v660_v26, %v661_v43  ;;  %v6550_v15 = vsel %vm178_vm3, %v700_v25, %v701_v42 }
  0xb3   :  { %13287 = vst [vmem:[#allocation74_spill] sm:$0xff] %v6517_v41  ;;  %v671_v40 = vsel %vm127_vm0, %v661_v43, %v662_v9  ;;  %v6533_v22 = vmax.f32 %v651_v17, %v673_v24  ;;  %v6539_v44 = vsel %vm178_vm3, %v701_v42, %v12056_v3  ;;  %v670_v8 = vsel %vm127_vm0, %v662_v9, %v6517_v41 }
  0xb4   :  { %13290 = vst [vmem:[#allocation77_spill] sm:$0xff] %v6539_v44  ;;  %v6544_v59 = vmax.f32 %v652_v1, %v672_v39  ;;  %v6546_v53 = vmax.f32 %v653_v29, %v671_v40  ;;  %13293 = vst [vmem:[#allocation80_spill] sm:$0xff] %v6550_v15  ;;  %v6552_v7 = vmax.f32 %v654_v5, %v670_v8  ;;  %v716_v52 = vrot.slane %v6214_v58, 6 }
  0xb5   :  { %13289 = vst [vmem:[#allocation76_spill] sm:$0xff] %v6533_v22  ;;  %v717_v51 = vrot.slane %v6216_v11, 6  ;;  %v12054_v62 = vrot.slane %v6218_v38, 6  ;;  %v12045_v50 = vrot.slane %v6319_v35, 2  ;;  %v733_v17 = vrot.slane %v6321_v45, 2 }
  0xb6   :  { %13291 = vst [vmem:[#allocation78_spill] sm:$0xff] %v6544_v59  ;;  %13292 = vst [vmem:[#allocation79_spill] sm:$0xff] %v6546_v53  ;;  %v734_v1 = vrot.slane %v6323_v18, 2  ;;  %v6575_v26 = vsel %vm723_vm4, %v12046_v49, %v716_v52  ;;  %v12051_v25 = vrot.slane %v6325_v14, 2  ;;  %v12049_v42 = vrot.slane %v6319_v35, 4 }
  0xb7   :  { %13294 = vst [vmem:[#allocation81_spill] sm:$0xff] %v6552_v7  ;;  %v6565_v29 = vsel %vm723_vm4, %v717_v51, %v12054_v62  ;;  %v6569_v5 = vsel %vm723_vm4, %v716_v52, %v717_v51  ;;  %13297 = vst [vmem:[#allocation84_spill] sm:$0xff] %v6575_v26  ;;  %v6586_v9 = vsel %vm144_vm1, %v12045_v50, %v733_v17  ;;  %v749_v24 = vrot.slane %v6321_v45, 4 }
  0xb8   :  { %13295 = vst [vmem:[#allocation82_spill] sm:$0xff] %v6565_v29  ;;  %13296 = vst [vmem:[#allocation83_spill] sm:$0xff] %v6569_v5  ;;  %v6580_v43 = vsel %vm144_vm1, %v733_v17, %v734_v1  ;;  %v6594_v40 = vsel %vm144_vm1, %v734_v1, %v12051_v25  ;;  %v750_v39 = vrot.slane %v6323_v18, 4  ;;  %v12052_v8 = vrot.slane %v6325_v14, 4 }
  0xb9   :  { %13298 = vst [vmem:[#allocation85_spill] sm:$0xff] %v6580_v43  ;;  %13299 = vst [vmem:[#allocation86_spill] sm:$0xff] %v6586_v9  ;;  %v12055_v52 = vrot.slane %v6319_v35, 6  ;;  %v6603_v51 = vsel %vm178_vm3, %v12049_v42, %v749_v24  ;;  %v765_v17 = vrot.slane %v6321_v45, 6  ;;  %v766_v50 = vrot.slane %v6323_v18, 6 }
  0xba   :  { %13300 = vst [vmem:[#allocation87_spill] sm:$0xff] %v6594_v40  ;;  %13301 = vst [vmem:[#allocation88_spill] sm:$0xff] %v6603_v51  ;;  %v12053_v49 = vrot.slane %v6325_v14, 6  ;;  %v6612_v1 = vsel %vm178_vm3, %v750_v39, %v12052_v8  ;;  %v6616_v34 = vsel %vm178_vm3, %v749_v24, %v750_v39  ;;  %v12058_v21 = vrot.slane %v6429_v60, 2 }
  0xbb   :  { %13302 = vst [vmem:[#allocation89_spill] sm:$0xff] %v6612_v1  ;;  %13303 = vst [vmem:[#allocation90_spill] sm:$0xff] %v6616_v34  ;;  %v781_v42 = vrot.slane %v6431_v20, 2  ;;  %v6628_v25 = vsel %vm723_vm4, %v765_v17, %v766_v50  ;;  %v6634_v24 = vsel %vm723_vm4, %v12055_v52, %v765_v17  ;;  %v782_v39 = vrot.slane %v6433_v36, 2 }
  0xbc   :  { %v6624_v19 = vsel %vm723_vm4, %v766_v50, %v12053_v49  ;;  %13305 = vst [vmem:[#allocation92_spill] sm:$0xff] %v6628_v25  ;;  %13306 = vst [vmem:[#allocation93_spill] sm:$0xff] %v6634_v24  ;;  %v12061_v8 = vrot.slane %v6435_v30, 2  ;;  %v12064_v50 = vrot.slane %v6429_v60, 4  ;;  %v797_v62 = vrot.slane %v6431_v20, 4 }
  0xbd   :  { %13304 = vst [vmem:[#allocation91_spill] sm:$0xff] %v6624_v19  ;;  %v6644_v49 = vsel %vm144_vm1, %v12058_v21, %v781_v42  ;;  %v6652_v17 = vsel %vm144_vm1, %v781_v42, %v782_v39  ;;  %v798_v52 = vrot.slane %v6433_v36, 4  ;;  %v813_v27 = vrot.slane %v6431_v20, 6 }
  0xbe   :  { %13307 = vst [vmem:[#allocation94_spill] sm:$0xff] %v6644_v49  ;;  %13308 = vst [vmem:[#allocation95_spill] sm:$0xff] %v6652_v17  ;;  %v6663_v21 = vsel %vm144_vm1, %v782_v39, %v12061_v8  ;;  %v6669_v42 = vsel %vm178_vm3, %v12064_v50, %v797_v62  ;;  %v814_v3 = vrot.slane %v6433_v36, 6  ;;  %v13311_v56 = vrot.slane %v6435_v30, 4 }
  0xbf   :  { %13309 = vst [vmem:[#allocation96_spill] sm:$0xff] %v6663_v21  ;;  %13310 = vst [vmem:[#allocation97_spill] sm:$0xff] %v6669_v42  ;;  %v6681_v39 = vsel %vm178_vm3, %v797_v62, %v798_v52  ;;  %v12071_v8 = vrot.slane %v6435_v30, 6  ;;  %v13315_v10 = vrot.slane %v6429_v60, 6  ;;  %v830_v54 = vrot.slane %v6546_v53, 2 }
  0xc0   :  { %v6677_v32 = vsel %vm178_vm3, %v798_v52, %v13311_v56  ;;  %13313 = vst [vmem:[#allocation99_spill] sm:$0xff] %v6681_v39  ;;  %v6687_v50 = vsel %vm723_vm4, %v813_v27, %v814_v3  ;;  %v829_v56 = vrot.slane %v6544_v59, 2  ;;  %v12078_v52 = vrot.slane %v6552_v7, 2 }
  0xc1   :  { %13312 = vst [vmem:[#allocation98_spill] sm:$0xff] %v6677_v32  ;;  %13314 = vst [vmem:[#allocation100_spill] sm:$0xff] %v6687_v50  ;;  %v6693_v41 = vsel %vm723_vm4, %v13315_v10, %v813_v27  ;;  %v6703_v62 = vsel %vm723_vm4, %v814_v3, %v12071_v8  ;;  %v845_v12 = vrot.slane %v6544_v59, 4  ;;  %v13319_v27 = vrot.slane %v6533_v22, 2 }
  0xc2   :  { %13316 = vst [vmem:[#allocation101_spill] sm:$0xff] %v6693_v41  ;;  %13317 = vst [vmem:[#allocation102_spill] sm:$0xff] %v6703_v62  ;;  %v6710_v10 = vsel %vm144_vm1, %v829_v56, %v830_v54  ;;  %v846_v3 = vrot.slane %v6546_v53, 4  ;;  %v6728_v0 = vsel %vm144_vm1, %v830_v54, %v12078_v52  ;;  %v13322_v4 = vrot.slane %v6533_v22, 4 }
  0xc3   :  { %13318 = vst [vmem:[#allocation103_spill] sm:$0xff] %v6710_v10  ;;  %v6716_v46 = vsel %vm144_vm1, %v13319_v27, %v829_v56  ;;  %13321 = vst [vmem:[#allocation105_spill] sm:$0xff] %v6728_v0  ;;  %v12085_v27 = vrot.slane %v6533_v22, 6  ;;  %v861_v8 = vrot.slane %v6544_v59, 6  ;;  %v13324_v31 = vrot.slane %v6552_v7, 4 }
  0xc4   :  { %13320 = vst [vmem:[#allocation104_spill] sm:$0xff] %v6716_v46  ;;  %v6734_v56 = vsel %vm178_vm3, %v13322_v4, %v845_v12  ;;  %v6746_v54 = vsel %vm178_vm3, %v845_v12, %v846_v3  ;;  %v862_v52 = vrot.slane %v6546_v53, 6  ;;  %v12088_v63 = vrot.slane %v6552_v7, 6 }
  0xc5   :  { %13323 = vst [vmem:[#allocation106_spill] sm:$0xff] %v6734_v56  ;;  %v6742_v55 = vsel %vm178_vm3, %v846_v3, %v13324_v31  ;;  %13326 = vst [vmem:[#allocation108_spill] sm:$0xff] %v6746_v54  ;;  %v6754_v4 = vsel %vm723_vm4, %v12085_v27, %v861_v8  ;;  %v6763_v31 = vstv %s6657_s29  ;;  %v882_v27 = vmul.f32 %v6757_v61, %v6212_v57  ;;  %s7043_s29 = sld [smem:[#allocation9 + $0x58]] }
  0xc6   :  { %13325 = vst [vmem:[#allocation107_spill] sm:$0xff] %v6742_v55  ;;  %13327 = vst [vmem:[#allocation109_spill] sm:$0xff] %v6754_v4  ;;  %v6773_v12 = vsel %vm723_vm4, %v862_v52, %v12088_v63  ;;  %v6777_v3 = vsel %vm723_vm4, %v861_v8, %v862_v52  ;;  %v883_v16 = vmul.f32 %v6757_v61, %v6214_v58  ;;  %v6802_v57 = vstv %s6697_s5  ;;  %s7053_s5 = sld [smem:[#allocation9 + $0x59]] }
  0xc7   :  { %13330 = vst [vmem:[#allocation112_spill] sm:$0xff] %v6763_v31  ;;  %13331 = vst [vmem:[#allocation113_spill] sm:$0xff] %v6773_v12  ;;  %v884_v63 = vmul.f32 %v6757_v61, %v6216_v11  ;;  %v892_v48 = vmul.f32 %v6760_v37, %v6493_v2  ;;  %v893_v8 = vmul.f32 %v6760_v37, %v6500_v33 }
  0xc8   :  { %13332 = vst [vmem:[#allocation114_spill] sm:$0xff] %v6777_v3  ;;  %v894_v52 = vmul.f32 %v6760_v37, %v6506_v28  ;;  %v910_v47 = vmul.f32 %v6763_v31, %v6526_v23  ;;  %v911_v6 = vmul.f32 %v6763_v31, %v6550_v15  ;;  %v912_v13 = vmul.f32 %v6763_v31, %v6539_v44 }
  0xc9   :  { %13333 = vst [vmem:[#allocation115_spill] sm:$0xff] %v6802_v57  ;;  %v900_v61 = vadd.f32 %v892_v48, %v882_v27  ;;  %v901_v7 = vadd.f32 %v893_v8, %v883_v16  ;;  %v928_v33 = vmul.f32 %v6802_v57, %v6575_v26  ;;  %v929_v37 = vmul.f32 %v6802_v57, %v6569_v5 }
  0xca   :  { %v902_v2 = vadd.f32 %v894_v52, %v884_v63  ;;  %v930_v23 = vmul.f32 %v6802_v57, %v6565_v29  ;;  %v6811_v28 = vstv %s6720_s23  ;;  %v6814_v15 = vstv %s6722_s24  ;;  %s7055_s23 = sld [smem:[#allocation9 + $0x5a]]  ;;  %s7074_s24 = sld [smem:[#allocation9 + $0x5b]] }
  0xcb   :  { %13334 = vst [vmem:[#allocation116_spill] sm:$0xff] %v6811_v28  ;;  %13335 = vst [vmem:[#allocation117_spill] sm:$0xff] %v6814_v15  ;;  %v918_v31 = vadd.f32 %v910_v47, %v900_v61  ;;  %v919_v44 = vadd.f32 %v911_v6, %v901_v7  ;;  %v946_v16 = vmul.f32 %v6811_v28, %v6214_v58  ;;  %v6835_v7 = vstv %s6765_s30  ;;  %s7087_s30 = sld [smem:[#allocation9 + $0x5c]] }
  0xcc   :  { %v920_v48 = vadd.f32 %v912_v13, %v902_v2  ;;  %v947_v63 = vmul.f32 %v6811_v28, %v6216_v11  ;;  %v948_v27 = vmul.f32 %v6811_v28, %v6218_v38  ;;  %v964_v8 = vmul.f32 %v6814_v15, %v6319_v35  ;;  %13336 = vst [vmem:[#allocation118_spill] sm:$0xff] %v6835_v7 }
  0xcd   :  { %v965_v6 = vmul.f32 %v6814_v15, %v6321_v45  ;;  %v936_v13 = vadd.f32 %v928_v33, %v918_v31  ;;  %v937_v47 = vadd.f32 %v929_v37, %v919_v44  ;;  %v966_v2 = vmul.f32 %v6814_v15, %v6323_v18 }
  0xce   :  { %v938_v61 = vadd.f32 %v930_v23, %v920_v48  ;;  %v6838_v52 = vstv %s6767_s10  ;;  %v6841_v28 = vstv %s6783_s11  ;;  %v6844_v57 = vstv %s6785_s12  ;;  %s7089_s10 = sld [smem:[#allocation9 + $0x5d]]  ;;  %s7108_s11 = sld [smem:[#allocation9 + $0x5e]] }
  0xcf   :  { %13337 = vst [vmem:[#allocation119_spill] sm:$0xff] %v6838_v52  ;;  %13338 = vst [vmem:[#allocation120_spill] sm:$0xff] %v6841_v28  ;;  %v954_v35 = vadd.f32 %v946_v16, %v936_v13  ;;  %v955_v38 = vadd.f32 %v947_v63, %v937_v47  ;;  %v982_v5 = vmul.f32 %v6835_v7, %v6586_v9  ;;  %s7110_s12 = sld [smem:[#allocation9 + $0x5f]] }
  0xd0   :  { %13339 = vst [vmem:[#allocation121_spill] sm:$0xff] %v6844_v57  ;;  %v956_v29 = vadd.f32 %v948_v27, %v938_v61  ;;  %v983_v37 = vmul.f32 %v6835_v7, %v6580_v43  ;;  %v984_v33 = vmul.f32 %v6835_v7, %v6594_v40  ;;  %v1000_v23 = vmul.f32 %v6838_v52, %v6603_v51 }
  0xd1   :  { %v1001_v44 = vmul.f32 %v6838_v52, %v6616_v34  ;;  %v972_v31 = vadd.f32 %v964_v8, %v954_v35  ;;  %v973_v48 = vadd.f32 %v965_v6, %v955_v38  ;;  %v1002_v63 = vmul.f32 %v6838_v52, %v6612_v1 }
  0xd2   :  { %v974_v16 = vadd.f32 %v966_v2, %v956_v29  ;;  %v1018_v27 = vmul.f32 %v6841_v28, %v6634_v24  ;;  %v1019_v13 = vmul.f32 %v6841_v28, %v6628_v25  ;;  %v1020_v47 = vmul.f32 %v6841_v28, %v6624_v19 }
  0xd3   :  { %v1036_v61 = vmul.f32 %v6844_v57, %v6321_v45  ;;  %v990_v38 = vadd.f32 %v982_v5, %v972_v31  ;;  %v991_v35 = vadd.f32 %v983_v37, %v973_v48  ;;  %v1037_v8 = vmul.f32 %v6844_v57, %v6323_v18 }
  0xd4   :  { %v992_v29 = vadd.f32 %v984_v33, %v974_v16  ;;  %v1038_v6 = vmul.f32 %v6844_v57, %v6325_v14  ;;  %v6877_v2 = vstv %s6818_s13  ;;  %v6880_v52 = vstv %s6828_s0  ;;  %s7131_s13 = sld [smem:[#allocation9 + $0x60]]  ;;  %s7145_s0 = sld [smem:[#allocation9 + $0x61]] }
  0xd5   :  { %13340 = vst [vmem:[#allocation122_spill] sm:$0xff] %v6877_v2  ;;  %13341 = vst [vmem:[#allocation123_spill] sm:$0xff] %v6880_v52  ;;  %v6883_v28 = vstv %s6830_s1  ;;  %v1008_v7 = vadd.f32 %v1000_v23, %v990_v38  ;;  %v1009_v15 = vadd.f32 %v1001_v44, %v991_v35  ;;  %v1054_v5 = vmul.f32 %v6877_v2, %v6429_v60  ;;  %s7147_s1 = sld [smem:[#allocation9 + $0x62]] }
  0xd6   :  { %13342 = vst [vmem:[#allocation124_spill] sm:$0xff] %v6883_v28  ;;  %v1010_v19 = vadd.f32 %v1002_v63, %v992_v29  ;;  %v1055_v37 = vmul.f32 %v6877_v2, %v6431_v20  ;;  %v1056_v33 = vmul.f32 %v6877_v2, %v6433_v36  ;;  %v1072_v31 = vmul.f32 %v6880_v52, %v6644_v49 }
  0xd7   :  { %v1073_v23 = vmul.f32 %v6880_v52, %v6652_v17  ;;  %v1026_v44 = vadd.f32 %v1018_v27, %v1008_v7  ;;  %v1027_v48 = vadd.f32 %v1019_v13, %v1009_v15  ;;  %v1074_v63 = vmul.f32 %v6880_v52, %v6663_v21 }
  0xd8   :  { %v1028_v16 = vadd.f32 %v1020_v47, %v1010_v19  ;;  %v1090_v38 = vmul.f32 %v6883_v28, %v6669_v42  ;;  %v1091_v35 = vmul.f32 %v6883_v28, %v6681_v39  ;;  %v1092_v29 = vmul.f32 %v6883_v28, %v6677_v32 }
  0xd9   :  { %v6912_v2 = vstv %s6856_s3  ;;  %v1044_v57 = vadd.f32 %v1036_v61, %v1026_v44  ;;  %v1045_v17 = vadd.f32 %v1037_v8, %v1027_v48  ;;  %v6921_v27 = vstv %s6868_s14  ;;  %s7167_s3 = sld [smem:[#allocation9 + $0x63]]  ;;  %s7169_s14 = sld [smem:[#allocation10 + $0x4]] }
  0xda   :  { %13343 = vst [vmem:[#allocation125_spill] sm:$0xff] %v6912_v2  ;;  %v1046_v49 = vadd.f32 %v1038_v6, %v1028_v16  ;;  %v1108_v19 = vmul.f32 %v6912_v2, %v6693_v41  ;;  %v1109_v15 = vmul.f32 %v6912_v2, %v6687_v50  ;;  %v1110_v7 = vmul.f32 %v6912_v2, %v6703_v62 }
  0xdb   :  { %13344 = vst [vmem:[#allocation126_spill] sm:$0xff] %v6921_v27  ;;  %v6924_v13 = vstv %s6870_s15  ;;  %v1062_v47 = vadd.f32 %v1054_v5, %v1044_v57  ;;  %v1063_v28 = vadd.f32 %v1055_v37, %v1045_v17  ;;  %v1126_v8 = vmul.f32 %v6921_v27, %v6431_v20  ;;  %s8621_s15 = sld [smem:[#allocation9 + $0x14]] }
  0xdc   :  { %13345 = vst [vmem:[#allocation127_spill] sm:$0xff] %v6924_v13  ;;  %v1064_v61 = vadd.f32 %v1056_v33, %v1046_v49  ;;  %v1127_v6 = vmul.f32 %v6921_v27, %v6433_v36  ;;  %v1128_v44 = vmul.f32 %v6921_v27, %v6435_v30  ;;  %v1144_v48 = vmul.f32 %v6924_v13, %v6533_v22 }
  0xdd   :  { %v1145_v57 = vmul.f32 %v6924_v13, %v6544_v59  ;;  %v1080_v49 = vadd.f32 %v1072_v31, %v1062_v47  ;;  %v1081_v17 = vadd.f32 %v1073_v23, %v1063_v28  ;;  %v1146_v37 = vmul.f32 %v6924_v13, %v6546_v53 }
  0xde   :  { %v1082_v5 = vadd.f32 %v1074_v63, %v1064_v61  ;;  %v6945_v33 = vstv %s6887_s16  ;;  %v6948_v16 = vstv %s6889_s17  ;;  %v6951_v27 = vstv %s6899_s18  ;;  %s8636_s16 = sld [smem:[#allocation9 + $0x15]]  ;;  %s8655_s17 = sld [smem:[#allocation9 + $0x16]] }
  0xdf   :  { %13346 = vst [vmem:[#allocation128_spill] sm:$0xff] %v6945_v33  ;;  %13347 = vst [vmem:[#allocation129_spill] sm:$0xff] %v6948_v16  ;;  %v6954_v2 = vstv %s6901_s19  ;;  %v1098_v52 = vadd.f32 %v1090_v38, %v1080_v49  ;;  %v1099_v22 = vadd.f32 %v1091_v35, %v1081_v17  ;;  %v1162_v62 = vmul.f32 %v6945_v33, %v6716_v46  ;;  %s8657_s18 = sld [smem:[#allocation9 + $0x17]]  ;;  %s8701_s19 = sld [smem:[#allocation9 + $0x18]] }
  0xe0   :  { %13348 = vst [vmem:[#allocation130_spill] sm:$0xff] %v6951_v27  ;;  %13349 = vst [vmem:[#allocation131_spill] sm:$0xff] %v6954_v2  ;;  %v1100_v30 = vadd.f32 %v1092_v29, %v1082_v5  ;;  %v1163_v28 = vmul.f32 %v6945_v33, %v6710_v10  ;;  %v1164_v31 = vmul.f32 %v6945_v33, %v6728_v0 }
  0xe1   :  { %v1180_v23 = vmul.f32 %v6948_v16, %v6734_v56  ;;  %v1181_v63 = vmul.f32 %v6948_v16, %v6746_v54  ;;  %v1116_v38 = vadd.f32 %v1108_v19, %v1098_v52  ;;  %v1117_v35 = vadd.f32 %v1109_v15, %v1099_v22  ;;  %v13350_v22 = vld [vmem:[#allocation81_spill] sm:$0xff] }
  0xe2   :  { %v1118_v29 = vadd.f32 %v1110_v7, %v1100_v30  ;;  %v1182_v47 = vmul.f32 %v6948_v16, %v6742_v55  ;;  %v1198_v61 = vmul.f32 %v6951_v27, %v6754_v4  ;;  %v1199_v49 = vmul.f32 %v6951_v27, %v6777_v3 }
  0xe3   :  { %v1200_v17 = vmul.f32 %v6951_v27, %v6773_v12  ;;  %v1216_v5 = vmul.f32 %v6954_v2, %v6544_v59  ;;  %v1134_v33 = vadd.f32 %v1126_v8, %v1116_v38  ;;  %v1135_v13 = vadd.f32 %v1127_v6, %v1117_v35  ;;  %v13354_v8 = vld [vmem:[#allocation36_spill] sm:$0xff]  ;;  %v13355_v35 = vld [vmem:[#allocation69_spill] sm:$0xff] }
  0xe4   :  { %v1136_v52 = vadd.f32 %v1128_v44, %v1118_v29  ;;  %v1217_v30 = vmul.f32 %v6954_v2, %v6546_v53  ;;  %v1218_v19 = vmul.f32 %v6954_v2, %v13350_v22  ;;  %v6985_v15 = vstv %s6928_s2  ;;  %v13356_v2 = vld [vmem:[#allocation71_spill] sm:$0xff]  ;;  %s8716_s2 = sld [smem:[#allocation9 + $0x19]] }
  0xe5   :  { %13351 = vst [vmem:[#allocation132_spill] sm:$0xff] %v6985_v15  ;;  %v6988_v7 = vstv %s6938_s20  ;;  %v6991_v16 = vstv %s6940_s21  ;;  %v1152_v27 = vadd.f32 %v1144_v48, %v1134_v33  ;;  %v1153_v12 = vadd.f32 %v1145_v57, %v1135_v13  ;;  %s8735_s20 = sld [smem:[#allocation9 + $0x1a]]  ;;  %s8737_s21 = sld [smem:[#allocation9 + $0x1b]] }
  0xe6   :  { %13352 = vst [vmem:[#allocation133_spill] sm:$0xff] %v6988_v7  ;;  %13353 = vst [vmem:[#allocation134_spill] sm:$0xff] %v6991_v16  ;;  %v1154_v3 = vadd.f32 %v1146_v37, %v1136_v52  ;;  %v2902_v6 = vmul.f32 %v6988_v7, %v13354_v8  ;;  %v2903_v44 = vmul.f32 %v6988_v7, %v6214_v58  ;;  %v13357_v37 = vld [vmem:[#allocation72_spill] sm:$0xff]  ;;  %v7008_v4 = vstv %s6966_s22  ;;  %s8756_s22 = sld [smem:[#allocation9 + $0x1c]] }
  0xe7   :  { %v2904_v38 = vmul.f32 %v6988_v7, %v6216_v11  ;;  %v2912_v29 = vmul.f32 %v6991_v16, %v13355_v35  ;;  %v2913_v48 = vmul.f32 %v6991_v16, %v13356_v2  ;;  %v1170_v33 = vadd.f32 %v1162_v62, %v1152_v27  ;;  %v13358_v62 = vld [vmem:[#allocation75_spill] sm:$0xff] }
  0xe8   :  { %v1171_v13 = vadd.f32 %v1163_v28, %v1153_v12  ;;  %v1172_v57 = vadd.f32 %v1164_v31, %v1154_v3  ;;  %v2914_v52 = vmul.f32 %v6991_v16, %v13357_v37  ;;  %v7011_v55 = vstv %s6968_s25  ;;  %v13359_v3 = vld [vmem:[#allocation80_spill] sm:$0xff]  ;;  %v13360_v28 = vld [vmem:[#allocation77_spill] sm:$0xff]  ;;  %s8758_s25 = sld [smem:[#allocation9 + $0x1d]] }
  0xe9   :  { %v2920_v8 = vadd.f32 %v2912_v29, %v2902_v6  ;;  %v2921_v22 = vadd.f32 %v2913_v48, %v2903_v44  ;;  %v1188_v35 = vadd.f32 %v1180_v23, %v1170_v33  ;;  %v2930_v12 = vmul.f32 %v7008_v4, %v13358_v62  ;;  %v13361_v23 = vld [vmem:[#allocation83_spill] sm:$0xff] }
  0xea   :  { %v1189_v7 = vadd.f32 %v1181_v63, %v1171_v13  ;;  %v1190_v54 = vadd.f32 %v1182_v47, %v1172_v57  ;;  %v2922_v2 = vadd.f32 %v2914_v52, %v2904_v38  ;;  %v2931_v27 = vmul.f32 %v7008_v4, %v13359_v3  ;;  %v13362_v13 = vld [vmem:[#allocation82_spill] sm:$0xff] }
  0xeb   :  { %v2932_v31 = vmul.f32 %v7008_v4, %v13360_v28  ;;  %v2948_v6 = vmul.f32 %v7011_v55, %v6575_v26  ;;  %v1206_v44 = vadd.f32 %v1198_v61, %v1188_v35  ;;  %v2949_v63 = vmul.f32 %v7011_v55, %v13361_v23 }
  0xec   :  { %v1207_v29 = vadd.f32 %v1199_v49, %v1189_v7  ;;  %v1208_v48 = vadd.f32 %v1200_v17, %v1190_v54  ;;  %v2938_v47 = vadd.f32 %v2930_v12, %v2920_v8  ;;  %v2939_v38 = vadd.f32 %v2931_v27, %v2921_v22 }
  0xed   :  { %v2940_v33 = vadd.f32 %v2932_v31, %v2922_v2  ;;  %v2950_v57 = vmul.f32 %v7011_v55, %v13362_v13  ;;  %v1224_v52 = vadd.f32 %v1216_v5, %v1206_v44  ;;  %v7030_v62 = vstv %s6995_s4  ;;  %v13367_v44 = vld [vmem:[#allocation48_spill] sm:$0xff]  ;;  %s8785_s4 = sld [smem:[#allocation9 + $0x1e]] }
  0xee   :  { %v1225_v3 = vadd.f32 %v1217_v30, %v1207_v29  ;;  %v1226_v28 = vadd.f32 %v1218_v19, %v1208_v48  ;;  %v2956_v61 = vadd.f32 %v2948_v6, %v2938_v47  ;;  %v2957_v54 = vadd.f32 %v2949_v63, %v2939_v38  ;;  %v13364_v19 = vld [vmem:[#allocation39_spill] sm:$0xff] }
  0xef   :  { %v2958_v49 = vadd.f32 %v2950_v57, %v2940_v33  ;;  %v2966_v17 = vmul.f32 %v7030_v62, %v6214_v58  ;;  %v1234_v2 = vadd.f32 %v6985_v15, %v1224_v52  ;;  %v2967_v30 = vmul.f32 %v7030_v62, %v6216_v11  ;;  %v13408_v11 = vld [vmem:[#allocation28_spill] sm:$0xff] }
  0xf0   :  { %v1235_v22 = vadd.f32 %v6985_v15, %v1225_v3  ;;  %v7039_v5 = vadd.f32 %v6985_v15, %v1226_v28  ;;  %v2968_v7 = vmul.f32 %v7030_v62, %v13364_v19  ;;  %v7048_v35 = vstv %s7013_s26  ;;  %s8809_s26 = sld [smem:[#allocation9 + $0x1f]] }
  0xf1   :  { %v2974_v8 = vadd.f32 %v2966_v17, %v2956_v61  ;;  %13365 = vst [vmem:[#allocation136_spill] sm:$0xff] %v7048_v35  ;;  %v7051_v12 = vstv %s7015_s27  ;;  %v1242_v3 = vmax.f32 %v1234_v2, 0.0  ;;  %v2975_v31 = vadd.f32 %v2967_v30, %v2957_v54  ;;  %s8811_s27 = sld [smem:[#allocation9 + $0x20]] }
  0xf2   :  { %13363 = vst [vmem:[#allocation135_spill] sm:$0xff] %v7039_v5  ;;  %13366 = vst [vmem:[#allocation137_spill] sm:$0xff] %v7051_v12  ;;  %v1243_v27 = vmax.f32 %v1235_v22, 0.0  ;;  %v12185_v28 = vmax.f32 %v7039_v5, 0.0  ;;  %v2976_v6 = vadd.f32 %v2968_v7, %v2958_v49  ;;  %v2984_v29 = vmul.f32 %v7048_v35, %v13367_v44 }
  0xf3   :  { %v2985_v48 = vmul.f32 %v7048_v35, %v6321_v45  ;;  %v2986_v63 = vmul.f32 %v7048_v35, %v6323_v18  ;;  %v7064_v47 = vrot.slane %v1242_v3, 2  ;;  %v3002_v57 = vmul.f32 %v7051_v12, %v6586_v9  ;;  %v7208_v9 = vld [vmem:[#allocation2 + $0x30] sm:$0xff] }
  0xf4   :  { %v1251_v38 = vrot.slane %v1243_v27, 2  ;;  %v7068_v33 = vrot.slane %v12185_v28, 2  ;;  %v2992_v52 = vadd.f32 %v2984_v29, %v2974_v8  ;;  %v3003_v49 = vmul.f32 %v7051_v12, %v6580_v43 }
  0xf5   :  { %13368 = vst [vmem:[#allocation138_spill] sm:$0xff] %v7064_v47  ;;  %v2993_v61 = vadd.f32 %v2985_v48, %v2975_v31  ;;  %v2994_v54 = vadd.f32 %v2986_v63, %v2976_v6  ;;  %v3004_v30 = vmul.f32 %v7051_v12, %v6594_v40  ;;  %v7085_v7 = vstv %s7032_s28  ;;  %s8824_s28 = sld [smem:[#allocation9 + $0x21]] }
  0xf6   :  { %13369 = vst [vmem:[#allocation139_spill] sm:$0xff] %v7068_v33  ;;  %v1263_v2 = vsel %vm144_vm1, %v1251_v38, %v7068_v33  ;;  %v1264_v22 = vsel %vm144_vm1, %v7064_v47, %v1251_v38  ;;  %13371 = vst [vmem:[#allocation140_spill] sm:$0xff] %v7085_v7  ;;  %v3010_v6 = vadd.f32 %v3002_v57, %v2992_v52  ;;  %v7098_v40 = vstv %s7043_s29  ;;  %s8834_s29 = sld [smem:[#allocation9 + $0x22]] }
  0xf7   :  { %v1266_v8 = vmax.f32 %v1242_v3, %v1264_v22  ;;  %v1267_v31 = vmax.f32 %v1243_v27, %v1263_v2  ;;  %v3011_v29 = vadd.f32 %v3003_v49, %v2993_v61  ;;  %v3012_v48 = vadd.f32 %v3004_v30, %v2994_v54  ;;  %13372 = vst [vmem:[#allocation141_spill] sm:$0xff] %v7098_v40  ;;  %v13375_v2 = vld [vmem:[#allocation91_spill] sm:$0xff] }
  0xf8   :  { %v3020_v63 = vmul.f32 %v7085_v7, %v6603_v51  ;;  %v3021_v38 = vmul.f32 %v7085_v7, %v6616_v34  ;;  %v3022_v28 = vmul.f32 %v7085_v7, %v6612_v1  ;;  %v7101_v3 = vstv %s7053_s5  ;;  %v13508_v7 = vld [vmem:[#allocation121_spill] sm:$0xff]  ;;  %s8847_s5 = sld [smem:[#allocation9 + $0x23]] }
  0xf9   :  { %v5514_v47 = vpack.c.bf16 %v1267_v31, %v1266_v8  ;;  %13373 = vst [vmem:[#allocation142_spill] sm:$0xff] %v7101_v3  ;;  %v7104_v27 = vstv %s7055_s23  ;;  %v3038_v54 = vmul.f32 %v7098_v40, %v6634_v24  ;;  %v3039_v49 = vmul.f32 %v7098_v40, %v6628_v25  ;;  %v13378_v24 = vld [vmem:[#allocation95_spill] sm:$0xff]  ;;  %s8862_s23 = sld [smem:[#allocation9 + $0x24]] }
  0xfa   :  { %13374 = vst [vmem:[#allocation143_spill] sm:$0xff] %v7104_v27  ;;  %v3028_v57 = vadd.f32 %v3020_v63, %v3010_v6  ;;  %v3029_v52 = vadd.f32 %v3021_v38, %v3011_v29  ;;  %v3030_v61 = vadd.f32 %v3022_v28, %v3012_v48  ;;  %v3040_v22 = vmul.f32 %v7098_v40, %v13375_v2 }
  0xfb   :  { %5515 = vmatprep.subr.bf16.mxu1 %v5514_v47  ;;  %v3056_v30 = vmul.f32 %v7101_v3, %v6321_v45  ;;  %v3057_v28 = vmul.f32 %v7101_v3, %v6323_v18  ;;  %v3058_v31 = vmul.f32 %v7101_v3, %v6325_v14  ;;  %v3074_v6 = vmul.f32 %v7104_v27, %v6429_v60  ;;  %v13506_v3 = vld [vmem:[#allocation119_spill] sm:$0xff] }
  0xfc   :  { %v3046_v8 = vadd.f32 %v3038_v54, %v3028_v57  ;;  %v3075_v29 = vmul.f32 %v7104_v27, %v6431_v20  ;;  %5517 = vmatpush3.bf16.msra.mxu1 %v5514_v47  ;;  %v3047_v48 = vadd.f32 %v3039_v49, %v3029_v52  ;;  %v3048_v63 = vadd.f32 %v3040_v22, %v3030_v61  ;;  %v13377_v54 = vld [vmem:[#allocation94_spill] sm:$0xff] }
  0xfd   :  { %v3076_v38 = vmul.f32 %v7104_v27, %v6433_v36  ;;  %v7129_v2 = vstv %s7074_s24  ;;  %v7140_v61 = vstv %s7087_s30  ;;  %v7143_v49 = vstv %s7089_s10  ;;  %s8881_s24 = sld [smem:[#allocation9 + $0x25]]  ;;  %s8883_s30 = sld [smem:[#allocation9 + $0x26]] }
  0xfe   :  { %13376 = vst [vmem:[#allocation144_spill] sm:$0xff] %v7129_v2  ;;  %v3064_v57 = vadd.f32 %v3056_v30, %v3046_v8  ;;  %v3092_v25 = vmul.f32 %v7129_v2, %v13377_v54  ;;  %v3093_v1 = vmul.f32 %v7129_v2, %v13378_v24  ;;  %v3094_v34 = vmul.f32 %v7129_v2, %v6663_v21  ;;  %v13381_v54 = vld [vmem:[#allocation102_spill] sm:$0xff]  ;;  %s8897_s10 = sld [smem:[#allocation9 + $0x27]] }
  0xff   :  { %v3065_v47 = vadd.f32 %v3057_v28, %v3047_v48  ;;  %v3066_v52 = vadd.f32 %v3058_v31, %v3048_v63  ;;  %13379 = vst [vmem:[#allocation145_spill] sm:$0xff] %v7140_v61  ;;  %13380 = vst [vmem:[#allocation146_spill] sm:$0xff] %v7143_v49  ;;  %v3110_v30 = vmul.f32 %v7140_v61, %v6669_v42  ;;  %v7165_v42 = vstv %s7110_s12  ;;  %v13505_v2 = vld [vmem:[#allocation118_spill] sm:$0xff]  ;;  %s8911_s12 = sld [smem:[#allocation9 + $0x64]] }
 0x100   :  { %v3082_v22 = vadd.f32 %v3074_v6, %v3064_v57  ;;  %v3111_v8 = vmul.f32 %v7140_v61, %v6681_v39  ;;  %v3112_v28 = vmul.f32 %v7140_v61, %v6677_v32  ;;  %v3128_v63 = vmul.f32 %v7143_v49, %v6693_v41  ;;  %13383 = vst [vmem:[#allocation148_spill] sm:$0xff] %v7165_v42 }
 0x101   :  { %v3083_v31 = vadd.f32 %v3075_v29, %v3065_v47  ;;  %v3084_v48 = vadd.f32 %v3076_v38, %v3066_v52  ;;  %v3129_v21 = vmul.f32 %v7143_v49, %v6687_v50  ;;  %v3130_v6 = vmul.f32 %v7143_v49, %v13381_v54  ;;  %v13385_v50 = vld [vmem:[#allocation76_spill] sm:$0xff]  ;;  %v13504_v49 = vld [vmem:[#allocation117_spill] sm:$0xff] }
 0x102   :  { %v3100_v24 = vadd.f32 %v3092_v25, %v3082_v22  ;;  %v7162_v57 = vstv %s7108_s11  ;;  %v13384_v22 = vld [vmem:[#allocation64_spill] sm:$0xff]  ;;  %v3164_v41 = vmul.f32 %v7165_v42, %v13385_v50  ;;  %v3165_v32 = vmul.f32 %v7165_v42, %v6544_v59  ;;  %s8909_s11 = sld [smem:[#allocation10 + $0x1]] }
 0x103   :  { %13382 = vst [vmem:[#allocation147_spill] sm:$0xff] %v7162_v57  ;;  %v3101_v29 = vadd.f32 %v3093_v1, %v3083_v31  ;;  %v3102_v38 = vadd.f32 %v3094_v34, %v3084_v48  ;;  %v3146_v47 = vmul.f32 %v7162_v57, %v6431_v20  ;;  %v3147_v25 = vmul.f32 %v7162_v57, %v6433_v36 }
 0x104   :  { %v3118_v52 = vadd.f32 %v3110_v30, %v3100_v24  ;;  %v3148_v54 = vmul.f32 %v7162_v57, %v13384_v22  ;;  %v3166_v31 = vmul.f32 %v7165_v42, %v6546_v53  ;;  %v7184_v48 = vstv %s7131_s13  ;;  %s8925_s13 = sld [smem:[#allocation9 + $0x65]] }
 0x105   :  { %v3119_v1 = vadd.f32 %v3111_v8, %v3101_v29  ;;  %v3120_v34 = vadd.f32 %v3112_v28, %v3102_v38  ;;  %13386 = vst [vmem:[#allocation149_spill] sm:$0xff] %v7184_v48  ;;  %v3182_v24 = vmul.f32 %v7184_v48, %v6716_v46  ;;  %v3183_v30 = vmul.f32 %v7184_v48, %v6710_v10  ;;  %v13389_v38 = vld [vmem:[#allocation108_spill] sm:$0xff]  ;;  %v13390_v46 = vld [vmem:[#allocation107_spill] sm:$0xff] }
 0x106   :  { %v3136_v39 = vadd.f32 %v3128_v63, %v3118_v52  ;;  %v3184_v36 = vmul.f32 %v7184_v48, %v6728_v0  ;;  %v7193_v8 = vstv %s7145_s0  ;;  %v7196_v28 = vstv %s7147_s1  ;;  %s8927_s0 = sld [smem:[#allocation9 + $0x66]]  ;;  %s8952_s1 = sld [smem:[#allocation9 + $0x67]] }
 0x107   :  { %v3137_v20 = vadd.f32 %v3129_v21, %v3119_v1  ;;  %v3138_v51 = vadd.f32 %v3130_v6, %v3120_v34  ;;  %13387 = vst [vmem:[#allocation150_spill] sm:$0xff] %v7193_v8  ;;  %13388 = vst [vmem:[#allocation151_spill] sm:$0xff] %v7196_v28  ;;  %v3200_v63 = vmul.f32 %v7193_v8, %v6734_v56  ;;  %v13391_v21 = vld [vmem:[#allocation109_spill] sm:$0xff]  ;;  %v13392_v1 = vld [vmem:[#allocation114_spill] sm:$0xff]  ;;  %v7218_v45 = vstv %s7169_s14  ;;  %s8992_s14 = sld [smem:[#allocation9 + $0x69]] }
 0x108   :  { %v3154_v29 = vadd.f32 %v3146_v47, %v3136_v39  ;;  %v3201_v52 = vmul.f32 %v7193_v8, %v13389_v38  ;;  %v3202_v10 = vmul.f32 %v7193_v8, %v13390_v46  ;;  %v3218_v6 = vmul.f32 %v7196_v28, %v13391_v21  ;;  %v7210_v39 = vld [vmem:[#allocation2 + $0x38] sm:$0xff]  ;;  %v13394_v56 = vld [vmem:[#allocation113_spill] sm:$0xff]  ;;  %13396 = vst [vmem:[#allocation154_spill] sm:$0xff] %v7218_v45 }
 0x109   :  { %v3155_v43 = vadd.f32 %v3147_v25, %v3137_v20  ;;  %v3156_v0 = vadd.f32 %v3148_v54, %v3138_v51  ;;  %v3219_v34 = vmul.f32 %v7196_v28, %v13392_v1  ;;  %13393 = vst [vmem:[#allocation152_spill] sm:$0xff] %v7210_v39  ;;  %v3220_v18 = vmul.f32 %v7196_v28, %v13394_v56  ;;  %v13397_v21 = vld [vmem:[#allocation81_spill] sm:$0xff] }
 0x10a   :  { %v3172_v47 = vadd.f32 %v3164_v41, %v3154_v29  ;;  %v7215_v38 = vstv %s7167_s3  ;;  %v123_v41 = vrot.slane %v7208_v9, 1  ;;  %v12231_v29 = vrot.slane %v7210_v39, 1  ;;  %s8970_s3 = sld [smem:[#allocation9 + $0x68]] }
 0x10b   :  { %13395 = vst [vmem:[#allocation153_spill] sm:$0xff] %v7215_v38  ;;  %v3173_v20 = vadd.f32 %v3165_v32, %v3155_v43  ;;  %v3174_v51 = vadd.f32 %v3166_v31, %v3156_v0  ;;  %v3236_v54 = vmul.f32 %v7215_v38, %v6544_v59  ;;  %v3237_v25 = vmul.f32 %v7215_v38, %v6546_v53  ;;  %v13398_v31 = vld [vmem:[#allocation22_spill] sm:$0xff]  ;;  %v7264_v53 = vld [vmem:[#allocation2 + $0x28] sm:$0xff]  ;;  %v13402_v59 = vld [vmem:[#allocation24_spill] sm:$0xff] }
 0x10c   :  { %v3190_v1 = vadd.f32 %v3182_v24, %v3172_v47  ;;  %v3238_v46 = vmul.f32 %v7215_v38, %v13397_v21  ;;  %v142_v23 = vrot.slane %v7208_v9, 2  ;;  %v12232_v0 = vrot.slane %v7210_v39, 2 }
 0x10d   :  { %v3191_v56 = vadd.f32 %v3183_v30, %v3173_v20  ;;  %v3192_v13 = vadd.f32 %v3184_v36, %v3174_v51  ;;  %v7234_v43 = vsel %vm127_vm0, %v123_v41, %v12231_v29  ;;  %v13399_v24 = vrot.slane %v13398_v31, 1 }
 0x10e   :  { %v3208_v32 = vadd.f32 %v3200_v63, %v3190_v1  ;;  %v159_v30 = vrot.slane %v7208_v9, 3  ;;  %v7247_v63 = vsel %vm144_vm1, %v142_v23, %v12232_v0  ;;  %v13400_v1 = vrot.slane %v13398_v31, 2 }
 0x10f   :  { %v7240_v47 = vsel %vm127_vm0, %v13399_v24, %v123_v41  ;;  %v3209_v36 = vadd.f32 %v3201_v52, %v3191_v56  ;;  %v3210_v20 = vadd.f32 %v3202_v10, %v3192_v13  ;;  %v12237_v41 = vrot.slane %v7210_v39, 3 }
 0x110   :  { %v7253_v51 = vsel %vm144_vm1, %v13400_v1, %v142_v23  ;;  %v3226_v29 = vadd.f32 %v3218_v6, %v3208_v32  ;;  %v13401_v24 = vrot.slane %v13398_v31, 3  ;;  %v176_v56 = vrot.slane %v7208_v9, 4 }
 0x111   :  { %v3227_v13 = vadd.f32 %v3219_v34, %v3209_v36  ;;  %v3228_v52 = vadd.f32 %v3220_v18, %v3210_v20  ;;  %v12238_v0 = vrot.slane %v7210_v39, 4  ;;  %v194_v23 = vmul.f32 %v7264_v53, %v13402_v59 }
 0x112   :  { %v7260_v10 = vsel %vm161_vm2, %v13401_v24, %v159_v30  ;;  %v3244_v6 = vadd.f32 %v3236_v54, %v3226_v29  ;;  %v7272_v32 = vsel %vm161_vm2, %v159_v30, %v12237_v41  ;;  %v13403_v1 = vrot.slane %v13398_v31, 4  ;;  %v13404_v29 = vld [vmem:[#allocation25_spill] sm:$0xff] }
 0x113   :  { %v195_v18 = vmul.f32 %v13402_v59, %v7208_v9  ;;  %v3245_v36 = vadd.f32 %v3237_v25, %v3227_v13  ;;  %v3246_v20 = vadd.f32 %v3238_v46, %v3228_v52  ;;  %v7286_v54 = vsel %vm178_vm3, %v176_v56, %v12238_v0  ;;  %v13407_v52 = vld [vmem:[#allocation27_spill] sm:$0xff] }
 0x114   :  { %v7278_v34 = vsel %vm178_vm3, %v13403_v1, %v176_v56  ;;  %v204_v30 = vmul.f32 %v13404_v29, %v7240_v47  ;;  %v3254_v31 = vadd.f32 %v7218_v45, %v3244_v6  ;;  %v205_v24 = vmul.f32 %v13404_v29, %v7234_v43  ;;  %v13405_v1 = vld [vmem:[#allocation26_spill] sm:$0xff]  ;;  %v13415_v29 = vld [vmem:[#allocation40_spill] sm:$0xff] }
 0x115   :  { %v222_v41 = vmul.f32 %v13405_v1, %v7253_v51  ;;  %v223_v46 = vmul.f32 %v13405_v1, %v7247_v63  ;;  %v3255_v25 = vadd.f32 %v7218_v45, %v3245_v36  ;;  %v7299_v13 = vadd.f32 %v7218_v45, %v3246_v20 }
 0x116   :  { %v212_v56 = vadd.f32 %v204_v30, %v194_v23  ;;  %v240_v0 = vmul.f32 %v13407_v52, %v7260_v10  ;;  %v3262_v26 = vmax.f32 %v3254_v31, 0.0  ;;  %v213_v6 = vadd.f32 %v205_v24, %v195_v18  ;;  %v13410_v30 = vld [vmem:[#allocation30_spill] sm:$0xff] }
 0x117   :  { %13406 = vst [vmem:[#allocation22_spill] sm:$0xff] %v7299_v13  ;;  %v241_v37 = vmul.f32 %v13407_v52, %v7272_v32  ;;  %v258_v58 = vmul.f32 %v13408_v11, %v7278_v34  ;;  %v3263_v50 = vmax.f32 %v3255_v25, 0.0  ;;  %v12254_v60 = vmax.f32 %v7299_v13, 0.0 }
 0x118   :  { %v230_v44 = vadd.f32 %v222_v41, %v212_v56  ;;  %v259_v36 = vmul.f32 %v13408_v11, %v7286_v54  ;;  %v7310_v20 = vrot.slane %v3262_v26, 2  ;;  %v231_v23 = vadd.f32 %v223_v46, %v213_v6  ;;  %v13412_v41 = vld [vmem:[#allocation31_spill] sm:$0xff]  ;;  %v13413_v46 = vld [vmem:[#allocation32_spill] sm:$0xff]  ;;  %v13414_v11 = vld [vmem:[#allocation29_spill] sm:$0xff] }
 0x119   :  { %v318_v31 = vmul.f32 %v7264_v53, %v13410_v30  ;;  %v319_v18 = vmul.f32 %v13410_v30, %v7208_v9  ;;  %v3271_v24 = vrot.slane %v3263_v50, 2  ;;  %v7318_v45 = vrot.slane %v12254_v60, 2 }
 0x11a   :  { %13409 = vst [vmem:[#allocation155_spill] sm:$0xff] %v7310_v20  ;;  %v248_v25 = vadd.f32 %v240_v0, %v230_v44  ;;  %v328_v56 = vmul.f32 %v13412_v41, %v7240_v47  ;;  %v249_v5 = vadd.f32 %v241_v37, %v231_v23  ;;  %v329_v33 = vmul.f32 %v13412_v41, %v7234_v43 }
 0x11b   :  { %13411 = vst [vmem:[#allocation156_spill] sm:$0xff] %v7318_v45  ;;  %v346_v6 = vmul.f32 %v13413_v46, %v7253_v51  ;;  %v347_v15 = vmul.f32 %v13413_v46, %v7247_v63  ;;  %v3283_v13 = vsel %vm144_vm1, %v3271_v24, %v7318_v45  ;;  %v3284_v44 = vsel %vm144_vm1, %v7310_v20, %v3271_v24  ;;  %v13425_v20 = vld [vmem:[#allocation33_spill] sm:$0xff] }
 0x11c   :  { %v266_v0 = vadd.f32 %v258_v58, %v248_v25  ;;  %v336_v60 = vadd.f32 %v328_v56, %v318_v31  ;;  %v3286_v37 = vmax.f32 %v3262_v26, %v3284_v44  ;;  %v3287_v23 = vmax.f32 %v3263_v50, %v3283_v13  ;;  %v13417_v58 = vld [vmem:[#allocation41_spill] sm:$0xff] }
 0x11d   :  { %v267_v30 = vadd.f32 %v259_v36, %v249_v5  ;;  %v337_v41 = vadd.f32 %v329_v33, %v319_v18  ;;  %v364_v46 = vmul.f32 %v13415_v29, %v7260_v10  ;;  %v365_v59 = vmul.f32 %v13415_v29, %v7272_v32 }
 0x11e   :  { %v276_v52 = vadd.f32 %v13414_v11, %v266_v0  ;;  %v354_v1 = vadd.f32 %v346_v6, %v336_v60  ;;  %v5578_v45 = vpack.c.bf16 %v3287_v23, %v3286_v37  ;;  %v382_v26 = vmul.f32 %v13417_v58, %v7278_v34  ;;  %v13418_v60 = vld [vmem:[#allocation43_spill] sm:$0xff]  ;;  %v13423_v37 = vld [vmem:[#allocation42_spill] sm:$0xff] }
 0x11f   :  { %v7340_v39 = vadd.f32 %v13414_v11, %v267_v30  ;;  %v355_v24 = vadd.f32 %v347_v15, %v337_v41  ;;  %v383_v33 = vmul.f32 %v13417_v58, %v7286_v54  ;;  %v442_v13 = vmul.f32 %v7264_v53, %v13418_v60  ;;  %v13419_v15 = vld [vmem:[#allocation44_spill] sm:$0xff]  ;;  %v13422_v0 = vld [vmem:[#allocation35_spill] sm:$0xff] }
 0x120   :  { %v284_v50 = vmax.f32 %v276_v52, 0.0  ;;  %v372_v5 = vadd.f32 %v364_v46, %v354_v1  ;;  %5579 = vmatprep.subr.bf16.mxu0 %v5578_v45  ;;  %v443_v30 = vmul.f32 %v13418_v60, %v7208_v9  ;;  %v452_v18 = vmul.f32 %v13419_v15, %v7240_v47  ;;  %v13420_v41 = vld [vmem:[#allocation52_spill] sm:$0xff] }
 0x121   :  { %13416 = vst [vmem:[#allocation157_spill] sm:$0xff] %v7340_v39  ;;  %v12266_v36 = vmax.f32 %v7340_v39, 0.0  ;;  %v373_v31 = vadd.f32 %v365_v59, %v355_v24  ;;  %5581 = vmatpush3.bf16.msra.mxu0 %v5578_v45  ;;  %v453_v1 = vmul.f32 %v13419_v15, %v7234_v43  ;;  %v470_v56 = vmul.f32 %v13420_v41, %v7253_v51 }
 0x122   :  { %v292_v25 = vrot.slane %v284_v50, 1  ;;  %v390_v52 = vadd.f32 %v382_v26, %v372_v5  ;;  %v460_v6 = vadd.f32 %v452_v18, %v442_v13  ;;  %v471_v44 = vmul.f32 %v13420_v41, %v7247_v63  ;;  %v13424_v26 = vld [vmem:[#allocation53_spill] sm:$0xff] }
 0x123   :  { %v7359_v46 = vrot.slane %v12266_v36, 1  ;;  %v391_v59 = vadd.f32 %v383_v33, %v373_v31  ;;  %v461_v24 = vadd.f32 %v453_v1, %v443_v30  ;;  %v488_v5 = vmul.f32 %v13424_v26, %v7260_v10 }
 0x124   :  { %v297_v45 = vsel %vm127_vm0, %v13422_v0, %v292_v25  ;;  %v400_v23 = vadd.f32 %v13423_v37, %v390_v52  ;;  %v13426_v33 = vmax.f32 %v13425_v20, 0.0  ;;  %v478_v18 = vadd.f32 %v470_v56, %v460_v6 }
 0x125   :  { %13421 = vst [vmem:[#allocation158_spill] sm:$0xff] %v7359_v46  ;;  %v296_v36 = vsel %vm127_vm0, %v292_v25, %v7359_v46  ;;  %v7377_v31 = vadd.f32 %v13423_v37, %v391_v59  ;;  %v479_v52 = vadd.f32 %v471_v44, %v461_v24  ;;  %v489_v30 = vmul.f32 %v13424_v26, %v7272_v32  ;;  %v13430_v25 = vld [vmem:[#allocation54_spill] sm:$0xff] }
 0x126   :  { %v7374_v13 = vmax.f32 %v13426_v33, %v297_v45  ;;  %v7379_v39 = vmax.f32 %v284_v50, %v296_v36  ;;  %v408_v0 = vmax.f32 %v400_v23, 0.0  ;;  %v496_v11 = vadd.f32 %v488_v5, %v478_v18  ;;  %v13431_v33 = vld [vmem:[#allocation56_spill] sm:$0xff]  ;;  %v13433_v44 = vld [vmem:[#allocation58_spill] sm:$0xff]  ;;  %v13434_v5 = vld [vmem:[#allocation47_spill] sm:$0xff] }
 0x127   :  { %13428 = vst [vmem:[#allocation33_spill] sm:$0xff] %v7377_v31  ;;  %v12271_v1 = vmax.f32 %v7377_v31, 0.0  ;;  %v506_v46 = vmul.f32 %v13430_v25, %v7278_v34  ;;  %v507_v20 = vmul.f32 %v13430_v25, %v7286_v54  ;;  %v497_v59 = vadd.f32 %v489_v30, %v479_v52 }
 0x128   :  { %13427 = vst [vmem:[#allocation35_spill] sm:$0xff] %v7374_v13  ;;  %13429 = vst [vmem:[#allocation159_spill] sm:$0xff] %v7379_v39  ;;  %v416_v45 = vrot.slane %v408_v0, 1  ;;  %v566_v50 = vmul.f32 %v7264_v53, %v13431_v33  ;;  %v567_v36 = vmul.f32 %v13431_v33, %v7208_v9  ;;  %v576_v23 = vmul.f32 %v13433_v44, %v7240_v47  ;;  %v13435_v53 = vld [vmem:[#allocation65_spill] sm:$0xff] }
 0x129   :  { %v7394_v56 = vrot.slane %v12271_v1, 1  ;;  %v514_v6 = vadd.f32 %v506_v46, %v496_v11  ;;  %v577_v24 = vmul.f32 %v13433_v44, %v7234_v43  ;;  %v515_v52 = vadd.f32 %v507_v20, %v497_v59  ;;  %v13436_v46 = vld [vmem:[#allocation45_spill] sm:$0xff]  ;;  %v13439_v43 = vld [vmem:[#allocation55_spill] sm:$0xff]  ;;  %v13442_v59 = vld [vmem:[#allocation66_spill] sm:$0xff] }
 0x12a   :  { %v421_v18 = vsel %vm127_vm0, %v13434_v5, %v416_v45  ;;  %v594_v30 = vmul.f32 %v13435_v53, %v7253_v51  ;;  %v595_v9 = vmul.f32 %v13435_v53, %v7247_v63  ;;  %v13437_v47 = vmax.f32 %v13436_v46, 0.0 }
 0x12b   :  { %13432 = vst [vmem:[#allocation160_spill] sm:$0xff] %v7394_v56  ;;  %v420_v11 = vsel %vm127_vm0, %v416_v45, %v7394_v56  ;;  %v524_v31 = vadd.f32 %v13439_v43, %v514_v6  ;;  %v584_v44 = vadd.f32 %v576_v23, %v566_v50  ;;  %v7418_v20 = vadd.f32 %v13439_v43, %v515_v52  ;;  %v13469_v56 = vld [vmem:[#allocation74_spill] sm:$0xff] }
 0x12c   :  { %v7412_v1 = vmax.f32 %v13437_v47, %v421_v18  ;;  %v7415_v33 = vmax.f32 %v408_v0, %v420_v11  ;;  %v585_v51 = vadd.f32 %v577_v24, %v567_v36  ;;  %v612_v63 = vmul.f32 %v13442_v59, %v7260_v10  ;;  %v13443_v18 = vld [vmem:[#allocation67_spill] sm:$0xff] }
 0x12d   :  { %13441 = vst [vmem:[#allocation161_spill] sm:$0xff] %v7418_v20  ;;  %v532_v5 = vmax.f32 %v524_v31, 0.0  ;;  %v602_v53 = vadd.f32 %v594_v30, %v584_v44  ;;  %v613_v45 = vmul.f32 %v13442_v59, %v7272_v32  ;;  %v630_v46 = vmul.f32 %v13443_v18, %v7278_v34  ;;  %v13447_v30 = vld [vmem:[#allocation60_spill] sm:$0xff]  ;;  %v13473_v59 = vld [vmem:[#allocation70_spill] sm:$0xff] }
 0x12e   :  { %13438 = vst [vmem:[#allocation47_spill] sm:$0xff] %v7412_v1  ;;  %13440 = vst [vmem:[#allocation45_spill] sm:$0xff] %v7415_v33  ;;  %v12277_v6 = vmax.f32 %v7418_v20, 0.0  ;;  %v603_v50 = vadd.f32 %v595_v9, %v585_v51  ;;  %v631_v0 = vmul.f32 %v13443_v18, %v7286_v54  ;;  %v687_v23 = vrot.slane %v7374_v13, 2 }
 0x12f   :  { %v540_v36 = vrot.slane %v532_v5, 1  ;;  %v620_v24 = vadd.f32 %v612_v63, %v602_v53  ;;  %v12276_v10 = vrot.slane %v7379_v39, 2  ;;  %v703_v31 = vrot.slane %v7374_v13, 4 }
 0x130   :  { %v7434_v32 = vrot.slane %v12277_v6, 1  ;;  %v621_v44 = vadd.f32 %v613_v45, %v603_v50  ;;  %v13445_v34 = vrot.slane %v13364_v19, 2  ;;  %v12279_v54 = vrot.slane %v7379_v39, 4  ;;  %v13451_v45 = vld [vmem:[#allocation57_spill] sm:$0xff] }
 0x131   :  { %v545_v53 = vsel %vm127_vm0, %v13447_v30, %v540_v36  ;;  %v638_v9 = vadd.f32 %v630_v46, %v620_v24  ;;  %v7450_v11 = vsel %vm144_vm1, %v687_v23, %v12276_v10  ;;  %v13449_v47 = vrot.slane %v13364_v19, 4  ;;  %v13456_v30 = vld [vmem:[#allocation68_spill] sm:$0xff] }
 0x132   :  { %13444 = vst [vmem:[#allocation162_spill] sm:$0xff] %v7434_v32  ;;  %v7440_v52 = vsel %vm144_vm1, %v13445_v34, %v687_v23  ;;  %13448 = vst [vmem:[#allocation60_spill] sm:$0xff] %v7450_v11  ;;  %v544_v63 = vsel %vm127_vm0, %v540_v36, %v7434_v32  ;;  %v13452_v50 = vmax.f32 %v13451_v45, 0.0  ;;  %v639_v46 = vadd.f32 %v631_v0, %v621_v44 }
 0x133   :  { %13446 = vst [vmem:[#allocation163_spill] sm:$0xff] %v7440_v52  ;;  %v7456_v51 = vsel %vm178_vm3, %v13449_v47, %v703_v31  ;;  %v7469_v23 = vsel %vm178_vm3, %v703_v31, %v12279_v54  ;;  %v7471_v24 = vmax.f32 %v532_v5, %v544_v63  ;;  %v648_v47 = vadd.f32 %v13456_v30, %v638_v9 }
 0x134   :  { %13450 = vst [vmem:[#allocation164_spill] sm:$0xff] %v7456_v51  ;;  %v7463_v34 = vmax.f32 %v13452_v50, %v545_v53  ;;  %13454 = vst [vmem:[#allocation165_spill] sm:$0xff] %v7469_v23  ;;  %v719_v10 = vrot.slane %v7374_v13, 6  ;;  %v12278_v6 = vrot.slane %v7379_v39, 6  ;;  %v7477_v36 = vadd.f32 %v13456_v30, %v639_v46 }
 0x135   :  { %13455 = vst [vmem:[#allocation166_spill] sm:$0xff] %v7471_v24  ;;  %v736_v53 = vrot.slane %v7412_v1, 2  ;;  %v12280_v0 = vrot.slane %v7415_v33, 2  ;;  %v752_v44 = vrot.slane %v7412_v1, 4  ;;  %v656_v45 = vmax.f32 %v648_v47, 0.0 }
 0x136   :  { %13453 = vst [vmem:[#allocation57_spill] sm:$0xff] %v7463_v34  ;;  %13457 = vst [vmem:[#allocation167_spill] sm:$0xff] %v7477_v36  ;;  %v7486_v5 = vsel %vm723_vm4, %v719_v10, %v12278_v6  ;;  %v13459_v31 = vrot.slane %v13364_v19, 6  ;;  %v12286_v63 = vrot.slane %v7415_v33, 4  ;;  %v13462_v47 = vrot.slane %v6325_v14, 2 }
 0x137   :  { %13458 = vst [vmem:[#allocation168_spill] sm:$0xff] %v7486_v5  ;;  %v7500_v46 = vsel %vm144_vm1, %v736_v53, %v12280_v0  ;;  %v13464_v54 = vrot.slane %v6325_v14, 4  ;;  %v768_v0 = vrot.slane %v7412_v1, 6  ;;  %v12291_v30 = vrot.slane %v7415_v33, 6 }
 0x138   :  { %v7492_v9 = vsel %vm723_vm4, %v13459_v31, %v719_v10  ;;  %13461 = vst [vmem:[#allocation170_spill] sm:$0xff] %v7500_v46  ;;  %v7506_v6 = vsel %vm144_vm1, %v13462_v47, %v736_v53  ;;  %v664_v31 = vrot.slane %v656_v45, 1  ;;  %v7518_v50 = vsel %vm178_vm3, %v752_v44, %v12286_v63 }
 0x139   :  { %13460 = vst [vmem:[#allocation169_spill] sm:$0xff] %v7492_v9  ;;  %13463 = vst [vmem:[#allocation171_spill] sm:$0xff] %v7506_v6  ;;  %v7512_v10 = vsel %vm178_vm3, %v13464_v54, %v752_v44  ;;  %v13467_v53 = vmax.f32 %v7477_v36, 0.0  ;;  %v784_v20 = vrot.slane %v7463_v34, 2  ;;  %v800_v32 = vrot.slane %v7463_v34, 4 }
 0x13a   :  { %13465 = vst [vmem:[#allocation172_spill] sm:$0xff] %v7512_v10  ;;  %13466 = vst [vmem:[#allocation173_spill] sm:$0xff] %v7518_v50  ;;  %v669_v18 = vsel %vm127_vm0, %v13469_v56, %v664_v31  ;;  %v7536_v44 = vsel %vm723_vm4, %v768_v0, %v12291_v30  ;;  %v13471_v63 = vrot.slane %v6325_v14, 6  ;;  %v12293_v54 = vrot.slane %v7471_v24, 4 }
 0x13b   :  { %v7524_v47 = vrot.slane %v13467_v53, 1  ;;  %13470 = vst [vmem:[#allocation74_spill] sm:$0xff] %v7536_v44  ;;  %v13474_v56 = vmax.f32 %v13473_v59, 0.0  ;;  %v13476_v37 = vrot.slane %v7471_v24, 2  ;;  %v13478_v25 = vrot.slane %v13384_v22, 2 }
 0x13c   :  { %v7542_v53 = vsel %vm723_vm4, %v13471_v63, %v768_v0  ;;  %v7570_v59 = vsel %vm178_vm3, %v800_v32, %v12293_v54  ;;  %v13487_v41 = vrot.slane %v13397_v21, 2  ;;  %v967_v61 = vmul.f32 %v13504_v49, %v6325_v14 }
 0x13d   :  { %13468 = vst [vmem:[#allocation174_spill] sm:$0xff] %v7524_v47  ;;  %13472 = vst [vmem:[#allocation175_spill] sm:$0xff] %v7542_v53  ;;  %v668_v36 = vsel %vm127_vm0, %v664_v31, %v7524_v47  ;;  %v7550_v43 = vmax.f32 %v13474_v56, %v669_v18  ;;  %v7556_v30 = vsel %vm144_vm1, %v784_v20, %v13476_v37  ;;  %v13482_v18 = vrot.slane %v13384_v22, 4 }
 0x13e   :  { %13477 = vst [vmem:[#allocation176_spill] sm:$0xff] %v7556_v30  ;;  %v7562_v0 = vsel %vm144_vm1, %v13478_v25, %v784_v20  ;;  %v7564_v63 = vmax.f32 %v656_v45, %v668_v36  ;;  %13481 = vst [vmem:[#allocation179_spill] sm:$0xff] %v7570_v59  ;;  %v816_v31 = vrot.slane %v7463_v34, 6  ;;  %v12298_v56 = vrot.slane %v7471_v24, 6 }
 0x13f   :  { %13475 = vst [vmem:[#allocation70_spill] sm:$0xff] %v7550_v43  ;;  %13479 = vst [vmem:[#allocation177_spill] sm:$0xff] %v7562_v0  ;;  %v7576_v37 = vsel %vm178_vm3, %v13482_v18, %v800_v32  ;;  %v832_v25 = vrot.slane %v7550_v43, 2  ;;  %v848_v20 = vrot.slane %v7550_v43, 4  ;;  %v864_v36 = vrot.slane %v7550_v43, 6 }
 0x140   :  { %13480 = vst [vmem:[#allocation178_spill] sm:$0xff] %v7564_v63  ;;  %13483 = vst [vmem:[#allocation180_spill] sm:$0xff] %v7576_v37  ;;  %v13484_v45 = vrot.slane %v13384_v22, 6  ;;  %v7596_v26 = vsel %vm723_vm4, %v816_v31, %v12298_v56  ;;  %v13491_v18 = vrot.slane %v13397_v21, 6  ;;  %v985_v27 = vmul.f32 %v13505_v2, %v7506_v6 }
 0x141   :  { %13486 = vst [vmem:[#allocation182_spill] sm:$0xff] %v7596_v26  ;;  %v7602_v15 = vsel %vm144_vm1, %v13487_v41, %v832_v25  ;;  %v13495_v41 = vrot.slane %v7564_v63, 4  ;;  %v1003_v40 = vmul.f32 %v13506_v3, %v7512_v10  ;;  %v1039_v12 = vmul.f32 %v13508_v7, %v7412_v1 }
 0x142   :  { %v7587_v54 = vsel %vm723_vm4, %v13484_v45, %v816_v31  ;;  %13488 = vst [vmem:[#allocation183_spill] sm:$0xff] %v7602_v15  ;;  %v13489_v45 = vrot.slane %v13397_v21, 4  ;;  %v7614_v32 = vsel %vm723_vm4, %v13491_v18, %v864_v36  ;;  %v13493_v31 = vrot.slane %v7564_v63, 2  ;;  %v13499_v18 = vld [vmem:[#allocation110_spill] sm:$0xff] }
 0x143   :  { %13485 = vst [vmem:[#allocation181_spill] sm:$0xff] %v7587_v54  ;;  %13492 = vst [vmem:[#allocation185_spill] sm:$0xff] %v7614_v32  ;;  %v7626_v60 = vsel %vm178_vm3, %v848_v20, %v13495_v41  ;;  %v885_v29 = vmul.f32 %v13499_v18, %v13364_v19  ;;  %v886_v38 = vmul.f32 %v13499_v18, %v7374_v13  ;;  %v13503_v18 = vld [vmem:[#allocation116_spill] sm:$0xff] }
 0x144   :  { %v7608_v47 = vsel %vm178_vm3, %v13489_v45, %v848_v20  ;;  %v7620_v56 = vsel %vm144_vm1, %v832_v25, %v13493_v31  ;;  %13496 = vst [vmem:[#allocation187_spill] sm:$0xff] %v7626_v60  ;;  %v13497_v45 = vrot.slane %v7564_v63, 6  ;;  %v13500_v25 = vld [vmem:[#allocation111_spill] sm:$0xff]  ;;  %v13501_v20 = vld [vmem:[#allocation112_spill] sm:$0xff]  ;;  %v949_v48 = vmul.f32 %v13503_v18, %v7374_v13 }
 0x145   :  { %13490 = vst [vmem:[#allocation184_spill] sm:$0xff] %v7608_v47  ;;  %13494 = vst [vmem:[#allocation186_spill] sm:$0xff] %v7620_v56  ;;  %v895_v31 = vmul.f32 %v13500_v25, %v7440_v52  ;;  %v896_v28 = vmul.f32 %v13500_v25, %v7450_v11  ;;  %v913_v41 = vmul.f32 %v13501_v20, %v7456_v51 }
 0x146   :  { %v7632_v58 = vsel %vm723_vm4, %v864_v36, %v13497_v45  ;;  %v914_v17 = vmul.f32 %v13501_v20, %v7469_v23  ;;  %v13502_v36 = vld [vmem:[#allocation115_spill] sm:$0xff]  ;;  %v950_v25 = vmul.f32 %v13503_v18, %v7379_v39  ;;  %v968_v20 = vmul.f32 %v13504_v49, %v7412_v1 }
 0x147   :  { %13498 = vst [vmem:[#allocation188_spill] sm:$0xff] %v7632_v58  ;;  %v931_v45 = vmul.f32 %v13502_v36, %v7492_v9  ;;  %v932_v8 = vmul.f32 %v13502_v36, %v7486_v5  ;;  %v903_v42 = vadd.f32 %v895_v31, %v885_v29  ;;  %v904_v57 = vadd.f32 %v896_v28, %v886_v38  ;;  %v13507_v31 = vld [vmem:[#allocation120_spill] sm:$0xff] }
 0x148   :  { %v986_v36 = vmul.f32 %v13505_v2, %v7500_v46  ;;  %v1004_v38 = vmul.f32 %v13506_v3, %v7518_v50  ;;  %v1021_v18 = vmul.f32 %v13507_v31, %v7542_v53  ;;  %v1022_v49 = vmul.f32 %v13507_v31, %v7536_v44  ;;  %v13509_v46 = vld [vmem:[#allocation122_spill] sm:$0xff]  ;;  %v13511_v44 = vld [vmem:[#allocation124_spill] sm:$0xff] }
 0x149   :  { %v921_v29 = vadd.f32 %v913_v41, %v903_v42  ;;  %v922_v28 = vadd.f32 %v914_v17, %v904_v57  ;;  %v1040_v2 = vmul.f32 %v13508_v7, %v7415_v33  ;;  %v1057_v10 = vmul.f32 %v13509_v46, %v13384_v22  ;;  %v13510_v41 = vld [vmem:[#allocation123_spill] sm:$0xff] }
 0x14a   :  { %v1058_v57 = vmul.f32 %v13509_v46, %v7463_v34  ;;  %v1075_v3 = vmul.f32 %v13510_v41, %v7562_v0  ;;  %v1076_v31 = vmul.f32 %v13510_v41, %v7556_v30  ;;  %v7684_v53 = vmul.f32 %v13511_v44, %v7576_v37  ;;  %v13514_v41 = vld [vmem:[#allocation126_spill] sm:$0xff] }
 0x14b   :  { %v939_v42 = vadd.f32 %v931_v45, %v921_v29  ;;  %v940_v17 = vadd.f32 %v932_v8, %v922_v28  ;;  %v7688_v7 = vmul.f32 %v13511_v44, %v7570_v59  ;;  %v13513_v45 = vld [vmem:[#allocation125_spill] sm:$0xff]  ;;  %v7700_v30 = vmul.f32 %v13514_v41, %v7463_v34  ;;  %v13517_v44 = vld [vmem:[#allocation127_spill] sm:$0xff] }
 0x14c   :  { %13512 = vst [vmem:[#allocation189_spill] sm:$0xff] %v7684_v53  ;;  %v7692_v8 = vmul.f32 %v13513_v45, %v7587_v54  ;;  %v7696_v46 = vmul.f32 %v13513_v45, %v7596_v26  ;;  %v7704_v53 = vmul.f32 %v13514_v41, %v7471_v24  ;;  %v7708_v59 = vmul.f32 %v13517_v44, %v13397_v21  ;;  %v13521_v41 = vld [vmem:[#allocation129_spill] sm:$0xff] }
 0x14d   :  { %v957_v29 = vadd.f32 %v949_v48, %v939_v42  ;;  %v958_v28 = vadd.f32 %v950_v25, %v940_v17  ;;  %13515 = vst [vmem:[#allocation190_spill] sm:$0xff] %v7700_v30  ;;  %v7712_v48 = vmul.f32 %v13517_v44, %v7550_v43  ;;  %v13520_v25 = vld [vmem:[#allocation128_spill] sm:$0xff]  ;;  %v13524_v44 = vld [vmem:[#allocation130_spill] sm:$0xff] }
 0x14e   :  { %13516 = vst [vmem:[#allocation191_spill] sm:$0xff] %v7704_v53  ;;  %13518 = vst [vmem:[#allocation192_spill] sm:$0xff] %v7708_v59  ;;  %v7716_v42 = vmul.f32 %v13520_v25, %v7602_v15  ;;  %v7720_v30 = vmul.f32 %v13520_v25, %v7620_v56  ;;  %v7724_v53 = vmul.f32 %v13521_v41, %v7608_v47 }
 0x14f   :  { %13519 = vst [vmem:[#allocation193_spill] sm:$0xff] %v7712_v48  ;;  %v975_v17 = vadd.f32 %v967_v61, %v957_v29  ;;  %v976_v45 = vadd.f32 %v968_v20, %v958_v28  ;;  %v7728_v59 = vmul.f32 %v13521_v41, %v7626_v60  ;;  %v7732_v48 = vmul.f32 %v13524_v44, %v7614_v32  ;;  %v13527_v20 = vld [vmem:[#allocation131_spill] sm:$0xff]  ;;  %v13529_v41 = vld [vmem:[#allocation133_spill] sm:$0xff] }
 0x150   :  { %13522 = vst [vmem:[#allocation194_spill] sm:$0xff] %v7724_v53  ;;  %v7736_v61 = vmul.f32 %v13524_v44, %v7632_v58  ;;  %v7740_v29 = vmul.f32 %v13527_v20, %v7550_v43  ;;  %v7744_v53 = vmul.f32 %v13527_v20, %v7564_v63  ;;  %v2915_v44 = vmul.f32 %v6991_v16, %v7440_v52 }
 0x151   :  { %13523 = vst [vmem:[#allocation195_spill] sm:$0xff] %v7728_v59  ;;  %13525 = vst [vmem:[#allocation196_spill] sm:$0xff] %v7732_v48  ;;  %v993_v28 = vadd.f32 %v985_v27, %v975_v17  ;;  %v994_v25 = vadd.f32 %v986_v36, %v976_v45  ;;  %v2905_v59 = vmul.f32 %v13529_v41, %v13364_v19 }
 0x152   :  { %13526 = vst [vmem:[#allocation197_spill] sm:$0xff] %v7736_v61  ;;  %13528 = vst [vmem:[#allocation198_spill] sm:$0xff] %v7744_v53  ;;  %v2906_v48 = vmul.f32 %v13529_v41, %v7374_v13  ;;  %v2916_v61 = vmul.f32 %v6991_v16, %v7450_v11  ;;  %v2933_v27 = vmul.f32 %v7008_v4, %v7456_v51 }
 0x153   :  { %v1011_v36 = vadd.f32 %v1003_v40, %v993_v28  ;;  %v1012_v45 = vadd.f32 %v1004_v38, %v994_v25  ;;  %v2934_v17 = vmul.f32 %v7008_v4, %v7469_v23  ;;  %v2951_v19 = vmul.f32 %v7011_v55, %v7492_v9  ;;  %v13531_v9 = vld [vmem:[#allocation170_spill] sm:$0xff] }
 0x154   :  { %v2923_v20 = vadd.f32 %v2915_v44, %v2905_v59  ;;  %v2924_v53 = vadd.f32 %v2916_v61, %v2906_v48  ;;  %v2952_v41 = vmul.f32 %v7011_v55, %v7486_v5  ;;  %v2969_v52 = vmul.f32 %v7030_v62, %v7374_v13  ;;  %v13530_v59 = vld [vmem:[#allocation137_spill] sm:$0xff] }
 0x155   :  { %v1029_v11 = vadd.f32 %v1021_v18, %v1011_v36  ;;  %v1030_v16 = vadd.f32 %v1022_v49, %v1012_v45  ;;  %v2970_v40 = vmul.f32 %v7030_v62, %v7379_v39  ;;  %v2987_v38 = vmul.f32 %v7048_v35, %v6325_v14  ;;  %v13532_v49 = vld [vmem:[#allocation172_spill] sm:$0xff] }
 0x156   :  { %v2941_v25 = vadd.f32 %v2933_v27, %v2923_v20  ;;  %v2942_v28 = vadd.f32 %v2934_v17, %v2924_v53  ;;  %v2988_v44 = vmul.f32 %v7048_v35, %v7412_v1  ;;  %v3005_v48 = vmul.f32 %v13530_v59, %v7506_v6  ;;  %v13533_v36 = vld [vmem:[#allocation140_spill] sm:$0xff]  ;;  %v13534_v53 = vld [vmem:[#allocation175_spill] sm:$0xff]  ;;  %v13535_v27 = vld [vmem:[#allocation141_spill] sm:$0xff] }
 0x157   :  { %v1047_v61 = vadd.f32 %v1039_v12, %v1029_v11  ;;  %v1048_v5 = vadd.f32 %v1040_v2, %v1030_v16  ;;  %v3006_v18 = vmul.f32 %v13530_v59, %v13531_v9  ;;  %v3023_v45 = vmul.f32 %v13533_v36, %v13532_v49  ;;  %v13536_v35 = vld [vmem:[#allocation74_spill] sm:$0xff] }
 0x158   :  { %v2959_v23 = vadd.f32 %v2951_v19, %v2941_v25  ;;  %v2960_v51 = vadd.f32 %v2952_v41, %v2942_v28  ;;  %v3024_v20 = vmul.f32 %v13533_v36, %v7518_v50  ;;  %v3041_v17 = vmul.f32 %v13535_v27, %v13534_v53  ;;  %v13537_v16 = vld [vmem:[#allocation142_spill] sm:$0xff]  ;;  %v13538_v41 = vld [vmem:[#allocation143_spill] sm:$0xff]  ;;  %v13540_v53 = vld [vmem:[#allocation176_spill] sm:$0xff] }
 0x159   :  { %v1065_v13 = vadd.f32 %v1057_v10, %v1047_v61  ;;  %v1066_v14 = vadd.f32 %v1058_v57, %v1048_v5  ;;  %v3042_v12 = vmul.f32 %v13535_v27, %v13536_v35  ;;  %v3059_v2 = vmul.f32 %v13537_v16, %v7412_v1  ;;  %v13539_v5 = vld [vmem:[#allocation144_spill] sm:$0xff] }
 0x15a   :  { %v2977_v11 = vadd.f32 %v2969_v52, %v2959_v23  ;;  %v2978_v9 = vadd.f32 %v2970_v40, %v2960_v51  ;;  %v3060_v19 = vmul.f32 %v13537_v16, %v7415_v33  ;;  %v3077_v25 = vmul.f32 %v13538_v41, %v13384_v22  ;;  %v13541_v51 = vld [vmem:[#allocation145_spill] sm:$0xff]  ;;  %v13568_v22 = vld [vmem:[#allocation195_spill] sm:$0xff] }
 0x15b   :  { %v1083_v28 = vadd.f32 %v1075_v3, %v1065_v13  ;;  %v1084_v50 = vadd.f32 %v1076_v31, %v1066_v14  ;;  %v3078_v10 = vmul.f32 %v13538_v41, %v7463_v34  ;;  %v3095_v57 = vmul.f32 %v13539_v5, %v7562_v0  ;;  %v13542_v40 = vld [vmem:[#allocation189_spill] sm:$0xff]  ;;  %v13543_v3 = vld [vmem:[#allocation179_spill] sm:$0xff]  ;;  %v13544_v13 = vld [vmem:[#allocation146_spill] sm:$0xff] }
 0x15c   :  { %v2995_v61 = vadd.f32 %v2987_v38, %v2977_v11  ;;  %v2996_v35 = vadd.f32 %v2988_v44, %v2978_v9  ;;  %v3096_v52 = vmul.f32 %v13539_v5, %v13540_v53  ;;  %v3113_v23 = vmul.f32 %v13541_v51, %v7576_v37  ;;  %v13545_v38 = vld [vmem:[#allocation147_spill] sm:$0xff]  ;;  %v13557_v53 = vld [vmem:[#allocation152_spill] sm:$0xff]  ;;  %v13676_v16 = vld [vmem:[#allocation121_spill] sm:$0xff] }
 0x15d   :  { %v1101_v49 = vadd.f32 %v13542_v40, %v1083_v28  ;;  %v1102_v6 = vadd.f32 %v7688_v7, %v1084_v50  ;;  %v3114_v14 = vmul.f32 %v13541_v51, %v13543_v3  ;;  %v3131_v31 = vmul.f32 %v13544_v13, %v7587_v54  ;;  %v13546_v50 = vld [vmem:[#allocation148_spill] sm:$0xff]  ;;  %v13550_v3 = vld [vmem:[#allocation150_spill] sm:$0xff] }
 0x15e   :  { %v3013_v1 = vadd.f32 %v3005_v48, %v2995_v61  ;;  %v3014_v0 = vadd.f32 %v3006_v18, %v2996_v35  ;;  %v3132_v9 = vmul.f32 %v13544_v13, %v7596_v26  ;;  %v3149_v44 = vmul.f32 %v13545_v38, %v7463_v34  ;;  %v13547_v18 = vld [vmem:[#allocation149_spill] sm:$0xff]  ;;  %v13567_v34 = vld [vmem:[#allocation194_spill] sm:$0xff]  ;;  %v13675_v5 = vld [vmem:[#allocation120_spill] sm:$0xff] }
 0x15f   :  { %v1119_v11 = vadd.f32 %v7692_v8, %v1101_v49  ;;  %v1120_v28 = vadd.f32 %v7696_v46, %v1102_v6  ;;  %v3150_v7 = vmul.f32 %v13545_v38, %v7471_v24  ;;  %v7812_v40 = vmul.f32 %v13546_v50, %v13397_v21  ;;  %v13548_v8 = vld [vmem:[#allocation190_spill] sm:$0xff]  ;;  %v13549_v6 = vld [vmem:[#allocation191_spill] sm:$0xff] }
 0x160   :  { %v3031_v54 = vadd.f32 %v3023_v45, %v3013_v1  ;;  %v3032_v48 = vadd.f32 %v3024_v20, %v3014_v0  ;;  %v7816_v35 = vmul.f32 %v13546_v50, %v7550_v43  ;;  %v7820_v61 = vmul.f32 %v13547_v18, %v7602_v15  ;;  %v13551_v15 = vld [vmem:[#allocation151_spill] sm:$0xff] }
 0x161   :  { %v1137_v49 = vadd.f32 %v13548_v8, %v1119_v11  ;;  %v1138_v46 = vadd.f32 %v13549_v6, %v1120_v28  ;;  %v7826_v26 = vmul.f32 %v13547_v18, %v7620_v56  ;;  %v7830_v1 = vmul.f32 %v13550_v3, %v7608_v47  ;;  %v13552_v11 = vld [vmem:[#allocation192_spill] sm:$0xff]  ;;  %v13553_v8 = vld [vmem:[#allocation193_spill] sm:$0xff] }
 0x162   :  { %v3049_v0 = vadd.f32 %v3041_v17, %v3031_v54  ;;  %v3050_v45 = vadd.f32 %v3042_v12, %v3032_v48  ;;  %v7834_v20 = vmul.f32 %v13550_v3, %v7626_v60  ;;  %v7838_v37 = vmul.f32 %v13551_v15, %v7614_v32  ;;  %v13554_v47 = vld [vmem:[#allocation153_spill] sm:$0xff]  ;;  %v13573_v3 = vld [vmem:[#allocation196_spill] sm:$0xff] }
 0x163   :  { %v1155_v28 = vadd.f32 %v13552_v11, %v1137_v49  ;;  %v1156_v6 = vadd.f32 %v13553_v8, %v1138_v46  ;;  %v7844_v56 = vmul.f32 %v13551_v15, %v7632_v58  ;;  %v7848_v54 = vmul.f32 %v13554_v47, %v7550_v43  ;;  %v13555_v32 = vld [vmem:[#allocation21_spill] sm:$0xff]  ;;  %v13673_v11 = vld [vmem:[#allocation118_spill] sm:$0xff] }
 0x164   :  { %v3067_v17 = vadd.f32 %v3059_v2, %v3049_v0  ;;  %v3068_v12 = vadd.f32 %v3060_v19, %v3050_v45  ;;  %v7852_v48 = vmul.f32 %v13554_v47, %v7564_v63  ;;  %v13556_v60 = vrot.slane %v13555_v32, 1  ;;  %v13574_v18 = vld [vmem:[#allocation197_spill] sm:$0xff] }
 0x165   :  { %v13558_v49 = vrot.slane %v13557_v53, 1  ;;  %v1173_v8 = vadd.f32 %v7716_v42, %v1155_v28  ;;  %v1174_v58 = vadd.f32 %v7720_v30, %v1156_v6  ;;  %v13560_v43 = vrot.slane %v13555_v32, 2 }
 0x166   :  { %v13561_v2 = vrot.slane %v13557_v53, 2  ;;  %v13562_v0 = vrot.slane %v13555_v32, 3  ;;  %v13563_v45 = vrot.slane %v13557_v53, 3  ;;  %v3086_v42 = vadd.f32 %v3078_v10, %v3068_v12  ;;  %v13571_v12 = vld [vmem:[#allocation27_spill] sm:$0xff] }
 0x167   :  { %v7860_v46 = vsel %vm127_vm0, %v13558_v49, %v13556_v60  ;;  %v3085_v49 = vadd.f32 %v3077_v25, %v3067_v17  ;;  %v13564_v30 = vrot.slane %v13555_v32, 4  ;;  %v13565_v28 = vrot.slane %v13557_v53, 4  ;;  %v13570_v25 = vld [vmem:[#allocation26_spill] sm:$0xff] }
 0x168   :  { %v7870_v19 = vsel %vm144_vm1, %v13561_v2, %v13560_v43  ;;  %v7878_v60 = vsel %vm161_vm2, %v13563_v45, %v13562_v0  ;;  %v13566_v43 = vld [vmem:[#allocation24_spill] sm:$0xff]  ;;  %v1191_v21 = vadd.f32 %v13567_v34, %v1173_v8  ;;  %v1192_v47 = vadd.f32 %v13568_v22, %v1174_v58  ;;  %v13569_v0 = vld [vmem:[#allocation25_spill] sm:$0xff]  ;;  %v13575_v22 = vld [vmem:[#allocation30_spill] sm:$0xff] }
 0x169   :  { %v7886_v6 = vsel %vm178_vm3, %v13565_v28, %v13564_v30  ;;  %v196_v2 = vmul.f32 %v13566_v43, %v13557_v53  ;;  %v206_v45 = vmul.f32 %v13569_v0, %v7860_v46  ;;  %v224_v10 = vmul.f32 %v13570_v25, %v7870_v19  ;;  %v13572_v30 = vld [vmem:[#allocation28_spill] sm:$0xff]  ;;  %v13576_v25 = vld [vmem:[#allocation31_spill] sm:$0xff] }
 0x16a   :  { %v3103_v32 = vadd.f32 %v3095_v57, %v3085_v49  ;;  %v3104_v17 = vadd.f32 %v3096_v52, %v3086_v42  ;;  %v242_v15 = vmul.f32 %v13571_v12, %v7878_v60  ;;  %v260_v28 = vmul.f32 %v13572_v30, %v7886_v6  ;;  %v13577_v52 = vld [vmem:[#allocation32_spill] sm:$0xff]  ;;  %v13578_v12 = vld [vmem:[#allocation198_spill] sm:$0xff] }
 0x16b   :  { %v1209_v43 = vadd.f32 %v13573_v3, %v1191_v21  ;;  %v1210_v34 = vadd.f32 %v13574_v18, %v1192_v47  ;;  %v214_v8 = vadd.f32 %v206_v45, %v196_v2  ;;  %v320_v58 = vmul.f32 %v13575_v22, %v13557_v53  ;;  %v13579_v21 = vld [vmem:[#allocation40_spill] sm:$0xff] }
 0x16c   :  { %v3121_v0 = vadd.f32 %v3113_v23, %v3103_v32  ;;  %v3122_v50 = vadd.f32 %v3114_v14, %v3104_v17  ;;  %v330_v57 = vmul.f32 %v13576_v25, %v7860_v46  ;;  %v348_v49 = vmul.f32 %v13577_v52, %v7870_v19  ;;  %v13580_v23 = vld [vmem:[#allocation41_spill] sm:$0xff]  ;;  %v13581_v45 = vld [vmem:[#allocation132_spill] sm:$0xff] }
 0x16d   :  { %v1227_v42 = vadd.f32 %v7740_v29, %v1209_v43  ;;  %v1228_v30 = vadd.f32 %v13578_v12, %v1210_v34  ;;  %v232_v38 = vadd.f32 %v224_v10, %v214_v8  ;;  %v366_v47 = vmul.f32 %v13579_v21, %v7878_v60  ;;  %v13583_v29 = vld [vmem:[#allocation43_spill] sm:$0xff]  ;;  %v13584_v25 = vld [vmem:[#allocation44_spill] sm:$0xff] }
 0x16e   :  { %v3139_v3 = vadd.f32 %v3131_v31, %v3121_v0  ;;  %v3140_v18 = vadd.f32 %v3132_v9, %v3122_v50  ;;  %v338_v2 = vadd.f32 %v330_v57, %v320_v58  ;;  %v384_v14 = vmul.f32 %v13580_v23, %v7886_v6  ;;  %v13585_v0 = vld [vmem:[#allocation52_spill] sm:$0xff] }
 0x16f   :  { %v1237_v32 = vadd.f32 %v13581_v45, %v1227_v42  ;;  %v7916_v17 = vadd.f32 %v13581_v45, %v1228_v30  ;;  %v250_v22 = vadd.f32 %v242_v15, %v232_v38  ;;  %v444_v43 = vmul.f32 %v13583_v29, %v13557_v53  ;;  %v13588_v30 = vld [vmem:[#allocation53_spill] sm:$0xff]  ;;  %v13591_v29 = vld [vmem:[#allocation135_spill] sm:$0xff] }
 0x170   :  { %v3157_v34 = vadd.f32 %v3149_v44, %v3139_v3  ;;  %v3158_v10 = vadd.f32 %v3150_v7, %v3140_v18  ;;  %v356_v8 = vadd.f32 %v348_v49, %v338_v2  ;;  %v454_v31 = vmul.f32 %v13584_v25, %v7860_v46  ;;  %v13587_v7 = vld [vmem:[#allocation29_spill] sm:$0xff] }
 0x171   :  { %13582 = vst [vmem:[#allocation137_spill] sm:$0xff] %v7916_v17  ;;  %v1245_v9 = vmax.f32 %v1237_v32, 0.0  ;;  %v12424_v50 = vmax.f32 %v7916_v17, 0.0  ;;  %v268_v58 = vadd.f32 %v260_v28, %v250_v22  ;;  %v472_v57 = vmul.f32 %v13585_v0, %v7870_v19  ;;  %v13590_v32 = vld [vmem:[#allocation54_spill] sm:$0xff] }
 0x172   :  { %v3175_v52 = vadd.f32 %v7812_v40, %v3157_v34  ;;  %v3176_v15 = vadd.f32 %v7816_v35, %v3158_v10  ;;  %v374_v38 = vadd.f32 %v366_v47, %v356_v8  ;;  %v462_v42 = vadd.f32 %v454_v31, %v444_v43  ;;  %v13589_v47 = vld [vmem:[#allocation139_spill] sm:$0xff]  ;;  %v13593_v8 = vld [vmem:[#allocation42_spill] sm:$0xff] }
 0x173   :  { %v1253_v12 = vrot.slane %v1245_v9, 2  ;;  %v7929_v44 = vrot.slane %v12424_v50, 2  ;;  %v278_v49 = vadd.f32 %v13587_v7, %v268_v58  ;;  %v490_v21 = vmul.f32 %v13588_v30, %v7878_v60  ;;  %v13594_v58 = vld [vmem:[#allocation56_spill] sm:$0xff]  ;;  %v13598_v30 = vld [vmem:[#allocation157_spill] sm:$0xff] }
 0x174   :  { %v3193_v28 = vadd.f32 %v7820_v61, %v3175_v52  ;;  %v3194_v3 = vadd.f32 %v7826_v26, %v3176_v15  ;;  %v392_v18 = vadd.f32 %v384_v14, %v374_v38  ;;  %v480_v40 = vadd.f32 %v472_v57, %v462_v42  ;;  %v13595_v38 = vld [vmem:[#allocation58_spill] sm:$0xff] }
 0x175   :  { %13586 = vst [vmem:[#allocation189_spill] sm:$0xff] %v7929_v44  ;;  %v1261_v35 = vsel %vm144_vm1, %v1253_v12, %v7929_v44  ;;  %v1262_v2 = vsel %vm144_vm1, %v13589_v47, %v1253_v12  ;;  %v286_v23 = vmax.f32 %v278_v49, 0.0  ;;  %v508_v22 = vmul.f32 %v13590_v32, %v7886_v6 }
 0x176   :  { %v13592_v43 = vmax.f32 %v13591_v29, 0.0  ;;  %v1269_v61 = vmax.f32 %v1245_v9, %v1261_v35  ;;  %v3211_v26 = vadd.f32 %v7830_v1, %v3193_v28  ;;  %v3212_v14 = vadd.f32 %v7834_v20, %v3194_v3  ;;  %v13596_v9 = vld [vmem:[#allocation158_spill] sm:$0xff]  ;;  %v13602_v3 = vld [vmem:[#allocation55_spill] sm:$0xff]  ;;  %v13603_v35 = vld [vmem:[#allocation65_spill] sm:$0xff] }
 0x177   :  { %v294_v10 = vrot.slane %v286_v23, 1  ;;  %v402_v25 = vadd.f32 %v13593_v8, %v392_v18  ;;  %v498_v31 = vadd.f32 %v490_v21, %v480_v40  ;;  %v568_v0 = vmul.f32 %v13594_v58, %v13557_v53  ;;  %v13597_v20 = vld [vmem:[#allocation34_spill] sm:$0xff]  ;;  %v13607_v29 = vld [vmem:[#allocation67_spill] sm:$0xff] }
 0x178   :  { %v1268_v34 = vmax.f32 %v13592_v43, %v1262_v2  ;;  %v3229_v52 = vadd.f32 %v7838_v37, %v3211_v26  ;;  %v3230_v15 = vadd.f32 %v7844_v56, %v3212_v14  ;;  %v578_v42 = vmul.f32 %v13595_v38, %v7860_v46  ;;  %v13604_v2 = vld [vmem:[#allocation154_spill] sm:$0xff]  ;;  %v13608_v43 = vld [vmem:[#allocation160_spill] sm:$0xff] }
 0x179   :  { %v295_v1 = vsel %vm127_vm0, %v13596_v9, %v294_v10  ;;  %v302_v12 = vsel %vm127_vm0, %v294_v10, %v13597_v20  ;;  %v410_v7 = vmax.f32 %v402_v25, 0.0  ;;  %v516_v49 = vadd.f32 %v508_v22, %v498_v31  ;;  %v13610_v25 = vld [vmem:[#allocation33_spill] sm:$0xff] }
 0x17a   :  { %v5518_v57 = vpack.c.bf16 %v1269_v61, %v1268_v34  ;;  %v3247_v53 = vadd.f32 %v7848_v54, %v3229_v52  ;;  %v3248_v37 = vadd.f32 %v7852_v48, %v3230_v15  ;;  %v13599_v56 = vmax.f32 %v13598_v30, 0.0  ;;  %v13606_v48 = vld [vmem:[#allocation66_spill] sm:$0xff]  ;;  %v13618_v30 = vld [vmem:[#allocation156_spill] sm:$0xff] }
 0x17b   :  { %v7967_v46 = vmax.f32 %v286_v23, %v302_v12  ;;  %v418_v28 = vrot.slane %v410_v7, 1  ;;  %v526_v18 = vadd.f32 %v13602_v3, %v516_v49  ;;  %v586_v40 = vadd.f32 %v578_v42, %v568_v0  ;;  %v13609_v61 = vld [vmem:[#allocation46_spill] sm:$0xff]  ;;  %v13616_v12 = vld [vmem:[#allocation59_spill] sm:$0xff] }
 0x17c   :  { %5519 = vmatprep.subr.bf16.mxu1 %v5518_v57  ;;  %v7965_v21 = vmax.f32 %v13599_v56, %v295_v1  ;;  %v596_v47 = vmul.f32 %v13603_v35, %v7870_v19  ;;  %v3257_v32 = vadd.f32 %v13604_v2, %v3247_v53  ;;  %v7974_v54 = vadd.f32 %v13604_v2, %v3248_v37  ;;  %v13615_v1 = vld [vmem:[#allocation162_spill] sm:$0xff]  ;;  %v13670_v2 = vld [vmem:[#allocation115_spill] sm:$0xff] }
 0x17d   :  { %13601 = vst [vmem:[#allocation191_spill] sm:$0xff] %v7967_v46  ;;  %5521 = vmatpush3.bf16.msra.mxu1 %v5518_v57  ;;  %v614_v22 = vmul.f32 %v13606_v48, %v7878_v60  ;;  %v632_v23 = vmul.f32 %v13607_v29, %v7886_v6  ;;  %v419_v34 = vsel %vm127_vm0, %v13608_v43, %v418_v28  ;;  %v534_v19 = vmax.f32 %v526_v18, 0.0  ;;  %v13623_v35 = vld [vmem:[#allocation22_spill] sm:$0xff] }
 0x17e   :  { %13600 = vst [vmem:[#allocation190_spill] sm:$0xff] %v7965_v21  ;;  %13605 = vst [vmem:[#allocation192_spill] sm:$0xff] %v7974_v54  ;;  %v426_v26 = vsel %vm127_vm0, %v418_v28, %v13609_v61  ;;  %v604_v14 = vadd.f32 %v596_v47, %v586_v40  ;;  %v3265_v10 = vmax.f32 %v3257_v32, 0.0  ;;  %v12423_v8 = vmax.f32 %v7974_v54, 0.0  ;;  %v13619_v28 = vld [vmem:[#allocation161_spill] sm:$0xff] }
 0x17f   :  { %v13611_v31 = vmax.f32 %v13610_v25, 0.0  ;;  %v7991_v60 = vmax.f32 %v410_v7, %v426_v26  ;;  %v542_v6 = vrot.slane %v534_v19, 1  ;;  %v689_v57 = vrot.slane %v7965_v21, 2 }
 0x180   :  { %v622_v0 = vadd.f32 %v614_v22, %v604_v14  ;;  %v12435_v52 = vrot.slane %v7967_v46, 2  ;;  %v3273_v15 = vrot.slane %v3265_v10, 2  ;;  %v7997_v38 = vrot.slane %v12423_v8, 2  ;;  %v13625_v22 = vld [vmem:[#allocation68_spill] sm:$0xff] }
 0x181   :  { %v7989_v58 = vmax.f32 %v13611_v31, %v419_v34  ;;  %13613 = vst [vmem:[#allocation21_spill] sm:$0xff] %v7991_v60  ;;  %v705_v42 = vrot.slane %v7965_v21, 4  ;;  %v12433_v9 = vrot.slane %v7967_v46, 4  ;;  %v543_v20 = vsel %vm127_vm0, %v13615_v1, %v542_v6 }
 0x182   :  { %13614 = vst [vmem:[#allocation152_spill] sm:$0xff] %v7997_v38  ;;  %v550_v7 = vsel %vm127_vm0, %v542_v6, %v13616_v12  ;;  %v640_v49 = vadd.f32 %v632_v23, %v622_v0  ;;  %v8011_v53 = vsel %vm144_vm1, %v689_v57, %v12435_v52  ;;  %v3281_v37 = vsel %vm144_vm1, %v3273_v15, %v7997_v38 }
 0x183   :  { %13612 = vst [vmem:[#allocation193_spill] sm:$0xff] %v7989_v58  ;;  %13617 = vst [vmem:[#allocation24_spill] sm:$0xff] %v8011_v53  ;;  %v3282_v56 = vsel %vm144_vm1, %v13618_v30, %v3273_v15  ;;  %v13620_v3 = vmax.f32 %v13619_v28, 0.0  ;;  %v8023_v40 = vmax.f32 %v534_v19, %v550_v7  ;;  %v13624_v47 = vmax.f32 %v13623_v35, 0.0 }
 0x184   :  { %v3289_v48 = vmax.f32 %v3265_v10, %v3281_v37  ;;  %v650_v29 = vadd.f32 %v13625_v22, %v640_v49  ;;  %v13626_v23 = vrot.slane %v7379_v39, 2  ;;  %v8038_v34 = vsel %vm178_vm3, %v705_v42, %v12433_v9  ;;  %v13666_v9 = vld [vmem:[#allocation112_spill] sm:$0xff] }
 0x185   :  { %v8021_v18 = vmax.f32 %v13620_v3, %v543_v20  ;;  %13622 = vst [vmem:[#allocation195_spill] sm:$0xff] %v8023_v40  ;;  %v3288_v32 = vmax.f32 %v13624_v47, %v3282_v56  ;;  %13628 = vst [vmem:[#allocation26_spill] sm:$0xff] %v8038_v34  ;;  %v13629_v61 = vrot.slane %v7379_v39, 4  ;;  %v721_v19 = vrot.slane %v7965_v21, 6  ;;  %v13640_v47 = vld [vmem:[#allocation174_spill] sm:$0xff] }
 0x186   :  { %v8032_v43 = vsel %vm144_vm1, %v13626_v23, %v689_v57  ;;  %v12432_v14 = vrot.slane %v7967_v46, 6  ;;  %v658_v25 = vmax.f32 %v650_v29, 0.0  ;;  %v738_v31 = vrot.slane %v7989_v58, 2 }
 0x187   :  { %13621 = vst [vmem:[#allocation194_spill] sm:$0xff] %v8021_v18  ;;  %13627 = vst [vmem:[#allocation25_spill] sm:$0xff] %v8032_v43  ;;  %v8044_v26 = vsel %vm178_vm3, %v13629_v61, %v705_v42  ;;  %v5582_v10 = vpack.c.bf16 %v3289_v48, %v3288_v32  ;;  %v12431_v6 = vrot.slane %v7991_v60, 2  ;;  %v13632_v57 = vrot.slane %v7379_v39, 6  ;;  %v13641_v48 = vld [vmem:[#allocation73_spill] sm:$0xff] }
 0x188   :  { %13630 = vst [vmem:[#allocation27_spill] sm:$0xff] %v8044_v26  ;;  %v8054_v0 = vsel %vm723_vm4, %v721_v19, %v12432_v14  ;;  %v754_v42 = vrot.slane %v7989_v58, 4  ;;  %v12430_v1 = vrot.slane %v7991_v60, 4  ;;  %v666_v20 = vrot.slane %v658_v25, 1 }
 0x189   :  { %13631 = vst [vmem:[#allocation28_spill] sm:$0xff] %v8054_v0  ;;  %v8060_v15 = vsel %vm723_vm4, %v13632_v57, %v721_v19  ;;  %5583 = vmatprep.subr.bf16.mxu0 %v5582_v10  ;;  %v8068_v12 = vsel %vm144_vm1, %v738_v31, %v12431_v6  ;;  %v13635_v7 = vrot.slane %v7415_v33, 2  ;;  %v770_v37 = vrot.slane %v7989_v58, 6  ;;  %v13644_v19 = vld [vmem:[#allocation167_spill] sm:$0xff] }
 0x18a   :  { %13633 = vst [vmem:[#allocation196_spill] sm:$0xff] %v8060_v15  ;;  %13634 = vst [vmem:[#allocation197_spill] sm:$0xff] %v8068_v12  ;;  %5585 = vmatpush3.bf16.msra.mxu0 %v5582_v10  ;;  %v8081_v30 = vsel %vm178_vm3, %v754_v42, %v12430_v1  ;;  %v13638_v56 = vrot.slane %v7415_v33, 4  ;;  %v12427_v3 = vrot.slane %v7991_v60, 6  ;;  %v786_v35 = vrot.slane %v8021_v18, 2  ;;  %v13664_v1 = vld [vmem:[#allocation110_spill] sm:$0xff] }
 0x18b   :  { %v8074_v49 = vsel %vm144_vm1, %v13635_v7, %v738_v31  ;;  %13637 = vst [vmem:[#allocation31_spill] sm:$0xff] %v8081_v30  ;;  %v667_v32 = vsel %vm127_vm0, %v13640_v47, %v666_v20  ;;  %v674_v22 = vsel %vm127_vm0, %v666_v20, %v13641_v48  ;;  %v13642_v29 = vrot.slane %v7415_v33, 6  ;;  %v13665_v6 = vld [vmem:[#allocation111_spill] sm:$0xff] }
 0x18c   :  { %13636 = vst [vmem:[#allocation30_spill] sm:$0xff] %v8074_v49  ;;  %v8087_v28 = vsel %vm178_vm3, %v13638_v56, %v754_v42  ;;  %v12426_v61 = vrot.slane %v8023_v40, 2  ;;  %v13645_v10 = vmax.f32 %v13644_v19, 0.0  ;;  %v8108_v57 = vmax.f32 %v658_v25, %v674_v22 }
 0x18d   :  { %13639 = vst [vmem:[#allocation32_spill] sm:$0xff] %v8087_v28  ;;  %v8101_v23 = vsel %vm723_vm4, %v13642_v29, %v770_v37  ;;  %v8114_v42 = vsel %vm723_vm4, %v770_v37, %v12427_v3  ;;  %v13649_v20 = vrot.slane %v7471_v24, 2  ;;  %v802_v25 = vrot.slane %v8021_v18, 4 }
 0x18e   :  { %13643 = vst [vmem:[#allocation198_spill] sm:$0xff] %v8101_v23  ;;  %v8106_v31 = vmax.f32 %v13645_v10, %v667_v32  ;;  %13647 = vst [vmem:[#allocation41_spill] sm:$0xff] %v8108_v57  ;;  %v8126_v56 = vsel %vm144_vm1, %v786_v35, %v12426_v61  ;;  %v12425_v47 = vrot.slane %v8023_v40, 4  ;;  %v818_v32 = vrot.slane %v8021_v18, 6 }
 0x18f   :  { %13648 = vst [vmem:[#allocation43_spill] sm:$0xff] %v8114_v42  ;;  %v8120_v7 = vsel %vm144_vm1, %v13649_v20, %v786_v35  ;;  %13651 = vst [vmem:[#allocation52_spill] sm:$0xff] %v8126_v56  ;;  %v12429_v37 = vrot.slane %v8023_v40, 6  ;;  %v12428_v22 = vrot.slane %v8108_v57, 2  ;;  %v13653_v19 = vrot.slane %v7471_v24, 4 }
 0x190   :  { %13646 = vst [vmem:[#allocation40_spill] sm:$0xff] %v8106_v31  ;;  %13650 = vst [vmem:[#allocation44_spill] sm:$0xff] %v8120_v7  ;;  %v834_v48 = vrot.slane %v8106_v31, 2  ;;  %v850_v29 = vrot.slane %v8106_v31, 4  ;;  %v8139_v35 = vsel %vm178_vm3, %v802_v25, %v12425_v47  ;;  %v13655_v20 = vrot.slane %v7471_v24, 6 }
 0x191   :  { %13652 = vst [vmem:[#allocation29_spill] sm:$0xff] %v8139_v35  ;;  %v8145_v10 = vsel %vm178_vm3, %v13653_v19, %v802_v25  ;;  %v12434_v50 = vrot.slane %v8108_v57, 4  ;;  %v8158_v47 = vsel %vm723_vm4, %v818_v32, %v12429_v37  ;;  %v13659_v19 = vrot.slane %v7564_v63, 2 }
 0x192   :  { %13654 = vst [vmem:[#allocation53_spill] sm:$0xff] %v8145_v10  ;;  %v8151_v8 = vsel %vm723_vm4, %v13655_v20, %v818_v32  ;;  %13657 = vst [vmem:[#allocation54_spill] sm:$0xff] %v8158_v47  ;;  %v8164_v25 = vsel %vm144_vm1, %v834_v48, %v12428_v22  ;;  %v13661_v61 = vrot.slane %v7564_v63, 4  ;;  %v866_v22 = vrot.slane %v8106_v31, 6 }
 0x193   :  { %13656 = vst [vmem:[#allocation139_spill] sm:$0xff] %v8151_v8  ;;  %13658 = vst [vmem:[#allocation135_spill] sm:$0xff] %v8164_v25  ;;  %v8170_v20 = vsel %vm144_vm1, %v13659_v19, %v834_v48  ;;  %v8182_v32 = vsel %vm178_vm3, %v850_v29, %v12434_v50  ;;  %v12443_v37 = vrot.slane %v8108_v57, 6  ;;  %v887_v48 = vmul.f32 %v13664_v1, %v7379_v39 }
 0x194   :  { %13660 = vst [vmem:[#allocation42_spill] sm:$0xff] %v8170_v20  ;;  %v8176_v3 = vsel %vm178_vm3, %v13661_v61, %v850_v29  ;;  %13663 = vst [vmem:[#allocation58_spill] sm:$0xff] %v8182_v32  ;;  %v888_v19 = vmul.f32 %v13664_v1, %v7965_v21  ;;  %v897_v61 = vmul.f32 %v13665_v6, %v8032_v43  ;;  %v13668_v52 = vrot.slane %v7564_v63, 6 }
 0x195   :  { %13662 = vst [vmem:[#allocation56_spill] sm:$0xff] %v8176_v3  ;;  %v898_v14 = vmul.f32 %v13665_v6, %v8011_v53  ;;  %v915_v29 = vmul.f32 %v13666_v9, %v8044_v26  ;;  %v8200_v50 = vsel %vm723_vm4, %v866_v22, %v12443_v37  ;;  %v916_v38 = vmul.f32 %v13666_v9, %v8038_v34  ;;  %v13671_v37 = vld [vmem:[#allocation116_spill] sm:$0xff] }
 0x196   :  { %13667 = vst [vmem:[#allocation158_spill] sm:$0xff] %v8200_v50  ;;  %v8206_v54 = vsel %vm723_vm4, %v13668_v52, %v866_v22  ;;  %v933_v17 = vmul.f32 %v13670_v2, %v8060_v15  ;;  %v905_v44 = vadd.f32 %v897_v61, %v887_v48  ;;  %v934_v6 = vmul.f32 %v13670_v2, %v8054_v0  ;;  %v13672_v52 = vld [vmem:[#allocation117_spill] sm:$0xff]  ;;  %v13674_v61 = vld [vmem:[#allocation119_spill] sm:$0xff] }
 0x197   :  { %13669 = vst [vmem:[#allocation34_spill] sm:$0xff] %v8206_v54  ;;  %v906_v45 = vadd.f32 %v898_v14, %v888_v19  ;;  %v951_v1 = vmul.f32 %v13671_v37, %v7965_v21  ;;  %v952_v13 = vmul.f32 %v13671_v37, %v7967_v46  ;;  %v969_v22 = vmul.f32 %v13672_v52, %v7415_v33 }
 0x198   :  { %v970_v9 = vmul.f32 %v13672_v52, %v7989_v58  ;;  %v987_v51 = vmul.f32 %v13673_v11, %v8074_v49  ;;  %v923_v48 = vadd.f32 %v915_v29, %v905_v44  ;;  %v988_v19 = vmul.f32 %v13673_v11, %v8068_v12  ;;  %v13677_v29 = vld [vmem:[#allocation122_spill] sm:$0xff] }
 0x199   :  { %v924_v14 = vadd.f32 %v916_v38, %v906_v45  ;;  %v1005_v2 = vmul.f32 %v13674_v61, %v8087_v28  ;;  %v1006_v37 = vmul.f32 %v13674_v61, %v8081_v30  ;;  %v1023_v41 = vmul.f32 %v13675_v5, %v8101_v23  ;;  %v13678_v30 = vld [vmem:[#allocation123_spill] sm:$0xff] }
 0x19a   :  { %v1024_v52 = vmul.f32 %v13675_v5, %v8114_v42  ;;  %v1041_v27 = vmul.f32 %v13676_v16, %v7989_v58  ;;  %v941_v44 = vadd.f32 %v933_v17, %v923_v48  ;;  %v1042_v38 = vmul.f32 %v13676_v16, %v7991_v60  ;;  %v13679_v42 = vld [vmem:[#allocation124_spill] sm:$0xff] }
 0x19b   :  { %v942_v45 = vadd.f32 %v934_v6, %v924_v14  ;;  %v1059_v11 = vmul.f32 %v13677_v29, %v7471_v24  ;;  %v1060_v61 = vmul.f32 %v13677_v29, %v8021_v18  ;;  %v1077_v23 = vmul.f32 %v13678_v30, %v8120_v7  ;;  %v13680_v14 = vld [vmem:[#allocation125_spill] sm:$0xff] }
 0x19c   :  { %v1078_v5 = vmul.f32 %v13678_v30, %v8126_v56  ;;  %v8248_v36 = vmul.f32 %v13679_v42, %v8145_v10  ;;  %v959_v17 = vadd.f32 %v951_v1, %v941_v44  ;;  %v8252_v48 = vmul.f32 %v13679_v42, %v8139_v35  ;;  %v13683_v30 = vld [vmem:[#allocation126_spill] sm:$0xff] }
 0x19d   :  { %v960_v6 = vadd.f32 %v952_v13, %v942_v45  ;;  %v8256_v16 = vmul.f32 %v13680_v14, %v8151_v8  ;;  %v8260_v29 = vmul.f32 %v13680_v14, %v8158_v47  ;;  %v8264_v56 = vmul.f32 %v13683_v30, %v8021_v18  ;;  %v13686_v13 = vld [vmem:[#allocation127_spill] sm:$0xff]  ;;  %v13687_v14 = vld [vmem:[#allocation128_spill] sm:$0xff] }
 0x19e   :  { %v8268_v1 = vmul.f32 %v13683_v30, %v8023_v40  ;;  %v8272_v44 = vmul.f32 %v13686_v13, %v7564_v63  ;;  %v977_v45 = vadd.f32 %v969_v22, %v959_v17  ;;  %v13690_v30 = vld [vmem:[#allocation129_spill] sm:$0xff] }
 0x19f   :  { %13681 = vst [vmem:[#allocation157_spill] sm:$0xff] %v8256_v16  ;;  %13682 = vst [vmem:[#allocation55_spill] sm:$0xff] %v8260_v29  ;;  %v978_v42 = vadd.f32 %v970_v9, %v960_v6  ;;  %v8276_v16 = vmul.f32 %v13686_v13, %v8106_v31  ;;  %v8280_v29 = vmul.f32 %v13687_v14, %v8170_v20  ;;  %v13693_v9 = vld [vmem:[#allocation130_spill] sm:$0xff] }
 0x1a0   :  { %13684 = vst [vmem:[#allocation65_spill] sm:$0xff] %v8264_v56  ;;  %13685 = vst [vmem:[#allocation66_spill] sm:$0xff] %v8268_v1  ;;  %v8284_v56 = vmul.f32 %v13687_v14, %v8164_v25  ;;  %v8288_v1 = vmul.f32 %v13690_v30, %v8176_v3  ;;  %v8292_v22 = vmul.f32 %v13690_v30, %v8182_v32  ;;  %v13696_v14 = vld [vmem:[#allocation131_spill] sm:$0xff]  ;;  %v13699_v30 = vld [vmem:[#allocation133_spill] sm:$0xff] }
 0x1a1   :  { %13688 = vst [vmem:[#allocation67_spill] sm:$0xff] %v8280_v29  ;;  %v8296_v17 = vmul.f32 %v13693_v9, %v8206_v54  ;;  %v995_v6 = vadd.f32 %v987_v51, %v977_v45  ;;  %v996_v13 = vadd.f32 %v988_v19, %v978_v42  ;;  %v8300_v29 = vmul.f32 %v13693_v9, %v8200_v50  ;;  %v13700_v51 = vld [vmem:[#allocation134_spill] sm:$0xff] }
 0x1a2   :  { %13689 = vst [vmem:[#allocation160_spill] sm:$0xff] %v8284_v56  ;;  %13691 = vst [vmem:[#allocation46_spill] sm:$0xff] %v8288_v1  ;;  %v8304_v56 = vmul.f32 %v13696_v14, %v8106_v31  ;;  %v8308_v1 = vmul.f32 %v13696_v14, %v8108_v57  ;;  %v2917_v42 = vmul.f32 %v13700_v51, %v8032_v43 }
 0x1a3   :  { %13692 = vst [vmem:[#allocation33_spill] sm:$0xff] %v8292_v22  ;;  %13694 = vst [vmem:[#allocation162_spill] sm:$0xff] %v8296_v17  ;;  %v2907_v22 = vmul.f32 %v13699_v30, %v7379_v39  ;;  %v2908_v17 = vmul.f32 %v13699_v30, %v7965_v21  ;;  %v1013_v19 = vadd.f32 %v1005_v2, %v995_v6 }
 0x1a4   :  { %13695 = vst [vmem:[#allocation59_spill] sm:$0xff] %v8300_v29  ;;  %13697 = vst [vmem:[#allocation156_spill] sm:$0xff] %v8304_v56  ;;  %v1014_v45 = vadd.f32 %v1006_v37, %v996_v13  ;;  %v2918_v9 = vmul.f32 %v13700_v51, %v8011_v53  ;;  %v2935_v56 = vmul.f32 %v7008_v4, %v8044_v26 }
 0x1a5   :  { %13698 = vst [vmem:[#allocation161_spill] sm:$0xff] %v8308_v1  ;;  %v2925_v29 = vadd.f32 %v2917_v42, %v2907_v22  ;;  %v2936_v14 = vmul.f32 %v7008_v4, %v8038_v34  ;;  %v2953_v39 = vmul.f32 %v7011_v55, %v8060_v15  ;;  %v2954_v30 = vmul.f32 %v7011_v55, %v8054_v0  ;;  %v13701_v22 = vld [vmem:[#allocation136_spill] sm:$0xff] }
 0x1a6   :  { %v1031_v1 = vadd.f32 %v1023_v41, %v1013_v19  ;;  %v1032_v43 = vadd.f32 %v1024_v52, %v1014_v45  ;;  %v2926_v2 = vadd.f32 %v2918_v9, %v2908_v17  ;;  %v2971_v37 = vmul.f32 %v7030_v62, %v7965_v21  ;;  %v13703_v17 = vld [vmem:[#allocation31_spill] sm:$0xff] }
 0x1a7   :  { %v2943_v13 = vadd.f32 %v2935_v56, %v2925_v29  ;;  %v2972_v6 = vmul.f32 %v7030_v62, %v7967_v46  ;;  %v2989_v42 = vmul.f32 %v13701_v22, %v7415_v33  ;;  %v2990_v34 = vmul.f32 %v13701_v22, %v7989_v58  ;;  %v13702_v56 = vld [vmem:[#allocation140_spill] sm:$0xff]  ;;  %v13704_v33 = vld [vmem:[#allocation198_spill] sm:$0xff] }
 0x1a8   :  { %v1049_v15 = vadd.f32 %v1041_v27, %v1031_v1  ;;  %v1050_v26 = vadd.f32 %v1042_v38, %v1032_v43  ;;  %v2944_v53 = vadd.f32 %v2936_v14, %v2926_v2  ;;  %v3007_v41 = vmul.f32 %v13530_v59, %v8074_v49  ;;  %v13705_v27 = vld [vmem:[#allocation141_spill] sm:$0xff]  ;;  %v13706_v14 = vld [vmem:[#allocation43_spill] sm:$0xff] }
 0x1a9   :  { %v2961_v52 = vadd.f32 %v2953_v39, %v2943_v13  ;;  %v3008_v9 = vmul.f32 %v13530_v59, %v8068_v12  ;;  %v3025_v29 = vmul.f32 %v13702_v56, %v8087_v28  ;;  %v3026_v19 = vmul.f32 %v13702_v56, %v13703_v17  ;;  %v13707_v39 = vld [vmem:[#allocation142_spill] sm:$0xff]  ;;  %v13714_v17 = vld [vmem:[#allocation55_spill] sm:$0xff] }
 0x1aa   :  { %v1067_v45 = vadd.f32 %v1059_v11, %v1049_v15  ;;  %v1068_v0 = vadd.f32 %v1060_v61, %v1050_v26  ;;  %v2962_v21 = vadd.f32 %v2954_v30, %v2944_v53  ;;  %v3043_v43 = vmul.f32 %v13705_v27, %v13704_v33  ;;  %v13708_v11 = vld [vmem:[#allocation143_spill] sm:$0xff]  ;;  %v13709_v30 = vld [vmem:[#allocation144_spill] sm:$0xff] }
 0x1ab   :  { %v2979_v38 = vadd.f32 %v2971_v37, %v2961_v52  ;;  %v3044_v1 = vmul.f32 %v13705_v27, %v13706_v14  ;;  %v3061_v2 = vmul.f32 %v13707_v39, %v7989_v58  ;;  %v3062_v13 = vmul.f32 %v13707_v39, %v7991_v60  ;;  %v13710_v37 = vld [vmem:[#allocation52_spill] sm:$0xff] }
 0x1ac   :  { %v1085_v28 = vadd.f32 %v1077_v23, %v1067_v45  ;;  %v1086_v12 = vadd.f32 %v1078_v5, %v1068_v0  ;;  %v2980_v49 = vadd.f32 %v2972_v6, %v2962_v21  ;;  %v3079_v26 = vmul.f32 %v13708_v11, %v7471_v24  ;;  %v13711_v5 = vld [vmem:[#allocation145_spill] sm:$0xff] }
 0x1ad   :  { %v2997_v53 = vadd.f32 %v2989_v42, %v2979_v38  ;;  %v3080_v15 = vmul.f32 %v13708_v11, %v8021_v18  ;;  %v3097_v61 = vmul.f32 %v13709_v30, %v8120_v7  ;;  %v3098_v52 = vmul.f32 %v13709_v30, %v13710_v37  ;;  %v13712_v42 = vld [vmem:[#allocation146_spill] sm:$0xff]  ;;  %v13713_v7 = vld [vmem:[#allocation157_spill] sm:$0xff]  ;;  %v13775_v11 = vld [vmem:[#allocation115_spill] sm:$0xff] }
 0x1ae   :  { %v1103_v14 = vadd.f32 %v8248_v36, %v1085_v28  ;;  %v1104_v33 = vadd.f32 %v8252_v48, %v1086_v12  ;;  %v2998_v23 = vadd.f32 %v2990_v34, %v2980_v49  ;;  %v3115_v21 = vmul.f32 %v13711_v5, %v8145_v10  ;;  %v13715_v34 = vld [vmem:[#allocation147_spill] sm:$0xff] }
 0x1af   :  { %v3015_v0 = vadd.f32 %v3007_v41, %v2997_v53  ;;  %v3116_v6 = vmul.f32 %v13711_v5, %v8139_v35  ;;  %v3133_v45 = vmul.f32 %v13712_v42, %v8151_v8  ;;  %v3134_v38 = vmul.f32 %v13712_v42, %v8158_v47  ;;  %v13716_v41 = vld [vmem:[#allocation148_spill] sm:$0xff]  ;;  %v13717_v47 = vld [vmem:[#allocation65_spill] sm:$0xff] }
 0x1b0   :  { %v1121_v37 = vadd.f32 %v13713_v7, %v1103_v14  ;;  %v1122_v36 = vadd.f32 %v13714_v17, %v1104_v33  ;;  %v3016_v28 = vadd.f32 %v3008_v9, %v2998_v23  ;;  %v3151_v12 = vmul.f32 %v13715_v34, %v8021_v18  ;;  %v13718_v7 = vld [vmem:[#allocation66_spill] sm:$0xff]  ;;  %v13719_v9 = vld [vmem:[#allocation149_spill] sm:$0xff]  ;;  %v13774_v5 = vld [vmem:[#allocation112_spill] sm:$0xff] }
 0x1b1   :  { %v3033_v49 = vadd.f32 %v3025_v29, %v3015_v0  ;;  %v3152_v48 = vmul.f32 %v13715_v34, %v8023_v40  ;;  %v3169_v53 = vmul.f32 %v13716_v41, %v7564_v63  ;;  %v8378_v8 = vmul.f32 %v13716_v41, %v8106_v31  ;;  %v13720_v0 = vld [vmem:[#allocation150_spill] sm:$0xff] }
 0x1b2   :  { %v1139_v35 = vadd.f32 %v13717_v47, %v1121_v37  ;;  %v1140_v14 = vadd.f32 %v13718_v7, %v1122_v36  ;;  %v3034_v33 = vadd.f32 %v3026_v19, %v3016_v28  ;;  %v8384_v17 = vmul.f32 %v13719_v9, %v8170_v20  ;;  %v13721_v36 = vld [vmem:[#allocation151_spill] sm:$0xff]  ;;  %v13722_v7 = vld [vmem:[#allocation153_spill] sm:$0xff] }
 0x1b3   :  { %v3051_v29 = vadd.f32 %v3043_v43, %v3033_v49  ;;  %v8388_v23 = vmul.f32 %v13719_v9, %v8164_v25  ;;  %v8392_v10 = vmul.f32 %v13720_v0, %v8176_v3  ;;  %v8396_v18 = vmul.f32 %v13720_v0, %v8182_v32  ;;  %v13760_v9 = vld [vmem:[#allocation76_spill] sm:$0xff] }
 0x1b4   :  { %v1157_v47 = vadd.f32 %v8272_v44, %v1139_v35  ;;  %v1158_v19 = vadd.f32 %v8276_v16, %v1140_v14  ;;  %v3052_v37 = vadd.f32 %v3044_v1, %v3034_v33  ;;  %v8402_v43 = vmul.f32 %v13721_v36, %v8206_v54  ;;  %v13723_v35 = vld [vmem:[#allocation67_spill] sm:$0xff]  ;;  %v13724_v44 = vld [vmem:[#allocation160_spill] sm:$0xff] }
 0x1b5   :  { %v3069_v28 = vadd.f32 %v3061_v2, %v3051_v29  ;;  %v8406_v49 = vmul.f32 %v13721_v36, %v8200_v50  ;;  %v8410_v3 = vmul.f32 %v13722_v7, %v8106_v31  ;;  %v8414_v32 = vmul.f32 %v13722_v7, %v8108_v57  ;;  %v13725_v33 = vld [vmem:[#allocation36_spill] sm:$0xff] }
 0x1b6   :  { %v1175_v16 = vadd.f32 %v13723_v35, %v1157_v47  ;;  %v1176_v1 = vadd.f32 %v13724_v44, %v1158_v19  ;;  %v3070_v14 = vadd.f32 %v3062_v13, %v3052_v37  ;;  %v13726_v54 = vrot.slane %v13725_v33, 2  ;;  %v13736_v37 = vld [vmem:[#allocation48_spill] sm:$0xff]  ;;  %v13740_v35 = vld [vmem:[#allocation46_spill] sm:$0xff] }
 0x1b7   :  { %v13727_v2 = vrot.slane %v7967_v46, 2  ;;  %v3087_v25 = vadd.f32 %v3079_v26, %v3069_v28  ;;  %v13730_v20 = vrot.slane %v13725_v33, 4  ;;  %v13731_v31 = vrot.slane %v7967_v46, 4 }
 0x1b8   :  { %v13733_v47 = vrot.slane %v13725_v33, 6  ;;  %v13734_v13 = vrot.slane %v7967_v46, 6  ;;  %v13738_v26 = vrot.slane %v7991_v60, 2  ;;  %v1193_v44 = vadd.f32 %v13740_v35, %v1175_v16  ;;  %v13748_v16 = vld [vmem:[#allocation61_spill] sm:$0xff] }
 0x1b9   :  { %v8424_v50 = vsel %vm144_vm1, %v13727_v2, %v13726_v54  ;;  %v8432_v58 = vsel %vm178_vm3, %v13731_v31, %v13730_v20  ;;  %v13737_v54 = vrot.slane %v13736_v37, 2  ;;  %v13741_v31 = vld [vmem:[#allocation33_spill] sm:$0xff]  ;;  %v3088_v2 = vadd.f32 %v3080_v15, %v3070_v14 }
 0x1ba   :  { %13729 = vst [vmem:[#allocation22_spill] sm:$0xff] %v8424_v50  ;;  %13732 = vst [vmem:[#allocation68_spill] sm:$0xff] %v8432_v58  ;;  %v8440_v19 = vsel %vm723_vm4, %v13734_v13, %v13733_v47  ;;  %v1194_v20 = vadd.f32 %v13741_v31, %v1176_v1  ;;  %v13742_v63 = vrot.slane %v13736_v37, 4  ;;  %v13743_v24 = vrot.slane %v7991_v60, 4 }
 0x1bb   :  { %13735 = vst [vmem:[#allocation174_spill] sm:$0xff] %v8440_v19  ;;  %v8448_v28 = vsel %vm144_vm1, %v13738_v26, %v13737_v54  ;;  %v3105_v13 = vadd.f32 %v3097_v61, %v3087_v25  ;;  %v13745_v7 = vrot.slane %v13736_v37, 6  ;;  %v13746_v36 = vrot.slane %v7991_v60, 6  ;;  %v13755_v61 = vld [vmem:[#allocation162_spill] sm:$0xff] }
 0x1bc   :  { %13739 = vst [vmem:[#allocation73_spill] sm:$0xff] %v8448_v28  ;;  %v8458_v47 = vsel %vm178_vm3, %v13743_v24, %v13742_v63  ;;  %v13749_v1 = vrot.slane %v13748_v16, 2  ;;  %v13750_v15 = vrot.slane %v8023_v40, 2  ;;  %v13752_v24 = vrot.slane %v13748_v16, 4 }
 0x1bd   :  { %13744 = vst [vmem:[#allocation167_spill] sm:$0xff] %v8458_v47  ;;  %v8466_v54 = vsel %vm723_vm4, %v13746_v36, %v13745_v7  ;;  %v13753_v63 = vrot.slane %v8023_v40, 4  ;;  %v1211_v26 = vadd.f32 %v13755_v61, %v1193_v44  ;;  %v13756_v36 = vld [vmem:[#allocation59_spill] sm:$0xff]  ;;  %v3106_v35 = vadd.f32 %v3098_v52, %v3088_v2 }
 0x1be   :  { %13747 = vst [vmem:[#allocation134_spill] sm:$0xff] %v8466_v54  ;;  %v8474_v14 = vsel %vm144_vm1, %v13750_v15, %v13749_v1  ;;  %v1212_v7 = vadd.f32 %v13756_v36, %v1194_v20  ;;  %v13757_v31 = vrot.slane %v13748_v16, 6  ;;  %v13758_v0 = vrot.slane %v8023_v40, 6  ;;  %v13772_v36 = vld [vmem:[#allocation110_spill] sm:$0xff] }
 0x1bf   :  { %13751 = vst [vmem:[#allocation136_spill] sm:$0xff] %v8474_v14  ;;  %v8482_v25 = vsel %vm178_vm3, %v13753_v63, %v13752_v24  ;;  %v3123_v15 = vadd.f32 %v3115_v21, %v3105_v13  ;;  %v13761_v41 = vrot.slane %v13760_v9, 2  ;;  %v13762_v34 = vrot.slane %v8108_v57, 2  ;;  %v13770_v13 = vld [vmem:[#allocation156_spill] sm:$0xff] }
 0x1c0   :  { %13754 = vst [vmem:[#allocation140_spill] sm:$0xff] %v8482_v25  ;;  %v8492_v1 = vsel %vm723_vm4, %v13758_v0, %v13757_v31  ;;  %v13764_v44 = vrot.slane %v13760_v9, 4  ;;  %v13765_v52 = vrot.slane %v8108_v57, 4  ;;  %v13767_v0 = vrot.slane %v13760_v9, 6 }
 0x1c1   :  { %13759 = vst [vmem:[#allocation157_spill] sm:$0xff] %v8492_v1  ;;  %v8500_v24 = vsel %vm144_vm1, %v13762_v34, %v13761_v41  ;;  %v13768_v21 = vrot.slane %v8108_v57, 6  ;;  %v1229_v63 = vadd.f32 %v13770_v13, %v1211_v26  ;;  %v13771_v34 = vld [vmem:[#allocation161_spill] sm:$0xff]  ;;  %v3124_v61 = vadd.f32 %v3116_v6, %v3106_v35  ;;  %v13778_v6 = vld [vmem:[#allocation116_spill] sm:$0xff] }
 0x1c2   :  { %13763 = vst [vmem:[#allocation55_spill] sm:$0xff] %v8500_v24  ;;  %v8508_v20 = vsel %vm178_vm3, %v13765_v52, %v13764_v44  ;;  %v1230_v41 = vadd.f32 %v13771_v34, %v1212_v7  ;;  %v889_v31 = vmul.f32 %v13772_v36, %v7967_v46  ;;  %v3141_v42 = vadd.f32 %v3133_v45, %v3123_v15  ;;  %v13773_v44 = vld [vmem:[#allocation111_spill] sm:$0xff]  ;;  %v13779_v15 = vld [vmem:[#allocation117_spill] sm:$0xff]  ;;  %v13780_v36 = vld [vmem:[#allocation118_spill] sm:$0xff] }
 0x1c3   :  { %13766 = vst [vmem:[#allocation65_spill] sm:$0xff] %v8508_v20  ;;  %v8516_v2 = vsel %vm723_vm4, %v13768_v21, %v13767_v0  ;;  %v899_v52 = vmul.f32 %v13773_v44, %v8424_v50  ;;  %v917_v30 = vmul.f32 %v13774_v5, %v8432_v58  ;;  %v935_v39 = vmul.f32 %v13775_v11, %v8440_v19  ;;  %v13776_v0 = vld [vmem:[#allocation132_spill] sm:$0xff] }
 0x1c4   :  { %13769 = vst [vmem:[#allocation66_spill] sm:$0xff] %v8516_v2  ;;  %v1239_v21 = vadd.f32 %v13776_v0, %v1229_v63  ;;  %v8530_v26 = vadd.f32 %v13776_v0, %v1230_v41  ;;  %v3142_v7 = vadd.f32 %v3134_v38, %v3124_v61  ;;  %v953_v35 = vmul.f32 %v13778_v6, %v13725_v33  ;;  %v13781_v63 = vld [vmem:[#allocation119_spill] sm:$0xff]  ;;  %v13782_v61 = vld [vmem:[#allocation120_spill] sm:$0xff] }
 0x1c5   :  { %v3159_v13 = vadd.f32 %v3151_v12, %v3141_v42  ;;  %v907_v45 = vadd.f32 %v899_v52, %v889_v31  ;;  %v971_v34 = vmul.f32 %v13779_v15, %v7991_v60  ;;  %v989_v5 = vmul.f32 %v13780_v36, %v8448_v28  ;;  %v13783_v42 = vld [vmem:[#allocation121_spill] sm:$0xff]  ;;  %v13787_v15 = vld [vmem:[#allocation124_spill] sm:$0xff] }
 0x1c6   :  { %13777 = vst [vmem:[#allocation67_spill] sm:$0xff] %v8530_v26  ;;  %v1247_v44 = vmax.f32 %v1239_v21, 0.0  ;;  %v12549_v11 = vmax.f32 %v8530_v26, 0.0  ;;  %v3160_v27 = vadd.f32 %v3152_v48, %v3142_v7  ;;  %v1007_v41 = vmul.f32 %v13781_v63, %v8458_v47  ;;  %v13785_v48 = vld [vmem:[#allocation122_spill] sm:$0xff] }
 0x1c7   :  { %v3177_v0 = vadd.f32 %v3169_v53, %v3159_v13  ;;  %v925_v38 = vadd.f32 %v917_v30, %v907_v45  ;;  %v1025_v6 = vmul.f32 %v13782_v61, %v8466_v54  ;;  %v1043_v12 = vmul.f32 %v13783_v42, %v13736_v37  ;;  %v13786_v13 = vld [vmem:[#allocation123_spill] sm:$0xff]  ;;  %v13792_v26 = vld [vmem:[#allocation126_spill] sm:$0xff] }
 0x1c8   :  { %v1255_v31 = vrot.slane %v1247_v44, 2  ;;  %v8547_v52 = vrot.slane %v12549_v11, 2  ;;  %v3178_v21 = vadd.f32 %v8378_v8, %v3160_v27  ;;  %v8552_v7 = vmul.f32 %v13785_v48, %v8023_v40  ;;  %v13788_v8 = vld [vmem:[#allocation189_spill] sm:$0xff] }
 0x1c9   :  { %v3195_v53 = vadd.f32 %v8384_v17, %v3177_v0  ;;  %v943_v30 = vadd.f32 %v935_v39, %v925_v38  ;;  %v8557_v45 = vmul.f32 %v13786_v13, %v8474_v14  ;;  %v8561_v36 = vmul.f32 %v13787_v15, %v8482_v25  ;;  %v13789_v39 = vld [vmem:[#allocation125_spill] sm:$0xff] }
 0x1ca   :  { %13784 = vst [vmem:[#allocation160_spill] sm:$0xff] %v8547_v52  ;;  %v1259_v63 = vsel %vm144_vm1, %v1255_v31, %v8547_v52  ;;  %v1260_v27 = vsel %vm144_vm1, %v13788_v8, %v1255_v31  ;;  %v3196_v61 = vadd.f32 %v8388_v23, %v3178_v21  ;;  %v8572_v17 = vmul.f32 %v13789_v39, %v8492_v1  ;;  %v13790_v0 = vld [vmem:[#allocation137_spill] sm:$0xff]  ;;  %v13793_v31 = vld [vmem:[#allocation127_spill] sm:$0xff]  ;;  %v13794_v21 = vld [vmem:[#allocation128_spill] sm:$0xff] }
 0x1cb   :  { %v13791_v38 = vmax.f32 %v13790_v0, 0.0  ;;  %v1271_v48 = vmax.f32 %v1247_v44, %v1259_v63  ;;  %v3213_v13 = vadd.f32 %v8392_v10, %v3195_v53  ;;  %v961_v15 = vadd.f32 %v953_v35, %v943_v30  ;;  %v13795_v10 = vld [vmem:[#allocation129_spill] sm:$0xff]  ;;  %v13797_v30 = vld [vmem:[#allocation131_spill] sm:$0xff] }
 0x1cc   :  { %v3214_v11 = vadd.f32 %v8396_v18, %v3196_v61  ;;  %v8580_v52 = vmul.f32 %v13792_v26, %v13748_v16  ;;  %v8584_v23 = vmul.f32 %v13793_v31, %v8108_v57  ;;  %v8588_v8 = vmul.f32 %v13794_v21, %v8500_v24  ;;  %v13796_v26 = vld [vmem:[#allocation130_spill] sm:$0xff]  ;;  %v13798_v61 = vld [vmem:[#allocation133_spill] sm:$0xff] }
 0x1cd   :  { %v1270_v42 = vmax.f32 %v13791_v38, %v1260_v27  ;;  %v3231_v44 = vadd.f32 %v8402_v43, %v3213_v13  ;;  %v979_v63 = vadd.f32 %v971_v34, %v961_v15  ;;  %v8593_v35 = vmul.f32 %v13795_v10, %v8508_v20 }
 0x1ce   :  { %v3232_v18 = vadd.f32 %v8406_v49, %v3214_v11  ;;  %v8598_v53 = vmul.f32 %v13796_v26, %v8516_v2  ;;  %v8602_v27 = vmul.f32 %v13797_v30, %v13760_v9  ;;  %v2909_v0 = vmul.f32 %v13798_v61, %v7967_v46  ;;  %v13804_v26 = vld [vmem:[#allocation145_spill] sm:$0xff]  ;;  %v13805_v61 = vld [vmem:[#allocation146_spill] sm:$0xff] }
 0x1cf   :  { %v5522_v39 = vpack.c.bf16 %v1271_v48, %v1270_v42  ;;  %v3249_v43 = vadd.f32 %v8410_v3, %v3231_v44  ;;  %v997_v34 = vadd.f32 %v989_v5, %v979_v63  ;;  %v2919_v38 = vmul.f32 %v13700_v51, %v8424_v50  ;;  %v13799_v3 = vld [vmem:[#allocation154_spill] sm:$0xff]  ;;  %v13802_v44 = vld [vmem:[#allocation143_spill] sm:$0xff] }
 0x1d0   :  { %v2937_v49 = vmul.f32 %v7008_v4, %v8432_v58  ;;  %v3250_v11 = vadd.f32 %v8414_v32, %v3232_v18  ;;  %v2955_v42 = vmul.f32 %v7011_v55, %v8440_v19  ;;  %v2973_v48 = vmul.f32 %v7030_v62, %v13725_v33  ;;  %v13800_v62 = vld [vmem:[#allocation141_spill] sm:$0xff] }
 0x1d1   :  { %5523 = vmatprep.subr.bf16.mxu1 %v5522_v39  ;;  %v2991_v13 = vmul.f32 %v13701_v22, %v7991_v60  ;;  %v3259_v5 = vadd.f32 %v13799_v3, %v3249_v43  ;;  %v1015_v15 = vadd.f32 %v1007_v41, %v997_v34  ;;  %v2927_v31 = vadd.f32 %v2919_v38, %v2909_v0  ;;  %v13801_v22 = vld [vmem:[#allocation142_spill] sm:$0xff]  ;;  %v13806_v38 = vld [vmem:[#allocation147_spill] sm:$0xff]  ;;  %v13845_v60 = vld [vmem:[#allocation132_spill] sm:$0xff] }
 0x1d2   :  { %5525 = vmatpush3.bf16.msra.mxu1 %v5522_v39  ;;  %v3009_v51 = vmul.f32 %v13530_v59, %v8448_v28  ;;  %v8624_v4 = vadd.f32 %v13799_v3, %v3250_v11  ;;  %v3027_v55 = vmul.f32 %v13702_v56, %v8458_v47  ;;  %v8630_v32 = vmul.f32 %v13800_v62, %v8466_v54  ;;  %v13803_v56 = vld [vmem:[#allocation144_spill] sm:$0xff]  ;;  %v13826_v47 = vld [vmem:[#allocation77_spill] sm:$0xff] }
 0x1d3   :  { %v8634_v21 = vmul.f32 %v13801_v22, %v13736_v37  ;;  %v3267_v41 = vmax.f32 %v3259_v5, 0.0  ;;  %v1033_v59 = vadd.f32 %v1025_v6, %v1015_v15  ;;  %v2945_v39 = vadd.f32 %v2937_v49, %v2927_v31  ;;  %v13807_v5 = vld [vmem:[#allocation148_spill] sm:$0xff]  ;;  %v13808_v31 = vld [vmem:[#allocation149_spill] sm:$0xff]  ;;  %v13809_v22 = vld [vmem:[#allocation150_spill] sm:$0xff] }
 0x1d4   :  { %v8640_v63 = vmul.f32 %v13802_v44, %v8023_v40  ;;  %v12552_v10 = vmax.f32 %v8624_v4, 0.0  ;;  %v8645_v18 = vmul.f32 %v13803_v56, %v8474_v14  ;;  %v8649_v30 = vmul.f32 %v13804_v26, %v8482_v25  ;;  %v13825_v14 = vld [vmem:[#allocation80_spill] sm:$0xff] }
 0x1d5   :  { %v8653_v0 = vmul.f32 %v13805_v61, %v8492_v1  ;;  %v3275_v6 = vrot.slane %v3267_v41, 2  ;;  %v1051_v43 = vadd.f32 %v1043_v12, %v1033_v59  ;;  %v2963_v34 = vadd.f32 %v2955_v42, %v2945_v39  ;;  %v1274_v42 = vld [vmem:[#allocation12] sm:$0xff]  ;;  %v13811_v61 = vld [vmem:[#allocation151_spill] sm:$0xff] }
 0x1d6   :  { %v8661_v49 = vmul.f32 %v13806_v38, %v13748_v16  ;;  %v8665_v11 = vrot.slane %v12552_v10, 2  ;;  %v8669_v15 = vmul.f32 %v13807_v5, %v8108_v57  ;;  %v8673_v62 = vmul.f32 %v13808_v31, %v8500_v24  ;;  %v3295_v59 = vld [vmem:[#allocation12 + $0x80] sm:$0xff]  ;;  %5343 = vmatprep.mubr.msk.f32.mxu1 %vm1278_vm5, %v1274_v42 }
 0x1d7   :  { %v8677_v12 = vmul.f32 %v13809_v22, %v8508_v20  ;;  %v13810_v39 = vld [vmem:[#allocation152_spill] sm:$0xff]  ;;  %v1069_v56 = vadd.f32 %v8552_v7, %v1051_v43  ;;  %v2981_v26 = vadd.f32 %v2973_v48, %v2963_v34  ;;  %v8685_v38 = vmul.f32 %v13811_v61, %v8516_v2  ;;  %v13814_v20 = vld [vmem:[#allocation153_spill] sm:$0xff]  ;;  %5431 = vmatprep.mubr.msk.f32.mxu0 %vm1278_vm5, %v3295_v59  ;;  %v13820_v59 = vld [vmem:[#allocation71_spill] sm:$0xff] }
 0x1d8   :  { %v3280_v44 = vsel %vm144_vm1, %v13810_v39, %v3275_v6  ;;  %v3279_v5 = vsel %vm144_vm1, %v3275_v6, %v8665_v11  ;;  %v13812_v31 = vld [vmem:[#allocation192_spill] sm:$0xff]  ;;  %v8694_v24 = vmul.f32 %v13814_v20, %v13760_v9  ;;  %v8699_v43 = vstv %s8621_s15  ;;  %v13816_v20 = vld [vmem:[#allocation37_spill] sm:$0xff]  ;;  %s8998_s15 = sld [smem:[#allocation9 + $0x6a]] }
 0x1d9   :  { %v13813_v22 = vmax.f32 %v13812_v31, 0.0  ;;  %v3291_v39 = vmax.f32 %v3267_v41, %v3279_v5  ;;  %v1087_v7 = vadd.f32 %v8557_v45, %v1069_v56  ;;  %v2999_v48 = vadd.f32 %v2991_v13, %v2981_v26  ;;  %13815 = vst [vmem:[#allocation46_spill] sm:$0xff] %v8699_v43  ;;  %v13817_v41 = vld [vmem:[#allocation38_spill] sm:$0xff]  ;;  %v13819_v26 = vld [vmem:[#allocation69_spill] sm:$0xff]  ;;  %v13821_v31 = vld [vmem:[#allocation72_spill] sm:$0xff] }
 0x1da   :  { %v1402_v6 = vmul.f32 %v8699_v43, %v13725_v33  ;;  %v1403_v34 = vmul.f32 %v8699_v43, %v13816_v20  ;;  %v1404_v45 = vmul.f32 %v8699_v43, %v13817_v41  ;;  %v8711_v13 = vstv %s8636_s16  ;;  %s9000_s16 = sld [smem:[#allocation9 + $0x6b]] }
 0x1db   :  { %v3290_v10 = vmax.f32 %v13813_v22, %v3280_v44  ;;  %13818 = vst [vmem:[#allocation33_spill] sm:$0xff] %v8711_v13  ;;  %v1105_v42 = vadd.f32 %v8561_v36, %v1087_v7  ;;  %v3017_v56 = vadd.f32 %v3009_v51, %v2999_v48  ;;  %v1412_v61 = vmul.f32 %v8711_v13, %v13819_v26 }
 0x1dc   :  { %v1413_v5 = vmul.f32 %v8711_v13, %v13820_v59  ;;  %v1414_v22 = vmul.f32 %v8711_v13, %v13821_v31  ;;  %v8723_v2 = vstv %s8655_s17  ;;  %v8726_v1 = vstv %s8657_s18  ;;  %s9014_s17 = sld [smem:[#allocation9 + $0x6c]]  ;;  %s9025_s18 = sld [smem:[#allocation9 + $0x6d]] }
 0x1dd   :  { %v5586_v44 = vpack.c.bf16 %v3291_v39, %v3290_v10  ;;  %13822 = vst [vmem:[#allocation162_spill] sm:$0xff] %v8723_v2  ;;  %13823 = vst [vmem:[#allocation59_spill] sm:$0xff] %v8726_v1  ;;  %v1123_v10 = vadd.f32 %v8572_v17, %v1105_v42  ;;  %v3035_v36 = vadd.f32 %v3027_v55, %v3017_v56  ;;  %v13824_v39 = vld [vmem:[#allocation75_spill] sm:$0xff]  ;;  %v13827_v42 = vld [vmem:[#allocation84_spill] sm:$0xff]  ;;  %v8800_v57 = vstv %s8756_s22  ;;  %s9085_s22 = sld [smem:[#allocation9 + $0x72]] }
 0x1de   :  { %v1420_v51 = vadd.f32 %v1412_v61, %v1402_v6  ;;  %v1430_v7 = vmul.f32 %v8723_v2, %v13824_v39  ;;  %v1421_v48 = vadd.f32 %v1413_v5, %v1403_v34  ;;  %v1422_v25 = vadd.f32 %v1414_v22, %v1404_v45  ;;  %v13828_v56 = vld [vmem:[#allocation83_spill] sm:$0xff]  ;;  %v13829_v5 = vld [vmem:[#allocation82_spill] sm:$0xff]  ;;  %13843 = vst [vmem:[#allocation112_spill] sm:$0xff] %v8800_v57 }
 0x1df   :  { %5587 = vmatprep.subr.bf16.mxu0 %v5586_v44  ;;  %v1431_v54 = vmul.f32 %v8723_v2, %v13825_v14  ;;  %v1432_v28 = vmul.f32 %v8723_v2, %v13826_v47  ;;  %v1141_v17 = vadd.f32 %v8580_v52, %v1123_v10  ;;  %v3053_v55 = vadd.f32 %v8630_v32, %v3035_v36  ;;  %v13868_v2 = vld [vmem:[#allocation102_spill] sm:$0xff] }
 0x1e0   :  { %5589 = vmatpush3.bf16.msra.mxu0 %v5586_v44  ;;  %v1438_v6 = vadd.f32 %v1430_v7, %v1420_v51  ;;  %v1448_v34 = vmul.f32 %v8726_v1, %v13827_v42  ;;  %v1449_v61 = vmul.f32 %v8726_v1, %v13828_v56  ;;  %v1450_v22 = vmul.f32 %v8726_v1, %v13829_v5 }
 0x1e1   :  { %v1439_v45 = vadd.f32 %v1431_v54, %v1421_v48  ;;  %v1440_v44 = vadd.f32 %v1432_v28, %v1422_v25  ;;  %v1159_v19 = vadd.f32 %v8584_v23, %v1141_v17  ;;  %v3071_v58 = vadd.f32 %v8634_v21, %v3053_v55  ;;  %v13831_v21 = vld [vmem:[#allocation39_spill] sm:$0xff] }
 0x1e2   :  { %v1456_v52 = vadd.f32 %v1448_v34, %v1438_v6  ;;  %v8750_v10 = vstv %s8701_s19  ;;  %v8765_v7 = vstv %s8716_s2  ;;  %v13833_v6 = vld [vmem:[#allocation49_spill] sm:$0xff]  ;;  %v8803_v40 = vstv %s8758_s25  ;;  %s9027_s19 = sld [smem:[#allocation9 + $0x6e]]  ;;  %s9050_s2 = sld [smem:[#allocation9 + $0x6f]] }
 0x1e3   :  { %13830 = vst [vmem:[#allocation156_spill] sm:$0xff] %v8750_v10  ;;  %v1457_v32 = vadd.f32 %v1449_v61, %v1439_v45  ;;  %v1458_v36 = vadd.f32 %v1450_v22, %v1440_v44  ;;  %v1466_v54 = vmul.f32 %v8750_v10, %v13816_v20  ;;  %v1467_v28 = vmul.f32 %v8750_v10, %v13817_v41  ;;  %s9087_s25 = sld [smem:[#allocation9 + $0x73]] }
 0x1e4   :  { %v1177_v25 = vadd.f32 %v8588_v8, %v1159_v19  ;;  %v3089_v23 = vadd.f32 %v8640_v63, %v3071_v58  ;;  %v1468_v51 = vmul.f32 %v8750_v10, %v13831_v21  ;;  %13832 = vst [vmem:[#allocation161_spill] sm:$0xff] %v8765_v7  ;;  %v1484_v55 = vmul.f32 %v8765_v7, %v13736_v37  ;;  %v13834_v8 = vld [vmem:[#allocation50_spill] sm:$0xff]  ;;  %v13846_v10 = vld [vmem:[#allocation93_spill] sm:$0xff] }
 0x1e5   :  { %v1474_v48 = vadd.f32 %v1466_v54, %v1456_v52  ;;  %v1475_v17 = vadd.f32 %v1467_v28, %v1457_v32  ;;  %v1485_v34 = vmul.f32 %v8765_v7, %v13833_v6  ;;  %v1486_v58 = vmul.f32 %v8765_v7, %v13834_v8  ;;  %13844 = vst [vmem:[#allocation115_spill] sm:$0xff] %v8803_v40 }
 0x1e6   :  { %v1195_v45 = vadd.f32 %v8593_v35, %v1177_v25  ;;  %v3107_v44 = vadd.f32 %v8645_v18, %v3089_v23  ;;  %v1476_v19 = vadd.f32 %v1468_v51, %v1458_v36  ;;  %v8776_v22 = vstv %s8735_s20  ;;  %v13837_v35 = vld [vmem:[#allocation86_spill] sm:$0xff]  ;;  %v13838_v36 = vld [vmem:[#allocation85_spill] sm:$0xff]  ;;  %v13839_v23 = vld [vmem:[#allocation87_spill] sm:$0xff]  ;;  %s9066_s20 = sld [smem:[#allocation9 + $0x70]] }
 0x1e7   :  { %v1492_v63 = vadd.f32 %v1484_v55, %v1474_v48  ;;  %v1493_v61 = vadd.f32 %v1485_v34, %v1475_v17  ;;  %13835 = vst [vmem:[#allocation110_spill] sm:$0xff] %v8776_v22  ;;  %v8779_v52 = vstv %s8737_s21  ;;  %v1502_v18 = vmul.f32 %v8776_v22, %v13837_v35  ;;  %v13840_v48 = vld [vmem:[#allocation88_spill] sm:$0xff]  ;;  %v13841_v55 = vld [vmem:[#allocation90_spill] sm:$0xff]  ;;  %s9068_s21 = sld [smem:[#allocation9 + $0x71]] }
 0x1e8   :  { %13836 = vst [vmem:[#allocation111_spill] sm:$0xff] %v8779_v52  ;;  %v1213_v32 = vadd.f32 %v8598_v53, %v1195_v45  ;;  %v3125_v54 = vadd.f32 %v8649_v30, %v3107_v44  ;;  %v1494_v28 = vadd.f32 %v1486_v58, %v1476_v19  ;;  %v1503_v25 = vmul.f32 %v8776_v22, %v13838_v36  ;;  %v13842_v44 = vld [vmem:[#allocation89_spill] sm:$0xff] }
 0x1e9   :  { %v1504_v51 = vmul.f32 %v8776_v22, %v13839_v23  ;;  %v1520_v17 = vmul.f32 %v8779_v52, %v13840_v48  ;;  %v1521_v53 = vmul.f32 %v8779_v52, %v13841_v55  ;;  %v1510_v45 = vadd.f32 %v1502_v18, %v1492_v63 }
 0x1ea   :  { %v1231_v30 = vadd.f32 %v8602_v27, %v1213_v32  ;;  %v3143_v34 = vadd.f32 %v8653_v0, %v3125_v54  ;;  %v1522_v19 = vmul.f32 %v8779_v52, %v13842_v44  ;;  %v1511_v58 = vadd.f32 %v1503_v25, %v1493_v61  ;;  %v13847_v61 = vld [vmem:[#allocation92_spill] sm:$0xff]  ;;  %v13848_v54 = vld [vmem:[#allocation91_spill] sm:$0xff] }
 0x1eb   :  { %v1512_v50 = vadd.f32 %v1504_v51, %v1494_v28  ;;  %v1528_v7 = vadd.f32 %v1520_v17, %v1510_v45  ;;  %v1538_v27 = vmul.f32 %v8800_v57, %v13846_v10  ;;  %v1539_v32 = vmul.f32 %v8800_v57, %v13847_v61 }
 0x1ec   :  { %v1241_v46 = vadd.f32 %v13845_v60, %v1231_v30  ;;  %v3161_v22 = vadd.f32 %v8661_v49, %v3143_v34  ;;  %v1529_v0 = vadd.f32 %v1521_v53, %v1511_v58  ;;  %v1540_v28 = vmul.f32 %v8800_v57, %v13848_v54  ;;  %v13849_v30 = vld [vmem:[#allocation51_spill] sm:$0xff]  ;;  %v13851_v58 = vld [vmem:[#allocation62_spill] sm:$0xff] }
 0x1ed   :  { %v1530_v63 = vadd.f32 %v1522_v19, %v1512_v50  ;;  %v1546_v18 = vadd.f32 %v1538_v27, %v1528_v7  ;;  %v1556_v25 = vmul.f32 %v8803_v40, %v13833_v6  ;;  %v1557_v53 = vmul.f32 %v8803_v40, %v13834_v8 }
 0x1ee   :  { %v1249_v60 = vmax.f32 %v1241_v46, 0.0  ;;  %v3179_v49 = vadd.f32 %v8669_v15, %v3161_v22  ;;  %v1547_v51 = vadd.f32 %v1539_v32, %v1529_v0  ;;  %v1558_v50 = vmul.f32 %v8803_v40, %v13849_v30  ;;  %v13852_v0 = vld [vmem:[#allocation160_spill] sm:$0xff] }
 0x1ef   :  { %v1548_v17 = vadd.f32 %v1540_v28, %v1530_v63  ;;  %v1564_v46 = vadd.f32 %v1556_v25, %v1546_v18  ;;  %v8828_v19 = vstv %s8785_s4  ;;  %v13855_v25 = vld [vmem:[#allocation67_spill] sm:$0xff]  ;;  %v8851_v52 = vstv %s8809_s26  ;;  %s9097_s4 = sld [smem:[#allocation9 + $0x74]]  ;;  %s9099_s26 = sld [smem:[#allocation9 + $0x75]] }
 0x1f0   :  { %v1257_v34 = vrot.slane %v1249_v60, 2  ;;  %v3197_v45 = vadd.f32 %v8673_v62, %v3179_v49  ;;  %13850 = vst [vmem:[#allocation116_spill] sm:$0xff] %v8828_v19  ;;  %v1565_v15 = vadd.f32 %v1557_v53, %v1547_v51  ;;  %v1574_v22 = vmul.f32 %v8828_v19, %v13748_v16  ;;  %v13853_v62 = vld [vmem:[#allocation138_spill] sm:$0xff]  ;;  %v13854_v49 = vld [vmem:[#allocation63_spill] sm:$0xff]  ;;  %13857 = vst [vmem:[#allocation117_spill] sm:$0xff] %v8851_v52 }
 0x1f1   :  { %v1566_v7 = vadd.f32 %v1558_v50, %v1548_v17  ;;  %v1575_v27 = vmul.f32 %v8828_v19, %v13851_v58  ;;  %v1576_v18 = vmul.f32 %v8828_v19, %v13854_v49  ;;  %v13856_v51 = vmax.f32 %v13855_v25, 0.0  ;;  %v13860_v19 = vld [vmem:[#allocation95_spill] sm:$0xff] }
 0x1f2   :  { %v1258_v63 = vsel %vm144_vm1, %v13852_v0, %v1257_v34  ;;  %v1265_v32 = vsel %vm144_vm1, %v1257_v34, %v13853_v62  ;;  %v3215_v28 = vadd.f32 %v8677_v12, %v3197_v45  ;;  %v1582_v50 = vadd.f32 %v1574_v22, %v1564_v46  ;;  %v13859_v45 = vld [vmem:[#allocation94_spill] sm:$0xff]  ;;  %v13863_v22 = vld [vmem:[#allocation99_spill] sm:$0xff] }
 0x1f3   :  { %v1272_v17 = vmax.f32 %v13856_v51, %v1258_v63  ;;  %v1273_v53 = vmax.f32 %v1249_v60, %v1265_v32  ;;  %v1583_v40 = vadd.f32 %v1575_v27, %v1565_v15  ;;  %v1584_v0 = vadd.f32 %v1576_v18, %v1566_v7  ;;  %v13861_v60 = vld [vmem:[#allocation96_spill] sm:$0xff]  ;;  %v13862_v15 = vld [vmem:[#allocation97_spill] sm:$0xff]  ;;  %v13864_v32 = vld [vmem:[#allocation98_spill] sm:$0xff] }
 0x1f4   :  { %v3233_v57 = vadd.f32 %v8685_v38, %v3215_v28  ;;  %v8854_v34 = vstv %s8811_s27  ;;  %v1592_v62 = vmul.f32 %v8851_v52, %v13859_v45  ;;  %v1593_v63 = vmul.f32 %v8851_v52, %v13860_v19  ;;  %s9126_s27 = sld [smem:[#allocation9 + $0x76]] }
 0x1f5   :  { %13858 = vst [vmem:[#allocation118_spill] sm:$0xff] %v8854_v34  ;;  %v5526_v12 = vpack.c.bf16 %v1273_v53, %v1272_v17  ;;  %v1594_v46 = vmul.f32 %v8851_v52, %v13861_v60  ;;  %v1610_v7 = vmul.f32 %v8854_v34, %v13862_v15  ;;  %v1611_v27 = vmul.f32 %v8854_v34, %v13863_v22  ;;  %v13867_v52 = vld [vmem:[#allocation100_spill] sm:$0xff] }
 0x1f6   :  { %v3251_v38 = vadd.f32 %v8694_v24, %v3233_v57  ;;  %v1612_v28 = vmul.f32 %v8854_v34, %v13864_v32  ;;  %v1600_v18 = vadd.f32 %v1592_v62, %v1582_v50  ;;  %v1601_v25 = vadd.f32 %v1593_v63, %v1583_v40  ;;  %v13866_v57 = vld [vmem:[#allocation101_spill] sm:$0xff] }
 0x1f7   :  { %5527 = vmatprep.subr.bf16.mxu1 %v5526_v12  ;;  %v1602_v51 = vadd.f32 %v1594_v46, %v1584_v0  ;;  %v8872_v17 = vstv %s8824_s28  ;;  %v1275_v40 = vld [vmem:[#allocation12 + $0x8] sm:$0xff]  ;;  %s9136_s28 = sld [smem:[#allocation9 + $0x77]] }
 0x1f8   :  { %13865 = vst [vmem:[#allocation119_spill] sm:$0xff] %v8872_v17  ;;  %v3261_v53 = vadd.f32 %v13799_v3, %v3251_v38  ;;  %5529 = vmatpush3.bf16.msra.mxu1 %v5526_v12  ;;  %v1628_v24 = vmul.f32 %v8872_v17, %v13866_v57  ;;  %v1629_v1 = vmul.f32 %v8872_v17, %v13867_v52  ;;  %v8886_v3 = vstv %s8834_s29  ;;  %v13870_v38 = vld [vmem:[#allocation64_spill] sm:$0xff]  ;;  %s9138_s29 = sld [smem:[#allocation10 + $0x5]] }
 0x1f9   :  { %v1630_v34 = vmul.f32 %v8872_v17, %v13868_v2  ;;  %v1618_v50 = vadd.f32 %v1610_v7, %v1600_v18  ;;  %v1619_v0 = vadd.f32 %v1611_v27, %v1601_v25  ;;  %v1620_v62 = vadd.f32 %v1612_v28, %v1602_v51  ;;  %13869 = vst [vmem:[#allocation120_spill] sm:$0xff] %v8886_v3  ;;  %v13872_v28 = vld [vmem:[#allocation78_spill] sm:$0xff]  ;;  %v13873_v25 = vld [vmem:[#allocation79_spill] sm:$0xff] }
 0x1fa   :  { %v3269_v12 = vmax.f32 %v3261_v53, 0.0  ;;  %v1646_v63 = vmul.f32 %v8886_v3, %v13851_v58  ;;  %v1647_v46 = vmul.f32 %v8886_v3, %v13854_v49  ;;  %v1648_v17 = vmul.f32 %v8886_v3, %v13870_v38 }
 0x1fb   :  { %v1636_v13 = vadd.f32 %v1628_v24, %v1618_v50  ;;  %v1637_v43 = vadd.f32 %v1629_v1, %v1619_v0  ;;  %v1638_v2 = vadd.f32 %v1630_v34, %v1620_v62  ;;  %v8895_v52 = vstv %s8847_s5  ;;  %5344 = vmatmul.mubr.msk.f32.vlgmr.msra.gmra.mrb[0].mxu1 %vm1278_vm5, %v1275_v40  ;;  %v13875_v50 = vld [vmem:[#allocation155_spill] sm:$0xff]  ;;  %v13876_v62 = vld [vmem:[#allocation104_spill] sm:$0xff]  ;;  %s9738_s5 = sld [smem:[#allocation9 + $0x28]] }
 0x1fc   :  { %13871 = vst [vmem:[#allocation121_spill] sm:$0xff] %v8895_v52  ;;  %v3277_v7 = vrot.slane %v3269_v12, 2  ;;  %v1664_v27 = vmul.f32 %v8895_v52, %v13760_v9  ;;  %v1665_v18 = vmul.f32 %v8895_v52, %v13872_v28  ;;  %v1666_v51 = vmul.f32 %v8895_v52, %v13873_v25  ;;  %v13879_v9 = vld [vmem:[#allocation105_spill] sm:$0xff] }
 0x1fd   :  { %v1654_v53 = vadd.f32 %v1646_v63, %v1636_v13  ;;  %v1655_v24 = vadd.f32 %v1647_v46, %v1637_v43  ;;  %v1656_v1 = vadd.f32 %v1648_v17, %v1638_v2  ;;  %v8907_v34 = vstv %s8862_s23  ;;  %v13877_v2 = vld [vmem:[#allocation103_spill] sm:$0xff]  ;;  %s9740_s23 = sld [smem:[#allocation9 + $0x29]] }
 0x1fe   :  { %13874 = vst [vmem:[#allocation122_spill] sm:$0xff] %v8907_v34  ;;  %v3278_v40 = vsel %vm144_vm1, %v8665_v11, %v3277_v7  ;;  %v3285_v0 = vsel %vm144_vm1, %v3277_v7, %v13875_v50  ;;  %v1682_v43 = vmul.f32 %v8907_v34, %v13876_v62  ;;  %v1683_v13 = vmul.f32 %v8907_v34, %v13877_v2 }
 0x1ff   :  { %v13878_v17 = vmax.f32 %v8624_v4, 0.0  ;;  %v3293_v46 = vmax.f32 %v3269_v12, %v3285_v0  ;;  %v1672_v52 = vadd.f32 %v1664_v27, %v1654_v53  ;;  %v1673_v3 = vadd.f32 %v1665_v18, %v1655_v24  ;;  %v13883_v18 = vld [vmem:[#allocation108_spill] sm:$0xff]  ;;  %v13884_v24 = vld [vmem:[#allocation107_spill] sm:$0xff] }
 0x200   :  { %v1674_v11 = vadd.f32 %v1666_v51, %v1656_v1  ;;  %v1684_v7 = vmul.f32 %v8907_v34, %v13879_v9  ;;  %v8932_v50 = vstv %s8881_s24  ;;  %v8935_v62 = vstv %s8883_s30  ;;  %v13885_v1 = vld [vmem:[#allocation109_spill] sm:$0xff]  ;;  %s9772_s24 = sld [smem:[#allocation9 + $0x2a]]  ;;  %s9810_s30 = sld [smem:[#allocation9 + $0x2b]] }
 0x201   :  { %v3292_v63 = vmax.f32 %v13878_v17, %v3278_v40  ;;  %13880 = vst [vmem:[#allocation123_spill] sm:$0xff] %v8932_v50  ;;  %13881 = vst [vmem:[#allocation124_spill] sm:$0xff] %v8935_v62  ;;  %v1690_v38 = vadd.f32 %v1682_v43, %v1672_v52  ;;  %v1691_v4 = vadd.f32 %v1683_v13, %v1673_v3  ;;  %v13882_v40 = vld [vmem:[#allocation106_spill] sm:$0xff]  ;;  %v13887_v3 = vld [vmem:[#allocation113_spill] sm:$0xff]  ;;  %v8950_v13 = vstv %s8897_s10  ;;  %s9812_s10 = sld [smem:[#allocation9 + $0x2c]] }
 0x202   :  { %v1700_v12 = vmul.f32 %v8932_v50, %v13882_v40  ;;  %v1692_v27 = vadd.f32 %v1684_v7, %v1674_v11  ;;  %v1701_v53 = vmul.f32 %v8932_v50, %v13883_v18  ;;  %v1702_v51 = vmul.f32 %v8932_v50, %v13884_v24  ;;  %13888 = vst [vmem:[#allocation189_spill] sm:$0xff] %v8950_v13  ;;  %v13889_v34 = vld [vmem:[#allocation81_spill] sm:$0xff] }
 0x203   :  { %v5590_v2 = vpack.c.bf16 %v3293_v46, %v3292_v63  ;;  %v1718_v0 = vmul.f32 %v8935_v62, %v13885_v1  ;;  %v13886_v63 = vld [vmem:[#allocation114_spill] sm:$0xff]  ;;  %v1720_v43 = vmul.f32 %v8935_v62, %v13887_v3  ;;  %v1736_v7 = vmul.f32 %v8950_v13, %v13872_v28 }
 0x204   :  { %v1708_v17 = vadd.f32 %v1700_v12, %v1690_v38  ;;  %v1719_v52 = vmul.f32 %v8935_v62, %v13886_v63  ;;  %v1709_v46 = vadd.f32 %v1701_v53, %v1691_v4  ;;  %v1710_v11 = vadd.f32 %v1702_v51, %v1692_v27  ;;  %v3296_v12 = vld [vmem:[#allocation12 + $0x88] sm:$0xff] }
 0x205   :  { %5591 = vmatprep.subr.bf16.mxu0 %v5590_v2  ;;  %v1737_v38 = vmul.f32 %v8950_v13, %v13873_v25  ;;  %v1738_v62 = vmul.f32 %v8950_v13, %v13889_v34  ;;  %v8961_v3 = vstv %s8909_s11  ;;  %v8964_v63 = vstv %s8911_s12  ;;  %s9840_s11 = sld [smem:[#allocation9 + $0x2d]]  ;;  %s9842_s12 = sld [smem:[#allocation9 + $0x2e]] }
 0x206   :  { %5593 = vmatpush3.bf16.msra.mxu0 %v5590_v2  ;;  %v1726_v50 = vadd.f32 %v1718_v0, %v1708_v17  ;;  %13890 = vst [vmem:[#allocation125_spill] sm:$0xff] %v8961_v3  ;;  %13891 = vst [vmem:[#allocation137_spill] sm:$0xff] %v8964_v63  ;;  %v1727_v2 = vadd.f32 %v1719_v52, %v1709_v46  ;;  %v1728_v4 = vadd.f32 %v1720_v43, %v1710_v11 }
 0x207   :  { %v3402_v27 = vmul.f32 %v8964_v63, %v13725_v33  ;;  %v3403_v53 = vmul.f32 %v8964_v63, %v13816_v20  ;;  %v3404_v0 = vmul.f32 %v8964_v63, %v13817_v41  ;;  %v8975_v17 = vstv %s8925_s13  ;;  %s9864_s13 = sld [smem:[#allocation9 + $0x2f]] }
 0x208   :  { %v1744_v51 = vadd.f32 %v1736_v7, %v1726_v50  ;;  %13892 = vst [vmem:[#allocation126_spill] sm:$0xff] %v8975_v17  ;;  %v8978_v13 = vstv %s8927_s0  ;;  %v1745_v52 = vadd.f32 %v1737_v38, %v1727_v2  ;;  %v1746_v43 = vadd.f32 %v1738_v62, %v1728_v4  ;;  %s9872_s0 = sld [smem:[#allocation9 + $0x30]] }
 0x209   :  { %13893 = vst [vmem:[#allocation127_spill] sm:$0xff] %v8978_v13  ;;  %5432 = vmatmul.mubr.msk.f32.vlgmr.msra.gmra.mrb[0].mxu0 %vm1278_vm5, %v3296_v12  ;;  %v3412_v46 = vmul.f32 %v8975_v17, %v13819_v26  ;;  %v3413_v11 = vmul.f32 %v8975_v17, %v13820_v59  ;;  %v3414_v7 = vmul.f32 %v8975_v17, %v13821_v31 }
 0x20a   :  { %v1754_v50 = vadd.f32 %v8961_v3, %v1744_v51  ;;  %v3430_v33 = vmul.f32 %v8978_v13, %v13824_v39  ;;  %v3431_v12 = vmul.f32 %v8978_v13, %v13825_v14  ;;  %v1755_v62 = vadd.f32 %v8961_v3, %v1745_v52 }
 0x20b   :  { %v8996_v38 = vadd.f32 %v8961_v3, %v1746_v43  ;;  %v3420_v2 = vadd.f32 %v3412_v46, %v3402_v27  ;;  %v3421_v4 = vadd.f32 %v3413_v11, %v3403_v53  ;;  %v3422_v31 = vadd.f32 %v3414_v7, %v3404_v0 }
 0x20c   :  { %v1762_v51 = vmax.f32 %v1754_v50, 0.0  ;;  %v3432_v39 = vmul.f32 %v8978_v13, %v13826_v47  ;;  %v9005_v14 = vstv %s8952_s1  ;;  %v1763_v59 = vmax.f32 %v1755_v62, 0.0  ;;  %s9874_s1 = sld [smem:[#allocation9 + $0x31]] }
 0x20d   :  { %13894 = vst [vmem:[#allocation128_spill] sm:$0xff] %v8996_v38  ;;  %v12634_v52 = vmax.f32 %v8996_v38, 0.0  ;;  %v3438_v26 = vadd.f32 %v3430_v33, %v3420_v2  ;;  %v3439_v43 = vadd.f32 %v3431_v12, %v3421_v4  ;;  %v3448_v53 = vmul.f32 %v9005_v14, %v13827_v42 }
 0x20e   :  { %v9008_v3 = vrot.slane %v1762_v51, 2  ;;  %v3440_v27 = vadd.f32 %v3432_v39, %v3422_v31  ;;  %v3449_v46 = vmul.f32 %v9005_v14, %v13828_v56  ;;  %v1771_v0 = vrot.slane %v1763_v59, 2 }
 0x20f   :  { %v9018_v11 = vrot.slane %v12634_v52, 2  ;;  %v3450_v33 = vmul.f32 %v9005_v14, %v13829_v5  ;;  %v9023_v50 = vstv %s8970_s3  ;;  %v3456_v31 = vadd.f32 %v3448_v53, %v3438_v26  ;;  %s9906_s3 = sld [smem:[#allocation9 + $0x32]] }
 0x210   :  { %13895 = vst [vmem:[#allocation129_spill] sm:$0xff] %v9008_v3  ;;  %v3457_v39 = vadd.f32 %v3449_v46, %v3439_v43  ;;  %v3466_v7 = vmul.f32 %v9023_v50, %v13816_v20  ;;  %v3467_v12 = vmul.f32 %v9023_v50, %v13817_v41  ;;  %v1784_v2 = vsel %vm144_vm1, %v9008_v3, %v1771_v0  ;;  %v13924_v20 = vld [vmem:[#allocation165_spill] sm:$0xff] }
 0x211   :  { %13896 = vst [vmem:[#allocation130_spill] sm:$0xff] %v9018_v11  ;;  %v1783_v62 = vsel %vm144_vm1, %v1771_v0, %v9018_v11  ;;  %v3458_v4 = vadd.f32 %v3450_v33, %v3440_v27  ;;  %v3468_v52 = vmul.f32 %v9023_v50, %v13831_v21  ;;  %v1786_v26 = vmax.f32 %v1762_v51, %v1784_v2 }
 0x212   :  { %v1787_v43 = vmax.f32 %v1763_v59, %v1783_v62  ;;  %v3474_v53 = vadd.f32 %v3466_v7, %v3456_v31  ;;  %v3475_v46 = vadd.f32 %v3467_v12, %v3457_v39  ;;  %v9042_v56 = vstv %s8992_s14  ;;  %s9921_s14 = sld [smem:[#allocation9 + $0x33]] }
 0x213   :  { %v3476_v5 = vadd.f32 %v3468_v52, %v3458_v4  ;;  %v9045_v42 = vstv %s8998_s15  ;;  %v9048_v47 = vstv %s9000_s16  ;;  %v3484_v27 = vmul.f32 %v9042_v56, %v13736_v37  ;;  %v13926_v37 = vld [vmem:[#allocation59_spill] sm:$0xff]  ;;  %s9939_s15 = sld [smem:[#allocation9 + $0x34]]  ;;  %s9941_s16 = sld [smem:[#allocation9 + $0x35]] }
 0x214   :  { %v5530_v41 = vpack.c.bf16 %v1787_v43, %v1786_v26  ;;  %v3485_v59 = vmul.f32 %v9042_v56, %v13833_v6  ;;  %v3486_v51 = vmul.f32 %v9042_v56, %v13834_v8  ;;  %v3502_v52 = vmul.f32 %v9045_v42, %v13837_v35 }
 0x215   :  { %v3503_v0 = vmul.f32 %v9045_v42, %v13838_v36  ;;  %v3504_v33 = vmul.f32 %v9045_v42, %v13839_v23  ;;  %v3520_v31 = vmul.f32 %v9048_v47, %v13840_v48  ;;  %v3492_v39 = vadd.f32 %v3484_v27, %v3474_v53 }
 0x216   :  { %5531 = vmatprep.subr.bf16.mxu1 %v5530_v41  ;;  %v3493_v7 = vadd.f32 %v3485_v59, %v3475_v46  ;;  %v3494_v12 = vadd.f32 %v3486_v51, %v3476_v5  ;;  %v3521_v62 = vmul.f32 %v9048_v47, %v13841_v55  ;;  %v3522_v2 = vmul.f32 %v9048_v47, %v13842_v44 }
 0x217   :  { %v9075_v4 = vstv %s9014_s17  ;;  %v9078_v26 = vstv %s9025_s18  ;;  %v9081_v43 = vstv %s9027_s19  ;;  %5533 = vmatpush3.bf16.msra.mxu1 %v5530_v41  ;;  %v3510_v3 = vadd.f32 %v3502_v52, %v3492_v39  ;;  %s9958_s17 = sld [smem:[#allocation9 + $0x36]]  ;;  %s9960_s18 = sld [smem:[#allocation9 + $0x37]] }
 0x218   :  { %13897 = vst [vmem:[#allocation131_spill] sm:$0xff] %v9078_v26  ;;  %13898 = vst [vmem:[#allocation133_spill] sm:$0xff] %v9081_v43  ;;  %v3511_v48 = vadd.f32 %v3503_v0, %v3493_v7  ;;  %v3512_v23 = vadd.f32 %v3504_v33, %v3494_v12  ;;  %v3538_v53 = vmul.f32 %v9075_v4, %v13846_v10  ;;  %v9110_v12 = vstv %s9050_s2  ;;  %s9990_s19 = sld [smem:[#allocation9 + $0x38]]  ;;  %s9992_s2 = sld [smem:[#allocation9 + $0x39]] }
 0x219   :  { %v3539_v5 = vmul.f32 %v9075_v4, %v13847_v61  ;;  %v3540_v46 = vmul.f32 %v9075_v4, %v13848_v54  ;;  %v3556_v41 = vmul.f32 %v9078_v26, %v13833_v6  ;;  %v3557_v27 = vmul.f32 %v9078_v26, %v13834_v8  ;;  %13899 = vst [vmem:[#allocation154_spill] sm:$0xff] %v9110_v12  ;;  %v13921_v8 = vld [vmem:[#allocation60_spill] sm:$0xff] }
 0x21a   :  { %v3528_v59 = vadd.f32 %v3520_v31, %v3510_v3  ;;  %v3529_v51 = vadd.f32 %v3521_v62, %v3511_v48  ;;  %v3530_v52 = vadd.f32 %v3522_v2, %v3512_v23  ;;  %v3558_v0 = vmul.f32 %v9078_v26, %v13849_v30 }
 0x21b   :  { %v3574_v33 = vmul.f32 %v9081_v43, %v13748_v16  ;;  %v3575_v39 = vmul.f32 %v9081_v43, %v13851_v58  ;;  %v3576_v7 = vmul.f32 %v9081_v43, %v13854_v49  ;;  %v3592_v23 = vmul.f32 %v9110_v12, %v13859_v45  ;;  %v13925_v16 = vld [vmem:[#allocation169_spill] sm:$0xff]  ;;  %v13958_v43 = vld [vmem:[#allocation166_spill] sm:$0xff] }
 0x21c   :  { %v3546_v54 = vadd.f32 %v3538_v53, %v3528_v59  ;;  %v3547_v61 = vadd.f32 %v3539_v5, %v3529_v51  ;;  %v3548_v10 = vadd.f32 %v3540_v46, %v3530_v52  ;;  %v3593_v48 = vmul.f32 %v9110_v12, %v13860_v19  ;;  %v13903_v52 = vld [vmem:[#allocation102_spill] sm:$0xff] }
 0x21d   :  { %v3594_v3 = vmul.f32 %v9110_v12, %v13861_v60  ;;  %v9119_v31 = vstv %s9066_s20  ;;  %v9122_v62 = vstv %s9068_s21  ;;  %v1276_v60 = vld [vmem:[#allocation12 + $0x10] sm:$0xff]  ;;  %v1451_v38 = vmul.f32 %v13926_v37, %v13925_v16  ;;  %s10010_s20 = sld [smem:[#allocation9 + $0x3a]]  ;;  %s10020_s21 = sld [smem:[#allocation9 + $0x3b]] }
 0x21e   :  { %13900 = vst [vmem:[#allocation141_spill] sm:$0xff] %v9119_v31  ;;  %13901 = vst [vmem:[#allocation142_spill] sm:$0xff] %v9122_v62  ;;  %v3564_v2 = vadd.f32 %v3556_v41, %v3546_v54  ;;  %v3565_v44 = vadd.f32 %v3557_v27, %v3547_v61  ;;  %v3566_v53 = vadd.f32 %v3558_v0, %v3548_v10  ;;  %v13902_v54 = vld [vmem:[#allocation100_spill] sm:$0xff]  ;;  %5346 = vmatprep.mubr.msk.f32.mxu1 %vm1278_vm5, %v1276_v60  ;;  %v13956_v12 = vld [vmem:[#allocation182_spill] sm:$0xff] }
 0x21f   :  { %v3610_v5 = vmul.f32 %v9119_v31, %v13862_v15  ;;  %v3611_v46 = vmul.f32 %v9119_v31, %v13863_v22  ;;  %v3612_v59 = vmul.f32 %v9119_v31, %v13864_v32  ;;  %v3628_v51 = vmul.f32 %v9122_v62, %v13866_v57  ;;  %v13954_v31 = vld [vmem:[#allocation181_spill] sm:$0xff] }
 0x220   :  { %v3629_v61 = vmul.f32 %v9122_v62, %v13902_v54  ;;  %v3582_v10 = vadd.f32 %v3574_v33, %v3564_v2  ;;  %v3583_v41 = vadd.f32 %v3575_v39, %v3565_v44  ;;  %v3584_v27 = vadd.f32 %v3576_v7, %v3566_v53  ;;  %v13908_v39 = vld [vmem:[#allocation64_spill] sm:$0xff] }
 0x221   :  { %v3630_v0 = vmul.f32 %v9122_v62, %v13903_v52  ;;  %v9143_v22 = vstv %s9085_s22  ;;  %v9146_v15 = vstv %s9087_s25  ;;  %v9149_v32 = vstv %s9097_s4  ;;  %v13909_v2 = vld [vmem:[#allocation76_spill] sm:$0xff]  ;;  %v13911_v52 = vld [vmem:[#allocation103_spill] sm:$0xff]  ;;  %s10022_s22 = sld [smem:[#allocation10 + $0x2]]  ;;  %s10035_s25 = sld [smem:[#allocation9 + $0x78]] }
 0x222   :  { %13904 = vst [vmem:[#allocation143_spill] sm:$0xff] %v9143_v22  ;;  %13905 = vst [vmem:[#allocation144_spill] sm:$0xff] %v9146_v15  ;;  %v9152_v57 = vstv %s9099_s26  ;;  %v3600_v54 = vadd.f32 %v3592_v23, %v3582_v10  ;;  %v3601_v19 = vadd.f32 %v3593_v48, %v3583_v41  ;;  %v3602_v45 = vadd.f32 %v3594_v3, %v3584_v27  ;;  %v13910_v41 = vld [vmem:[#allocation104_spill] sm:$0xff]  ;;  %s10037_s4 = sld [smem:[#allocation9 + $0x79]]  ;;  %s10057_s26 = sld [smem:[#allocation9 + $0x7a]] }
 0x223   :  { %13906 = vst [vmem:[#allocation145_spill] sm:$0xff] %v9149_v32  ;;  %13907 = vst [vmem:[#allocation146_spill] sm:$0xff] %v9152_v57  ;;  %v3646_v33 = vmul.f32 %v9143_v22, %v13851_v58  ;;  %v3647_v44 = vmul.f32 %v9143_v22, %v13854_v49  ;;  %v3648_v7 = vmul.f32 %v9143_v22, %v13908_v39 }
 0x224   :  { %v3664_v53 = vmul.f32 %v9146_v15, %v13909_v2  ;;  %v3665_v23 = vmul.f32 %v9146_v15, %v13872_v28  ;;  %v3618_v48 = vadd.f32 %v3610_v5, %v3600_v54  ;;  %v3619_v3 = vadd.f32 %v3611_v46, %v3601_v19 }
 0x225   :  { %v3620_v10 = vadd.f32 %v3612_v59, %v3602_v45  ;;  %v3666_v60 = vmul.f32 %v9146_v15, %v13873_v25  ;;  %v3682_v27 = vmul.f32 %v9149_v32, %v13910_v41  ;;  %v3683_v49 = vmul.f32 %v9149_v32, %v13911_v52 }
 0x226   :  { %v3684_v58 = vmul.f32 %v9149_v32, %v13879_v9  ;;  %v3700_v55 = vmul.f32 %v9152_v57, %v13882_v40  ;;  %v3636_v36 = vadd.f32 %v3628_v51, %v3618_v48  ;;  %v3637_v35 = vadd.f32 %v3629_v61, %v3619_v3  ;;  %v13915_v61 = vld [vmem:[#allocation114_spill] sm:$0xff]  ;;  %v13916_v48 = vld [vmem:[#allocation113_spill] sm:$0xff] }
 0x227   :  { %v3638_v5 = vadd.f32 %v3630_v0, %v3620_v10  ;;  %v3701_v19 = vmul.f32 %v9152_v57, %v13883_v18  ;;  %v3702_v45 = vmul.f32 %v9152_v57, %v13884_v24  ;;  %v9180_v46 = vstv %s9126_s27  ;;  %s10059_s27 = sld [smem:[#allocation9 + $0x7b]] }
 0x228   :  { %13912 = vst [vmem:[#allocation147_spill] sm:$0xff] %v9180_v46  ;;  %v9183_v59 = vstv %s9136_s28  ;;  %v9186_v54 = vstv %s9138_s29  ;;  %v3654_v52 = vadd.f32 %v3646_v33, %v3636_v36  ;;  %v3655_v9 = vadd.f32 %v3647_v44, %v3637_v35  ;;  %v13917_v33 = vld [vmem:[#allocation46_spill] sm:$0xff]  ;;  %s10097_s28 = sld [smem:[#allocation9 + $0x7c]]  ;;  %s10111_s29 = sld [smem:[#allocation9 + $0x7d]] }
 0x229   :  { %13913 = vst [vmem:[#allocation148_spill] sm:$0xff] %v9183_v59  ;;  %13914 = vst [vmem:[#allocation149_spill] sm:$0xff] %v9186_v54  ;;  %v3656_v41 = vadd.f32 %v3648_v7, %v3638_v5  ;;  %v3718_v51 = vmul.f32 %v9180_v46, %v13885_v1  ;;  %v3719_v0 = vmul.f32 %v9180_v46, %v13915_v61  ;;  %v13918_v7 = vld [vmem:[#allocation35_spill] sm:$0xff] }
 0x22a   :  { %v3720_v3 = vmul.f32 %v9180_v46, %v13916_v48  ;;  %v3736_v10 = vmul.f32 %v9183_v59, %v13872_v28  ;;  %v3737_v24 = vmul.f32 %v9183_v59, %v13873_v25  ;;  %v3672_v18 = vadd.f32 %v3664_v53, %v3654_v52  ;;  %v13919_v61 = vld [vmem:[#allocation163_spill] sm:$0xff]  ;;  %v13920_v48 = vld [vmem:[#allocation33_spill] sm:$0xff]  ;;  %v13923_v53 = vld [vmem:[#allocation162_spill] sm:$0xff] }
 0x22b   :  { %v3673_v40 = vadd.f32 %v3665_v23, %v3655_v9  ;;  %v3674_v36 = vadd.f32 %v3666_v60, %v3656_v41  ;;  %v3738_v35 = vmul.f32 %v9183_v59, %v13889_v34  ;;  %v1405_v44 = vmul.f32 %v13917_v33, %v13831_v21  ;;  %v13922_v9 = vld [vmem:[#allocation164_spill] sm:$0xff] }
 0x22c   :  { %v1406_v5 = vmul.f32 %v13917_v33, %v13918_v7  ;;  %v1415_v1 = vmul.f32 %v13920_v48, %v13919_v61  ;;  %v1416_v28 = vmul.f32 %v13920_v48, %v13921_v8  ;;  %v3690_v6 = vadd.f32 %v3682_v27, %v3672_v18  ;;  %v13927_v46 = vld [vmem:[#allocation168_spill] sm:$0xff]  ;;  %v13929_v27 = vld [vmem:[#allocation159_spill] sm:$0xff] }
 0x22d   :  { %v3691_v25 = vadd.f32 %v3683_v49, %v3673_v40  ;;  %v3692_v52 = vadd.f32 %v3684_v58, %v3674_v36  ;;  %v1433_v23 = vmul.f32 %v13923_v53, %v13922_v9  ;;  %v1434_v2 = vmul.f32 %v13923_v53, %v13924_v20  ;;  %v13928_v58 = vld [vmem:[#allocation156_spill] sm:$0xff] }
 0x22e   :  { %v1423_v60 = vadd.f32 %v1415_v1, %v1405_v44  ;;  %v1424_v41 = vadd.f32 %v1416_v28, %v1406_v5  ;;  %v3708_v11 = vadd.f32 %v3700_v55, %v3690_v6  ;;  %v1452_v48 = vmul.f32 %v13926_v37, %v13927_v46  ;;  %v13930_v5 = vld [vmem:[#allocation161_spill] sm:$0xff]  ;;  %v13934_v37 = vld [vmem:[#allocation170_spill] sm:$0xff] }
 0x22f   :  { %v3709_v33 = vadd.f32 %v3701_v19, %v3691_v25  ;;  %v3710_v59 = vadd.f32 %v3702_v45, %v3692_v52  ;;  %v1469_v40 = vmul.f32 %v13928_v58, %v13918_v7  ;;  %v1470_v28 = vmul.f32 %v13928_v58, %v13929_v27  ;;  %v13931_v25 = vld [vmem:[#allocation47_spill] sm:$0xff]  ;;  %v13933_v52 = vld [vmem:[#allocation110_spill] sm:$0xff] }
 0x230   :  { %v1441_v18 = vadd.f32 %v1433_v23, %v1423_v60  ;;  %v1442_v49 = vadd.f32 %v1434_v2, %v1424_v41  ;;  %v3726_v1 = vadd.f32 %v3718_v51, %v3708_v11  ;;  %v1487_v53 = vmul.f32 %v13930_v5, %v13849_v30  ;;  %v13932_v45 = vld [vmem:[#allocation171_spill] sm:$0xff] }
 0x231   :  { %v3727_v36 = vadd.f32 %v3719_v0, %v3709_v33  ;;  %v3728_v44 = vadd.f32 %v3720_v3, %v3710_v59  ;;  %v1488_v19 = vmul.f32 %v13930_v5, %v13931_v25  ;;  %v1505_v2 = vmul.f32 %v13933_v52, %v13932_v45  ;;  %v13935_v59 = vld [vmem:[#allocation172_spill] sm:$0xff]  ;;  %v13936_v0 = vld [vmem:[#allocation111_spill] sm:$0xff]  ;;  %v13937_v33 = vld [vmem:[#allocation173_spill] sm:$0xff] }
 0x232   :  { %v1459_v6 = vadd.f32 %v1451_v38, %v1441_v18  ;;  %v1460_v55 = vadd.f32 %v1452_v48, %v1442_v49  ;;  %v3744_v23 = vadd.f32 %v3736_v10, %v3726_v1  ;;  %v1506_v58 = vmul.f32 %v13933_v52, %v13934_v37  ;;  %v13940_v10 = vld [vmem:[#allocation112_spill] sm:$0xff]  ;;  %v3297_v1 = vld [vmem:[#allocation12 + $0x90] sm:$0xff] }
 0x233   :  { %v3745_v60 = vadd.f32 %v3737_v24, %v3727_v36  ;;  %v3746_v41 = vadd.f32 %v3738_v35, %v3728_v44  ;;  %v1523_v3 = vmul.f32 %v13936_v0, %v13935_v59  ;;  %v1524_v38 = vmul.f32 %v13936_v0, %v13937_v33  ;;  %v13939_v24 = vld [vmem:[#allocation175_spill] sm:$0xff]  ;;  %5434 = vmatprep.mubr.msk.f32.mxu0 %vm1278_vm5, %v3297_v1  ;;  %v13949_v1 = vld [vmem:[#allocation117_spill] sm:$0xff] }
 0x234   :  { %v1477_v11 = vadd.f32 %v1469_v40, %v1459_v6  ;;  %v1478_v51 = vadd.f32 %v1470_v28, %v1460_v55  ;;  %v3754_v48 = vadd.f32 %v9186_v54, %v3744_v23  ;;  %v1541_v35 = vmul.f32 %v13940_v10, %v13939_v24  ;;  %v13941_v28 = vld [vmem:[#allocation74_spill] sm:$0xff]  ;;  %v13942_v6 = vld [vmem:[#allocation115_spill] sm:$0xff] }
 0x235   :  { %v3755_v18 = vadd.f32 %v9186_v54, %v3745_v60  ;;  %v9235_v49 = vadd.f32 %v9186_v54, %v3746_v41  ;;  %v1542_v44 = vmul.f32 %v13940_v10, %v13941_v28  ;;  %v1559_v55 = vmul.f32 %v13942_v6, %v13931_v25  ;;  %v13943_v41 = vld [vmem:[#allocation45_spill] sm:$0xff] }
 0x236   :  { %v1495_v36 = vadd.f32 %v1487_v53, %v1477_v11  ;;  %v1496_v40 = vadd.f32 %v1488_v19, %v1478_v51  ;;  %v3762_v23 = vmax.f32 %v3754_v48, 0.0  ;;  %v1560_v54 = vmul.f32 %v13942_v6, %v13943_v41  ;;  %v13944_v53 = vld [vmem:[#allocation116_spill] sm:$0xff]  ;;  %v13945_v11 = vld [vmem:[#allocation57_spill] sm:$0xff] }
 0x237   :  { %13938 = vst [vmem:[#allocation150_spill] sm:$0xff] %v9235_v49  ;;  %v3763_v0 = vmax.f32 %v3755_v18, 0.0  ;;  %v12698_v60 = vmax.f32 %v9235_v49, 0.0  ;;  %v1577_v19 = vmul.f32 %v13944_v53, %v13908_v39  ;;  %v1578_v51 = vmul.f32 %v13944_v53, %v13945_v11  ;;  %v13948_v18 = vld [vmem:[#allocation177_spill] sm:$0xff]  ;;  %v13953_v49 = vld [vmem:[#allocation179_spill] sm:$0xff] }
 0x238   :  { %v1513_v52 = vadd.f32 %v1505_v2, %v1495_v36  ;;  %v1514_v5 = vadd.f32 %v1506_v58, %v1496_v40  ;;  %v9251_v10 = vrot.slane %v3762_v23, 2  ;;  %v1595_v32 = vmul.f32 %v13949_v1, %v13948_v18  ;;  %v13950_v2 = vld [vmem:[#allocation176_spill] sm:$0xff]  ;;  %v13952_v40 = vld [vmem:[#allocation118_spill] sm:$0xff] }
 0x239   :  { %v3771_v57 = vrot.slane %v3763_v0, 2  ;;  %v9255_v48 = vrot.slane %v12698_v60, 2  ;;  %v1596_v58 = vmul.f32 %v13949_v1, %v13950_v2  ;;  %v13951_v36 = vld [vmem:[#allocation180_spill] sm:$0xff]  ;;  %v1614_v62 = vmul.f32 %v13952_v40, %v13953_v49 }
 0x23a   :  { %13946 = vst [vmem:[#allocation152_spill] sm:$0xff] %v9251_v10  ;;  %v1531_v15 = vadd.f32 %v1523_v3, %v1513_v52  ;;  %v1532_v6 = vadd.f32 %v1524_v38, %v1514_v5  ;;  %v1613_v22 = vmul.f32 %v13952_v40, %v13951_v36  ;;  %v13955_v52 = vld [vmem:[#allocation119_spill] sm:$0xff]  ;;  %v13957_v18 = vld [vmem:[#allocation120_spill] sm:$0xff] }
 0x23b   :  { %13947 = vst [vmem:[#allocation151_spill] sm:$0xff] %v9255_v48  ;;  %v3783_v53 = vsel %vm144_vm1, %v3771_v57, %v9255_v48  ;;  %v3784_v60 = vsel %vm144_vm1, %v9251_v10, %v3771_v57  ;;  %v1631_v5 = vmul.f32 %v13955_v52, %v13954_v31  ;;  %v1632_v36 = vmul.f32 %v13955_v52, %v13956_v12  ;;  %v13959_v57 = vld [vmem:[#allocation121_spill] sm:$0xff]  ;;  %v13960_v31 = vld [vmem:[#allocation70_spill] sm:$0xff] }
 0x23c   :  { %v3786_v3 = vmax.f32 %v3762_v23, %v3784_v60  ;;  %v3787_v38 = vmax.f32 %v3763_v0, %v3783_v53  ;;  %v1549_v1 = vadd.f32 %v1541_v35, %v1531_v15  ;;  %v1550_v2 = vadd.f32 %v1542_v44, %v1532_v6  ;;  %v13961_v15 = vld [vmem:[#allocation183_spill] sm:$0xff]  ;;  %v13962_v35 = vld [vmem:[#allocation122_spill] sm:$0xff]  ;;  %v13964_v60 = vld [vmem:[#allocation184_spill] sm:$0xff] }
 0x23d   :  { %v1649_v48 = vmul.f32 %v13957_v18, %v13945_v11  ;;  %v1650_v29 = vmul.f32 %v13957_v18, %v13958_v43  ;;  %v1667_v10 = vmul.f32 %v13959_v57, %v13889_v34  ;;  %v1668_v0 = vmul.f32 %v13959_v57, %v13960_v31  ;;  %v13963_v6 = vld [vmem:[#allocation186_spill] sm:$0xff]  ;;  %v13965_v53 = vld [vmem:[#allocation123_spill] sm:$0xff] }
 0x23e   :  { %v5594_v40 = vpack.c.bf16 %v3787_v38, %v3786_v3  ;;  %v1567_v49 = vadd.f32 %v1559_v55, %v1549_v1  ;;  %v1568_v39 = vadd.f32 %v1560_v54, %v1550_v2  ;;  %v1685_v44 = vmul.f32 %v13962_v35, %v13961_v15  ;;  %v13966_v18 = vld [vmem:[#allocation187_spill] sm:$0xff]  ;;  %v13967_v1 = vld [vmem:[#allocation185_spill] sm:$0xff]  ;;  %v13968_v2 = vld [vmem:[#allocation124_spill] sm:$0xff] }
 0x23f   :  { %v1686_v23 = vmul.f32 %v13962_v35, %v13963_v6  ;;  %v9289_v52 = vmul.f32 %v13965_v53, %v13964_v60  ;;  %v9293_v43 = vmul.f32 %v13965_v53, %v13966_v18  ;;  %v9297_v3 = vmul.f32 %v13968_v2, %v13967_v1  ;;  %v13969_v38 = vld [vmem:[#allocation188_spill] sm:$0xff]  ;;  %v1277_v35 = vld [vmem:[#allocation12 + $0x18] sm:$0xff]  ;;  %v13970_v60 = vld [vmem:[#allocation189_spill] sm:$0xff] }
 0x240   :  { %5595 = vmatprep.subr.bf16.mxu0 %v5594_v40  ;;  %v1585_v55 = vadd.f32 %v1577_v19, %v1567_v49  ;;  %v1586_v54 = vadd.f32 %v1578_v51, %v1568_v39  ;;  %v9301_v57 = vmul.f32 %v13968_v2, %v13969_v38  ;;  %v3298_v6 = vld [vmem:[#allocation12 + $0x98] sm:$0xff]  ;;  %v9305_v15 = vmul.f32 %v13970_v60, %v13960_v31  ;;  %v13971_v53 = vld [vmem:[#allocation178_spill] sm:$0xff]  ;;  %v1795_v19 = vld [vmem:[#allocation12 + $0x20] sm:$0xff] }
 0x241   :  { %5597 = vmatpush3.bf16.msra.mxu0 %v5594_v40  ;;  %v9309_v18 = vmul.f32 %v13970_v60, %v13971_v53  ;;  %v3405_v39 = vmul.f32 %v8964_v63, %v13831_v21  ;;  %v3406_v49 = vmul.f32 %v8964_v63, %v13918_v7  ;;  %v3415_v40 = vmul.f32 %v8975_v17, %v13919_v61 }
 0x242   :  { %v1603_v51 = vadd.f32 %v1595_v32, %v1585_v55  ;;  %v1604_v2 = vadd.f32 %v1596_v58, %v1586_v54  ;;  %v3416_v38 = vmul.f32 %v8975_v17, %v13921_v8  ;;  %5347 = vmatmul.mubr.msk.f32.gmra.mrb[2].mxu1 %vm1278_vm5, %v1277_v35  ;;  %v3433_v60 = vmul.f32 %v8978_v13, %v13922_v9 }
 0x243   :  { %v3434_v21 = vmul.f32 %v8978_v13, %v13924_v20  ;;  %v3451_v63 = vmul.f32 %v9005_v14, %v13925_v16  ;;  %v3452_v32 = vmul.f32 %v9005_v14, %v13927_v46  ;;  %5435 = vmatmul.mubr.msk.f32.gmra.mrb[2].mxu0 %vm1278_vm5, %v3298_v6  ;;  %v3423_v54 = vadd.f32 %v3415_v40, %v3405_v39 }
 0x244   :  { %v1621_v58 = vadd.f32 %v1613_v22, %v1603_v51  ;;  %v1622_v55 = vadd.f32 %v1614_v62, %v1604_v2  ;;  %v3424_v8 = vadd.f32 %v3416_v38, %v3406_v49  ;;  %5365 = vmatprep.mubr.msk.f32.mxu1 %vm1278_vm5, %v1795_v19  ;;  %v3469_v35 = vmul.f32 %v9023_v50, %v13918_v7 }
 0x245   :  { %v3470_v20 = vmul.f32 %v9023_v50, %v13929_v27  ;;  %v3487_v16 = vmul.f32 %v9042_v56, %v13849_v30  ;;  %v3488_v46 = vmul.f32 %v9042_v56, %v13931_v25  ;;  %v3441_v22 = vadd.f32 %v3433_v60, %v3423_v54 }
 0x246   :  { %v1639_v9 = vadd.f32 %v1631_v5, %v1621_v58  ;;  %v1640_v6 = vadd.f32 %v1632_v36, %v1622_v55  ;;  %v3442_v62 = vadd.f32 %v3434_v21, %v3424_v8  ;;  %v3505_v2 = vmul.f32 %v9045_v42, %v13932_v45 }
 0x247   :  { %v3506_v38 = vmul.f32 %v9045_v42, %v13934_v37  ;;  %v3523_v39 = vmul.f32 %v9048_v47, %v13935_v59  ;;  %v3524_v49 = vmul.f32 %v9048_v47, %v13937_v33  ;;  %v3459_v40 = vadd.f32 %v3451_v63, %v3441_v22 }
 0x248   :  { %v1657_v19 = vadd.f32 %v1649_v48, %v1639_v9  ;;  %v1658_v51 = vadd.f32 %v1650_v29, %v1640_v6  ;;  %v3460_v61 = vadd.f32 %v3452_v32, %v3442_v62  ;;  %v3541_v36 = vmul.f32 %v9075_v4, %v13939_v24  ;;  %v13972_v9 = vld [vmem:[#allocation64_spill] sm:$0xff]  ;;  %v13973_v29 = vld [vmem:[#allocation133_spill] sm:$0xff]  ;;  %v13975_v6 = vld [vmem:[#allocation154_spill] sm:$0xff] }
 0x249   :  { %v3542_v21 = vmul.f32 %v9075_v4, %v13941_v28  ;;  %v3559_v8 = vmul.f32 %v9078_v26, %v13931_v25  ;;  %v3560_v5 = vmul.f32 %v9078_v26, %v13943_v41  ;;  %v3477_v55 = vadd.f32 %v3469_v35, %v3459_v40  ;;  %v13974_v32 = vld [vmem:[#allocation177_spill] sm:$0xff]  ;;  %v13976_v62 = vld [vmem:[#allocation176_spill] sm:$0xff]  ;;  %v13990_v25 = vld [vmem:[#allocation187_spill] sm:$0xff] }
 0x24a   :  { %v1675_v60 = vadd.f32 %v1667_v10, %v1657_v19  ;;  %v1676_v58 = vadd.f32 %v1668_v0, %v1658_v51  ;;  %v3478_v54 = vadd.f32 %v3470_v20, %v3460_v61  ;;  %v3577_v63 = vmul.f32 %v13973_v29, %v13972_v9  ;;  %v13977_v10 = vld [vmem:[#allocation180_spill] sm:$0xff]  ;;  %v13978_v0 = vld [vmem:[#allocation141_spill] sm:$0xff]  ;;  %v13979_v20 = vld [vmem:[#allocation179_spill] sm:$0xff] }
 0x24b   :  { %v3578_v48 = vmul.f32 %v13973_v29, %v13945_v11  ;;  %v3595_v22 = vmul.f32 %v13975_v6, %v13974_v32  ;;  %v3596_v28 = vmul.f32 %v13975_v6, %v13976_v62  ;;  %v3495_v59 = vadd.f32 %v3487_v16, %v3477_v55  ;;  %v13980_v19 = vld [vmem:[#allocation181_spill] sm:$0xff]  ;;  %v13981_v51 = vld [vmem:[#allocation142_spill] sm:$0xff]  ;;  %v13982_v16 = vld [vmem:[#allocation143_spill] sm:$0xff] }
 0x24c   :  { %v1693_v24 = vadd.f32 %v1685_v44, %v1675_v60  ;;  %v1694_v33 = vadd.f32 %v1686_v23, %v1676_v58  ;;  %v3496_v37 = vadd.f32 %v3488_v46, %v3478_v54  ;;  %v3613_v35 = vmul.f32 %v13978_v0, %v13977_v10  ;;  %v13983_v60 = vld [vmem:[#allocation166_spill] sm:$0xff]  ;;  %v13984_v55 = vld [vmem:[#allocation144_spill] sm:$0xff]  ;;  %v14014_v29 = vld [vmem:[#allocation161_spill] sm:$0xff] }
 0x24d   :  { %v3614_v61 = vmul.f32 %v13978_v0, %v13979_v20  ;;  %v3631_v40 = vmul.f32 %v13981_v51, %v13980_v19  ;;  %v3632_v45 = vmul.f32 %v13981_v51, %v13956_v12  ;;  %v3513_v44 = vadd.f32 %v3505_v2, %v3495_v59  ;;  %v13988_v20 = vld [vmem:[#allocation184_spill] sm:$0xff]  ;;  %v13989_v10 = vld [vmem:[#allocation146_spill] sm:$0xff]  ;;  %v14013_v0 = vld [vmem:[#allocation191_spill] sm:$0xff] }
 0x24e   :  { %v1711_v32 = vadd.f32 %v9289_v52, %v1693_v24  ;;  %v1712_v62 = vadd.f32 %v9293_v43, %v1694_v33  ;;  %v3514_v23 = vadd.f32 %v3506_v38, %v3496_v37  ;;  %v3649_v46 = vmul.f32 %v13982_v16, %v13945_v11  ;;  %v13985_v33 = vld [vmem:[#allocation183_spill] sm:$0xff]  ;;  %v13986_v52 = vld [vmem:[#allocation145_spill] sm:$0xff]  ;;  %v13987_v38 = vld [vmem:[#allocation186_spill] sm:$0xff] }
 0x24f   :  { %v3650_v58 = vmul.f32 %v13982_v16, %v13983_v60  ;;  %v9378_v54 = vmul.f32 %v13984_v55, %v13889_v34  ;;  %v9382_v19 = vmul.f32 %v13984_v55, %v13960_v31  ;;  %v3531_v59 = vadd.f32 %v3523_v39, %v3513_v44  ;;  %v13992_v44 = vld [vmem:[#allocation188_spill] sm:$0xff]  ;;  %v14032_v26 = vld [vmem:[#allocation53_spill] sm:$0xff] }
 0x250   :  { %v1729_v24 = vadd.f32 %v9297_v3, %v1711_v32  ;;  %v1730_v43 = vadd.f32 %v9301_v57, %v1712_v62  ;;  %v3532_v37 = vadd.f32 %v3524_v49, %v3514_v23  ;;  %v9388_v2 = vmul.f32 %v13986_v52, %v13985_v33  ;;  %v13991_v32 = vld [vmem:[#allocation147_spill] sm:$0xff]  ;;  %v13998_v33 = vld [vmem:[#allocation25_spill] sm:$0xff]  ;;  %v14000_v9 = vld [vmem:[#allocation24_spill] sm:$0xff] }
 0x251   :  { %v9392_v12 = vmul.f32 %v13986_v52, %v13987_v38  ;;  %v9396_v11 = vmul.f32 %v13989_v10, %v13988_v20  ;;  %v9400_v7 = vmul.f32 %v13989_v10, %v13990_v25  ;;  %v3549_v39 = vadd.f32 %v3541_v36, %v3531_v59  ;;  %v13993_v20 = vld [vmem:[#allocation148_spill] sm:$0xff]  ;;  %v13996_v59 = vld [vmem:[#allocation46_spill] sm:$0xff] }
 0x252   :  { %v1747_v57 = vadd.f32 %v9305_v15, %v1729_v24  ;;  %v1748_v3 = vadd.f32 %v9309_v18, %v1730_v43  ;;  %v3550_v49 = vadd.f32 %v3542_v21, %v3532_v37  ;;  %v9406_v62 = vmul.f32 %v13991_v32, %v13967_v1  ;;  %v3795_v15 = vld [vmem:[#allocation12 + $0xa0] sm:$0xff]  ;;  %v13994_v18 = vld [vmem:[#allocation125_spill] sm:$0xff]  ;;  %v14003_v10 = vld [vmem:[#allocation26_spill] sm:$0xff] }
 0x253   :  { %v9410_v23 = vmul.f32 %v13991_v32, %v13992_v44  ;;  %v9414_v38 = vmul.f32 %v13993_v20, %v13960_v31  ;;  %v9418_v25 = vmul.f32 %v13993_v20, %v13971_v53  ;;  %v3567_v24 = vadd.f32 %v3559_v8, %v3549_v39  ;;  %5453 = vmatprep.mubr.msk.f32.mxu0 %vm1278_vm5, %v3795_v15  ;;  %v13997_v44 = vld [vmem:[#allocation190_spill] sm:$0xff]  ;;  %v13999_v31 = vld [vmem:[#allocation33_spill] sm:$0xff]  ;;  %v14005_v51 = vld [vmem:[#allocation196_spill] sm:$0xff] }
 0x254   :  { %v1757_v36 = vadd.f32 %v13994_v18, %v1747_v57  ;;  %v9422_v21 = vadd.f32 %v13994_v18, %v1748_v3  ;;  %v3568_v43 = vadd.f32 %v3560_v5, %v3550_v49  ;;  %v1407_v37 = vmul.f32 %v13996_v59, %v13929_v27  ;;  %v14001_v49 = vld [vmem:[#allocation27_spill] sm:$0xff]  ;;  %v14002_v15 = vld [vmem:[#allocation162_spill] sm:$0xff] }
 0x255   :  { %v1408_v1 = vmul.f32 %v13996_v59, %v13997_v44  ;;  %v1417_v34 = vmul.f32 %v13999_v31, %v13998_v33  ;;  %v1418_v30 = vmul.f32 %v13999_v31, %v14000_v9  ;;  %v3585_v20 = vadd.f32 %v3577_v63, %v3567_v24  ;;  %v14006_v63 = vld [vmem:[#allocation59_spill] sm:$0xff] }
 0x256   :  { %13995 = vst [vmem:[#allocation192_spill] sm:$0xff] %v9422_v21  ;;  %v1765_v57 = vmax.f32 %v1757_v36, 0.0  ;;  %v12754_v3 = vmax.f32 %v9422_v21, 0.0  ;;  %v3586_v8 = vadd.f32 %v3578_v48, %v3568_v43  ;;  %v1435_v32 = vmul.f32 %v14002_v15, %v14001_v49  ;;  %v14009_v43 = vld [vmem:[#allocation130_spill] sm:$0xff] }
 0x257   :  { %v1425_v5 = vadd.f32 %v1417_v34, %v1407_v37  ;;  %v1426_v39 = vadd.f32 %v1418_v30, %v1408_v1  ;;  %v1436_v52 = vmul.f32 %v14002_v15, %v14003_v10  ;;  %v3603_v55 = vadd.f32 %v3595_v22, %v3585_v20  ;;  %v14007_v34 = vld [vmem:[#allocation28_spill] sm:$0xff]  ;;  %v14103_v1 = vld [vmem:[#allocation110_spill] sm:$0xff] }
 0x258   :  { %v1773_v59 = vrot.slane %v1765_v57, 2  ;;  %v9440_v18 = vrot.slane %v12754_v3, 2  ;;  %v3604_v31 = vadd.f32 %v3596_v28, %v3586_v8  ;;  %v1453_v48 = vmul.f32 %v14006_v63, %v14005_v51  ;;  %v14010_v22 = vld [vmem:[#allocation128_spill] sm:$0xff] }
 0x259   :  { %v1443_v36 = vadd.f32 %v1435_v32, %v1425_v5  ;;  %v1444_v16 = vadd.f32 %v1436_v52, %v1426_v39  ;;  %v1454_v30 = vmul.f32 %v14006_v63, %v14007_v34  ;;  %v3621_v3 = vadd.f32 %v3613_v35, %v3603_v55  ;;  %v14012_v63 = vld [vmem:[#allocation156_spill] sm:$0xff]  ;;  %v14015_v35 = vld [vmem:[#allocation193_spill] sm:$0xff]  ;;  %v14017_v55 = vld [vmem:[#allocation110_spill] sm:$0xff] }
 0x25a   :  { %14004 = vst [vmem:[#allocation153_spill] sm:$0xff] %v9440_v18  ;;  %v1781_v24 = vsel %vm144_vm1, %v1773_v59, %v9440_v18  ;;  %v1782_v37 = vsel %vm144_vm1, %v14009_v43, %v1773_v59  ;;  %v3622_v21 = vadd.f32 %v3614_v61, %v3604_v31  ;;  %v14011_v28 = vmax.f32 %v14010_v22, 0.0  ;;  %v14016_v61 = vld [vmem:[#allocation30_spill] sm:$0xff]  ;;  %v14021_v43 = vld [vmem:[#allocation31_spill] sm:$0xff] }
 0x25b   :  { %v1789_v52 = vmax.f32 %v1765_v57, %v1781_v24  ;;  %v1461_v32 = vadd.f32 %v1453_v48, %v1443_v36  ;;  %v1462_v8 = vadd.f32 %v1454_v30, %v1444_v16  ;;  %v3639_v5 = vadd.f32 %v3631_v40, %v3621_v3  ;;  %v14019_v48 = vld [vmem:[#allocation32_spill] sm:$0xff]  ;;  %v14020_v30 = vld [vmem:[#allocation111_spill] sm:$0xff]  ;;  %v14022_v22 = vld [vmem:[#allocation198_spill] sm:$0xff] }
 0x25c   :  { %v1788_v20 = vmax.f32 %v14011_v28, %v1782_v37  ;;  %v3640_v39 = vadd.f32 %v3632_v45, %v3622_v21  ;;  %v1471_v15 = vmul.f32 %v14012_v63, %v13997_v44  ;;  %v1472_v18 = vmul.f32 %v14012_v63, %v14013_v0  ;;  %v14018_v21 = vld [vmem:[#allocation197_spill] sm:$0xff]  ;;  %v14023_v28 = vld [vmem:[#allocation112_spill] sm:$0xff] }
 0x25d   :  { %v1489_v59 = vmul.f32 %v14014_v29, %v13943_v41  ;;  %v1490_v31 = vmul.f32 %v14014_v29, %v14015_v35  ;;  %v1507_v57 = vmul.f32 %v14017_v55, %v14016_v61  ;;  %v3657_v36 = vadd.f32 %v3649_v46, %v3639_v5 }
 0x25e   :  { %v5534_v6 = vpack.c.bf16 %v1789_v52, %v1788_v20  ;;  %v3658_v16 = vadd.f32 %v3650_v58, %v3640_v39  ;;  %v1479_v40 = vadd.f32 %v1471_v15, %v1461_v32  ;;  %v1480_v45 = vadd.f32 %v1472_v18, %v1462_v8  ;;  %v14024_v15 = vld [vmem:[#allocation43_spill] sm:$0xff]  ;;  %v14026_v39 = vld [vmem:[#allocation21_spill] sm:$0xff] }
 0x25f   :  { %v1508_v3 = vmul.f32 %v14017_v55, %v14018_v21  ;;  %v1525_v24 = vmul.f32 %v14020_v30, %v14019_v48  ;;  %v1526_v37 = vmul.f32 %v14020_v30, %v14021_v43  ;;  %v1543_v20 = vmul.f32 %v14023_v28, %v14022_v22  ;;  %v14025_v8 = vld [vmem:[#allocation115_spill] sm:$0xff]  ;;  %v14027_v30 = vld [vmem:[#allocation116_spill] sm:$0xff] }
 0x260   :  { %5535 = vmatprep.subr.bf16.mxu1 %v5534_v6  ;;  %v3675_v52 = vadd.f32 %v9378_v54, %v3657_v36  ;;  %v3676_v46 = vadd.f32 %v9382_v19, %v3658_v16  ;;  %v1497_v58 = vadd.f32 %v1489_v59, %v1479_v40  ;;  %v1498_v18 = vadd.f32 %v1490_v31, %v1480_v45  ;;  %v14028_v59 = vld [vmem:[#allocation194_spill] sm:$0xff]  ;;  %v14029_v36 = vld [vmem:[#allocation44_spill] sm:$0xff]  ;;  %v14030_v16 = vld [vmem:[#allocation117_spill] sm:$0xff] }
 0x261   :  { %5537 = vmatpush3.bf16.msra.mxu1 %v5534_v6  ;;  %v1544_v32 = vmul.f32 %v14023_v28, %v14024_v15  ;;  %v1561_v5 = vmul.f32 %v14025_v8, %v14015_v35  ;;  %v1562_v55 = vmul.f32 %v14025_v8, %v14026_v39  ;;  %v1579_v29 = vmul.f32 %v14027_v30, %v13983_v60  ;;  %v14031_v45 = vld [vmem:[#allocation52_spill] sm:$0xff]  ;;  %v14033_v8 = vld [vmem:[#allocation118_spill] sm:$0xff] }
 0x262   :  { %v3693_v63 = vadd.f32 %v9388_v2, %v3675_v52  ;;  %v3694_v54 = vadd.f32 %v9392_v12, %v3676_v46  ;;  %v1515_v19 = vadd.f32 %v1507_v57, %v1497_v58  ;;  %v1516_v6 = vadd.f32 %v1508_v3, %v1498_v18  ;;  %v14034_v57 = vld [vmem:[#allocation29_spill] sm:$0xff]  ;;  %v14035_v46 = vld [vmem:[#allocation139_spill] sm:$0xff] }
 0x263   :  { %v1580_v31 = vmul.f32 %v14027_v30, %v14028_v59  ;;  %v1597_v40 = vmul.f32 %v14030_v16, %v14029_v36  ;;  %v1598_v28 = vmul.f32 %v14030_v16, %v14031_v45  ;;  %v1615_v39 = vmul.f32 %v14033_v8, %v14032_v26  ;;  %v14036_v58 = vld [vmem:[#allocation119_spill] sm:$0xff]  ;;  %v14037_v30 = vld [vmem:[#allocation54_spill] sm:$0xff]  ;;  %v14038_v16 = vld [vmem:[#allocation120_spill] sm:$0xff] }
 0x264   :  { %v3711_v60 = vadd.f32 %v9396_v11, %v3693_v63  ;;  %v3712_v2 = vadd.f32 %v9400_v7, %v3694_v54  ;;  %v1533_v52 = vadd.f32 %v1525_v24, %v1515_v19  ;;  %v1534_v12 = vadd.f32 %v1526_v37, %v1516_v6  ;;  %v14039_v24 = vld [vmem:[#allocation195_spill] sm:$0xff]  ;;  %v14040_v54 = vld [vmem:[#allocation121_spill] sm:$0xff]  ;;  %v14041_v6 = vld [vmem:[#allocation40_spill] sm:$0xff] }
 0x265   :  { %v1616_v3 = vmul.f32 %v14033_v8, %v14034_v57  ;;  %v1633_v18 = vmul.f32 %v14036_v58, %v14035_v46  ;;  %v1634_v36 = vmul.f32 %v14036_v58, %v14037_v30  ;;  %v1651_v45 = vmul.f32 %v14038_v16, %v14028_v59  ;;  %v14042_v46 = vld [vmem:[#allocation42_spill] sm:$0xff] }
 0x266   :  { %v3729_v26 = vadd.f32 %v9406_v62, %v3711_v60  ;;  %v3730_v11 = vadd.f32 %v9410_v23, %v3712_v2  ;;  %v1551_v63 = vadd.f32 %v1543_v20, %v1533_v52  ;;  %v1552_v7 = vadd.f32 %v1544_v32, %v1534_v12  ;;  %v14043_v58 = vld [vmem:[#allocation122_spill] sm:$0xff]  ;;  %v14044_v20 = vld [vmem:[#allocation135_spill] sm:$0xff]  ;;  %v14045_v2 = vld [vmem:[#allocation56_spill] sm:$0xff] }
 0x267   :  { %v1652_v37 = vmul.f32 %v14038_v16, %v14039_v24  ;;  %v1669_v19 = vmul.f32 %v14040_v54, %v13971_v53  ;;  %v1670_v8 = vmul.f32 %v14040_v54, %v14041_v6  ;;  %v1687_v30 = vmul.f32 %v14043_v58, %v14042_v46  ;;  %v14046_v52 = vld [vmem:[#allocation123_spill] sm:$0xff]  ;;  %v14047_v16 = vld [vmem:[#allocation58_spill] sm:$0xff]  ;;  %v14049_v54 = vld [vmem:[#allocation124_spill] sm:$0xff] }
 0x268   :  { %v3747_v57 = vadd.f32 %v9414_v38, %v3729_v26  ;;  %v3748_v60 = vadd.f32 %v9418_v25, %v3730_v11  ;;  %v1569_v62 = vadd.f32 %v1561_v5, %v1551_v63  ;;  %v1570_v23 = vadd.f32 %v1562_v55, %v1552_v7  ;;  %v14048_v24 = vld [vmem:[#allocation34_spill] sm:$0xff]  ;;  %v14050_v46 = vld [vmem:[#allocation149_spill] sm:$0xff] }
 0x269   :  { %v1688_v32 = vmul.f32 %v14043_v58, %v14044_v20  ;;  %v1705_v12 = vmul.f32 %v14046_v52, %v14045_v2  ;;  %v1706_v53 = vmul.f32 %v14046_v52, %v14047_v16  ;;  %v9522_v59 = vmul.f32 %v14049_v54, %v14048_v24  ;;  %v14052_v55 = vld [vmem:[#allocation158_spill] sm:$0xff]  ;;  %v14053_v11 = vld [vmem:[#allocation189_spill] sm:$0xff] }
 0x26a   :  { %v3757_v15 = vadd.f32 %v14050_v46, %v3747_v57  ;;  %v9526_v26 = vadd.f32 %v14050_v46, %v3748_v60  ;;  %v1587_v25 = vadd.f32 %v1579_v29, %v1569_v62  ;;  %v1588_v38 = vadd.f32 %v1580_v31, %v1570_v23  ;;  %v14054_v7 = vld [vmem:[#allocation41_spill] sm:$0xff] }
 0x26b   :  { %v9530_v5 = vmul.f32 %v14049_v54, %v14052_v55  ;;  %v9534_v63 = vmul.f32 %v14053_v11, %v14041_v6  ;;  %v9538_v52 = vmul.f32 %v14053_v11, %v14054_v7  ;;  %v14055_v58 = vld [vmem:[#allocation137_spill] sm:$0xff]  ;;  %v3417_v23 = vmul.f32 %v8975_v17, %v13998_v33 }
 0x26c   :  { %14051 = vst [vmem:[#allocation132_spill] sm:$0xff] %v9526_v26  ;;  %v3407_v57 = vmul.f32 %v14055_v58, %v13929_v27  ;;  %v3765_v24 = vmax.f32 %v3757_v15, 0.0  ;;  %v12789_v60 = vmax.f32 %v9526_v26, 0.0  ;;  %v1605_v29 = vadd.f32 %v1597_v40, %v1587_v25 }
 0x26d   :  { %v1606_v31 = vadd.f32 %v1598_v28, %v1588_v38  ;;  %v3408_v62 = vmul.f32 %v14055_v58, %v13997_v44  ;;  %v3418_v46 = vmul.f32 %v8975_v17, %v14000_v9  ;;  %v3435_v11 = vmul.f32 %v8978_v13, %v14001_v49  ;;  %v14057_v49 = vld [vmem:[#allocation151_spill] sm:$0xff] }
 0x26e   :  { %v3773_v54 = vrot.slane %v3765_v24, 2  ;;  %v9553_v15 = vrot.slane %v12789_v60, 2  ;;  %v1623_v27 = vadd.f32 %v1615_v39, %v1605_v29  ;;  %v3425_v28 = vadd.f32 %v3417_v23, %v3407_v57  ;;  %v14058_v39 = vld [vmem:[#allocation150_spill] sm:$0xff] }
 0x26f   :  { %v1624_v40 = vadd.f32 %v1616_v3, %v1606_v31  ;;  %v3426_v25 = vadd.f32 %v3418_v46, %v3408_v62  ;;  %v3436_v38 = vmul.f32 %v8978_v13, %v14003_v10  ;;  %v3453_v33 = vmul.f32 %v9005_v14, %v14005_v51 }
 0x270   :  { %14056 = vst [vmem:[#allocation160_spill] sm:$0xff] %v9553_v15  ;;  %v3781_v9 = vsel %vm144_vm1, %v3773_v54, %v9553_v15  ;;  %v3782_v26 = vsel %vm144_vm1, %v14057_v49, %v3773_v54  ;;  %v1641_v60 = vadd.f32 %v1633_v18, %v1623_v27  ;;  %v14059_v3 = vmax.f32 %v14058_v39, 0.0  ;;  %v14063_v39 = vld [vmem:[#allocation166_spill] sm:$0xff] }
 0x271   :  { %v1642_v17 = vadd.f32 %v1634_v36, %v1624_v40  ;;  %v3789_v46 = vmax.f32 %v3765_v24, %v3781_v9  ;;  %v3443_v29 = vadd.f32 %v3435_v11, %v3425_v28  ;;  %v3444_v31 = vadd.f32 %v3436_v38, %v3426_v25 }
 0x272   :  { %v3788_v57 = vmax.f32 %v14059_v3, %v3782_v26  ;;  %v1659_v62 = vadd.f32 %v1651_v45, %v1641_v60  ;;  %v3454_v51 = vmul.f32 %v9005_v14, %v14007_v34  ;;  %v3471_v10 = vmul.f32 %v9023_v50, %v13997_v44  ;;  %v14061_v60 = vld [vmem:[#allocation131_spill] sm:$0xff]  ;;  %v14064_v3 = vld [vmem:[#allocation133_spill] sm:$0xff] }
 0x273   :  { %v1660_v23 = vadd.f32 %v1652_v37, %v1642_v17  ;;  %v3461_v13 = vadd.f32 %v3453_v33, %v3443_v29  ;;  %v3472_v27 = vmul.f32 %v9023_v50, %v14013_v0  ;;  %v3489_v49 = vmul.f32 %v9042_v56, %v13943_v41  ;;  %v14094_v44 = vld [vmem:[#allocation153_spill] sm:$0xff] }
 0x274   :  { %v5598_v15 = vpack.c.bf16 %v3789_v46, %v3788_v57  ;;  %v1677_v36 = vadd.f32 %v1669_v19, %v1659_v62  ;;  %v3462_v18 = vadd.f32 %v3454_v51, %v3444_v31  ;;  %v3490_v17 = vmul.f32 %v9042_v56, %v14015_v35  ;;  %v14065_v46 = vld [vmem:[#allocation194_spill] sm:$0xff]  ;;  %v14066_v31 = vld [vmem:[#allocation44_spill] sm:$0xff] }
 0x275   :  { %v1678_v9 = vadd.f32 %v1670_v8, %v1660_v23  ;;  %v3479_v45 = vadd.f32 %v3471_v10, %v3461_v13  ;;  %v3507_v24 = vmul.f32 %v9045_v42, %v14016_v61  ;;  %v3508_v33 = vmul.f32 %v9045_v42, %v14018_v21  ;;  %v14060_v10 = vld [vmem:[#allocation43_spill] sm:$0xff]  ;;  %v14067_v62 = vld [vmem:[#allocation154_spill] sm:$0xff]  ;;  %v14091_v21 = vld [vmem:[#allocation33_spill] sm:$0xff] }
 0x276   :  { %5599 = vmatprep.subr.bf16.mxu0 %v5598_v15  ;;  %v3525_v37 = vmul.f32 %v9048_v47, %v14019_v48  ;;  %v1695_v54 = vadd.f32 %v1687_v30, %v1677_v36  ;;  %v3480_v19 = vadd.f32 %v3472_v27, %v3462_v18  ;;  %v3526_v51 = vmul.f32 %v9048_v47, %v14021_v43  ;;  %v14069_v18 = vld [vmem:[#allocation53_spill] sm:$0xff] }
 0x277   :  { %5601 = vmatpush3.bf16.msra.mxu0 %v5598_v15  ;;  %v1696_v26 = vadd.f32 %v1688_v32, %v1678_v9  ;;  %v3497_v8 = vadd.f32 %v3489_v49, %v3479_v45  ;;  %v3543_v13 = vmul.f32 %v9075_v4, %v14022_v22  ;;  %v3544_v11 = vmul.f32 %v9075_v4, %v14060_v10  ;;  %v14062_v15 = vld [vmem:[#allocation21_spill] sm:$0xff] }
 0x278   :  { %v3561_v40 = vmul.f32 %v14061_v60, %v14015_v35  ;;  %v1713_v28 = vadd.f32 %v1705_v12, %v1695_v54  ;;  %v3498_v38 = vadd.f32 %v3490_v17, %v3480_v19  ;;  %v3562_v30 = vmul.f32 %v14061_v60, %v14062_v15  ;;  %v14070_v17 = vld [vmem:[#allocation141_spill] sm:$0xff]  ;;  %v14073_v19 = vld [vmem:[#allocation142_spill] sm:$0xff]  ;;  %v14092_v35 = vld [vmem:[#allocation68_spill] sm:$0xff] }
 0x279   :  { %v1714_v25 = vadd.f32 %v1706_v53, %v1696_v26  ;;  %v3515_v32 = vadd.f32 %v3507_v24, %v3497_v8  ;;  %v3579_v57 = vmul.f32 %v14064_v3, %v14063_v39  ;;  %v3580_v29 = vmul.f32 %v14064_v3, %v14065_v46  ;;  %v14068_v53 = vld [vmem:[#allocation52_spill] sm:$0xff]  ;;  %v14071_v24 = vld [vmem:[#allocation29_spill] sm:$0xff]  ;;  %v14072_v26 = vld [vmem:[#allocation139_spill] sm:$0xff] }
 0x27a   :  { %v3597_v23 = vmul.f32 %v14067_v62, %v14066_v31  ;;  %v1731_v27 = vadd.f32 %v9522_v59, %v1713_v28  ;;  %v3516_v12 = vadd.f32 %v3508_v33, %v3498_v38  ;;  %v3598_v36 = vmul.f32 %v14067_v62, %v14068_v53  ;;  %v14077_v53 = vld [vmem:[#allocation178_spill] sm:$0xff]  ;;  %v14079_v22 = vld [vmem:[#allocation125_spill] sm:$0xff]  ;;  %v14097_v39 = vld [vmem:[#allocation192_spill] sm:$0xff] }
 0x27b   :  { %v1732_v49 = vadd.f32 %v9530_v5, %v1714_v25  ;;  %v3533_v9 = vadd.f32 %v3525_v37, %v3515_v32  ;;  %v3615_v45 = vmul.f32 %v14070_v17, %v14069_v18  ;;  %v3616_v54 = vmul.f32 %v14070_v17, %v14071_v24  ;;  %v14074_v5 = vld [vmem:[#allocation54_spill] sm:$0xff]  ;;  %v14075_v37 = vld [vmem:[#allocation143_spill] sm:$0xff]  ;;  %v14078_v24 = vld [vmem:[#allocation144_spill] sm:$0xff] }
 0x27c   :  { %v3633_v8 = vmul.f32 %v14073_v19, %v14072_v26  ;;  %v1749_v31 = vadd.f32 %v9534_v63, %v1731_v27  ;;  %v3534_v28 = vadd.f32 %v3526_v51, %v3516_v12  ;;  %v3634_v33 = vmul.f32 %v14073_v19, %v14074_v5  ;;  %v14076_v32 = vld [vmem:[#allocation195_spill] sm:$0xff]  ;;  %v14083_v5 = vld [vmem:[#allocation146_spill] sm:$0xff] }
 0x27d   :  { %v1750_v59 = vadd.f32 %v9538_v52, %v1732_v49  ;;  %v3551_v25 = vadd.f32 %v3543_v13, %v3533_v9  ;;  %v3651_v38 = vmul.f32 %v14075_v37, %v14065_v46  ;;  %v3652_v18 = vmul.f32 %v14075_v37, %v14076_v32  ;;  %v14081_v13 = vld [vmem:[#allocation42_spill] sm:$0xff]  ;;  %v14082_v49 = vld [vmem:[#allocation145_spill] sm:$0xff] }
 0x27e   :  { %v3669_v10 = vmul.f32 %v14078_v24, %v14077_v53  ;;  %v1759_v26 = vadd.f32 %v14079_v22, %v1749_v31  ;;  %v3552_v52 = vadd.f32 %v3544_v11, %v3534_v28  ;;  %v3670_v51 = vmul.f32 %v14078_v24, %v14041_v6  ;;  %v14095_v53 = vld [vmem:[#allocation174_spill] sm:$0xff]  ;;  %v14102_v24 = vld [vmem:[#allocation73_spill] sm:$0xff] }
 0x27f   :  { %v9621_v63 = vadd.f32 %v14079_v22, %v1750_v59  ;;  %v3569_v27 = vadd.f32 %v3561_v40, %v3551_v25  ;;  %v3687_v12 = vmul.f32 %v14082_v49, %v14081_v13  ;;  %v3688_v9 = vmul.f32 %v14082_v49, %v14044_v20  ;;  %v14084_v40 = vld [vmem:[#allocation34_spill] sm:$0xff]  ;;  %v14085_v25 = vld [vmem:[#allocation147_spill] sm:$0xff] }
 0x280   :  { %v9631_v46 = vmul.f32 %v14083_v5, %v14045_v2  ;;  %v1767_v43 = vmax.f32 %v1759_v26, 0.0  ;;  %v3570_v59 = vadd.f32 %v3562_v30, %v3552_v52  ;;  %v9636_v11 = vmul.f32 %v14083_v5, %v14047_v16  ;;  %v14086_v2 = vld [vmem:[#allocation148_spill] sm:$0xff] }
 0x281   :  { %14080 = vst [vmem:[#allocation138_spill] sm:$0xff] %v9621_v63  ;;  %v12808_v31 = vmax.f32 %v9621_v63, 0.0  ;;  %v3587_v28 = vadd.f32 %v3579_v57, %v3569_v27  ;;  %v9640_v48 = vmul.f32 %v14085_v25, %v14084_v40  ;;  %v9644_v20 = vmul.f32 %v14085_v25, %v14052_v55  ;;  %v14089_v40 = vld [vmem:[#allocation46_spill] sm:$0xff]  ;;  %v14100_v25 = vld [vmem:[#allocation156_spill] sm:$0xff] }
 0x282   :  { %v9648_v13 = vmul.f32 %v14086_v2, %v14041_v6  ;;  %v1775_v26 = vrot.slane %v1767_v43, 2  ;;  %v3588_v52 = vadd.f32 %v3580_v29, %v3570_v59  ;;  %v9656_v57 = vmul.f32 %v14086_v2, %v14054_v7  ;;  %v14090_v55 = vld [vmem:[#allocation22_spill] sm:$0xff] }
 0x283   :  { %v9652_v30 = vrot.slane %v12808_v31, 2  ;;  %v3605_v27 = vadd.f32 %v3597_v23, %v3587_v28  ;;  %v1409_v16 = vmul.f32 %v14089_v40, %v14013_v0  ;;  %v1419_v61 = vmul.f32 %v14091_v21, %v14090_v55  ;;  %v14093_v6 = vld [vmem:[#allocation162_spill] sm:$0xff]  ;;  %v14096_v23 = vld [vmem:[#allocation59_spill] sm:$0xff] }
 0x284   :  { %14088 = vst [vmem:[#allocation155_spill] sm:$0xff] %v9656_v57  ;;  %v1437_v34 = vmul.f32 %v14093_v6, %v14092_v35  ;;  %v1780_v29 = vsel %vm144_vm1, %v14094_v44, %v1775_v26  ;;  %v3606_v59 = vadd.f32 %v3598_v36, %v3588_v52  ;;  %v1455_v28 = vmul.f32 %v14096_v23, %v14095_v53  ;;  %v14099_v6 = vld [vmem:[#allocation36_spill] sm:$0xff]  ;;  %v14104_v23 = vld [vmem:[#allocation167_spill] sm:$0xff] }
 0x285   :  { %14087 = vst [vmem:[#allocation67_spill] sm:$0xff] %v9652_v30  ;;  %v1779_v31 = vsel %vm144_vm1, %v1775_v26, %v9652_v30  ;;  %v14098_v40 = vmax.f32 %v14097_v39, 0.0  ;;  %v3623_v21 = vadd.f32 %v3615_v45, %v3605_v27  ;;  %v1427_v22 = vadd.f32 %v1419_v61, %v1409_v16  ;;  %v14101_v30 = vld [vmem:[#allocation161_spill] sm:$0xff]  ;;  %v14105_v57 = vld [vmem:[#allocation111_spill] sm:$0xff]  ;;  %v14107_v45 = vld [vmem:[#allocation112_spill] sm:$0xff] }
 0x286   :  { %v1791_v63 = vmax.f32 %v1767_v43, %v1779_v31  ;;  %v3624_v2 = vadd.f32 %v3616_v54, %v3606_v59  ;;  %v1473_v5 = vmul.f32 %v14100_v25, %v14099_v6  ;;  %v1491_v49 = vmul.f32 %v14101_v30, %v14062_v15  ;;  %v14106_v43 = vld [vmem:[#allocation134_spill] sm:$0xff]  ;;  %v14108_v16 = vld [vmem:[#allocation48_spill] sm:$0xff]  ;;  %v14109_v54 = vld [vmem:[#allocation115_spill] sm:$0xff] }
 0x287   :  { %v1790_v41 = vmax.f32 %v14098_v40, %v1780_v29  ;;  %v1509_v44 = vmul.f32 %v14103_v1, %v14102_v24  ;;  %v3641_v26 = vadd.f32 %v3633_v8, %v3623_v21  ;;  %v1445_v52 = vadd.f32 %v1437_v34, %v1427_v22  ;;  %v14110_v25 = vld [vmem:[#allocation116_spill] sm:$0xff]  ;;  %v14113_v8 = vld [vmem:[#allocation117_spill] sm:$0xff]  ;;  %v14119_v59 = vld [vmem:[#allocation119_spill] sm:$0xff] }
 0x288   :  { %v1527_v39 = vmul.f32 %v14105_v57, %v14104_v23  ;;  %v3642_v29 = vadd.f32 %v3634_v33, %v3624_v2  ;;  %v1545_v61 = vmul.f32 %v14107_v45, %v14106_v43  ;;  %v1563_v31 = vmul.f32 %v14109_v54, %v14108_v16  ;;  %v14115_v22 = vld [vmem:[#allocation140_spill] sm:$0xff]  ;;  %v14118_v57 = vld [vmem:[#allocation157_spill] sm:$0xff] }
 0x289   :  { %v5538_v36 = vpack.c.bf16 %v1791_v63, %v1790_v41  ;;  %v9688_v27 = vmul.f32 %v14110_v25, %v14076_v32  ;;  %v3659_v30 = vadd.f32 %v3651_v38, %v3641_v26  ;;  %v1463_v1 = vadd.f32 %v1455_v28, %v1445_v52  ;;  %v14112_v41 = vld [vmem:[#allocation136_spill] sm:$0xff]  ;;  %v14116_v63 = vld [vmem:[#allocation118_spill] sm:$0xff]  ;;  %v14121_v21 = vld [vmem:[#allocation61_spill] sm:$0xff] }
 0x28a   :  { %v9692_v34 = vmul.f32 %v14113_v8, %v14112_v41  ;;  %v9696_v2 = vmul.f32 %v14116_v63, %v14115_v22  ;;  %v3660_v33 = vadd.f32 %v3652_v18, %v3642_v29  ;;  %v9700_v40 = vmul.f32 %v14119_v59, %v14118_v57  ;;  %v14122_v45 = vld [vmem:[#allocation120_spill] sm:$0xff]  ;;  %v14124_v38 = vld [vmem:[#allocation121_spill] sm:$0xff]  ;;  %v14125_v25 = vld [vmem:[#allocation55_spill] sm:$0xff] }
 0x28b   :  { %14111 = vst [vmem:[#allocation130_spill] sm:$0xff] %v9688_v27  ;;  %5539 = vmatprep.subr.bf16.mxu1 %v5538_v36  ;;  %v9704_v54 = vmul.f32 %v14122_v45, %v14121_v21  ;;  %v9708_v28 = vmul.f32 %v14124_v38, %v14054_v7  ;;  %v3677_v26 = vadd.f32 %v3669_v10, %v3659_v30  ;;  %v14126_v8 = vld [vmem:[#allocation122_spill] sm:$0xff]  ;;  %v14127_v18 = vld [vmem:[#allocation65_spill] sm:$0xff]  ;;  %v14131_v45 = vld [vmem:[#allocation76_spill] sm:$0xff] }
 0x28c   :  { %14114 = vst [vmem:[#allocation128_spill] sm:$0xff] %v9692_v34  ;;  %14117 = vst [vmem:[#allocation137_spill] sm:$0xff] %v9696_v2  ;;  %5541 = vmatpush3.bf16.msra.mxu1 %v5538_v36  ;;  %v1481_v52 = vadd.f32 %v1473_v5, %v1463_v1  ;;  %v9712_v63 = vmul.f32 %v14126_v8, %v14125_v25  ;;  %v14128_v36 = vld [vmem:[#allocation123_spill] sm:$0xff]  ;;  %v3678_v59 = vadd.f32 %v3670_v51, %v3660_v33  ;;  %v14130_v2 = vld [vmem:[#allocation124_spill] sm:$0xff] }
 0x28d   :  { %14120 = vst [vmem:[#allocation151_spill] sm:$0xff] %v9700_v40  ;;  %14123 = vst [vmem:[#allocation150_spill] sm:$0xff] %v9704_v54  ;;  %v9716_v29 = vmul.f32 %v14128_v36, %v14127_v18  ;;  %v14129_v40 = vld [vmem:[#allocation66_spill] sm:$0xff]  ;;  %v14132_v54 = vld [vmem:[#allocation189_spill] sm:$0xff]  ;;  %v3409_v10 = vmul.f32 %v14055_v58, %v14013_v0  ;;  %v3695_v5 = vadd.f32 %v3687_v12, %v3677_v26 }
 0x28e   :  { %v9720_v34 = vmul.f32 %v14130_v2, %v14129_v40  ;;  %v9724_v27 = vmul.f32 %v14132_v54, %v14131_v45  ;;  %v1499_v30 = vadd.f32 %v1491_v49, %v1481_v52  ;;  %v14133_v1 = vld [vmem:[#allocation126_spill] sm:$0xff]  ;;  %v14134_v8 = vld [vmem:[#allocation127_spill] sm:$0xff]  ;;  %v3696_v51 = vadd.f32 %v3688_v9, %v3678_v59 }
 0x28f   :  { %v3419_v38 = vmul.f32 %v14133_v1, %v14090_v55  ;;  %v3437_v36 = vmul.f32 %v14134_v8, %v14092_v35  ;;  %v3455_v2 = vmul.f32 %v9005_v14, %v14095_v53  ;;  %v3473_v33 = vmul.f32 %v9023_v50, %v14099_v6 }
 0x290   :  { %v3491_v54 = vmul.f32 %v9042_v56, %v14062_v15  ;;  %v3713_v58 = vadd.f32 %v9631_v46, %v3695_v5  ;;  %v1517_v49 = vadd.f32 %v1509_v44, %v1499_v30  ;;  %v3509_v9 = vmul.f32 %v9045_v42, %v14102_v24  ;;  %v14138_v30 = vld [vmem:[#allocation146_spill] sm:$0xff] }
 0x291   :  { %v3427_v12 = vadd.f32 %v3419_v38, %v3409_v10  ;;  %v3714_v26 = vadd.f32 %v9636_v11, %v3696_v51  ;;  %v3527_v14 = vmul.f32 %v9048_v47, %v14104_v23  ;;  %v3545_v50 = vmul.f32 %v9075_v4, %v14106_v43  ;;  %v14135_v11 = vld [vmem:[#allocation155_spill] sm:$0xff] }
 0x292   :  { %v9752_v56 = vmul.f32 %v14061_v60, %v14108_v16  ;;  %v3731_v52 = vadd.f32 %v9640_v48, %v3713_v58  ;;  %v1535_v46 = vadd.f32 %v1527_v39, %v1517_v49  ;;  %v9757_v59 = vmul.f32 %v14064_v3, %v14076_v32  ;;  %v14157_v43 = vld [vmem:[#allocation75_spill] sm:$0xff] }
 0x293   :  { %v3445_v44 = vadd.f32 %v3437_v36, %v3427_v12  ;;  %v3732_v42 = vadd.f32 %v9644_v20, %v3714_v26  ;;  %v9762_v47 = vmul.f32 %v14067_v62, %v14112_v41  ;;  %v9766_v4 = vmul.f32 %v14070_v17, %v14115_v22  ;;  %v14136_v17 = vld [vmem:[#allocation144_spill] sm:$0xff]  ;;  %v14154_v22 = vld [vmem:[#allocation137_spill] sm:$0xff] }
 0x294   :  { %v9770_v60 = vmul.f32 %v14073_v19, %v14118_v57  ;;  %v3749_v48 = vadd.f32 %v9648_v13, %v3731_v52  ;;  %v1553_v3 = vadd.f32 %v1545_v61, %v1535_v46  ;;  %v9777_v62 = vmul.f32 %v14075_v37, %v14121_v21  ;;  %v14137_v19 = vld [vmem:[#allocation145_spill] sm:$0xff]  ;;  %v14140_v37 = vld [vmem:[#allocation147_spill] sm:$0xff] }
 0x295   :  { %v3463_v20 = vadd.f32 %v3455_v2, %v3445_v44  ;;  %v3750_v39 = vadd.f32 %v14135_v11, %v3732_v42  ;;  %v9782_v10 = vmul.f32 %v14136_v17, %v14054_v7  ;;  %v9786_v5 = vmul.f32 %v14137_v19, %v14125_v25  ;;  %v14139_v13 = vld [vmem:[#allocation149_spill] sm:$0xff]  ;;  %v14141_v2 = vld [vmem:[#allocation148_spill] sm:$0xff] }
 0x296   :  { %v9790_v1 = vmul.f32 %v14138_v30, %v14127_v18  ;;  %v3759_v61 = vadd.f32 %v14139_v13, %v3749_v48  ;;  %v1571_v38 = vadd.f32 %v1563_v31, %v1553_v3  ;;  %v9795_v36 = vmul.f32 %v14140_v37, %v14129_v40  ;;  %v14145_v42 = vld [vmem:[#allocation37_spill] sm:$0xff]  ;;  %v14146_v3 = vld [vmem:[#allocation38_spill] sm:$0xff]  ;;  %v14148_v19 = vld [vmem:[#allocation128_spill] sm:$0xff] }
 0x297   :  { %v3481_v8 = vadd.f32 %v3473_v33, %v3463_v20  ;;  %v9798_v51 = vadd.f32 %v14139_v13, %v3750_v39  ;;  %v9802_v58 = vmul.f32 %v14141_v2, %v14131_v45  ;;  %v9805_v49 = vstv %s9738_s5  ;;  %v14144_v33 = vld [vmem:[#allocation130_spill] sm:$0xff]  ;;  %v14147_v11 = vld [vmem:[#allocation69_spill] sm:$0xff]  ;;  %v14150_v37 = vld [vmem:[#allocation72_spill] sm:$0xff]  ;;  %s10122_s5 = sld [smem:[#allocation9 + $0x7e]] }
 0x298   :  { %14142 = vst [vmem:[#allocation131_spill] sm:$0xff] %v9805_v49  ;;  %v9808_v12 = vstv %s9740_s23  ;;  %v3767_v31 = vmax.f32 %v3759_v61, 0.0  ;;  %v1589_v26 = vadd.f32 %v14144_v33, %v1571_v38  ;;  %v1902_v46 = vmul.f32 %v9805_v49, %v14099_v6  ;;  %v14149_v38 = vld [vmem:[#allocation71_spill] sm:$0xff]  ;;  %v14152_v18 = vld [vmem:[#allocation160_spill] sm:$0xff]  ;;  %s10131_s23 = sld [smem:[#allocation9 + $0x7f]] }
 0x299   :  { %14143 = vst [vmem:[#allocation133_spill] sm:$0xff] %v9808_v12  ;;  %v3499_v52 = vadd.f32 %v3491_v54, %v3481_v8  ;;  %v12825_v44 = vmax.f32 %v9798_v51, 0.0  ;;  %v1903_v48 = vmul.f32 %v9805_v49, %v14145_v42  ;;  %v1904_v20 = vmul.f32 %v9805_v49, %v14146_v3 }
 0x29a   :  { %v1912_v39 = vmul.f32 %v9808_v12, %v14147_v11  ;;  %v3775_v17 = vrot.slane %v3767_v31, 2  ;;  %v1607_v30 = vadd.f32 %v14148_v19, %v1589_v26  ;;  %v1913_v54 = vmul.f32 %v9808_v12, %v14149_v38 }
 0x29b   :  { %v3517_v61 = vadd.f32 %v3509_v9, %v3499_v52  ;;  %v9829_v8 = vrot.slane %v12825_v44, 2  ;;  %v1914_v2 = vmul.f32 %v9808_v12, %v14150_v37  ;;  %v9834_v40 = vstv %s9772_s24  ;;  %s10144_s24 = sld [smem:[#allocation9 + $0x80]] }
 0x29c   :  { %v1920_v33 = vadd.f32 %v1912_v39, %v1902_v46  ;;  %14151 = vst [vmem:[#allocation154_spill] sm:$0xff] %v9834_v40  ;;  %v3780_v57 = vsel %vm144_vm1, %v14152_v18, %v3775_v17  ;;  %v1625_v9 = vadd.f32 %v14154_v22, %v1607_v30  ;;  %v1921_v52 = vadd.f32 %v1913_v54, %v1903_v48  ;;  %v14155_v39 = vld [vmem:[#allocation132_spill] sm:$0xff]  ;;  %v14158_v22 = vld [vmem:[#allocation151_spill] sm:$0xff]  ;;  %v14160_v54 = vld [vmem:[#allocation77_spill] sm:$0xff] }
 0x29d   :  { %v3535_v26 = vadd.f32 %v3527_v14, %v3517_v61  ;;  %v3779_v46 = vsel %vm144_vm1, %v3775_v17, %v9829_v8  ;;  %v14156_v19 = vmax.f32 %v14155_v39, 0.0  ;;  %v1922_v41 = vadd.f32 %v1914_v2, %v1904_v20  ;;  %v14159_v48 = vld [vmem:[#allocation80_spill] sm:$0xff]  ;;  %v14163_v20 = vld [vmem:[#allocation150_spill] sm:$0xff] }
 0x29e   :  { %v1930_v18 = vmul.f32 %v9834_v40, %v14157_v43  ;;  %v3791_v23 = vmax.f32 %v3767_v31, %v3779_v46  ;;  %v1643_v30 = vadd.f32 %v14158_v22, %v1625_v9  ;;  %v1931_v61 = vmul.f32 %v9834_v40, %v14159_v48  ;;  %v14164_v9 = vld [vmem:[#allocation84_spill] sm:$0xff]  ;;  %v14165_v46 = vld [vmem:[#allocation83_spill] sm:$0xff] }
 0x29f   :  { %v3790_v44 = vmax.f32 %v14156_v19, %v3780_v57  ;;  %v3553_v14 = vadd.f32 %v3545_v50, %v3535_v26  ;;  %v1932_v24 = vmul.f32 %v9834_v40, %v14160_v54  ;;  %v9857_v35 = vstv %s9810_s30  ;;  %s10146_s30 = sld [smem:[#allocation9 + $0x81]] }
 0x2a0   :  { %v1938_v53 = vadd.f32 %v1930_v18, %v1920_v33  ;;  %14161 = vst [vmem:[#allocation141_spill] sm:$0xff] %v9857_v35  ;;  %v9860_v17 = vstv %s9812_s10  ;;  %v1661_v2 = vadd.f32 %v14163_v20, %v1643_v30  ;;  %v1939_v31 = vadd.f32 %v1931_v61, %v1921_v52  ;;  %v14166_v33 = vld [vmem:[#allocation82_spill] sm:$0xff]  ;;  %v14167_v30 = vld [vmem:[#allocation39_spill] sm:$0xff]  ;;  %s10165_s10 = sld [smem:[#allocation9 + $0x82]] }
 0x2a1   :  { %14162 = vst [vmem:[#allocation142_spill] sm:$0xff] %v9860_v17  ;;  %v5602_v57 = vpack.c.bf16 %v3791_v23, %v3790_v44  ;;  %v3571_v39 = vadd.f32 %v9752_v56, %v3553_v14  ;;  %v1940_v50 = vadd.f32 %v1932_v24, %v1922_v41  ;;  %v1948_v26 = vmul.f32 %v9857_v35, %v14164_v9 }
 0x2a2   :  { %v1949_v19 = vmul.f32 %v9857_v35, %v14165_v46  ;;  %v1950_v18 = vmul.f32 %v9857_v35, %v14166_v33  ;;  %v1679_v23 = vadd.f32 %v9708_v28, %v1661_v2  ;;  %v1966_v41 = vmul.f32 %v9860_v17, %v14145_v42  ;;  %v14195_v35 = vld [vmem:[#allocation95_spill] sm:$0xff] }
 0x2a3   :  { %5603 = vmatprep.subr.bf16.mxu0 %v5602_v57  ;;  %v3589_v24 = vadd.f32 %v9757_v59, %v3571_v39  ;;  %v1967_v56 = vmul.f32 %v9860_v17, %v14146_v3  ;;  %v1956_v44 = vadd.f32 %v1948_v26, %v1938_v53  ;;  %v1968_v14 = vmul.f32 %v9860_v17, %v14167_v30  ;;  %v14188_v17 = vld [vmem:[#allocation63_spill] sm:$0xff] }
 0x2a4   :  { %5605 = vmatpush3.bf16.msra.mxu0 %v5602_v57  ;;  %v1957_v52 = vadd.f32 %v1949_v19, %v1939_v31  ;;  %v1958_v22 = vadd.f32 %v1950_v18, %v1940_v50  ;;  %v1697_v61 = vadd.f32 %v9712_v63, %v1679_v23  ;;  %v9887_v28 = vstv %s9840_s11  ;;  %v14170_v63 = vld [vmem:[#allocation49_spill] sm:$0xff]  ;;  %v14171_v50 = vld [vmem:[#allocation50_spill] sm:$0xff]  ;;  %s10167_s11 = sld [smem:[#allocation9 + $0x83]] }
 0x2a5   :  { %v3607_v20 = vadd.f32 %v9762_v47, %v3589_v24  ;;  %14168 = vst [vmem:[#allocation143_spill] sm:$0xff] %v9887_v28  ;;  %v9890_v59 = vstv %s9842_s12  ;;  %v1974_v2 = vadd.f32 %v1966_v41, %v1956_v44  ;;  %v1984_v53 = vmul.f32 %v9887_v28, %v14108_v16  ;;  %v14172_v18 = vld [vmem:[#allocation86_spill] sm:$0xff]  ;;  %v14173_v24 = vld [vmem:[#allocation85_spill] sm:$0xff]  ;;  %s10185_s12 = sld [smem:[#allocation9 + $0x84]] }
 0x2a6   :  { %14169 = vst [vmem:[#allocation46_spill] sm:$0xff] %v9890_v59  ;;  %v1975_v39 = vadd.f32 %v1967_v56, %v1957_v52  ;;  %v1976_v55 = vadd.f32 %v1968_v14, %v1958_v22  ;;  %v1715_v57 = vadd.f32 %v9716_v29, %v1697_v61  ;;  %v1985_v47 = vmul.f32 %v9887_v28, %v14170_v63  ;;  %v14174_v56 = vld [vmem:[#allocation87_spill] sm:$0xff] }
 0x2a7   :  { %v3625_v31 = vadd.f32 %v9766_v4, %v3607_v20  ;;  %v1986_v26 = vmul.f32 %v9887_v28, %v14171_v50  ;;  %v1992_v19 = vadd.f32 %v1984_v53, %v1974_v2  ;;  %v2002_v23 = vmul.f32 %v9890_v59, %v14172_v18 }
 0x2a8   :  { %v2003_v41 = vmul.f32 %v9890_v59, %v14173_v24  ;;  %v2004_v44 = vmul.f32 %v9890_v59, %v14174_v56  ;;  %v1733_v29 = vadd.f32 %v9720_v34, %v1715_v57  ;;  %v1993_v52 = vadd.f32 %v1985_v47, %v1975_v39  ;;  %v14178_v34 = vld [vmem:[#allocation88_spill] sm:$0xff]  ;;  %v14179_v39 = vld [vmem:[#allocation90_spill] sm:$0xff]  ;;  %v14180_v57 = vld [vmem:[#allocation89_spill] sm:$0xff] }
 0x2a9   :  { %v3643_v4 = vadd.f32 %v9770_v60, %v3625_v31  ;;  %v1994_v22 = vadd.f32 %v1986_v26, %v1976_v55  ;;  %v2010_v14 = vadd.f32 %v2002_v23, %v1992_v19  ;;  %v9911_v61 = vstv %s9864_s13  ;;  %v14181_v47 = vld [vmem:[#allocation93_spill] sm:$0xff]  ;;  %v14183_v23 = vld [vmem:[#allocation92_spill] sm:$0xff]  ;;  %s10199_s13 = sld [smem:[#allocation9 + $0x85]] }
 0x2aa   :  { %14175 = vst [vmem:[#allocation33_spill] sm:$0xff] %v9911_v61  ;;  %v9914_v20 = vstv %s9872_s0  ;;  %v9917_v2 = vstv %s9874_s1  ;;  %v1751_v53 = vadd.f32 %v9724_v27, %v1733_v29  ;;  %v2011_v32 = vadd.f32 %v2003_v41, %v1993_v52  ;;  %v14182_v19 = vld [vmem:[#allocation125_spill] sm:$0xff]  ;;  %s10201_s0 = sld [smem:[#allocation9 + $0x86]]  ;;  %s10221_s1 = sld [smem:[#allocation9 + $0x87]] }
 0x2ab   :  { %14176 = vst [vmem:[#allocation162_spill] sm:$0xff] %v9914_v20  ;;  %14177 = vst [vmem:[#allocation153_spill] sm:$0xff] %v9917_v2  ;;  %v3661_v7 = vadd.f32 %v9777_v62, %v3643_v4  ;;  %v2012_v15 = vadd.f32 %v2004_v44, %v1994_v22  ;;  %v2020_v60 = vmul.f32 %v9911_v61, %v14178_v34  ;;  %v14184_v44 = vld [vmem:[#allocation91_spill] sm:$0xff] }
 0x2ac   :  { %v2021_v55 = vmul.f32 %v9911_v61, %v14179_v39  ;;  %v2022_v31 = vmul.f32 %v9911_v61, %v14180_v57  ;;  %v2038_v26 = vmul.f32 %v9914_v20, %v14181_v47  ;;  %v1761_v27 = vadd.f32 %v14182_v19, %v1751_v53  ;;  %v14185_v19 = vld [vmem:[#allocation51_spill] sm:$0xff] }
 0x2ad   :  { %v3679_v62 = vadd.f32 %v9782_v10, %v3661_v7  ;;  %v2039_v41 = vmul.f32 %v9914_v20, %v14183_v23  ;;  %v2040_v29 = vmul.f32 %v9914_v20, %v14184_v44  ;;  %v2028_v4 = vadd.f32 %v2020_v60, %v2010_v14 }
 0x2ae   :  { %v2029_v52 = vadd.f32 %v2021_v55, %v2011_v32  ;;  %v2030_v22 = vadd.f32 %v2022_v31, %v2012_v15  ;;  %v2056_v0 = vmul.f32 %v9917_v2, %v14170_v63  ;;  %v1769_v53 = vmax.f32 %v1761_v27, 0.0  ;;  %v14187_v27 = vld [vmem:[#allocation62_spill] sm:$0xff] }
 0x2af   :  { %v3697_v7 = vadd.f32 %v9786_v5, %v3679_v62  ;;  %v2057_v10 = vmul.f32 %v9917_v2, %v14171_v50  ;;  %v2058_v61 = vmul.f32 %v9917_v2, %v14185_v19  ;;  %v2046_v20 = vadd.f32 %v2038_v26, %v2028_v4  ;;  %v14194_v2 = vld [vmem:[#allocation94_spill] sm:$0xff] }
 0x2b0   :  { %v2047_v14 = vadd.f32 %v2039_v41, %v2029_v52  ;;  %v2048_v15 = vadd.f32 %v2040_v29, %v2030_v22  ;;  %v9949_v32 = vstv %s9906_s3  ;;  %v1777_v60 = vrot.slane %v1769_v53, 2  ;;  %v14189_v41 = vld [vmem:[#allocation67_spill] sm:$0xff]  ;;  %v14190_v29 = vld [vmem:[#allocation129_spill] sm:$0xff]  ;;  %s10223_s3 = sld [smem:[#allocation9 + $0x88]] }
 0x2b1   :  { %14186 = vst [vmem:[#allocation59_spill] sm:$0xff] %v9949_v32  ;;  %v3715_v55 = vadd.f32 %v9790_v1, %v3697_v7  ;;  %v2074_v31 = vmul.f32 %v9949_v32, %v14121_v21  ;;  %v2075_v5 = vmul.f32 %v9949_v32, %v14187_v27  ;;  %v2064_v62 = vadd.f32 %v2056_v0, %v2046_v20  ;;  %v14192_v20 = vld [vmem:[#allocation138_spill] sm:$0xff] }
 0x2b2   :  { %v2065_v59 = vadd.f32 %v2057_v10, %v2047_v14  ;;  %v2066_v28 = vadd.f32 %v2058_v61, %v2048_v15  ;;  %v2076_v26 = vmul.f32 %v9949_v32, %v14188_v17  ;;  %v1778_v1 = vsel %vm144_vm1, %v14189_v41, %v1777_v60 }
 0x2b3   :  { %v1785_v4 = vsel %vm144_vm1, %v1777_v60, %v14190_v29  ;;  %v3733_v0 = vadd.f32 %v9795_v36, %v3715_v55  ;;  %v9970_v61 = vstv %s9921_s14  ;;  %v14193_v52 = vmax.f32 %v14192_v20, 0.0  ;;  %v14196_v29 = vld [vmem:[#allocation96_spill] sm:$0xff]  ;;  %s10240_s14 = sld [smem:[#allocation9 + $0x89]] }
 0x2b4   :  { %14191 = vst [vmem:[#allocation192_spill] sm:$0xff] %v9970_v61  ;;  %v1793_v7 = vmax.f32 %v1769_v53, %v1785_v4  ;;  %v2082_v10 = vadd.f32 %v2074_v31, %v2064_v62  ;;  %v2083_v14 = vadd.f32 %v2075_v5, %v2065_v59  ;;  %v2084_v32 = vadd.f32 %v2076_v26, %v2066_v28  ;;  %v14200_v62 = vld [vmem:[#allocation99_spill] sm:$0xff] }
 0x2b5   :  { %v1792_v22 = vmax.f32 %v14193_v52, %v1778_v1  ;;  %v3751_v15 = vadd.f32 %v9802_v58, %v3733_v0  ;;  %v2092_v41 = vmul.f32 %v9970_v61, %v14194_v2  ;;  %v2093_v40 = vmul.f32 %v9970_v61, %v14195_v35  ;;  %v14199_v58 = vld [vmem:[#allocation97_spill] sm:$0xff]  ;;  %v14201_v1 = vld [vmem:[#allocation98_spill] sm:$0xff] }
 0x2b6   :  { %v2094_v36 = vmul.f32 %v9970_v61, %v14196_v29  ;;  %v9982_v55 = vstv %s9939_s15  ;;  %v9985_v20 = vstv %s9941_s16  ;;  %v10008_v61 = vstv %s9960_s18  ;;  %s10254_s15 = sld [smem:[#allocation9 + $0x8a]]  ;;  %s10256_s16 = sld [smem:[#allocation9 + $0x8b]] }
 0x2b7   :  { %v5542_v60 = vpack.c.bf16 %v1793_v7, %v1792_v22  ;;  %14197 = vst [vmem:[#allocation156_spill] sm:$0xff] %v9982_v55  ;;  %14198 = vst [vmem:[#allocation161_spill] sm:$0xff] %v9985_v20  ;;  %v3761_v53 = vadd.f32 %v14139_v13, %v3751_v15  ;;  %v2100_v59 = vadd.f32 %v2092_v41, %v2082_v10  ;;  %v14202_v13 = vld [vmem:[#allocation101_spill] sm:$0xff]  ;;  %v14203_v22 = vld [vmem:[#allocation100_spill] sm:$0xff]  ;;  %s10855_s18 = sld [smem:[#allocation9 + $0x3c]] }
 0x2b8   :  { %v2101_v31 = vadd.f32 %v2093_v40, %v2083_v14  ;;  %v2110_v28 = vmul.f32 %v9982_v55, %v14199_v58  ;;  %v2102_v5 = vadd.f32 %v2094_v36, %v2084_v32  ;;  %v2111_v26 = vmul.f32 %v9982_v55, %v14200_v62  ;;  %v14204_v10 = vld [vmem:[#allocation102_spill] sm:$0xff]  ;;  %v1796_v15 = vld [vmem:[#allocation12 + $0x28] sm:$0xff]  ;;  %14206 = vst [vmem:[#allocation111_spill] sm:$0xff] %v10008_v61 }
 0x2b9   :  { %5543 = vmatprep.subr.bf16.mxu1 %v5542_v60  ;;  %v2112_v4 = vmul.f32 %v9982_v55, %v14201_v1  ;;  %v2128_v40 = vmul.f32 %v9985_v20, %v14202_v13  ;;  %v3769_v0 = vmax.f32 %v3761_v53, 0.0  ;;  %v2129_v7 = vmul.f32 %v9985_v20, %v14203_v22 }
 0x2ba   :  { %5545 = vmatpush3.bf16.msra.mxu1 %v5542_v60  ;;  %v2118_v52 = vadd.f32 %v2110_v28, %v2100_v59  ;;  %v2130_v14 = vmul.f32 %v9985_v20, %v14204_v10  ;;  %v2119_v32 = vadd.f32 %v2111_v26, %v2101_v31  ;;  %v10005_v36 = vstv %s9958_s17  ;;  %v14207_v20 = vld [vmem:[#allocation64_spill] sm:$0xff]  ;;  %s10277_s17 = sld [smem:[#allocation10 + $0x6]] }
 0x2bb   :  { %v2120_v41 = vadd.f32 %v2112_v4, %v2102_v5  ;;  %14205 = vst [vmem:[#allocation110_spill] sm:$0xff] %v10005_v36  ;;  %v3777_v55 = vrot.slane %v3769_v0, 2  ;;  %v2146_v60 = vmul.f32 %v10005_v36, %v14187_v27  ;;  %v2147_v53 = vmul.f32 %v10005_v36, %v14188_v17  ;;  %v14208_v4 = vld [vmem:[#allocation152_spill] sm:$0xff] }
 0x2bc   :  { %v2136_v12 = vadd.f32 %v2128_v40, %v2118_v52  ;;  %v2137_v59 = vadd.f32 %v2129_v7, %v2119_v32  ;;  %v2148_v31 = vmul.f32 %v10005_v36, %v14207_v20  ;;  %v2164_v5 = vmul.f32 %v10008_v61, %v14131_v45  ;;  %v14209_v7 = vld [vmem:[#allocation78_spill] sm:$0xff] }
 0x2bd   :  { %v2138_v28 = vadd.f32 %v2130_v14, %v2120_v41  ;;  %5366 = vmatmul.mubr.msk.f32.vlgmr.msra.gmra.mrb[0].mxu1 %vm1278_vm5, %v1796_v15  ;;  %v3778_v26 = vsel %vm144_vm1, %v9829_v8, %v3777_v55  ;;  %v3785_v40 = vsel %vm144_vm1, %v3777_v55, %v14208_v4  ;;  %v2165_v14 = vmul.f32 %v10008_v61, %v14209_v7  ;;  %v14211_v15 = vld [vmem:[#allocation79_spill] sm:$0xff]  ;;  %v14217_v4 = vld [vmem:[#allocation106_spill] sm:$0xff] }
 0x2be   :  { %v2154_v52 = vadd.f32 %v2146_v60, %v2136_v12  ;;  %v14210_v32 = vmax.f32 %v9798_v51, 0.0  ;;  %v3793_v36 = vmax.f32 %v3769_v0, %v3785_v40  ;;  %v2155_v49 = vadd.f32 %v2147_v53, %v2137_v59  ;;  %v14214_v51 = vld [vmem:[#allocation104_spill] sm:$0xff]  ;;  %v14215_v53 = vld [vmem:[#allocation103_spill] sm:$0xff] }
 0x2bf   :  { %v2156_v45 = vadd.f32 %v2148_v31, %v2138_v28  ;;  %v2166_v8 = vmul.f32 %v10008_v61, %v14211_v15  ;;  %v10042_v10 = vstv %s9990_s19  ;;  %v10045_v12 = vstv %s9992_s2  ;;  %v14216_v31 = vld [vmem:[#allocation105_spill] sm:$0xff]  ;;  %v14218_v40 = vld [vmem:[#allocation108_spill] sm:$0xff]  ;;  %v14222_v61 = vld [vmem:[#allocation114_spill] sm:$0xff]  ;;  %s10863_s19 = sld [smem:[#allocation9 + $0x3d]]  ;;  %s10865_s2 = sld [smem:[#allocation9 + $0x3e]] }
 0x2c0   :  { %v3792_v41 = vmax.f32 %v14210_v32, %v3778_v26  ;;  %v2172_v20 = vadd.f32 %v2164_v5, %v2154_v52  ;;  %14212 = vst [vmem:[#allocation112_spill] sm:$0xff] %v10042_v10  ;;  %14213 = vst [vmem:[#allocation115_spill] sm:$0xff] %v10045_v12  ;;  %v2173_v60 = vadd.f32 %v2165_v14, %v2155_v49  ;;  %v14219_v14 = vld [vmem:[#allocation107_spill] sm:$0xff]  ;;  %v10064_v32 = vstv %s10010_s20  ;;  %s10932_s20 = sld [smem:[#allocation9 + $0x3f]] }
 0x2c1   :  { %v2182_v0 = vmul.f32 %v10042_v10, %v14214_v51  ;;  %v2183_v59 = vmul.f32 %v10042_v10, %v14215_v53  ;;  %v2174_v28 = vadd.f32 %v2166_v8, %v2156_v45  ;;  %v2184_v26 = vmul.f32 %v10042_v10, %v14216_v31  ;;  %14220 = vst [vmem:[#allocation116_spill] sm:$0xff] %v10064_v32  ;;  %v14221_v8 = vld [vmem:[#allocation109_spill] sm:$0xff] }
 0x2c2   :  { %v5606_v55 = vpack.c.bf16 %v3793_v36, %v3792_v41  ;;  %v2200_v5 = vmul.f32 %v10045_v12, %v14217_v4  ;;  %v2201_v52 = vmul.f32 %v10045_v12, %v14218_v40  ;;  %v2202_v45 = vmul.f32 %v10045_v12, %v14219_v14  ;;  %v14223_v4 = vld [vmem:[#allocation113_spill] sm:$0xff] }
 0x2c3   :  { %v2190_v49 = vadd.f32 %v2182_v0, %v2172_v20  ;;  %v2191_v36 = vadd.f32 %v2183_v59, %v2173_v60  ;;  %v2192_v41 = vadd.f32 %v2184_v26, %v2174_v28  ;;  %v2218_v10 = vmul.f32 %v10064_v32, %v14221_v8  ;;  %v3796_v20 = vld [vmem:[#allocation12 + $0xa8] sm:$0xff] }
 0x2c4   :  { %5607 = vmatprep.subr.bf16.mxu0 %v5606_v55  ;;  %v2219_v40 = vmul.f32 %v10064_v32, %v14222_v61  ;;  %v2220_v31 = vmul.f32 %v10064_v32, %v14223_v4  ;;  %v10073_v59 = vstv %s10020_s21  ;;  %v10076_v12 = vstv %s10022_s22  ;;  %v14226_v8 = vld [vmem:[#allocation81_spill] sm:$0xff]  ;;  %s10934_s21 = sld [smem:[#allocation9 + $0x40]]  ;;  %s10957_s22 = sld [smem:[#allocation9 + $0x41]] }
 0x2c5   :  { %5609 = vmatpush3.bf16.msra.mxu0 %v5606_v55  ;;  %v2208_v60 = vadd.f32 %v2200_v5, %v2190_v49  ;;  %v2209_v0 = vadd.f32 %v2201_v52, %v2191_v36  ;;  %14224 = vst [vmem:[#allocation117_spill] sm:$0xff] %v10073_v59  ;;  %14225 = vst [vmem:[#allocation118_spill] sm:$0xff] %v10076_v12  ;;  %v2210_v55 = vadd.f32 %v2202_v45, %v2192_v41 }
 0x2c6   :  { %v2236_v28 = vmul.f32 %v10073_v59, %v14209_v7  ;;  %v2237_v26 = vmul.f32 %v10073_v59, %v14211_v15  ;;  %v2238_v61 = vmul.f32 %v10073_v59, %v14226_v8  ;;  %v10085_v5 = vstv %s10035_s25  ;;  %s10973_s25 = sld [smem:[#allocation9 + $0x42]] }
 0x2c7   :  { %v2226_v14 = vadd.f32 %v2218_v10, %v2208_v60  ;;  %v2227_v32 = vadd.f32 %v2219_v40, %v2209_v0  ;;  %14227 = vst [vmem:[#allocation119_spill] sm:$0xff] %v10085_v5  ;;  %v10088_v52 = vstv %s10037_s4  ;;  %v2228_v49 = vadd.f32 %v2220_v31, %v2210_v55  ;;  %v14302_v25 = vld [vmem:[#allocation115_spill] sm:$0xff]  ;;  %s10975_s4 = sld [smem:[#allocation9 + $0x43]] }
 0x2c8   :  { %14228 = vst [vmem:[#allocation120_spill] sm:$0xff] %v10088_v52  ;;  %5454 = vmatmul.mubr.msk.f32.vlgmr.msra.gmra.mrb[0].mxu0 %vm1278_vm5, %v3796_v20  ;;  %v3902_v36 = vmul.f32 %v10085_v5, %v14099_v6  ;;  %v3903_v45 = vmul.f32 %v10085_v5, %v14145_v42  ;;  %v3904_v41 = vmul.f32 %v10085_v5, %v14146_v3  ;;  %v10106_v55 = vstv %s10057_s26  ;;  %s10998_s26 = sld [smem:[#allocation9 + $0x44]] }
 0x2c9   :  { %v2244_v10 = vadd.f32 %v2236_v28, %v2226_v14  ;;  %v2245_v40 = vadd.f32 %v2237_v26, %v2227_v32  ;;  %v3912_v60 = vmul.f32 %v10088_v52, %v14147_v11  ;;  %v3913_v20 = vmul.f32 %v10088_v52, %v14149_v38  ;;  %14229 = vst [vmem:[#allocation121_spill] sm:$0xff] %v10106_v55 }
 0x2ca   :  { %v2246_v31 = vadd.f32 %v2238_v61, %v2228_v49  ;;  %v3914_v0 = vmul.f32 %v10088_v52, %v14150_v37  ;;  %v10109_v6 = vstv %s10059_s27  ;;  %v3930_v61 = vmul.f32 %v10106_v55, %v14157_v43  ;;  %v14261_v43 = vld [vmem:[#allocation165_spill] sm:$0xff]  ;;  %s11012_s27 = sld [smem:[#allocation9 + $0x45]] }
 0x2cb   :  { %v2254_v5 = vadd.f32 %v10076_v12, %v2244_v10  ;;  %v2255_v14 = vadd.f32 %v10076_v12, %v2245_v40  ;;  %v3920_v32 = vadd.f32 %v3912_v60, %v3902_v36  ;;  %v3921_v28 = vadd.f32 %v3913_v20, %v3903_v45 }
 0x2cc   :  { %v10116_v26 = vadd.f32 %v10076_v12, %v2246_v31  ;;  %v3922_v38 = vadd.f32 %v3914_v0, %v3904_v41  ;;  %v3931_v49 = vmul.f32 %v10106_v55, %v14159_v48  ;;  %v3932_v10 = vmul.f32 %v10106_v55, %v14160_v54  ;;  %v14258_v54 = vld [vmem:[#allocation60_spill] sm:$0xff] }
 0x2cd   :  { %v2262_v37 = vmax.f32 %v2254_v5, 0.0  ;;  %v2263_v11 = vmax.f32 %v2255_v14, 0.0  ;;  %v3948_v36 = vmul.f32 %v10109_v6, %v14164_v9  ;;  %v3938_v41 = vadd.f32 %v3930_v61, %v3920_v32 }
 0x2ce   :  { %14230 = vst [vmem:[#allocation122_spill] sm:$0xff] %v10116_v26  ;;  %v12883_v45 = vmax.f32 %v10116_v26, 0.0  ;;  %v3939_v40 = vadd.f32 %v3931_v49, %v3921_v28  ;;  %v3949_v60 = vmul.f32 %v10109_v6, %v14165_v46  ;;  %v3940_v31 = vadd.f32 %v3932_v10, %v3922_v38  ;;  %v14264_v26 = vld [vmem:[#allocation168_spill] sm:$0xff] }
 0x2cf   :  { %v10133_v20 = vrot.slane %v2262_v37, 2  ;;  %v2271_v5 = vrot.slane %v2263_v11, 2  ;;  %v3950_v0 = vmul.f32 %v10109_v6, %v14166_v33  ;;  %v3956_v9 = vadd.f32 %v3948_v36, %v3938_v41 }
 0x2d0   :  { %v10139_v14 = vrot.slane %v12883_v45, 2  ;;  %v3957_v32 = vadd.f32 %v3949_v60, %v3939_v40  ;;  %v10142_v28 = vstv %s10097_s28  ;;  %v10161_v60 = vstv %s10111_s29  ;;  %s11014_s28 = sld [smem:[#allocation9 + $0x46]]  ;;  %s11038_s29 = sld [smem:[#allocation9 + $0x47]] }
 0x2d1   :  { %14231 = vst [vmem:[#allocation123_spill] sm:$0xff] %v10133_v20  ;;  %v2284_v61 = vsel %vm144_vm1, %v10133_v20, %v2271_v5  ;;  %v3958_v38 = vadd.f32 %v3950_v0, %v3940_v31  ;;  %v3966_v49 = vmul.f32 %v10142_v28, %v14145_v42  ;;  %v3967_v10 = vmul.f32 %v10142_v28, %v14146_v3 }
 0x2d2   :  { %14232 = vst [vmem:[#allocation124_spill] sm:$0xff] %v10139_v14  ;;  %v2283_v36 = vsel %vm144_vm1, %v2271_v5, %v10139_v14  ;;  %v2286_v41 = vmax.f32 %v2262_v37, %v2284_v61  ;;  %v3968_v40 = vmul.f32 %v10142_v28, %v14167_v30  ;;  %v3984_v0 = vmul.f32 %v10161_v60, %v14108_v16 }
 0x2d3   :  { %v2287_v45 = vmax.f32 %v2263_v11, %v2283_v36  ;;  %v3974_v20 = vadd.f32 %v3966_v49, %v3956_v9  ;;  %v3975_v31 = vadd.f32 %v3967_v10, %v3957_v32  ;;  %v3985_v37 = vmul.f32 %v10161_v60, %v14170_v63 }
 0x2d4   :  { %v3976_v33 = vadd.f32 %v3968_v40, %v3958_v38  ;;  %v3986_v5 = vmul.f32 %v10161_v60, %v14171_v50  ;;  %v10174_v61 = vstv %s10122_s5  ;;  %v10183_v40 = vstv %s10131_s23  ;;  %s11059_s5 = sld [smem:[#allocation9 + $0x48]]  ;;  %s11061_s23 = sld [smem:[#allocation9 + $0x49]] }
 0x2d5   :  { %v5546_v11 = vpack.c.bf16 %v2287_v45, %v2286_v41  ;;  %v3992_v9 = vadd.f32 %v3984_v0, %v3974_v20  ;;  %v4002_v32 = vmul.f32 %v10174_v61, %v14172_v18  ;;  %v4003_v49 = vmul.f32 %v10174_v61, %v14173_v24  ;;  %v14246_v24 = vld [vmem:[#allocation106_spill] sm:$0xff] }
 0x2d6   :  { %v3993_v10 = vadd.f32 %v3985_v37, %v3975_v31  ;;  %v3994_v38 = vadd.f32 %v3986_v5, %v3976_v33  ;;  %v4004_v36 = vmul.f32 %v10174_v61, %v14174_v56  ;;  %v4020_v20 = vmul.f32 %v10183_v40, %v14178_v34 }
 0x2d7   :  { %5547 = vmatprep.subr.bf16.mxu1 %v5546_v11  ;;  %v4010_v45 = vadd.f32 %v4002_v32, %v3992_v9  ;;  %v4021_v41 = vmul.f32 %v10183_v40, %v14179_v39  ;;  %v4022_v0 = vmul.f32 %v10183_v40, %v14180_v57  ;;  %v10194_v37 = vstv %s10144_s24  ;;  %s11076_s24 = sld [smem:[#allocation9 + $0x4a]] }
 0x2d8   :  { %v4011_v31 = vadd.f32 %v4003_v49, %v3993_v10  ;;  %v4012_v33 = vadd.f32 %v4004_v36, %v3994_v38  ;;  %v10197_v5 = vstv %s10146_s30  ;;  %5549 = vmatpush3.bf16.msra.mxu1 %v5546_v11  ;;  %v4038_v32 = vmul.f32 %v10194_v37, %v14181_v47  ;;  %s11090_s30 = sld [smem:[#allocation9 + $0x4b]] }
 0x2d9   :  { %14233 = vst [vmem:[#allocation189_spill] sm:$0xff] %v10197_v5  ;;  %v4028_v9 = vadd.f32 %v4020_v20, %v4010_v45  ;;  %v4039_v57 = vmul.f32 %v10194_v37, %v14183_v23  ;;  %v4040_v49 = vmul.f32 %v10194_v37, %v14184_v44  ;;  %v4056_v36 = vmul.f32 %v10197_v5, %v14170_v63 }
 0x2da   :  { %v4029_v10 = vadd.f32 %v4021_v41, %v4011_v31  ;;  %v4030_v38 = vadd.f32 %v4022_v0, %v4012_v33  ;;  %v4057_v39 = vmul.f32 %v10197_v5, %v14171_v50  ;;  %v4058_v11 = vmul.f32 %v10197_v5, %v14185_v19  ;;  %v14248_v50 = vld [vmem:[#allocation107_spill] sm:$0xff]  ;;  %v14295_v5 = vld [vmem:[#allocation166_spill] sm:$0xff] }
 0x2db   :  { %v4046_v34 = vadd.f32 %v4038_v32, %v4028_v9  ;;  %v10216_v45 = vstv %s10165_s10  ;;  %v10219_v20 = vstv %s10167_s11  ;;  %s11106_s10 = sld [smem:[#allocation9 + $0x4c]]  ;;  %s11118_s11 = sld [smem:[#allocation9 + $0x4d]] }
 0x2dc   :  { %14234 = vst [vmem:[#allocation126_spill] sm:$0xff] %v10216_v45  ;;  %14235 = vst [vmem:[#allocation127_spill] sm:$0xff] %v10219_v20  ;;  %v4047_v41 = vadd.f32 %v4039_v57, %v4029_v10  ;;  %v4048_v0 = vadd.f32 %v4040_v49, %v4030_v38  ;;  %v4074_v31 = vmul.f32 %v10216_v45, %v14121_v21  ;;  %v10238_v38 = vstv %s10185_s12  ;;  %s11129_s12 = sld [smem:[#allocation9 + $0x4e]] }
 0x2dd   :  { %v4075_v33 = vmul.f32 %v10216_v45, %v14187_v27  ;;  %v4064_v9 = vadd.f32 %v4056_v36, %v4046_v34  ;;  %v4076_v32 = vmul.f32 %v10216_v45, %v14188_v17  ;;  %v4092_v44 = vmul.f32 %v10219_v20, %v14194_v2  ;;  %14236 = vst [vmem:[#allocation155_spill] sm:$0xff] %v10238_v38 }
 0x2de   :  { %v4093_v23 = vmul.f32 %v10219_v20, %v14195_v35  ;;  %v4065_v57 = vadd.f32 %v4057_v39, %v4047_v41  ;;  %v4066_v49 = vadd.f32 %v4058_v11, %v4048_v0  ;;  %v4094_v10 = vmul.f32 %v10219_v20, %v14196_v29 }
 0x2df   :  { %v4082_v34 = vadd.f32 %v4074_v31, %v4064_v9  ;;  %v4110_v36 = vmul.f32 %v10238_v38, %v14199_v58  ;;  %v4111_v47 = vmul.f32 %v10238_v38, %v14200_v62  ;;  %v4112_v2 = vmul.f32 %v10238_v38, %v14201_v1  ;;  %v14239_v1 = vld [vmem:[#allocation102_spill] sm:$0xff] }
 0x2e0   :  { %v4083_v35 = vadd.f32 %v4075_v33, %v4065_v57  ;;  %v4084_v39 = vadd.f32 %v4076_v32, %v4066_v49  ;;  %v10249_v11 = vstv %s10199_s13  ;;  %v10252_v41 = vstv %s10201_s0  ;;  %v1797_v32 = vld [vmem:[#allocation12 + $0x30] sm:$0xff]  ;;  %s11131_s13 = sld [smem:[#allocation9 + $0x4f]]  ;;  %s11149_s0 = sld [smem:[#allocation10 + $0x3]] }
 0x2e1   :  { %14237 = vst [vmem:[#allocation144_spill] sm:$0xff] %v10249_v11  ;;  %14238 = vst [vmem:[#allocation145_spill] sm:$0xff] %v10252_v41  ;;  %v4100_v0 = vadd.f32 %v4092_v44, %v4082_v34  ;;  %v4128_v31 = vmul.f32 %v10249_v11, %v14202_v13  ;;  %v4129_v9 = vmul.f32 %v10249_v11, %v14203_v22  ;;  %5368 = vmatprep.mubr.msk.f32.mxu1 %vm1278_vm5, %v1797_v32  ;;  %v14240_v34 = vld [vmem:[#allocation64_spill] sm:$0xff] }
 0x2e2   :  { %v4130_v33 = vmul.f32 %v10249_v11, %v14239_v1  ;;  %v4101_v57 = vadd.f32 %v4093_v23, %v4083_v35  ;;  %v4102_v49 = vadd.f32 %v4094_v10, %v4084_v39  ;;  %v4146_v62 = vmul.f32 %v10252_v41, %v14187_v27  ;;  %v14243_v10 = vld [vmem:[#allocation76_spill] sm:$0xff] }
 0x2e3   :  { %v4147_v58 = vmul.f32 %v10252_v41, %v14188_v17  ;;  %v4118_v44 = vadd.f32 %v4110_v36, %v4100_v0  ;;  %v4148_v13 = vmul.f32 %v10252_v41, %v14240_v34  ;;  %v10272_v22 = vstv %s10221_s1  ;;  %v14289_v11 = vld [vmem:[#allocation156_spill] sm:$0xff]  ;;  %s11151_s1 = sld [smem:[#allocation9 + $0x8c]] }
 0x2e4   :  { %14241 = vst [vmem:[#allocation146_spill] sm:$0xff] %v10272_v22  ;;  %v10275_v29 = vstv %s10223_s3  ;;  %v4119_v35 = vadd.f32 %v4111_v47, %v4101_v57  ;;  %v4120_v23 = vadd.f32 %v4112_v2, %v4102_v49  ;;  %v4164_v39 = vmul.f32 %v10272_v22, %v14243_v10  ;;  %v14244_v57 = vld [vmem:[#allocation105_spill] sm:$0xff]  ;;  %s11164_s3 = sld [smem:[#allocation9 + $0x8d]] }
 0x2e5   :  { %14242 = vst [vmem:[#allocation149_spill] sm:$0xff] %v10275_v29  ;;  %v4165_v32 = vmul.f32 %v10272_v22, %v14209_v7  ;;  %v4136_v36 = vadd.f32 %v4128_v31, %v4118_v44  ;;  %v4166_v0 = vmul.f32 %v10272_v22, %v14211_v15  ;;  %v4182_v1 = vmul.f32 %v10275_v29, %v14214_v51  ;;  %v14247_v44 = vld [vmem:[#allocation108_spill] sm:$0xff] }
 0x2e6   :  { %v4183_v17 = vmul.f32 %v10275_v29, %v14215_v53  ;;  %v4137_v47 = vadd.f32 %v4129_v9, %v4119_v35  ;;  %v4138_v2 = vadd.f32 %v4130_v33, %v4120_v23  ;;  %v4184_v49 = vmul.f32 %v10275_v29, %v14244_v57  ;;  %v14251_v23 = vld [vmem:[#allocation109_spill] sm:$0xff]  ;;  %v14286_v22 = vld [vmem:[#allocation192_spill] sm:$0xff] }
 0x2e7   :  { %v10292_v27 = vstv %s10240_s14  ;;  %v4154_v56 = vadd.f32 %v4146_v62, %v4136_v36  ;;  %v10301_v9 = vstv %s10254_s15  ;;  %v10304_v33 = vstv %s10256_s16  ;;  %v14252_v36 = vld [vmem:[#allocation114_spill] sm:$0xff]  ;;  %s11166_s14 = sld [smem:[#allocation9 + $0x8e]]  ;;  %s11191_s15 = sld [smem:[#allocation9 + $0x8f]] }
 0x2e8   :  { %14245 = vst [vmem:[#allocation147_spill] sm:$0xff] %v10292_v27  ;;  %v4200_v31 = vmul.f32 %v10292_v27, %v14246_v24  ;;  %v4201_v18 = vmul.f32 %v10292_v27, %v14247_v44  ;;  %v4202_v51 = vmul.f32 %v10292_v27, %v14248_v50  ;;  %v4155_v63 = vadd.f32 %v4147_v58, %v4137_v47  ;;  %s11210_s16 = sld [smem:[#allocation9 + $0x90]] }
 0x2e9   :  { %v4156_v53 = vadd.f32 %v4148_v13, %v4138_v2  ;;  %14249 = vst [vmem:[#allocation148_spill] sm:$0xff] %v10301_v9  ;;  %14250 = vst [vmem:[#allocation130_spill] sm:$0xff] %v10304_v33  ;;  %v4172_v35 = vadd.f32 %v4164_v39, %v4154_v56  ;;  %v4218_v62 = vmul.f32 %v10301_v9, %v14251_v23  ;;  %v10319_v39 = vstv %s10277_s17  ;;  %v14254_v2 = vld [vmem:[#allocation131_spill] sm:$0xff]  ;;  %s11231_s17 = sld [smem:[#allocation9 + $0x91]] }
 0x2ea   :  { %v4219_v24 = vmul.f32 %v10301_v9, %v14252_v36  ;;  %v4220_v44 = vmul.f32 %v10301_v9, %v14223_v4  ;;  %v4173_v57 = vadd.f32 %v4165_v32, %v4155_v63  ;;  %v4236_v58 = vmul.f32 %v10304_v33, %v14209_v7  ;;  %14253 = vst [vmem:[#allocation128_spill] sm:$0xff] %v10319_v39  ;;  %v14255_v4 = vld [vmem:[#allocation35_spill] sm:$0xff]  ;;  %v14257_v32 = vld [vmem:[#allocation133_spill] sm:$0xff] }
 0x2eb   :  { %v4174_v46 = vadd.f32 %v4166_v0, %v4156_v53  ;;  %v4237_v13 = vmul.f32 %v10304_v33, %v14211_v15  ;;  %v4190_v47 = vadd.f32 %v4182_v1, %v4172_v35  ;;  %v4238_v56 = vmul.f32 %v10304_v33, %v14226_v8  ;;  %v14256_v53 = vld [vmem:[#allocation163_spill] sm:$0xff]  ;;  %v14259_v35 = vld [vmem:[#allocation164_spill] sm:$0xff]  ;;  %v14260_v15 = vld [vmem:[#allocation154_spill] sm:$0xff] }
 0x2ec   :  { %v1905_v36 = vmul.f32 %v14254_v2, %v14167_v30  ;;  %v4191_v23 = vadd.f32 %v4183_v17, %v4173_v57  ;;  %v1906_v63 = vmul.f32 %v14254_v2, %v14255_v4  ;;  %v1915_v0 = vmul.f32 %v14257_v32, %v14256_v53  ;;  %v14263_v57 = vld [vmem:[#allocation141_spill] sm:$0xff]  ;;  %v14266_v33 = vld [vmem:[#allocation159_spill] sm:$0xff] }
 0x2ed   :  { %v4192_v50 = vadd.f32 %v4184_v49, %v4174_v46  ;;  %v4208_v7 = vadd.f32 %v4200_v31, %v4190_v47  ;;  %v1916_v1 = vmul.f32 %v14257_v32, %v14258_v54  ;;  %v1933_v48 = vmul.f32 %v14260_v15, %v14259_v35  ;;  %v14262_v46 = vld [vmem:[#allocation169_spill] sm:$0xff]  ;;  %v14265_v47 = vld [vmem:[#allocation142_spill] sm:$0xff] }
 0x2ee   :  { %v1934_v3 = vmul.f32 %v14260_v15, %v14261_v43  ;;  %v4209_v42 = vadd.f32 %v4201_v18, %v4191_v23  ;;  %v1923_v17 = vadd.f32 %v1915_v0, %v1905_v36  ;;  %v1951_v49 = vmul.f32 %v14263_v57, %v14262_v46  ;;  %v14268_v36 = vld [vmem:[#allocation47_spill] sm:$0xff] }
 0x2ef   :  { %v4210_v10 = vadd.f32 %v4202_v51, %v4192_v50  ;;  %v4226_v21 = vadd.f32 %v4218_v62, %v4208_v7  ;;  %v1924_v16 = vadd.f32 %v1916_v1, %v1906_v63  ;;  %v1952_v31 = vmul.f32 %v14263_v57, %v14264_v26  ;;  %v14267_v51 = vld [vmem:[#allocation143_spill] sm:$0xff]  ;;  %v14270_v57 = vld [vmem:[#allocation46_spill] sm:$0xff] }
 0x2f0   :  { %v1969_v14 = vmul.f32 %v14265_v47, %v14255_v4  ;;  %v4227_v32 = vadd.f32 %v4219_v24, %v4209_v42  ;;  %v1941_v12 = vadd.f32 %v1933_v48, %v1923_v17  ;;  %v1970_v15 = vmul.f32 %v14265_v47, %v14266_v33  ;;  %v14269_v1 = vld [vmem:[#allocation171_spill] sm:$0xff]  ;;  %v14271_v24 = vld [vmem:[#allocation170_spill] sm:$0xff] }
 0x2f1   :  { %v4228_v2 = vadd.f32 %v4220_v44, %v4210_v10  ;;  %v4244_v18 = vadd.f32 %v4236_v58, %v4226_v21  ;;  %v1942_v50 = vadd.f32 %v1934_v3, %v1924_v16  ;;  %v1987_v23 = vmul.f32 %v14267_v51, %v14185_v19  ;;  %v14272_v21 = vld [vmem:[#allocation172_spill] sm:$0xff]  ;;  %v14273_v16 = vld [vmem:[#allocation33_spill] sm:$0xff]  ;;  %v14276_v17 = vld [vmem:[#allocation175_spill] sm:$0xff] }
 0x2f2   :  { %v1988_v7 = vmul.f32 %v14267_v51, %v14268_v36  ;;  %v4245_v62 = vadd.f32 %v4237_v13, %v4227_v32  ;;  %v1959_v0 = vadd.f32 %v1951_v49, %v1941_v12  ;;  %v2005_v9 = vmul.f32 %v14270_v57, %v14269_v1  ;;  %v14277_v49 = vld [vmem:[#allocation162_spill] sm:$0xff] }
 0x2f3   :  { %v4246_v63 = vadd.f32 %v4238_v56, %v4228_v2  ;;  %v4254_v42 = vadd.f32 %v10319_v39, %v4244_v18  ;;  %v1960_v48 = vadd.f32 %v1952_v31, %v1942_v50  ;;  %v2006_v10 = vmul.f32 %v14270_v57, %v14271_v24  ;;  %v14275_v56 = vld [vmem:[#allocation173_spill] sm:$0xff]  ;;  %v14278_v18 = vld [vmem:[#allocation74_spill] sm:$0xff] }
 0x2f4   :  { %v2023_v3 = vmul.f32 %v14273_v16, %v14272_v21  ;;  %v4255_v44 = vadd.f32 %v10319_v39, %v4245_v62  ;;  %v1977_v13 = vadd.f32 %v1969_v14, %v1959_v0  ;;  %v2024_v12 = vmul.f32 %v14273_v16, %v14275_v56  ;;  %v3797_v57 = vld [vmem:[#allocation12 + $0xb0] sm:$0xff] }
 0x2f5   :  { %v10354_v58 = vadd.f32 %v10319_v39, %v4246_v63  ;;  %v4262_v2 = vmax.f32 %v4254_v42, 0.0  ;;  %v1978_v32 = vadd.f32 %v1970_v15, %v1960_v48  ;;  %v2041_v31 = vmul.f32 %v14277_v49, %v14276_v17  ;;  %v14279_v63 = vld [vmem:[#allocation153_spill] sm:$0xff]  ;;  %5456 = vmatprep.mubr.msk.f32.mxu0 %vm1278_vm5, %v3797_v57  ;;  %v14282_v48 = vld [vmem:[#allocation59_spill] sm:$0xff] }
 0x2f6   :  { %v2042_v50 = vmul.f32 %v14277_v49, %v14278_v18  ;;  %v4263_v51 = vmax.f32 %v4255_v44, 0.0  ;;  %v1995_v62 = vadd.f32 %v1987_v23, %v1977_v13  ;;  %v2059_v39 = vmul.f32 %v14279_v63, %v14268_v36  ;;  %v14281_v15 = vld [vmem:[#allocation45_spill] sm:$0xff] }
 0x2f7   :  { %14274 = vst [vmem:[#allocation160_spill] sm:$0xff] %v10354_v58  ;;  %v12953_v47 = vmax.f32 %v10354_v58, 0.0  ;;  %v10366_v14 = vrot.slane %v4262_v2, 2  ;;  %v1996_v0 = vadd.f32 %v1988_v7, %v1978_v32  ;;  %v2060_v42 = vmul.f32 %v14279_v63, %v14281_v15  ;;  %v14284_v13 = vld [vmem:[#allocation57_spill] sm:$0xff]  ;;  %v14287_v7 = vld [vmem:[#allocation176_spill] sm:$0xff] }
 0x2f8   :  { %v2077_v16 = vmul.f32 %v14282_v48, %v14240_v34  ;;  %v4271_v49 = vrot.slane %v4263_v51, 2  ;;  %v2013_v23 = vadd.f32 %v2005_v9, %v1995_v62  ;;  %v2078_v27 = vmul.f32 %v14282_v48, %v14284_v13  ;;  %v14285_v57 = vld [vmem:[#allocation177_spill] sm:$0xff]  ;;  %v14288_v63 = vld [vmem:[#allocation180_spill] sm:$0xff] }
 0x2f9   :  { %14280 = vst [vmem:[#allocation137_spill] sm:$0xff] %v10366_v14  ;;  %v10374_v44 = vrot.slane %v12953_v47, 2  ;;  %v2014_v29 = vadd.f32 %v2006_v10, %v1996_v0  ;;  %v2095_v41 = vmul.f32 %v14286_v22, %v14285_v57  ;;  %v2096_v32 = vmul.f32 %v14286_v22, %v14287_v7  ;;  %v14290_v47 = vld [vmem:[#allocation179_spill] sm:$0xff]  ;;  %v14291_v57 = vld [vmem:[#allocation181_spill] sm:$0xff] }
 0x2fa   :  { %v2113_v38 = vmul.f32 %v14289_v11, %v14288_v63  ;;  %v4284_v9 = vsel %vm144_vm1, %v10366_v14, %v4271_v49  ;;  %v2031_v62 = vadd.f32 %v2023_v3, %v2013_v23  ;;  %v2114_v10 = vmul.f32 %v14289_v11, %v14290_v47  ;;  %v14292_v22 = vld [vmem:[#allocation161_spill] sm:$0xff]  ;;  %v14293_v63 = vld [vmem:[#allocation182_spill] sm:$0xff]  ;;  %v14296_v14 = vld [vmem:[#allocation111_spill] sm:$0xff] }
 0x2fb   :  { %14283 = vst [vmem:[#allocation132_spill] sm:$0xff] %v10374_v44  ;;  %v4283_v58 = vsel %vm144_vm1, %v4271_v49, %v10374_v44  ;;  %v4286_v0 = vmax.f32 %v4262_v2, %v4284_v9  ;;  %v2032_v20 = vadd.f32 %v2024_v12, %v2014_v29  ;;  %v2131_v7 = vmul.f32 %v14292_v22, %v14291_v57  ;;  %v14294_v44 = vld [vmem:[#allocation110_spill] sm:$0xff]  ;;  %v14298_v12 = vld [vmem:[#allocation183_spill] sm:$0xff]  ;;  %v14301_v11 = vld [vmem:[#allocation184_spill] sm:$0xff] }
 0x2fc   :  { %v4287_v48 = vmax.f32 %v4263_v51, %v4283_v58  ;;  %v2049_v45 = vadd.f32 %v2041_v31, %v2031_v62  ;;  %v2132_v34 = vmul.f32 %v14292_v22, %v14293_v63  ;;  %v2149_v15 = vmul.f32 %v14294_v44, %v14284_v13  ;;  %v14297_v51 = vld [vmem:[#allocation70_spill] sm:$0xff]  ;;  %v14299_v31 = vld [vmem:[#allocation112_spill] sm:$0xff] }
 0x2fd   :  { %v2150_v49 = vmul.f32 %v14294_v44, %v14295_v5  ;;  %v2050_v23 = vadd.f32 %v2042_v50, %v2032_v20  ;;  %v2167_v2 = vmul.f32 %v14296_v14, %v14226_v8  ;;  %v2168_v29 = vmul.f32 %v14296_v14, %v14297_v51  ;;  %v14300_v62 = vld [vmem:[#allocation186_spill] sm:$0xff]  ;;  %v14303_v50 = vld [vmem:[#allocation187_spill] sm:$0xff]  ;;  %v14307_v14 = vld [vmem:[#allocation188_spill] sm:$0xff] }
 0x2fe   :  { %v5610_v3 = vpack.c.bf16 %v4287_v48, %v4286_v0  ;;  %v2067_v58 = vadd.f32 %v2059_v39, %v2049_v45  ;;  %v10406_v9 = vmul.f32 %v14299_v31, %v14298_v12  ;;  %v10410_v22 = vmul.f32 %v14299_v31, %v14300_v62  ;;  %v14304_v0 = vld [vmem:[#allocation185_spill] sm:$0xff]  ;;  %v14305_v45 = vld [vmem:[#allocation116_spill] sm:$0xff]  ;;  %v1798_v31 = vld [vmem:[#allocation12 + $0x38] sm:$0xff] }
 0x2ff   :  { %v10414_v44 = vmul.f32 %v14302_v25, %v14301_v11  ;;  %v2068_v20 = vadd.f32 %v2060_v42, %v2050_v23  ;;  %v10418_v48 = vmul.f32 %v14302_v25, %v14303_v50  ;;  %v10422_v39 = vmul.f32 %v14305_v45, %v14304_v0  ;;  %v3798_v62 = vld [vmem:[#allocation12 + $0xb8] sm:$0xff]  ;;  %v14308_v42 = vld [vmem:[#allocation178_spill] sm:$0xff]  ;;  %v2295_v50 = vld [vmem:[#allocation12 + $0x40] sm:$0xff]  ;;  %5369 = vmatmul.mubr.msk.f32.gmra.mrb[2].mxu1 %vm1278_vm5, %v1798_v31 }
 0x300   :  { %5611 = vmatprep.subr.bf16.mxu0 %v5610_v3  ;;  %v10426_v12 = vmul.f32 %v14305_v45, %v14307_v14  ;;  %v2085_v8 = vadd.f32 %v2077_v16, %v2067_v58  ;;  %v10430_v11 = vmul.f32 %v10073_v59, %v14297_v51  ;;  %v10434_v23 = vmul.f32 %v10073_v59, %v14308_v42  ;;  %v14309_v25 = vld [vmem:[#allocation119_spill] sm:$0xff] }
 0x301   :  { %14306 = vst [vmem:[#allocation151_spill] sm:$0xff] %v10422_v39  ;;  %5613 = vmatpush3.bf16.msra.mxu0 %v5610_v3  ;;  %v3905_v0 = vmul.f32 %v14309_v25, %v14167_v30  ;;  %v2086_v39 = vadd.f32 %v2078_v27, %v2068_v20  ;;  %v3906_v45 = vmul.f32 %v14309_v25, %v14255_v4 }
 0x302   :  { %v3915_v3 = vmul.f32 %v10088_v52, %v14256_v53  ;;  %v3916_v16 = vmul.f32 %v10088_v52, %v14258_v54  ;;  %v2103_v58 = vadd.f32 %v2095_v41, %v2085_v8  ;;  %v3933_v59 = vmul.f32 %v10106_v55, %v14259_v35  ;;  %5457 = vmatmul.mubr.msk.f32.gmra.mrb[2].mxu0 %vm1278_vm5, %v3798_v62 }
 0x303   :  { %v3934_v30 = vmul.f32 %v10106_v55, %v14261_v43  ;;  %v3951_v27 = vmul.f32 %v10109_v6, %v14262_v46  ;;  %v2104_v20 = vadd.f32 %v2096_v32, %v2086_v39  ;;  %v3952_v54 = vmul.f32 %v10109_v6, %v14264_v26  ;;  %5387 = vmatprep.mubr.msk.f32.mxu1 %vm1278_vm5, %v2295_v50 }
 0x304   :  { %v3923_v25 = vadd.f32 %v3915_v3, %v3905_v0  ;;  %v3924_v53 = vadd.f32 %v3916_v16, %v3906_v45  ;;  %v2121_v8 = vadd.f32 %v2113_v38, %v2103_v58  ;;  %v3969_v41 = vmul.f32 %v10142_v28, %v14255_v4 }
 0x305   :  { %v3970_v31 = vmul.f32 %v10142_v28, %v14266_v33  ;;  %v3987_v46 = vmul.f32 %v10161_v60, %v14185_v19  ;;  %v2122_v43 = vadd.f32 %v2114_v10, %v2104_v20  ;;  %v3988_v0 = vmul.f32 %v10161_v60, %v14268_v36  ;;  %v14341_v19 = vld [vmem:[#allocation154_spill] sm:$0xff] }
 0x306   :  { %v3941_v62 = vadd.f32 %v3933_v59, %v3923_v25  ;;  %v3942_v32 = vadd.f32 %v3934_v30, %v3924_v53  ;;  %v2139_v45 = vadd.f32 %v2131_v7, %v2121_v8  ;;  %v4005_v50 = vmul.f32 %v10174_v61, %v14269_v1  ;;  %v14310_v7 = vld [vmem:[#allocation189_spill] sm:$0xff] }
 0x307   :  { %v4006_v38 = vmul.f32 %v10174_v61, %v14271_v24  ;;  %v4023_v39 = vmul.f32 %v10183_v40, %v14272_v21  ;;  %v2140_v3 = vadd.f32 %v2132_v34, %v2122_v43  ;;  %v4024_v25 = vmul.f32 %v10183_v40, %v14275_v56  ;;  %v14311_v21 = vld [vmem:[#allocation45_spill] sm:$0xff]  ;;  %v14312_v34 = vld [vmem:[#allocation64_spill] sm:$0xff] }
 0x308   :  { %v3959_v16 = vadd.f32 %v3951_v27, %v3941_v62  ;;  %v3960_v58 = vadd.f32 %v3952_v54, %v3942_v32  ;;  %v2157_v30 = vadd.f32 %v2149_v15, %v2139_v45  ;;  %v4041_v59 = vmul.f32 %v10194_v37, %v14276_v17  ;;  %v14313_v27 = vld [vmem:[#allocation126_spill] sm:$0xff]  ;;  %v14314_v32 = vld [vmem:[#allocation177_spill] sm:$0xff]  ;;  %v14315_v45 = vld [vmem:[#allocation127_spill] sm:$0xff] }
 0x309   :  { %v4042_v53 = vmul.f32 %v10194_v37, %v14278_v18  ;;  %v4059_v10 = vmul.f32 %v14310_v7, %v14268_v36  ;;  %v2158_v20 = vadd.f32 %v2150_v49, %v2140_v3  ;;  %v4060_v43 = vmul.f32 %v14310_v7, %v14311_v21  ;;  %v14316_v36 = vld [vmem:[#allocation176_spill] sm:$0xff]  ;;  %v14318_v3 = vld [vmem:[#allocation155_spill] sm:$0xff] }
 0x30a   :  { %v3977_v8 = vadd.f32 %v3969_v41, %v3959_v16  ;;  %v3978_v24 = vadd.f32 %v3970_v31, %v3960_v58  ;;  %v2175_v54 = vadd.f32 %v2167_v2, %v2157_v30  ;;  %v4077_v62 = vmul.f32 %v14313_v27, %v14312_v34  ;;  %v14317_v31 = vld [vmem:[#allocation180_spill] sm:$0xff] }
 0x30b   :  { %v4078_v15 = vmul.f32 %v14313_v27, %v14284_v13  ;;  %v4095_v17 = vmul.f32 %v14315_v45, %v14314_v32  ;;  %v2176_v18 = vadd.f32 %v2168_v29, %v2158_v20  ;;  %v4096_v49 = vmul.f32 %v14315_v45, %v14316_v36  ;;  %v14319_v58 = vld [vmem:[#allocation144_spill] sm:$0xff]  ;;  %v14355_v45 = vld [vmem:[#allocation30_spill] sm:$0xff] }
 0x30c   :  { %v3995_v56 = vadd.f32 %v3987_v46, %v3977_v8  ;;  %v3996_v1 = vadd.f32 %v3988_v0, %v3978_v24  ;;  %v2193_v41 = vadd.f32 %v10406_v9, %v2175_v54  ;;  %v4113_v2 = vmul.f32 %v14318_v3, %v14317_v31  ;;  %v14320_v9 = vld [vmem:[#allocation145_spill] sm:$0xff]  ;;  %v14322_v54 = vld [vmem:[#allocation146_spill] sm:$0xff]  ;;  %v14327_v36 = vld [vmem:[#allocation184_spill] sm:$0xff] }
 0x30d   :  { %v4114_v16 = vmul.f32 %v14318_v3, %v14290_v47  ;;  %v4131_v30 = vmul.f32 %v14319_v58, %v14291_v57  ;;  %v2194_v26 = vadd.f32 %v10410_v22, %v2176_v18  ;;  %v4132_v46 = vmul.f32 %v14319_v58, %v14293_v63  ;;  %v14321_v8 = vld [vmem:[#allocation81_spill] sm:$0xff]  ;;  %v14323_v18 = vld [vmem:[#allocation151_spill] sm:$0xff]  ;;  %v14326_v63 = vld [vmem:[#allocation186_spill] sm:$0xff] }
 0x30e   :  { %v4013_v32 = vadd.f32 %v4005_v50, %v3995_v56  ;;  %v4014_v29 = vadd.f32 %v4006_v38, %v3996_v1  ;;  %v2211_v24 = vadd.f32 %v10414_v44, %v2193_v41  ;;  %v4149_v0 = vmul.f32 %v14320_v9, %v14284_v13  ;;  %v14324_v50 = vld [vmem:[#allocation183_spill] sm:$0xff]  ;;  %v14325_v38 = vld [vmem:[#allocation149_spill] sm:$0xff]  ;;  %v14347_v58 = vld [vmem:[#allocation124_spill] sm:$0xff] }
 0x30f   :  { %v4150_v20 = vmul.f32 %v14320_v9, %v14295_v5  ;;  %v10504_v47 = vmul.f32 %v14322_v54, %v14321_v8  ;;  %v2212_v57 = vadd.f32 %v10418_v48, %v2194_v26  ;;  %v10509_v1 = vmul.f32 %v14322_v54, %v14297_v51  ;;  %v14328_v13 = vld [vmem:[#allocation147_spill] sm:$0xff]  ;;  %v14337_v8 = vld [vmem:[#allocation133_spill] sm:$0xff]  ;;  %v14356_v27 = vld [vmem:[#allocation46_spill] sm:$0xff] }
 0x310   :  { %v4031_v22 = vadd.f32 %v4023_v39, %v4013_v32  ;;  %v4032_v56 = vadd.f32 %v4024_v25, %v4014_v29  ;;  %v2229_v44 = vadd.f32 %v14323_v18, %v2211_v24  ;;  %v10514_v41 = vmul.f32 %v14325_v38, %v14324_v50  ;;  %v14329_v25 = vld [vmem:[#allocation187_spill] sm:$0xff]  ;;  %v14330_v24 = vld [vmem:[#allocation185_spill] sm:$0xff]  ;;  %v14331_v18 = vld [vmem:[#allocation148_spill] sm:$0xff] }
 0x311   :  { %v10518_v31 = vmul.f32 %v14325_v38, %v14326_v63  ;;  %v10522_v35 = vmul.f32 %v14328_v13, %v14327_v36  ;;  %v2230_v26 = vadd.f32 %v10426_v12, %v2212_v57  ;;  %v10527_v32 = vmul.f32 %v14328_v13, %v14329_v25  ;;  %v14332_v36 = vld [vmem:[#allocation130_spill] sm:$0xff]  ;;  %v4295_v57 = vld [vmem:[#allocation12 + $0xc0] sm:$0xff] }
 0x312   :  { %v4049_v48 = vadd.f32 %v4041_v59, %v4031_v22  ;;  %v4050_v39 = vadd.f32 %v4042_v53, %v4032_v56  ;;  %v2247_v29 = vadd.f32 %v10430_v11, %v2229_v44  ;;  %v10532_v50 = vmul.f32 %v14331_v18, %v14330_v24  ;;  %5475 = vmatprep.mubr.msk.f32.mxu0 %vm1278_vm5, %v4295_v57  ;;  %v14333_v22 = vld [vmem:[#allocation118_spill] sm:$0xff]  ;;  %v14334_v44 = vld [vmem:[#allocation131_spill] sm:$0xff] }
 0x313   :  { %v10536_v63 = vmul.f32 %v14331_v18, %v14307_v14  ;;  %v10540_v4 = vmul.f32 %v14332_v36, %v14297_v51  ;;  %v2248_v12 = vadd.f32 %v10434_v23, %v2230_v26  ;;  %v10545_v11 = vmul.f32 %v14332_v36, %v14308_v42  ;;  %v14335_v24 = vld [vmem:[#allocation190_spill] sm:$0xff]  ;;  %v14336_v51 = vld [vmem:[#allocation25_spill] sm:$0xff]  ;;  %v14339_v26 = vld [vmem:[#allocation24_spill] sm:$0xff] }
 0x314   :  { %v4067_v59 = vadd.f32 %v4059_v10, %v4049_v48  ;;  %v4068_v53 = vadd.f32 %v4060_v43, %v4050_v39  ;;  %v2257_v56 = vadd.f32 %v14333_v22, %v2247_v29  ;;  %v1907_v14 = vmul.f32 %v14334_v44, %v14266_v33  ;;  %v14340_v29 = vld [vmem:[#allocation27_spill] sm:$0xff]  ;;  %v14342_v18 = vld [vmem:[#allocation26_spill] sm:$0xff] }
 0x315   :  { %v1908_v25 = vmul.f32 %v14334_v44, %v14335_v24  ;;  %v1917_v34 = vmul.f32 %v14337_v8, %v14336_v51  ;;  %v10556_v23 = vadd.f32 %v14333_v22, %v2248_v12  ;;  %v1918_v48 = vmul.f32 %v14337_v8, %v14339_v26 }
 0x316   :  { %v4085_v10 = vadd.f32 %v4077_v62, %v4067_v59  ;;  %v4086_v43 = vadd.f32 %v4078_v15, %v4068_v53  ;;  %v2265_v39 = vmax.f32 %v2257_v56, 0.0  ;;  %v1935_v36 = vmul.f32 %v14341_v19, %v14340_v29  ;;  %v14343_v62 = vld [vmem:[#allocation196_spill] sm:$0xff]  ;;  %v14344_v15 = vld [vmem:[#allocation141_spill] sm:$0xff] }
 0x317   :  { %14338 = vst [vmem:[#allocation150_spill] sm:$0xff] %v10556_v23  ;;  %v1925_v57 = vadd.f32 %v1917_v34, %v1907_v14  ;;  %v1936_v13 = vmul.f32 %v14341_v19, %v14342_v18  ;;  %v13011_v44 = vmax.f32 %v10556_v23, 0.0  ;;  %v1926_v9 = vadd.f32 %v1918_v48, %v1908_v25  ;;  %v14345_v53 = vld [vmem:[#allocation28_spill] sm:$0xff]  ;;  %v14354_v23 = vld [vmem:[#allocation193_spill] sm:$0xff] }
 0x318   :  { %v4103_v38 = vadd.f32 %v4095_v17, %v4085_v10  ;;  %v4104_v54 = vadd.f32 %v4096_v49, %v4086_v43  ;;  %v2273_v12 = vrot.slane %v2265_v39, 2  ;;  %v1953_v59 = vmul.f32 %v14344_v15, %v14343_v62  ;;  %v14350_v10 = vld [vmem:[#allocation191_spill] sm:$0xff] }
 0x319   :  { %v1943_v22 = vadd.f32 %v1935_v36, %v1925_v57  ;;  %v1954_v56 = vmul.f32 %v14344_v15, %v14345_v53  ;;  %v10571_v14 = vrot.slane %v13011_v44, 2  ;;  %v1944_v19 = vadd.f32 %v1936_v13, %v1926_v9  ;;  %v14349_v36 = vld [vmem:[#allocation142_spill] sm:$0xff] }
 0x31a   :  { %v4121_v34 = vadd.f32 %v4113_v2, %v4103_v38  ;;  %v4122_v8 = vadd.f32 %v4114_v16, %v4104_v54  ;;  %v2282_v17 = vsel %vm144_vm1, %v14347_v58, %v2273_v12  ;;  %v1971_v25 = vmul.f32 %v14349_v36, %v14335_v24  ;;  %v14351_v57 = vld [vmem:[#allocation122_spill] sm:$0xff]  ;;  %v14353_v58 = vld [vmem:[#allocation143_spill] sm:$0xff] }
 0x31b   :  { %14346 = vst [vmem:[#allocation125_spill] sm:$0xff] %v10571_v14  ;;  %v1961_v49 = vadd.f32 %v1953_v59, %v1943_v22  ;;  %v1972_v43 = vmul.f32 %v14349_v36, %v14350_v10  ;;  %v2281_v48 = vsel %vm144_vm1, %v2273_v12, %v10571_v14  ;;  %v14352_v44 = vmax.f32 %v14351_v57, 0.0 }
 0x31c   :  { %v4139_v16 = vadd.f32 %v4131_v30, %v4121_v34  ;;  %v4140_v13 = vadd.f32 %v4132_v46, %v4122_v8  ;;  %v2289_v9 = vmax.f32 %v2265_v39, %v2281_v48  ;;  %v1962_v54 = vadd.f32 %v1954_v56, %v1944_v19  ;;  %v14358_v8 = vld [vmem:[#allocation32_spill] sm:$0xff]  ;;  %v14359_v39 = vld [vmem:[#allocation33_spill] sm:$0xff]  ;;  %v14363_v48 = vld [vmem:[#allocation43_spill] sm:$0xff] }
 0x31d   :  { %v2288_v2 = vmax.f32 %v14352_v44, %v2282_v17  ;;  %v1979_v38 = vadd.f32 %v1971_v25, %v1961_v49  ;;  %v1989_v22 = vmul.f32 %v14353_v58, %v14311_v21  ;;  %v1990_v36 = vmul.f32 %v14353_v58, %v14354_v23  ;;  %v14357_v44 = vld [vmem:[#allocation197_spill] sm:$0xff]  ;;  %v14361_v49 = vld [vmem:[#allocation198_spill] sm:$0xff] }
 0x31e   :  { %v4157_v59 = vadd.f32 %v4149_v0, %v4139_v16  ;;  %v4158_v15 = vadd.f32 %v4150_v20, %v4140_v13  ;;  %v2007_v7 = vmul.f32 %v14356_v27, %v14355_v45  ;;  %v1980_v14 = vadd.f32 %v1972_v43, %v1962_v54  ;;  %v14360_v20 = vld [vmem:[#allocation31_spill] sm:$0xff]  ;;  %v14362_v25 = vld [vmem:[#allocation162_spill] sm:$0xff]  ;;  %v14365_v13 = vld [vmem:[#allocation21_spill] sm:$0xff] }
 0x31f   :  { %v5550_v12 = vpack.c.bf16 %v2289_v9, %v2288_v2  ;;  %v1997_v57 = vadd.f32 %v1989_v22, %v1979_v38  ;;  %v2008_v30 = vmul.f32 %v14356_v27, %v14357_v44  ;;  %v2025_v0 = vmul.f32 %v14359_v39, %v14358_v8  ;;  %v14367_v38 = vld [vmem:[#allocation194_spill] sm:$0xff] }
 0x320   :  { %v4175_v19 = vadd.f32 %v10504_v47, %v4157_v59  ;;  %v4176_v46 = vadd.f32 %v10509_v1, %v4158_v15  ;;  %v2026_v56 = vmul.f32 %v14359_v39, %v14360_v20  ;;  %v1998_v34 = vadd.f32 %v1990_v36, %v1980_v14  ;;  %v14364_v1 = vld [vmem:[#allocation153_spill] sm:$0xff]  ;;  %v14376_v27 = vld [vmem:[#allocation54_spill] sm:$0xff] }
 0x321   :  { %5551 = vmatprep.subr.bf16.mxu1 %v5550_v12  ;;  %v2015_v17 = vadd.f32 %v2007_v7, %v1997_v57  ;;  %v2043_v43 = vmul.f32 %v14362_v25, %v14361_v49  ;;  %v2044_v2 = vmul.f32 %v14362_v25, %v14363_v48  ;;  %v2061_v15 = vmul.f32 %v14364_v1, %v14354_v23  ;;  %v14366_v7 = vld [vmem:[#allocation59_spill] sm:$0xff] }
 0x322   :  { %v4193_v16 = vadd.f32 %v10514_v41, %v4175_v19  ;;  %v4194_v47 = vadd.f32 %v10518_v31, %v4176_v46  ;;  %5553 = vmatpush3.bf16.msra.mxu1 %v5550_v12  ;;  %v2062_v9 = vmul.f32 %v14364_v1, %v14365_v13  ;;  %v2016_v54 = vadd.f32 %v2008_v30, %v1998_v34  ;;  %v14368_v31 = vld [vmem:[#allocation44_spill] sm:$0xff]  ;;  %v14371_v30 = vld [vmem:[#allocation53_spill] sm:$0xff] }
 0x323   :  { %v2033_v14 = vadd.f32 %v2025_v0, %v2015_v17  ;;  %v2079_v36 = vmul.f32 %v14366_v7, %v14295_v5  ;;  %v2080_v22 = vmul.f32 %v14366_v7, %v14367_v38  ;;  %v14369_v12 = vld [vmem:[#allocation192_spill] sm:$0xff]  ;;  %v14373_v17 = vld [vmem:[#allocation29_spill] sm:$0xff] }
 0x324   :  { %v4211_v59 = vadd.f32 %v10522_v35, %v4193_v16  ;;  %v4212_v41 = vadd.f32 %v10527_v32, %v4194_v47  ;;  %v2097_v57 = vmul.f32 %v14369_v12, %v14368_v31  ;;  %v14370_v19 = vld [vmem:[#allocation52_spill] sm:$0xff]  ;;  %v2034_v25 = vadd.f32 %v2026_v56, %v2016_v54  ;;  %v14374_v16 = vld [vmem:[#allocation139_spill] sm:$0xff]  ;;  %v14375_v32 = vld [vmem:[#allocation161_spill] sm:$0xff] }
 0x325   :  { %v2098_v46 = vmul.f32 %v14369_v12, %v14370_v19  ;;  %v2051_v1 = vadd.f32 %v2043_v43, %v2033_v14  ;;  %v14372_v0 = vld [vmem:[#allocation156_spill] sm:$0xff]  ;;  %v2133_v47 = vmul.f32 %v14375_v32, %v14374_v16  ;;  %v2134_v58 = vmul.f32 %v14375_v32, %v14376_v27  ;;  %v14377_v56 = vld [vmem:[#allocation110_spill] sm:$0xff]  ;;  %v14378_v54 = vld [vmem:[#allocation195_spill] sm:$0xff] }
 0x326   :  { %v2115_v34 = vmul.f32 %v14372_v0, %v14371_v30  ;;  %v2116_v39 = vmul.f32 %v14372_v0, %v14373_v17  ;;  %v4229_v7 = vadd.f32 %v10532_v50, %v4211_v59  ;;  %v4230_v35 = vadd.f32 %v10536_v63, %v4212_v41  ;;  %v14379_v63 = vld [vmem:[#allocation111_spill] sm:$0xff]  ;;  %v14380_v41 = vld [vmem:[#allocation40_spill] sm:$0xff] }
 0x327   :  { %v2052_v31 = vadd.f32 %v2044_v2, %v2034_v25  ;;  %v2069_v12 = vadd.f32 %v2061_v15, %v2051_v1  ;;  %v2151_v43 = vmul.f32 %v14377_v56, %v14367_v38  ;;  %v2152_v14 = vmul.f32 %v14377_v56, %v14378_v54  ;;  %v14381_v25 = vld [vmem:[#allocation42_spill] sm:$0xff]  ;;  %v14382_v2 = vld [vmem:[#allocation112_spill] sm:$0xff]  ;;  %v14383_v15 = vld [vmem:[#allocation135_spill] sm:$0xff] }
 0x328   :  { %v4247_v0 = vadd.f32 %v10540_v4, %v4229_v7  ;;  %v4248_v50 = vadd.f32 %v10545_v11, %v4230_v35  ;;  %v2169_v59 = vmul.f32 %v14379_v63, %v14308_v42  ;;  %v2170_v16 = vmul.f32 %v14379_v63, %v14380_v41  ;;  %v14384_v30 = vld [vmem:[#allocation128_spill] sm:$0xff]  ;;  %v14387_v7 = vld [vmem:[#allocation115_spill] sm:$0xff]  ;;  %v14388_v42 = vld [vmem:[#allocation58_spill] sm:$0xff] }
 0x329   :  { %v2070_v17 = vadd.f32 %v2062_v9, %v2052_v31  ;;  %v2087_v32 = vadd.f32 %v2079_v36, %v2069_v12  ;;  %v2187_v1 = vmul.f32 %v14382_v2, %v14381_v25  ;;  %v2188_v27 = vmul.f32 %v14382_v2, %v14383_v15  ;;  %v14386_v11 = vld [vmem:[#allocation56_spill] sm:$0xff]  ;;  %v14389_v36 = vld [vmem:[#allocation34_spill] sm:$0xff]  ;;  %v14393_v15 = vld [vmem:[#allocation41_spill] sm:$0xff] }
 0x32a   :  { %v4257_v56 = vadd.f32 %v14384_v30, %v4247_v0  ;;  %v10645_v4 = vadd.f32 %v14384_v30, %v4248_v50  ;;  %v2205_v35 = vmul.f32 %v14387_v7, %v14386_v11  ;;  %v2206_v54 = vmul.f32 %v14387_v7, %v14388_v42  ;;  %v14390_v31 = vld [vmem:[#allocation116_spill] sm:$0xff]  ;;  %v14391_v25 = vld [vmem:[#allocation158_spill] sm:$0xff]  ;;  %v14392_v50 = vld [vmem:[#allocation117_spill] sm:$0xff] }
 0x32b   :  { %v2088_v63 = vadd.f32 %v2080_v22, %v2070_v17  ;;  %v2105_v9 = vadd.f32 %v2097_v57, %v2087_v32  ;;  %v2223_v12 = vmul.f32 %v14390_v31, %v14389_v36  ;;  %v10655_v19 = vmul.f32 %v14390_v31, %v14391_v25  ;;  %v14394_v57 = vld [vmem:[#allocation119_spill] sm:$0xff] }
 0x32c   :  { %14385 = vst [vmem:[#allocation67_spill] sm:$0xff] %v10645_v4  ;;  %v4265_v2 = vmax.f32 %v4257_v56, 0.0  ;;  %v13036_v0 = vmax.f32 %v10645_v4, 0.0  ;;  %v2241_v30 = vmul.f32 %v14392_v50, %v14380_v41  ;;  %v10662_v11 = vmul.f32 %v14392_v50, %v14393_v15 }
 0x32d   :  { %v2106_v7 = vadd.f32 %v2098_v46, %v2088_v63  ;;  %v2123_v22 = vadd.f32 %v2115_v34, %v2105_v9  ;;  %v3907_v17 = vmul.f32 %v14394_v57, %v14266_v33  ;;  %v3908_v32 = vmul.f32 %v14394_v57, %v14335_v24  ;;  %v14397_v57 = vld [vmem:[#allocation160_spill] sm:$0xff] }
 0x32e   :  { %v4273_v31 = vrot.slane %v4265_v2, 2  ;;  %v10670_v56 = vrot.slane %v13036_v0, 2  ;;  %v3917_v25 = vmul.f32 %v10088_v52, %v14336_v51  ;;  %v3918_v50 = vmul.f32 %v10088_v52, %v14339_v26  ;;  %v14396_v0 = vld [vmem:[#allocation132_spill] sm:$0xff] }
 0x32f   :  { %v2124_v15 = vadd.f32 %v2116_v39, %v2106_v7  ;;  %v2141_v46 = vadd.f32 %v2133_v47, %v2123_v22  ;;  %v3935_v34 = vmul.f32 %v10106_v55, %v14340_v29  ;;  %v3936_v63 = vmul.f32 %v10106_v55, %v14342_v18 }
 0x330   :  { %14395 = vst [vmem:[#allocation129_spill] sm:$0xff] %v10670_v56  ;;  %v4281_v9 = vsel %vm144_vm1, %v4273_v31, %v10670_v56  ;;  %v4282_v33 = vsel %vm144_vm1, %v14396_v0, %v4273_v31  ;;  %v3925_v51 = vadd.f32 %v3917_v25, %v3907_v17  ;;  %v3926_v4 = vadd.f32 %v3918_v50, %v3908_v32 }
 0x331   :  { %v14398_v26 = vmax.f32 %v14397_v57, 0.0  ;;  %v4289_v47 = vmax.f32 %v4265_v2, %v4281_v9  ;;  %v2142_v7 = vadd.f32 %v2134_v58, %v2124_v15  ;;  %v2159_v22 = vadd.f32 %v2151_v43, %v2141_v46  ;;  %v14402_v9 = vld [vmem:[#allocation127_spill] sm:$0xff] }
 0x332   :  { %v3943_v29 = vadd.f32 %v3935_v34, %v3925_v51  ;;  %v3944_v52 = vadd.f32 %v3936_v63, %v3926_v4  ;;  %v3953_v18 = vmul.f32 %v10109_v6, %v14343_v62  ;;  %v3954_v56 = vmul.f32 %v10109_v6, %v14345_v53  ;;  %v14401_v63 = vld [vmem:[#allocation44_spill] sm:$0xff]  ;;  %v14434_v53 = vld [vmem:[#allocation133_spill] sm:$0xff] }
 0x333   :  { %v4288_v39 = vmax.f32 %v14398_v26, %v4282_v33  ;;  %v2160_v36 = vadd.f32 %v2152_v14, %v2142_v7  ;;  %v2177_v3 = vadd.f32 %v2169_v59, %v2159_v22  ;;  %v3971_v25 = vmul.f32 %v10142_v28, %v14335_v24  ;;  %v14403_v22 = vld [vmem:[#allocation52_spill] sm:$0xff]  ;;  %v14436_v24 = vld [vmem:[#allocation154_spill] sm:$0xff] }
 0x334   :  { %v3961_v31 = vadd.f32 %v3953_v18, %v3943_v29  ;;  %v3962_v0 = vadd.f32 %v3954_v56, %v3944_v52  ;;  %v3972_v33 = vmul.f32 %v10142_v28, %v14350_v10  ;;  %v3989_v51 = vmul.f32 %v10161_v60, %v14311_v21  ;;  %v14438_v21 = vld [vmem:[#allocation141_spill] sm:$0xff] }
 0x335   :  { %v5614_v55 = vpack.c.bf16 %v4289_v47, %v4288_v39  ;;  %v2178_v26 = vadd.f32 %v2170_v16, %v2160_v36  ;;  %v2195_v58 = vadd.f32 %v2187_v1, %v2177_v3  ;;  %v3990_v43 = vmul.f32 %v10161_v60, %v14354_v23  ;;  %v14399_v36 = vld [vmem:[#allocation189_spill] sm:$0xff] }
 0x336   :  { %v4007_v14 = vmul.f32 %v10174_v61, %v14355_v45  ;;  %v3979_v59 = vadd.f32 %v3971_v25, %v3961_v31  ;;  %v3980_v2 = vadd.f32 %v3972_v33, %v3962_v0  ;;  %v4008_v52 = vmul.f32 %v10174_v61, %v14357_v44  ;;  %v14405_v25 = vld [vmem:[#allocation155_spill] sm:$0xff] }
 0x337   :  { %5615 = vmatprep.subr.bf16.mxu0 %v5614_v55  ;;  %v4025_v18 = vmul.f32 %v10183_v40, %v14358_v8  ;;  %v2196_v29 = vadd.f32 %v2188_v27, %v2178_v26  ;;  %v2213_v15 = vadd.f32 %v2205_v35, %v2195_v58  ;;  %v4026_v3 = vmul.f32 %v10183_v40, %v14360_v20  ;;  %v14400_v35 = vld [vmem:[#allocation126_spill] sm:$0xff]  ;;  %v14407_v58 = vld [vmem:[#allocation139_spill] sm:$0xff] }
 0x338   :  { %5617 = vmatpush3.bf16.msra.mxu0 %v5614_v55  ;;  %v4043_v16 = vmul.f32 %v10194_v37, %v14361_v49  ;;  %v3997_v1 = vadd.f32 %v3989_v51, %v3979_v59  ;;  %v3998_v4 = vadd.f32 %v3990_v43, %v3980_v2  ;;  %v4044_v55 = vmul.f32 %v10194_v37, %v14363_v48  ;;  %v14406_v51 = vld [vmem:[#allocation29_spill] sm:$0xff]  ;;  %v14408_v43 = vld [vmem:[#allocation144_spill] sm:$0xff]  ;;  %v14409_v2 = vld [vmem:[#allocation118_spill] sm:$0xff] }
 0x339   :  { %v4061_v50 = vmul.f32 %v14399_v36, %v14354_v23  ;;  %v2214_v57 = vadd.f32 %v2206_v54, %v2196_v29  ;;  %v2231_v17 = vadd.f32 %v2223_v12, %v2213_v15  ;;  %v4062_v27 = vmul.f32 %v14399_v36, %v14365_v13  ;;  %v14404_v12 = vld [vmem:[#allocation53_spill] sm:$0xff]  ;;  %v14422_v48 = vld [vmem:[#allocation148_spill] sm:$0xff]  ;;  %v14433_v23 = vld [vmem:[#allocation22_spill] sm:$0xff] }
 0x33a   :  { %v4079_v32 = vmul.f32 %v14400_v35, %v14295_v5  ;;  %v4015_v56 = vadd.f32 %v4007_v14, %v3997_v1  ;;  %v4016_v46 = vadd.f32 %v4008_v52, %v3998_v4  ;;  %v4080_v34 = vmul.f32 %v14400_v35, %v14367_v38  ;;  %v14411_v29 = vld [vmem:[#allocation145_spill] sm:$0xff]  ;;  %v14437_v5 = vld [vmem:[#allocation174_spill] sm:$0xff] }
 0x33b   :  { %v4097_v39 = vmul.f32 %v14402_v9, %v14401_v63  ;;  %v2232_v47 = vadd.f32 %v10655_v19, %v2214_v57  ;;  %v2249_v7 = vadd.f32 %v2241_v30, %v2231_v17  ;;  %v4098_v54 = vmul.f32 %v14402_v9, %v14403_v22  ;;  %v14410_v19 = vld [vmem:[#allocation54_spill] sm:$0xff] }
 0x33c   :  { %v4115_v31 = vmul.f32 %v14405_v25, %v14404_v12  ;;  %v4033_v0 = vadd.f32 %v4025_v18, %v4015_v56  ;;  %v4034_v33 = vadd.f32 %v4026_v3, %v4016_v46  ;;  %v4116_v26 = vmul.f32 %v14405_v25, %v14406_v51  ;;  %v14412_v18 = vld [vmem:[#allocation195_spill] sm:$0xff]  ;;  %v14413_v57 = vld [vmem:[#allocation178_spill] sm:$0xff] }
 0x33d   :  { %v4133_v14 = vmul.f32 %v14408_v43, %v14407_v58  ;;  %v2250_v59 = vadd.f32 %v10662_v11, %v2232_v47  ;;  %v2259_v52 = vadd.f32 %v14409_v2, %v2249_v7  ;;  %v4134_v30 = vmul.f32 %v14408_v43, %v14410_v19  ;;  %v14414_v17 = vld [vmem:[#allocation146_spill] sm:$0xff]  ;;  %v14417_v19 = vld [vmem:[#allocation149_spill] sm:$0xff] }
 0x33e   :  { %v4151_v15 = vmul.f32 %v14411_v29, %v14367_v38  ;;  %v4051_v1 = vadd.f32 %v4043_v16, %v4033_v0  ;;  %v4052_v4 = vadd.f32 %v4044_v55, %v4034_v33  ;;  %v4152_v3 = vmul.f32 %v14411_v29, %v14412_v18  ;;  %v14416_v7 = vld [vmem:[#allocation42_spill] sm:$0xff]  ;;  %v14418_v16 = vld [vmem:[#allocation135_spill] sm:$0xff]  ;;  %v14419_v0 = vld [vmem:[#allocation56_spill] sm:$0xff] }
 0x33f   :  { %v4169_v56 = vmul.f32 %v14414_v17, %v14413_v57  ;;  %v10742_v46 = vadd.f32 %v14409_v2, %v2250_v59  ;;  %v2267_v11 = vmax.f32 %v2259_v52, 0.0  ;;  %v4170_v47 = vmul.f32 %v14414_v17, %v14380_v41  ;;  %v14420_v33 = vld [vmem:[#allocation147_spill] sm:$0xff]  ;;  %v14421_v38 = vld [vmem:[#allocation34_spill] sm:$0xff]  ;;  %v14439_v2 = vld [vmem:[#allocation36_spill] sm:$0xff] }
 0x340   :  { %v4187_v58 = vmul.f32 %v14417_v19, %v14416_v7  ;;  %v4069_v51 = vadd.f32 %v4061_v50, %v4051_v1  ;;  %v4070_v12 = vadd.f32 %v4062_v27, %v4052_v4  ;;  %v4188_v55 = vmul.f32 %v14417_v19, %v14418_v16  ;;  %v14423_v1 = vld [vmem:[#allocation158_spill] sm:$0xff] }
 0x341   :  { %14415 = vst [vmem:[#allocation138_spill] sm:$0xff] %v10742_v46  ;;  %v10752_v22 = vmul.f32 %v14420_v33, %v14419_v0  ;;  %v13059_v63 = vmax.f32 %v10742_v46, 0.0  ;;  %v2275_v59 = vrot.slane %v2267_v11, 2  ;;  %v10757_v52 = vmul.f32 %v14420_v33, %v14388_v42  ;;  %v14424_v0 = vld [vmem:[#allocation130_spill] sm:$0xff]  ;;  %v14426_v42 = vld [vmem:[#allocation125_spill] sm:$0xff] }
 0x342   :  { %v10761_v49 = vmul.f32 %v14422_v48, %v14421_v38  ;;  %v4087_v50 = vadd.f32 %v4079_v32, %v4069_v51  ;;  %v4088_v27 = vadd.f32 %v4080_v34, %v4070_v12  ;;  %v10765_v4 = vmul.f32 %v14422_v48, %v14423_v1  ;;  %v14428_v38 = vld [vmem:[#allocation41_spill] sm:$0xff]  ;;  %v14430_v34 = vld [vmem:[#allocation131_spill] sm:$0xff]  ;;  %v14431_v51 = vld [vmem:[#allocation150_spill] sm:$0xff] }
 0x343   :  { %v10769_v16 = vmul.f32 %v14424_v0, %v14380_v41  ;;  %v10773_v7 = vrot.slane %v13059_v63, 2  ;;  %v2280_v8 = vsel %vm144_vm1, %v14426_v42, %v2275_v59  ;;  %v10780_v32 = vmul.f32 %v14424_v0, %v14428_v38  ;;  %v14435_v42 = vld [vmem:[#allocation68_spill] sm:$0xff]  ;;  %v14447_v33 = vld [vmem:[#allocation162_spill] sm:$0xff] }
 0x344   :  { %v1909_v12 = vmul.f32 %v14430_v34, %v14350_v10  ;;  %v14432_v1 = vmax.f32 %v14431_v51, 0.0  ;;  %v4105_v41 = vadd.f32 %v4097_v39, %v4087_v50  ;;  %v4106_v45 = vadd.f32 %v4098_v54, %v4088_v27  ;;  %v14440_v34 = vld [vmem:[#allocation142_spill] sm:$0xff]  ;;  %v14441_v50 = vld [vmem:[#allocation143_spill] sm:$0xff]  ;;  %v14442_v27 = vld [vmem:[#allocation73_spill] sm:$0xff] }
 0x345   :  { %14425 = vst [vmem:[#allocation152_spill] sm:$0xff] %v10773_v7  ;;  %14429 = vst [vmem:[#allocation151_spill] sm:$0xff] %v10780_v32  ;;  %v1919_v63 = vmul.f32 %v14434_v53, %v14433_v23  ;;  %v2279_v62 = vsel %vm144_vm1, %v2275_v59, %v10773_v7  ;;  %v1937_v57 = vmul.f32 %v14436_v24, %v14435_v42  ;;  %v14444_v59 = vld [vmem:[#allocation167_spill] sm:$0xff]  ;;  %v14445_v7 = vld [vmem:[#allocation33_spill] sm:$0xff] }
 0x346   :  { %v2290_v44 = vmax.f32 %v14432_v1, %v2280_v8  ;;  %v1955_v46 = vmul.f32 %v14438_v21, %v14437_v5  ;;  %v1973_v0 = vmul.f32 %v14440_v34, %v14439_v2  ;;  %v2291_v51 = vmax.f32 %v2267_v11, %v2279_v62  ;;  %v14443_v1 = vld [vmem:[#allocation46_spill] sm:$0xff]  ;;  %v14448_v62 = vld [vmem:[#allocation48_spill] sm:$0xff] }
 0x347   :  { %v4123_v8 = vadd.f32 %v4115_v31, %v4105_v41  ;;  %v4124_v39 = vadd.f32 %v4116_v26, %v4106_v45  ;;  %v1927_v54 = vadd.f32 %v1919_v63, %v1909_v12  ;;  %v1991_v53 = vmul.f32 %v14441_v50, %v14365_v13  ;;  %v14446_v24 = vld [vmem:[#allocation134_spill] sm:$0xff]  ;;  %v14449_v41 = vld [vmem:[#allocation153_spill] sm:$0xff]  ;;  %v14450_v63 = vld [vmem:[#allocation59_spill] sm:$0xff] }
 0x348   :  { %v2009_v20 = vmul.f32 %v14443_v1, %v14442_v27  ;;  %v2027_v48 = vmul.f32 %v14445_v7, %v14444_v59  ;;  %v2045_v19 = vmul.f32 %v14447_v33, %v14446_v24  ;;  %v5554_v21 = vpack.c.bf16 %v2291_v51, %v2290_v44  ;;  %v14451_v26 = vld [vmem:[#allocation136_spill] sm:$0xff]  ;;  %v14458_v33 = vld [vmem:[#allocation161_spill] sm:$0xff] }
 0x349   :  { %v4141_v17 = vadd.f32 %v4133_v14, %v4123_v8  ;;  %v4142_v32 = vadd.f32 %v4134_v30, %v4124_v39  ;;  %v1945_v34 = vadd.f32 %v1937_v57, %v1927_v54  ;;  %v2063_v45 = vmul.f32 %v14449_v41, %v14448_v62  ;;  %v14452_v11 = vld [vmem:[#allocation192_spill] sm:$0xff]  ;;  %v14457_v57 = vld [vmem:[#allocation157_spill] sm:$0xff]  ;;  %v14461_v39 = vld [vmem:[#allocation110_spill] sm:$0xff] }
 0x34a   :  { %v10809_v31 = vmul.f32 %v14450_v63, %v14412_v18  ;;  %v10813_v12 = vmul.f32 %v14452_v11, %v14451_v26  ;;  %v14454_v50 = vld [vmem:[#allocation140_spill] sm:$0xff]  ;;  %5555 = vmatprep.subr.bf16.mxu1 %v5554_v21  ;;  %v10821_v51 = vmul.f32 %v14458_v33, %v14457_v57  ;;  %v14460_v8 = vld [vmem:[#allocation61_spill] sm:$0xff]  ;;  %v14463_v41 = vld [vmem:[#allocation111_spill] sm:$0xff] }
 0x34b   :  { %v14455_v7 = vld [vmem:[#allocation156_spill] sm:$0xff]  ;;  %v4159_v44 = vadd.f32 %v4151_v15, %v4141_v17  ;;  %v4160_v14 = vadd.f32 %v4152_v3, %v4142_v32  ;;  %v1963_v30 = vadd.f32 %v1955_v46, %v1945_v34  ;;  %5557 = vmatpush3.bf16.msra.mxu1 %v5554_v21  ;;  %v10825_v54 = vmul.f32 %v14461_v39, %v14460_v8  ;;  %v14465_v11 = vld [vmem:[#allocation55_spill] sm:$0xff]  ;;  %v14468_v15 = vld [vmem:[#allocation65_spill] sm:$0xff] }
 0x34c   :  { %14453 = vst [vmem:[#allocation124_spill] sm:$0xff] %v10813_v12  ;;  %v10817_v1 = vmul.f32 %v14455_v7, %v14454_v50  ;;  %14459 = vst [vmem:[#allocation132_spill] sm:$0xff] %v10821_v51  ;;  %v10829_v63 = vmul.f32 %v14463_v41, %v14428_v38  ;;  %v14466_v7 = vld [vmem:[#allocation112_spill] sm:$0xff]  ;;  %v14469_v3 = vld [vmem:[#allocation115_spill] sm:$0xff] }
 0x34d   :  { %14462 = vst [vmem:[#allocation160_spill] sm:$0xff] %v10825_v54  ;;  %v10837_v17 = vmul.f32 %v14469_v3, %v14468_v15  ;;  %v4177_v46 = vadd.f32 %v4169_v56, %v4159_v44  ;;  %v4178_v32 = vadd.f32 %v4170_v47, %v4160_v14  ;;  %v1981_v34 = vadd.f32 %v1973_v0, %v1963_v30  ;;  %v14471_v21 = vld [vmem:[#allocation66_spill] sm:$0xff]  ;;  %v14472_v33 = vld [vmem:[#allocation116_spill] sm:$0xff]  ;;  %v14474_v54 = vld [vmem:[#allocation117_spill] sm:$0xff] }
 0x34e   :  { %14456 = vst [vmem:[#allocation122_spill] sm:$0xff] %v10817_v1  ;;  %14464 = vst [vmem:[#allocation189_spill] sm:$0xff] %v10829_v63  ;;  %v10833_v1 = vmul.f32 %v14466_v7, %v14465_v11  ;;  %v10841_v51 = vmul.f32 %v14472_v33, %v14471_v21  ;;  %v14473_v39 = vld [vmem:[#allocation76_spill] sm:$0xff]  ;;  %v14475_v41 = vld [vmem:[#allocation119_spill] sm:$0xff]  ;;  %v3955_v44 = vmul.f32 %v10109_v6, %v14437_v5 }
 0x34f   :  { %14470 = vst [vmem:[#allocation127_spill] sm:$0xff] %v10837_v17  ;;  %v10845_v12 = vmul.f32 %v14474_v54, %v14473_v39  ;;  %v3909_v63 = vmul.f32 %v14475_v41, %v14350_v10  ;;  %v14476_v7 = vld [vmem:[#allocation120_spill] sm:$0xff]  ;;  %v14477_v3 = vld [vmem:[#allocation121_spill] sm:$0xff]  ;;  %v4195_v56 = vadd.f32 %v4187_v58, %v4177_v46  ;;  %v4196_v47 = vadd.f32 %v4188_v55, %v4178_v32 }
 0x350   :  { %14467 = vst [vmem:[#allocation126_spill] sm:$0xff] %v10833_v1  ;;  %v3919_v1 = vmul.f32 %v14476_v7, %v14433_v23  ;;  %v3937_v17 = vmul.f32 %v14477_v3, %v14435_v42  ;;  %v1999_v0 = vadd.f32 %v1991_v53, %v1981_v34  ;;  %v3973_v30 = vmul.f32 %v10142_v28, %v14439_v2  ;;  %v14480_v32 = vld [vmem:[#allocation149_spill] sm:$0xff]  ;;  %v14481_v34 = vld [vmem:[#allocation147_spill] sm:$0xff] }
 0x351   :  { %v3991_v54 = vmul.f32 %v10161_v60, %v14365_v13  ;;  %v4009_v33 = vmul.f32 %v10174_v61, %v14442_v27  ;;  %v4213_v58 = vadd.f32 %v10752_v22, %v4195_v56  ;;  %v4214_v6 = vadd.f32 %v10757_v52, %v4196_v47  ;;  %v14484_v47 = vld [vmem:[#allocation130_spill] sm:$0xff]  ;;  %v14502_v5 = vld [vmem:[#allocation77_spill] sm:$0xff] }
 0x352   :  { %v3927_v14 = vadd.f32 %v3919_v1, %v3909_v63  ;;  %v2017_v55 = vadd.f32 %v2009_v20, %v1999_v0  ;;  %v4027_v53 = vmul.f32 %v10183_v40, %v14444_v59  ;;  %v4045_v28 = vmul.f32 %v10194_v37, %v14446_v24  ;;  %v14501_v59 = vld [vmem:[#allocation80_spill] sm:$0xff]  ;;  %v14527_v13 = vld [vmem:[#allocation118_spill] sm:$0xff] }
 0x353   :  { %v4063_v60 = vmul.f32 %v14399_v36, %v14448_v62  ;;  %v10877_v61 = vmul.f32 %v14400_v35, %v14412_v18  ;;  %v4231_v63 = vadd.f32 %v10761_v49, %v4213_v58  ;;  %v4232_v22 = vadd.f32 %v10765_v4, %v4214_v6  ;;  %v14478_v35 = vld [vmem:[#allocation151_spill] sm:$0xff] }
 0x354   :  { %v3945_v1 = vadd.f32 %v3937_v17, %v3927_v14  ;;  %v2035_v52 = vadd.f32 %v2027_v48, %v2017_v55  ;;  %v10883_v20 = vmul.f32 %v14402_v9, %v14451_v26  ;;  %v10887_v37 = vmul.f32 %v14405_v25, %v14454_v50  ;;  %v14479_v17 = vld [vmem:[#allocation146_spill] sm:$0xff]  ;;  %v14500_v26 = vld [vmem:[#allocation132_spill] sm:$0xff] }
 0x355   :  { %v10891_v36 = vmul.f32 %v14408_v43, %v14457_v57  ;;  %v10895_v49 = vmul.f32 %v14411_v29, %v14460_v8  ;;  %v4249_v48 = vadd.f32 %v10769_v16, %v4231_v63  ;;  %v4250_v9 = vadd.f32 %v14478_v35, %v4232_v22  ;;  %v14482_v29 = vld [vmem:[#allocation148_spill] sm:$0xff] }
 0x356   :  { %v3963_v40 = vadd.f32 %v3955_v44, %v3945_v1  ;;  %v2053_v4 = vadd.f32 %v2045_v19, %v2035_v52  ;;  %v10901_v25 = vmul.f32 %v14479_v17, %v14428_v38  ;;  %v10905_v43 = vmul.f32 %v14480_v32, %v14465_v11  ;;  %v14483_v16 = vld [vmem:[#allocation128_spill] sm:$0xff]  ;;  %v14489_v52 = vld [vmem:[#allocation38_spill] sm:$0xff] }
 0x357   :  { %v10909_v41 = vmul.f32 %v14481_v34, %v14468_v15  ;;  %v10913_v7 = vmul.f32 %v14482_v29, %v14471_v21  ;;  %v4259_v3 = vadd.f32 %v14483_v16, %v4249_v48  ;;  %v10917_v19 = vadd.f32 %v14483_v16, %v4250_v9  ;;  %v14490_v48 = vld [vmem:[#allocation69_spill] sm:$0xff]  ;;  %v14491_v17 = vld [vmem:[#allocation124_spill] sm:$0xff]  ;;  %v14498_v15 = vld [vmem:[#allocation67_spill] sm:$0xff] }
 0x358   :  { %v3981_v46 = vadd.f32 %v3973_v30, %v3963_v40  ;;  %v2071_v56 = vadd.f32 %v2063_v45, %v2053_v4  ;;  %v10921_v0 = vmul.f32 %v14484_v47, %v14473_v39  ;;  %v10924_v14 = vstv %s10855_s18  ;;  %v14493_v34 = vld [vmem:[#allocation72_spill] sm:$0xff]  ;;  %v14496_v21 = vld [vmem:[#allocation129_spill] sm:$0xff]  ;;  %s11237_s18 = sld [smem:[#allocation9 + $0x92]] }
 0x359   :  { %14485 = vst [vmem:[#allocation155_spill] sm:$0xff] %v10924_v14  ;;  %v10927_v30 = vstv %s10863_s19  ;;  %v10930_v58 = vstv %s10865_s2  ;;  %v4267_v6 = vmax.f32 %v4259_v3, 0.0  ;;  %v13073_v55 = vmax.f32 %v10917_v19, 0.0  ;;  %s11239_s19 = sld [smem:[#allocation9 + $0x93]]  ;;  %s11253_s2 = sld [smem:[#allocation9 + $0x94]] }
 0x35a   :  { %v3999_v44 = vadd.f32 %v3991_v54, %v3981_v46  ;;  %14486 = vst [vmem:[#allocation144_spill] sm:$0xff] %v10927_v30  ;;  %14487 = vst [vmem:[#allocation145_spill] sm:$0xff] %v10930_v58  ;;  %v2089_v45 = vadd.f32 %v10809_v31, %v2071_v56  ;;  %v2402_v1 = vmul.f32 %v10924_v14, %v14439_v2  ;;  %v14488_v54 = vld [vmem:[#allocation37_spill] sm:$0xff]  ;;  %v14492_v46 = vld [vmem:[#allocation71_spill] sm:$0xff] }
 0x35b   :  { %v2403_v22 = vmul.f32 %v10924_v14, %v14488_v54  ;;  %v2404_v40 = vmul.f32 %v10924_v14, %v14489_v52  ;;  %v2412_v35 = vmul.f32 %v10927_v30, %v14490_v48  ;;  %v4275_v9 = vrot.slane %v4267_v6, 2  ;;  %v14494_v56 = vld [vmem:[#allocation75_spill] sm:$0xff] }
 0x35c   :  { %v4017_v63 = vadd.f32 %v4009_v33, %v3999_v44  ;;  %v10948_v4 = vrot.slane %v13073_v55, 2  ;;  %v2107_v31 = vadd.f32 %v14491_v17, %v2089_v45  ;;  %v2413_v32 = vmul.f32 %v10927_v30, %v14492_v46  ;;  %v14497_v17 = vld [vmem:[#allocation122_spill] sm:$0xff] }
 0x35d   :  { %v2414_v29 = vmul.f32 %v10927_v30, %v14493_v34  ;;  %v2420_v3 = vadd.f32 %v2412_v35, %v2402_v1  ;;  %v2430_v47 = vmul.f32 %v10930_v58, %v14494_v56  ;;  %v4280_v45 = vsel %vm144_vm1, %v14496_v21, %v4275_v9 }
 0x35e   :  { %v4035_v33 = vadd.f32 %v4027_v53, %v4017_v63  ;;  %v4279_v55 = vsel %vm144_vm1, %v4275_v9, %v10948_v4  ;;  %v2125_v53 = vadd.f32 %v14497_v17, %v2107_v31  ;;  %v2421_v63 = vadd.f32 %v2413_v32, %v2403_v22  ;;  %v14506_v9 = vld [vmem:[#allocation84_spill] sm:$0xff] }
 0x35f   :  { %v14499_v1 = vmax.f32 %v14498_v15, 0.0  ;;  %v4291_v11 = vmax.f32 %v4267_v6, %v4279_v55  ;;  %v2422_v50 = vadd.f32 %v2414_v29, %v2404_v40  ;;  %v2431_v27 = vmul.f32 %v10930_v58, %v14501_v59 }
 0x360   :  { %v4053_v57 = vadd.f32 %v4045_v28, %v4035_v33  ;;  %v2143_v24 = vadd.f32 %v14500_v26, %v2125_v53  ;;  %v2432_v42 = vmul.f32 %v10930_v58, %v14502_v5  ;;  %v2438_v23 = vadd.f32 %v2430_v47, %v2420_v3  ;;  %v14505_v28 = vld [vmem:[#allocation160_spill] sm:$0xff]  ;;  %v14507_v33 = vld [vmem:[#allocation83_spill] sm:$0xff] }
 0x361   :  { %v4290_v35 = vmax.f32 %v14499_v1, %v4280_v45  ;;  %v10978_v15 = vstv %s10932_s20  ;;  %v10981_v6 = vstv %s10934_s21  ;;  %v2439_v26 = vadd.f32 %v2431_v27, %v2421_v63  ;;  %v14510_v3 = vld [vmem:[#allocation39_spill] sm:$0xff]  ;;  %v14512_v63 = vld [vmem:[#allocation126_spill] sm:$0xff]  ;;  %s11264_s20 = sld [smem:[#allocation9 + $0x95]]  ;;  %s11266_s21 = sld [smem:[#allocation9 + $0x96]] }
 0x362   :  { %v4071_v22 = vadd.f32 %v4063_v60, %v4053_v57  ;;  %14503 = vst [vmem:[#allocation125_spill] sm:$0xff] %v10978_v15  ;;  %14504 = vst [vmem:[#allocation131_spill] sm:$0xff] %v10981_v6  ;;  %v2161_v55 = vadd.f32 %v14505_v28, %v2143_v24  ;;  %v2440_v40 = vadd.f32 %v2432_v42, %v2422_v50  ;;  %v14509_v24 = vld [vmem:[#allocation189_spill] sm:$0xff]  ;;  %v11002_v53 = vstv %s10957_s22  ;;  %s11289_s22 = sld [smem:[#allocation9 + $0x97]] }
 0x363   :  { %v5618_v21 = vpack.c.bf16 %v4291_v11, %v4290_v35  ;;  %v2448_v31 = vmul.f32 %v10978_v15, %v14506_v9  ;;  %v2449_v29 = vmul.f32 %v10978_v15, %v14507_v33  ;;  %v14508_v11 = vld [vmem:[#allocation82_spill] sm:$0xff]  ;;  %v2466_v60 = vmul.f32 %v10981_v6, %v14488_v54  ;;  %14511 = vst [vmem:[#allocation150_spill] sm:$0xff] %v11002_v53 }
 0x364   :  { %v4089_v32 = vadd.f32 %v10877_v61, %v4071_v22  ;;  %v2450_v57 = vmul.f32 %v10978_v15, %v14508_v11  ;;  %v2179_v27 = vadd.f32 %v14509_v24, %v2161_v55  ;;  %v2467_v50 = vmul.f32 %v10981_v6, %v14489_v52  ;;  %v14541_v15 = vld [vmem:[#allocation96_spill] sm:$0xff] }
 0x365   :  { %5619 = vmatprep.subr.bf16.mxu0 %v5618_v21  ;;  %v2456_v42 = vadd.f32 %v2448_v31, %v2438_v23  ;;  %v2468_v47 = vmul.f32 %v10981_v6, %v14510_v3  ;;  %v2457_v45 = vadd.f32 %v2449_v29, %v2439_v26  ;;  %v2484_v23 = vmul.f32 %v11002_v53, %v14448_v62 }
 0x366   :  { %5621 = vmatpush3.bf16.msra.mxu0 %v5618_v21  ;;  %v4107_v61 = vadd.f32 %v10883_v20, %v4089_v32  ;;  %v2458_v17 = vadd.f32 %v2450_v57, %v2440_v40  ;;  %v2197_v1 = vadd.f32 %v14512_v63, %v2179_v27  ;;  %v14513_v21 = vld [vmem:[#allocation49_spill] sm:$0xff]  ;;  %v14514_v20 = vld [vmem:[#allocation50_spill] sm:$0xff]  ;;  %v14515_v40 = vld [vmem:[#allocation127_spill] sm:$0xff]  ;;  %v11018_v57 = vstv %s10973_s25  ;;  %s11305_s25 = sld [smem:[#allocation9 + $0x98]] }
 0x367   :  { %v2474_v35 = vadd.f32 %v2466_v60, %v2456_v42  ;;  %v2485_v22 = vmul.f32 %v11002_v53, %v14513_v21  ;;  %v2475_v55 = vadd.f32 %v2467_v50, %v2457_v45  ;;  %v2486_v26 = vmul.f32 %v11002_v53, %v14514_v20  ;;  %14516 = vst [vmem:[#allocation133_spill] sm:$0xff] %v11018_v57  ;;  %v14518_v42 = vld [vmem:[#allocation86_spill] sm:$0xff]  ;;  %v14528_v53 = vld [vmem:[#allocation91_spill] sm:$0xff] }
 0x368   :  { %v4125_v28 = vadd.f32 %v10887_v37, %v4107_v61  ;;  %v2476_v31 = vadd.f32 %v2468_v47, %v2458_v17  ;;  %v2215_v32 = vadd.f32 %v14515_v40, %v2197_v1  ;;  %v11021_v60 = vstv %s10975_s4  ;;  %v14519_v61 = vld [vmem:[#allocation85_spill] sm:$0xff]  ;;  %v14520_v17 = vld [vmem:[#allocation87_spill] sm:$0xff]  ;;  %v14521_v1 = vld [vmem:[#allocation88_spill] sm:$0xff]  ;;  %s11307_s4 = sld [smem:[#allocation9 + $0x99]] }
 0x369   :  { %v2492_v29 = vadd.f32 %v2484_v23, %v2474_v35  ;;  %14517 = vst [vmem:[#allocation154_spill] sm:$0xff] %v11021_v60  ;;  %v2493_v37 = vadd.f32 %v2485_v22, %v2475_v55  ;;  %v2502_v50 = vmul.f32 %v11018_v57, %v14518_v42  ;;  %v2503_v45 = vmul.f32 %v11018_v57, %v14519_v61  ;;  %v14523_v55 = vld [vmem:[#allocation89_spill] sm:$0xff] }
 0x36a   :  { %v4143_v24 = vadd.f32 %v10891_v36, %v4125_v28  ;;  %v2494_v27 = vadd.f32 %v2486_v26, %v2476_v31  ;;  %v2233_v47 = vadd.f32 %v10841_v51, %v2215_v32  ;;  %v2504_v63 = vmul.f32 %v11018_v57, %v14520_v17  ;;  %v14522_v28 = vld [vmem:[#allocation90_spill] sm:$0xff] }
 0x36b   :  { %v2520_v35 = vmul.f32 %v11021_v60, %v14521_v1  ;;  %v2510_v36 = vadd.f32 %v2502_v50, %v2492_v29  ;;  %v2521_v22 = vmul.f32 %v11021_v60, %v14522_v28  ;;  %v2522_v31 = vmul.f32 %v11021_v60, %v14523_v55  ;;  %v14525_v29 = vld [vmem:[#allocation93_spill] sm:$0xff]  ;;  %v14526_v50 = vld [vmem:[#allocation92_spill] sm:$0xff] }
 0x36c   :  { %v4161_v23 = vadd.f32 %v10895_v49, %v4143_v24  ;;  %v2251_v51 = vadd.f32 %v10845_v12, %v2233_v47  ;;  %v2511_v26 = vadd.f32 %v2503_v45, %v2493_v37  ;;  %v2512_v40 = vadd.f32 %v2504_v63, %v2494_v27 }
 0x36d   :  { %v11042_v32 = vstv %s10998_s26  ;;  %v2528_v49 = vadd.f32 %v2520_v35, %v2510_v36  ;;  %v11054_v47 = vstv %s11012_s27  ;;  %v11101_v58 = vstv %s11059_s5  ;;  %s11324_s26 = sld [smem:[#allocation9 + $0x9a]]  ;;  %s11334_s27 = sld [smem:[#allocation9 + $0x9b]] }
 0x36e   :  { %14524 = vst [vmem:[#allocation141_spill] sm:$0xff] %v11042_v32  ;;  %v4179_v38 = vadd.f32 %v10901_v25, %v4161_v23  ;;  %v2538_v24 = vmul.f32 %v11042_v32, %v14525_v29  ;;  %v2539_v18 = vmul.f32 %v11042_v32, %v14526_v50  ;;  %v2261_v10 = vadd.f32 %v14527_v13, %v2251_v51  ;;  %s11371_s5 = sld [smem:[#allocation9 + $0x9e]] }
 0x36f   :  { %v2529_v60 = vadd.f32 %v2521_v22, %v2511_v26  ;;  %v2530_v57 = vadd.f32 %v2522_v31, %v2512_v40  ;;  %v2540_v12 = vmul.f32 %v11042_v32, %v14528_v53  ;;  %14529 = vst [vmem:[#allocation142_spill] sm:$0xff] %v11054_v47  ;;  %v11057_v25 = vstv %s11014_s28  ;;  %14542 = vst [vmem:[#allocation33_spill] sm:$0xff] %v11101_v58  ;;  %s11336_s28 = sld [smem:[#allocation9 + $0x9c]] }
 0x370   :  { %v4197_v37 = vadd.f32 %v10905_v43, %v4179_v38  ;;  %v2546_v27 = vadd.f32 %v2538_v24, %v2528_v49  ;;  %14530 = vst [vmem:[#allocation143_spill] sm:$0xff] %v11057_v25  ;;  %v2269_v45 = vmax.f32 %v2261_v10, 0.0  ;;  %v2556_v35 = vmul.f32 %v11054_v47, %v14513_v21  ;;  %v14531_v43 = vld [vmem:[#allocation51_spill] sm:$0xff]  ;;  %v14532_v10 = vld [vmem:[#allocation62_spill] sm:$0xff]  ;;  %v14535_v24 = vld [vmem:[#allocation152_spill] sm:$0xff] }
 0x371   :  { %v2547_v63 = vadd.f32 %v2539_v18, %v2529_v60  ;;  %v2548_v13 = vadd.f32 %v2540_v12, %v2530_v57  ;;  %v2557_v38 = vmul.f32 %v11054_v47, %v14514_v20  ;;  %v2558_v36 = vmul.f32 %v11054_v47, %v14531_v43  ;;  %v14533_v57 = vld [vmem:[#allocation63_spill] sm:$0xff] }
 0x372   :  { %v4215_v23 = vadd.f32 %v10909_v41, %v4197_v37  ;;  %v2574_v22 = vmul.f32 %v11057_v25, %v14460_v8  ;;  %v2277_v31 = vrot.slane %v2269_v45, 2  ;;  %v2564_v51 = vadd.f32 %v2556_v35, %v2546_v27  ;;  %v14536_v37 = vld [vmem:[#allocation123_spill] sm:$0xff] }
 0x373   :  { %v2575_v18 = vmul.f32 %v11057_v25, %v14532_v10  ;;  %v2576_v60 = vmul.f32 %v11057_v25, %v14533_v57  ;;  %v2565_v26 = vadd.f32 %v2557_v38, %v2547_v63  ;;  %v2566_v40 = vadd.f32 %v2558_v36, %v2548_v13  ;;  %v14537_v25 = vld [vmem:[#allocation94_spill] sm:$0xff] }
 0x374   :  { %v4233_v41 = vadd.f32 %v10913_v7, %v4215_v23  ;;  %v11080_v49 = vstv %s11038_s29  ;;  %v2278_v12 = vsel %vm144_vm1, %v14535_v24, %v2277_v31  ;;  %v2285_v27 = vsel %vm144_vm1, %v2277_v31, %v14536_v37  ;;  %v14538_v7 = vld [vmem:[#allocation138_spill] sm:$0xff]  ;;  %v14540_v24 = vld [vmem:[#allocation95_spill] sm:$0xff]  ;;  %s11340_s29 = sld [smem:[#allocation9 + $0x9d]] }
 0x375   :  { %14534 = vst [vmem:[#allocation46_spill] sm:$0xff] %v11080_v49  ;;  %v2582_v35 = vadd.f32 %v2574_v22, %v2564_v51  ;;  %v2592_v47 = vmul.f32 %v11080_v49, %v14537_v25  ;;  %v14539_v63 = vmax.f32 %v14538_v7, 0.0  ;;  %v2293_v23 = vmax.f32 %v2269_v45, %v2285_v27 }
 0x376   :  { %v4251_v38 = vadd.f32 %v10921_v0, %v4233_v41  ;;  %v2583_v36 = vadd.f32 %v2575_v18, %v2565_v26  ;;  %v2584_v32 = vadd.f32 %v2576_v60, %v2566_v40  ;;  %v2593_v6 = vmul.f32 %v11080_v49, %v14540_v24  ;;  %v14544_v18 = vld [vmem:[#allocation97_spill] sm:$0xff]  ;;  %v14545_v41 = vld [vmem:[#allocation99_spill] sm:$0xff]  ;;  %v14546_v40 = vld [vmem:[#allocation98_spill] sm:$0xff] }
 0x377   :  { %v2292_v13 = vmax.f32 %v14539_v63, %v2278_v12  ;;  %v2594_v31 = vmul.f32 %v11080_v49, %v14541_v15  ;;  %v2600_v22 = vadd.f32 %v2592_v47, %v2582_v35  ;;  %v11104_v30 = vstv %s11061_s23  ;;  %v14547_v12 = vld [vmem:[#allocation101_spill] sm:$0xff]  ;;  %v14548_v35 = vld [vmem:[#allocation100_spill] sm:$0xff]  ;;  %v14549_v63 = vld [vmem:[#allocation102_spill] sm:$0xff]  ;;  %s11373_s23 = sld [smem:[#allocation9 + $0x9f]] }
 0x378   :  { %v4261_v37 = vadd.f32 %v14483_v16, %v4251_v38  ;;  %14543 = vst [vmem:[#allocation162_spill] sm:$0xff] %v11104_v30  ;;  %v2601_v0 = vadd.f32 %v2593_v6, %v2583_v36  ;;  %v2610_v60 = vmul.f32 %v11101_v58, %v14544_v18  ;;  %v2611_v26 = vmul.f32 %v11101_v58, %v14545_v41  ;;  %v2296_v38 = vld [vmem:[#allocation12 + $0x48] sm:$0xff] }
 0x379   :  { %v5558_v51 = vpack.c.bf16 %v2293_v23, %v2292_v13  ;;  %v2602_v45 = vadd.f32 %v2594_v31, %v2584_v32  ;;  %v2612_v16 = vmul.f32 %v11101_v58, %v14546_v40  ;;  %v2628_v27 = vmul.f32 %v11104_v30, %v14547_v12 }
 0x37a   :  { %v4269_v47 = vmax.f32 %v4261_v37, 0.0  ;;  %v2629_v7 = vmul.f32 %v11104_v30, %v14548_v35  ;;  %v2618_v6 = vadd.f32 %v2610_v60, %v2600_v22  ;;  %v2619_v32 = vadd.f32 %v2611_v26, %v2601_v0  ;;  %v14551_v0 = vld [vmem:[#allocation64_spill] sm:$0xff] }
 0x37b   :  { %5559 = vmatprep.subr.bf16.mxu1 %v5558_v51  ;;  %v2630_v13 = vmul.f32 %v11104_v30, %v14549_v63  ;;  %v11123_v23 = vstv %s11076_s24  ;;  %v2620_v31 = vadd.f32 %v2612_v16, %v2602_v45  ;;  %v11136_v26 = vstv %s11090_s30  ;;  %v14553_v16 = vld [vmem:[#allocation137_spill] sm:$0xff]  ;;  %s11426_s24 = sld [smem:[#allocation10 + $0x7]] }
 0x37c   :  { %5561 = vmatpush3.bf16.msra.mxu1 %v5558_v51  ;;  %14550 = vst [vmem:[#allocation153_spill] sm:$0xff] %v11123_v23  ;;  %v4277_v36 = vrot.slane %v4269_v47, 2  ;;  %v2646_v37 = vmul.f32 %v11123_v23, %v14532_v10  ;;  %v2647_v58 = vmul.f32 %v11123_v23, %v14533_v57  ;;  %v2636_v22 = vadd.f32 %v2628_v27, %v2618_v6 }
 0x37d   :  { %v2637_v51 = vadd.f32 %v2629_v7, %v2619_v32  ;;  %v2648_v60 = vmul.f32 %v11123_v23, %v14551_v0  ;;  %14552 = vst [vmem:[#allocation59_spill] sm:$0xff] %v11136_v26  ;;  %v2638_v49 = vadd.f32 %v2630_v13, %v2620_v31  ;;  %v2664_v14 = vmul.f32 %v11136_v26, %v14473_v39  ;;  %v14555_v0 = vld [vmem:[#allocation78_spill] sm:$0xff] }
 0x37e   :  { %v4278_v45 = vsel %vm144_vm1, %v10948_v4, %v4277_v36  ;;  %v4285_v30 = vsel %vm144_vm1, %v4277_v36, %v14553_v16  ;;  %v14554_v27 = vmax.f32 %v10917_v19, 0.0  ;;  %v2654_v32 = vadd.f32 %v2646_v37, %v2636_v22  ;;  %v14556_v36 = vld [vmem:[#allocation79_spill] sm:$0xff]  ;;  %v14560_v22 = vld [vmem:[#allocation105_spill] sm:$0xff] }
 0x37f   :  { %5388 = vmatmul.mubr.msk.f32.vlgmr.msra.gmra.mrb[0].mxu1 %vm1278_vm5, %v2296_v38  ;;  %v4293_v6 = vmax.f32 %v4269_v47, %v4285_v30  ;;  %v2655_v23 = vadd.f32 %v2647_v58, %v2637_v51  ;;  %v2656_v4 = vadd.f32 %v2648_v60, %v2638_v49  ;;  %v2665_v13 = vmul.f32 %v11136_v26, %v14555_v0  ;;  %v14559_v58 = vld [vmem:[#allocation103_spill] sm:$0xff] }
 0x380   :  { %v4292_v7 = vmax.f32 %v14554_v27, %v4278_v45  ;;  %v2666_v31 = vmul.f32 %v11136_v26, %v14556_v36  ;;  %v11158_v16 = vstv %s11106_s10  ;;  %v2672_v19 = vadd.f32 %v2664_v14, %v2654_v32  ;;  %v14558_v45 = vld [vmem:[#allocation104_spill] sm:$0xff]  ;;  %v14562_v27 = vld [vmem:[#allocation106_spill] sm:$0xff]  ;;  %v14564_v26 = vld [vmem:[#allocation107_spill] sm:$0xff] }
 0x381   :  { %14557 = vst [vmem:[#allocation192_spill] sm:$0xff] %v11158_v16  ;;  %v2682_v30 = vmul.f32 %v11158_v16, %v14558_v45  ;;  %v2683_v47 = vmul.f32 %v11158_v16, %v14559_v58  ;;  %v2673_v49 = vadd.f32 %v2665_v13, %v2655_v23  ;;  %v2684_v51 = vmul.f32 %v11158_v16, %v14560_v22  ;;  %v14569_v22 = vld [vmem:[#allocation113_spill] sm:$0xff] }
 0x382   :  { %v5622_v38 = vpack.c.bf16 %v4293_v6, %v4292_v7  ;;  %v2674_v37 = vadd.f32 %v2666_v31, %v2656_v4  ;;  %v11171_v60 = vstv %s11118_s11  ;;  %v14563_v6 = vld [vmem:[#allocation108_spill] sm:$0xff]  ;;  %v11180_v4 = vstv %s11129_s12  ;;  %v4296_v31 = vld [vmem:[#allocation12 + $0xc8] sm:$0xff] }
 0x383   :  { %14561 = vst [vmem:[#allocation156_spill] sm:$0xff] %v11171_v60  ;;  %v2690_v14 = vadd.f32 %v2682_v30, %v2672_v19  ;;  %v2700_v7 = vmul.f32 %v11171_v60, %v14562_v27  ;;  %v2701_v32 = vmul.f32 %v11171_v60, %v14563_v6  ;;  %v2702_v58 = vmul.f32 %v11171_v60, %v14564_v26  ;;  %v14567_v30 = vld [vmem:[#allocation109_spill] sm:$0xff]  ;;  %v14568_v27 = vld [vmem:[#allocation114_spill] sm:$0xff] }
 0x384   :  { %5623 = vmatprep.subr.bf16.mxu0 %v5622_v38  ;;  %v2691_v45 = vadd.f32 %v2683_v47, %v2673_v49  ;;  %v2692_v23 = vadd.f32 %v2684_v51, %v2674_v37  ;;  %14565 = vst [vmem:[#allocation161_spill] sm:$0xff] %v11180_v4  ;;  %v11183_v13 = vstv %s11131_s13  ;;  %v2718_v16 = vmul.f32 %v11180_v4, %v14567_v30 }
 0x385   :  { %5625 = vmatpush3.bf16.msra.mxu0 %v5622_v38  ;;  %14566 = vst [vmem:[#allocation110_spill] sm:$0xff] %v11183_v13  ;;  %v2708_v19 = vadd.f32 %v2700_v7, %v2690_v14  ;;  %v2719_v6 = vmul.f32 %v11180_v4, %v14568_v27  ;;  %v2720_v60 = vmul.f32 %v11180_v4, %v14569_v22  ;;  %v14570_v14 = vld [vmem:[#allocation81_spill] sm:$0xff]  ;;  %v11200_v27 = vstv %s11149_s0 }
 0x386   :  { %v2709_v38 = vadd.f32 %v2701_v32, %v2691_v45  ;;  %v2710_v47 = vadd.f32 %v2702_v58, %v2692_v23  ;;  %v2736_v49 = vmul.f32 %v11183_v13, %v14555_v0  ;;  %v2737_v37 = vmul.f32 %v11183_v13, %v14556_v36  ;;  %14571 = vst [vmem:[#allocation111_spill] sm:$0xff] %v11200_v27 }
 0x387   :  { %v2726_v51 = vadd.f32 %v2718_v16, %v2708_v19  ;;  %v2738_v7 = vmul.f32 %v11183_v13, %v14570_v14  ;;  %v11203_v30 = vstv %s11151_s1  ;;  %v11215_v13 = vstv %s11164_s3 }
 0x388   :  { %14572 = vst [vmem:[#allocation112_spill] sm:$0xff] %v11203_v30  ;;  %5476 = vmatmul.mubr.msk.f32.vlgmr.msra.gmra.mrb[0].mxu0 %vm1278_vm5, %v4296_v31  ;;  %v2727_v45 = vadd.f32 %v2719_v6, %v2709_v38  ;;  %v2728_v32 = vadd.f32 %v2720_v60, %v2710_v47  ;;  %v4402_v58 = vmul.f32 %v11203_v30, %v14439_v2  ;;  %14573 = vst [vmem:[#allocation115_spill] sm:$0xff] %v11215_v13 }
 0x389   :  { %v4403_v23 = vmul.f32 %v11203_v30, %v14488_v54  ;;  %v2744_v16 = vadd.f32 %v2736_v49, %v2726_v51  ;;  %v4404_v19 = vmul.f32 %v11203_v30, %v14489_v52  ;;  %v11218_v4 = vstv %s11166_s14 }
 0x38a   :  { %14574 = vst [vmem:[#allocation116_spill] sm:$0xff] %v11218_v4  ;;  %v2745_v14 = vadd.f32 %v2737_v37, %v2727_v45  ;;  %v2746_v31 = vadd.f32 %v2738_v7, %v2728_v32  ;;  %v4412_v60 = vmul.f32 %v11215_v13, %v14490_v48  ;;  %v4413_v6 = vmul.f32 %v11215_v13, %v14492_v46 }
 0x38b   :  { %v2754_v38 = vadd.f32 %v11200_v27, %v2744_v16  ;;  %v4414_v47 = vmul.f32 %v11215_v13, %v14493_v34  ;;  %v4430_v49 = vmul.f32 %v11218_v4, %v14494_v56  ;;  %v4431_v51 = vmul.f32 %v11218_v4, %v14501_v59 }
 0x38c   :  { %v2755_v37 = vadd.f32 %v11200_v27, %v2745_v14  ;;  %v11235_v48 = vadd.f32 %v11200_v27, %v2746_v31  ;;  %v4420_v7 = vadd.f32 %v4412_v60, %v4402_v58  ;;  %v4421_v46 = vadd.f32 %v4413_v6, %v4403_v23  ;;  %v14632_v27 = vld [vmem:[#allocation176_spill] sm:$0xff] }
 0x38d   :  { %v2762_v34 = vmax.f32 %v2754_v38, 0.0  ;;  %v4422_v45 = vadd.f32 %v4414_v47, %v4404_v19  ;;  %v4432_v56 = vmul.f32 %v11218_v4, %v14502_v5  ;;  %v11244_v59 = vstv %s11191_s15 }
 0x38e   :  { %14575 = vst [vmem:[#allocation117_spill] sm:$0xff] %v11235_v48  ;;  %14576 = vst [vmem:[#allocation119_spill] sm:$0xff] %v11244_v59  ;;  %v2763_v32 = vmax.f32 %v2755_v37, 0.0  ;;  %v13131_v14 = vmax.f32 %v11235_v48, 0.0  ;;  %v4438_v16 = vadd.f32 %v4430_v49, %v4420_v7  ;;  %v4439_v31 = vadd.f32 %v4431_v51, %v4421_v46 }
 0x38f   :  { %v11247_v2 = vrot.slane %v2762_v34, 2  ;;  %v4440_v58 = vadd.f32 %v4432_v56, %v4422_v45  ;;  %v4448_v23 = vmul.f32 %v11244_v59, %v14506_v9  ;;  %v4449_v60 = vmul.f32 %v11244_v59, %v14507_v33 }
 0x390   :  { %v2771_v19 = vrot.slane %v2763_v32, 2  ;;  %v11257_v5 = vrot.slane %v13131_v14, 2  ;;  %v4450_v6 = vmul.f32 %v11244_v59, %v14508_v11  ;;  %v11262_v38 = vstv %s11210_s16  ;;  %s5834_s16 = smov [#allocation14]  }
 0x391   :  { %14577 = vst [vmem:[#allocation120_spill] sm:$0xff] %v11247_v2  ;;  %v4456_v9 = vadd.f32 %v4448_v23, %v4438_v16  ;;  %v4457_v33 = vadd.f32 %v4449_v60, %v4439_v31  ;;  %v4466_v47 = vmul.f32 %v11262_v38, %v14488_v54  ;;  %v4467_v49 = vmul.f32 %v11262_v38, %v14489_v52 }
 0x392   :  { %14578 = vst [vmem:[#allocation121_spill] sm:$0xff] %v11257_v5  ;;  %v2783_v11 = vsel %vm144_vm1, %v2771_v19, %v11257_v5  ;;  %v2784_v51 = vsel %vm144_vm1, %v11247_v2, %v2771_v19  ;;  %v4458_v37 = vadd.f32 %v4450_v6, %v4440_v58  ;;  %v4468_v7 = vmul.f32 %v11262_v38, %v14510_v3  ;;  %v14605_v2 = vld [vmem:[#allocation165_spill] sm:$0xff] }
 0x393   :  { %v2786_v46 = vmax.f32 %v2762_v34, %v2784_v51  ;;  %v2787_v45 = vmax.f32 %v2763_v32, %v2783_v11  ;;  %v4474_v56 = vadd.f32 %v4466_v47, %v4456_v9  ;;  %v4475_v16 = vadd.f32 %v4467_v49, %v4457_v33 }
 0x394   :  { %v4476_v54 = vadd.f32 %v4468_v7, %v4458_v37  ;;  %v11281_v31 = vstv %s11231_s17  ;;  %v11284_v52 = vstv %s11237_s18  ;;  %v11287_v23 = vstv %s11239_s19  ;;  %s4992_s17 = sshll.u32 %s5834_s16, 4  ;;  %s4993_s17 = int_to_ptr.vmem [resolvable:$true] %s4992_s17 }
 0x395   :  { %v5562_v60 = vpack.c.bf16 %v2787_v45, %v2786_v46  ;;  %v4484_v58 = vmul.f32 %v11281_v31, %v14448_v62  ;;  %v4485_v34 = vmul.f32 %v11281_v31, %v14513_v21  ;;  %v4486_v32 = vmul.f32 %v11281_v31, %v14514_v20  ;;  %v14607_v62 = vld [vmem:[#allocation125_spill] sm:$0xff]  ;;  %s5788_s18 = scalar_lea.vmem %s4993_s17, 128  ;;  %p5793_p9 = scmp.lt.s32.totalorder %s4993_s17, %s4993_s17 }
 0x396   :  { %v4502_v19 = vmul.f32 %v11284_v52, %v14518_v42  ;;  %v4503_v6 = vmul.f32 %v11284_v52, %v14519_v61  ;;  %v4504_v9 = vmul.f32 %v11284_v52, %v14520_v17  ;;  %v4520_v33 = vmul.f32 %v11287_v23, %v14521_v1  ;;  %p5789_p8 = scmp.ne.s32.totalorder %s4993_s17, %s5788_s18  ;;  %p5794_p10 = scmp.lt.s32.totalorder %s5788_s18, %s5788_s18 }
 0x397   :  { %5563 = vmatprep.subr.bf16.mxu1 %v5562_v60  ;;  %v4492_v47 = vadd.f32 %v4484_v58, %v4474_v56  ;;  %v4493_v49 = vadd.f32 %v4485_v34, %v4475_v16  ;;  %v4494_v11 = vadd.f32 %v4486_v32, %v4476_v54  ;;  %v4521_v42 = vmul.f32 %v11287_v23, %v14522_v28 }
 0x398   :  { %v4522_v61 = vmul.f32 %v11287_v23, %v14523_v55  ;;  %v11314_v51 = vstv %s11253_s2  ;;  %v11317_v17 = vstv %s11264_s20  ;;  %v11320_v37 = vstv %s11266_s21  ;;  %5565 = vmatpush3.bf16.msra.mxu1 %v5562_v60  ;;  %p5795_p11 = por %p5794_p10, %p5793_p9 }
 0x399   :  { %14579 = vst [vmem:[#allocation151_spill] sm:$0xff] %v11320_v37  ;;  %v4510_v1 = vadd.f32 %v4502_v19, %v4492_v47  ;;  %v4511_v7 = vadd.f32 %v4503_v6, %v4493_v49  ;;  %v4512_v46 = vadd.f32 %v4504_v9, %v4494_v11  ;;  %v4538_v45 = vmul.f32 %v11314_v51, %v14525_v29 }
 0x39a   :  { %v4539_v28 = vmul.f32 %v11314_v51, %v14526_v50  ;;  %v4540_v55 = vmul.f32 %v11314_v51, %v14528_v53  ;;  %v4556_v56 = vmul.f32 %v11317_v17, %v14513_v21  ;;  %v4557_v16 = vmul.f32 %v11317_v17, %v14514_v20  ;;  %p5796_p12 = pnand %p5795_p11, %p5789_p8 }
 0x39b   :  { %v4528_v29 = vadd.f32 %v4520_v33, %v4510_v1  ;;  %v4529_v54 = vadd.f32 %v4521_v42, %v4511_v7  ;;  %v4530_v60 = vadd.f32 %v4522_v61, %v4512_v46  ;;  %v4558_v50 = vmul.f32 %v11317_v17, %v14531_v43 }
 0x39c   :  { %v4574_v53 = vmul.f32 %v11320_v37, %v14460_v8  ;;  %v4575_v21 = vmul.f32 %v11320_v37, %v14532_v10  ;;  %v11347_v20 = vstv %s11289_s22  ;;  %v4576_v19 = vmul.f32 %v11320_v37, %v14533_v57  ;;  %v14606_v8 = vld [vmem:[#allocation169_spill] sm:$0xff] }
 0x39d   :  { %14580 = vst [vmem:[#allocation146_spill] sm:$0xff] %v11347_v20  ;;  %v4546_v58 = vadd.f32 %v4538_v45, %v4528_v29  ;;  %v4547_v34 = vadd.f32 %v4539_v28, %v4529_v54  ;;  %v4548_v32 = vadd.f32 %v4540_v55, %v4530_v60  ;;  %v4592_v6 = vmul.f32 %v11347_v20, %v14537_v25 }
 0x39e   :  { %v4593_v9 = vmul.f32 %v11347_v20, %v14540_v24  ;;  %v11356_v33 = vstv %s11305_s25  ;;  %v11359_v47 = vstv %s11307_s4  ;;  %v4594_v61 = vmul.f32 %v11347_v20, %v14541_v15 }
 0x39f   :  { %14581 = vst [vmem:[#allocation149_spill] sm:$0xff] %v11356_v33  ;;  %14582 = vst [vmem:[#allocation147_spill] sm:$0xff] %v11359_v47  ;;  %v4564_v49 = vadd.f32 %v4556_v56, %v4546_v58  ;;  %v4565_v11 = vadd.f32 %v4557_v16, %v4547_v34  ;;  %v4566_v42 = vadd.f32 %v4558_v50, %v4548_v32  ;;  %v11380_v28 = vstv %s11324_s26  ;;  %v4297_v56 = vld [vmem:[#allocation12 + $0xd0] sm:$0xff]  ;;  %v2298_v16 = vld [vmem:[#allocation12 + $0x58] sm:$0xff] }
 0x3a0   :  { %v4610_v1 = vmul.f32 %v11356_v33, %v14544_v18  ;;  %v4611_v25 = vmul.f32 %v11356_v33, %v14545_v41  ;;  %v4612_v24 = vmul.f32 %v11356_v33, %v14546_v40  ;;  %v4628_v7 = vmul.f32 %v11359_v47, %v14547_v12  ;;  %14583 = vst [vmem:[#allocation148_spill] sm:$0xff] %v11380_v28  ;;  %v2297_v12 = vld [vmem:[#allocation12 + $0x50] sm:$0xff] }
 0x3a1   :  { %v4582_v46 = vadd.f32 %v4574_v53, %v4564_v49  ;;  %v4583_v45 = vadd.f32 %v4575_v21, %v4565_v11  ;;  %v4584_v15 = vadd.f32 %v4576_v19, %v4566_v42  ;;  %v4629_v18 = vmul.f32 %v11359_v47, %v14548_v35  ;;  %5390 = vmatprep.mubr.msk.f32.mxu1 %vm1278_vm5, %v2297_v12  ;;  %v14587_v53 = vld [vmem:[#allocation64_spill] sm:$0xff]  ;;  %v14589_v49 = vld [vmem:[#allocation103_spill] sm:$0xff]  ;;  %v14590_v42 = vld [vmem:[#allocation105_spill] sm:$0xff] }
 0x3a2   :  { %v4630_v41 = vmul.f32 %v11359_v47, %v14549_v63  ;;  %v11383_v40 = vstv %s11334_s27  ;;  %v11386_v55 = vstv %s11336_s28  ;;  %v11389_v50 = vstv %s11340_s29  ;;  %5478 = vmatprep.mubr.msk.f32.mxu0 %vm1278_vm5, %v4297_v56  ;;  %5391 = vmatmul.mubr.msk.f32.gmra.mrb[2].mxu1 %vm1278_vm5, %v2298_v16 }
 0x3a3   :  { %14584 = vst [vmem:[#allocation128_spill] sm:$0xff] %v11383_v40  ;;  %14585 = vst [vmem:[#allocation130_spill] sm:$0xff] %v11386_v55  ;;  %v4600_v29 = vadd.f32 %v4592_v6, %v4582_v46  ;;  %v4601_v54 = vadd.f32 %v4593_v9, %v4583_v45  ;;  %v4602_v60 = vadd.f32 %v4594_v61, %v4584_v15  ;;  %v14591_v46 = vld [vmem:[#allocation106_spill] sm:$0xff]  ;;  %v14592_v15 = vld [vmem:[#allocation108_spill] sm:$0xff]  ;;  %v11419_v16 = vstv %s11371_s5 }
 0x3a4   :  { %14586 = vst [vmem:[#allocation37_spill] sm:$0xff] %v11389_v50  ;;  %v4646_v35 = vmul.f32 %v11380_v28, %v14532_v10  ;;  %v4647_v63 = vmul.f32 %v11380_v28, %v14533_v57  ;;  %v4648_v21 = vmul.f32 %v11380_v28, %v14587_v53  ;;  %v4664_v58 = vmul.f32 %v11383_v40, %v14473_v39  ;;  %v14588_v57 = vld [vmem:[#allocation104_spill] sm:$0xff]  ;;  %v14635_v28 = vld [vmem:[#allocation179_spill] sm:$0xff] }
 0x3a5   :  { %v4618_v34 = vadd.f32 %v4610_v1, %v4600_v29  ;;  %v4619_v32 = vadd.f32 %v4611_v25, %v4601_v54  ;;  %v4620_v19 = vadd.f32 %v4612_v24, %v4602_v60  ;;  %v4665_v6 = vmul.f32 %v11383_v40, %v14555_v0  ;;  %14593 = vst [vmem:[#allocation38_spill] sm:$0xff] %v11419_v16 }
 0x3a6   :  { %v4666_v10 = vmul.f32 %v11383_v40, %v14556_v36  ;;  %v4682_v9 = vmul.f32 %v11386_v55, %v14588_v57  ;;  %v4683_v11 = vmul.f32 %v11386_v55, %v14589_v49  ;;  %v4684_v61 = vmul.f32 %v11386_v55, %v14590_v42  ;;  %v14595_v49 = vld [vmem:[#allocation109_spill] sm:$0xff]  ;;  %v14633_v55 = vld [vmem:[#allocation180_spill] sm:$0xff] }
 0x3a7   :  { %v4636_v1 = vadd.f32 %v4628_v7, %v4618_v34  ;;  %v4637_v25 = vadd.f32 %v4629_v18, %v4619_v32  ;;  %v4638_v24 = vadd.f32 %v4630_v41, %v4620_v19  ;;  %v4700_v45 = vmul.f32 %v11389_v50, %v14591_v46  ;;  %v14596_v18 = vld [vmem:[#allocation114_spill] sm:$0xff]  ;;  %v14597_v19 = vld [vmem:[#allocation81_spill] sm:$0xff] }
 0x3a8   :  { %v4701_v12 = vmul.f32 %v11389_v50, %v14592_v15  ;;  %v4702_v56 = vmul.f32 %v11389_v50, %v14564_v26  ;;  %v11422_v29 = vstv %s11373_s23  ;;  %v4718_v7 = vmul.f32 %v11419_v16, %v14595_v49  ;;  %v14600_v15 = vld [vmem:[#allocation163_spill] sm:$0xff]  ;;  %v14634_v40 = vld [vmem:[#allocation33_spill] sm:$0xff] }
 0x3a9   :  { %14594 = vst [vmem:[#allocation69_spill] sm:$0xff] %v11422_v29  ;;  %v4654_v54 = vadd.f32 %v4646_v35, %v4636_v1  ;;  %v4655_v60 = vadd.f32 %v4647_v63, %v4637_v25  ;;  %v4656_v57 = vadd.f32 %v4648_v21, %v4638_v24  ;;  %v4719_v41 = vmul.f32 %v11419_v16, %v14596_v18  ;;  %v14598_v1 = vld [vmem:[#allocation155_spill] sm:$0xff]  ;;  %v14602_v18 = vld [vmem:[#allocation60_spill] sm:$0xff] }
 0x3aa   :  { %v4720_v34 = vmul.f32 %v11419_v16, %v14569_v22  ;;  %v4736_v26 = vmul.f32 %v11422_v29, %v14555_v0  ;;  %v4737_v32 = vmul.f32 %v11422_v29, %v14556_v36  ;;  %v4738_v42 = vmul.f32 %v11422_v29, %v14597_v19  ;;  %v14599_v24 = vld [vmem:[#allocation35_spill] sm:$0xff]  ;;  %v14601_v22 = vld [vmem:[#allocation144_spill] sm:$0xff] }
 0x3ab   :  { %v4672_v35 = vadd.f32 %v4664_v58, %v4654_v54  ;;  %v4673_v63 = vadd.f32 %v4665_v6, %v4655_v60  ;;  %v4674_v21 = vadd.f32 %v4666_v10, %v4656_v57  ;;  %v2405_v25 = vmul.f32 %v14598_v1, %v14510_v3  ;;  %v14603_v6 = vld [vmem:[#allocation164_spill] sm:$0xff]  ;;  %v14604_v10 = vld [vmem:[#allocation145_spill] sm:$0xff] }
 0x3ac   :  { %v2406_v46 = vmul.f32 %v14598_v1, %v14599_v24  ;;  %v2415_v49 = vmul.f32 %v14601_v22, %v14600_v15  ;;  %v2416_v0 = vmul.f32 %v14601_v22, %v14602_v18  ;;  %v2433_v54 = vmul.f32 %v14604_v10, %v14603_v6  ;;  %v14608_v1 = vld [vmem:[#allocation168_spill] sm:$0xff] }
 0x3ad   :  { %v4690_v14 = vadd.f32 %v4682_v9, %v4672_v35  ;;  %v4691_v36 = vadd.f32 %v4683_v11, %v4673_v63  ;;  %v4692_v58 = vadd.f32 %v4684_v61, %v4674_v21  ;;  %v2434_v39 = vmul.f32 %v14604_v10, %v14605_v2  ;;  %v14609_v35 = vld [vmem:[#allocation131_spill] sm:$0xff] }
 0x3ae   :  { %v2423_v60 = vadd.f32 %v2415_v49, %v2405_v25  ;;  %v2424_v57 = vadd.f32 %v2416_v0, %v2406_v46  ;;  %v2451_v29 = vmul.f32 %v14607_v62, %v14606_v8  ;;  %v2452_v9 = vmul.f32 %v14607_v62, %v14608_v1  ;;  %v14610_v21 = vld [vmem:[#allocation159_spill] sm:$0xff] }
 0x3af   :  { %v4708_v16 = vadd.f32 %v4700_v45, %v4690_v14  ;;  %v4709_v48 = vadd.f32 %v4701_v12, %v4691_v36  ;;  %v4710_v5 = vadd.f32 %v4702_v56, %v4692_v58  ;;  %v2469_v63 = vmul.f32 %v14609_v35, %v14599_v24  ;;  %v14612_v45 = vld [vmem:[#allocation150_spill] sm:$0xff]  ;;  %v14613_v56 = vld [vmem:[#allocation47_spill] sm:$0xff] }
 0x3b0   :  { %v2441_v11 = vadd.f32 %v2433_v54, %v2423_v60  ;;  %v2442_v61 = vadd.f32 %v2434_v39, %v2424_v57  ;;  %v2470_v25 = vmul.f32 %v14609_v35, %v14610_v21  ;;  %v11459_v10 = vstv %s11426_s24  ;;  %v14614_v62 = vld [vmem:[#allocation171_spill] sm:$0xff]  ;;  %v14615_v35 = vld [vmem:[#allocation133_spill] sm:$0xff] }
 0x3b1   :  { %v4726_v46 = vadd.f32 %v4718_v7, %v4708_v16  ;;  %v4727_v49 = vadd.f32 %v4719_v41, %v4709_v48  ;;  %v4728_v0 = vadd.f32 %v4720_v34, %v4710_v5  ;;  %14611 = vst [vmem:[#allocation124_spill] sm:$0xff] %v11459_v10  ;;  %v2487_v12 = vmul.f32 %v14612_v45, %v14531_v43  ;;  %v14616_v48 = vld [vmem:[#allocation170_spill] sm:$0xff]  ;;  %v4298_v34 = vld [vmem:[#allocation12 + $0xd8] sm:$0xff] }
 0x3b2   :  { %v2459_v22 = vadd.f32 %v2451_v29, %v2441_v11  ;;  %v2460_v14 = vadd.f32 %v2452_v9, %v2442_v61  ;;  %v2488_v36 = vmul.f32 %v14612_v45, %v14613_v56  ;;  %v2505_v16 = vmul.f32 %v14615_v35, %v14614_v62  ;;  %v14620_v11 = vld [vmem:[#allocation173_spill] sm:$0xff]  ;;  %5479 = vmatmul.mubr.msk.f32.gmra.mrb[2].mxu0 %vm1278_vm5, %v4298_v34 }
 0x3b3   :  { %v4744_v39 = vadd.f32 %v4736_v26, %v4726_v46  ;;  %v4745_v58 = vadd.f32 %v4737_v32, %v4727_v49  ;;  %v4746_v54 = vadd.f32 %v4738_v42, %v4728_v0  ;;  %v2506_v5 = vmul.f32 %v14615_v35, %v14616_v48  ;;  %v14618_v32 = vld [vmem:[#allocation172_spill] sm:$0xff]  ;;  %v14619_v42 = vld [vmem:[#allocation154_spill] sm:$0xff]  ;;  %v14630_v35 = vld [vmem:[#allocation177_spill] sm:$0xff] }
 0x3b4   :  { %v2477_v60 = vadd.f32 %v2469_v63, %v2459_v22  ;;  %v2478_v57 = vadd.f32 %v2470_v25, %v2460_v14  ;;  %v2523_v22 = vmul.f32 %v14619_v42, %v14618_v32  ;;  %v2524_v61 = vmul.f32 %v14619_v42, %v14620_v11  ;;  %v14621_v14 = vld [vmem:[#allocation175_spill] sm:$0xff] }
 0x3b5   :  { %v4754_v29 = vadd.f32 %v11459_v10, %v4744_v39  ;;  %v4755_v7 = vadd.f32 %v11459_v10, %v4745_v58  ;;  %v11472_v41 = vadd.f32 %v11459_v10, %v4746_v54  ;;  %v14622_v39 = vld [vmem:[#allocation141_spill] sm:$0xff]  ;;  %v14623_v54 = vld [vmem:[#allocation74_spill] sm:$0xff]  ;;  %v2614_v44 = vmul.f32 %v14634_v40, %v14635_v28 }
 0x3b6   :  { %v2495_v9 = vadd.f32 %v2487_v12, %v2477_v60  ;;  %v2496_v26 = vadd.f32 %v2488_v36, %v2478_v57  ;;  %v2541_v58 = vmul.f32 %v14622_v39, %v14621_v14  ;;  %v2542_v12 = vmul.f32 %v14622_v39, %v14623_v54 }
 0x3b7   :  { %14617 = vst [vmem:[#allocation71_spill] sm:$0xff] %v11472_v41  ;;  %v4762_v63 = vmax.f32 %v4754_v29, 0.0  ;;  %v4763_v25 = vmax.f32 %v4755_v7, 0.0  ;;  %v13150_v46 = vmax.f32 %v11472_v41, 0.0  ;;  %v14626_v29 = vld [vmem:[#allocation142_spill] sm:$0xff]  ;;  %v14629_v41 = vld [vmem:[#allocation57_spill] sm:$0xff] }
 0x3b8   :  { %v2513_v49 = vadd.f32 %v2505_v16, %v2495_v9  ;;  %v2514_v0 = vadd.f32 %v2506_v5, %v2496_v26  ;;  %v2559_v7 = vmul.f32 %v14626_v29, %v14613_v56  ;;  %v14627_v16 = vld [vmem:[#allocation45_spill] sm:$0xff]  ;;  %v14628_v9 = vld [vmem:[#allocation143_spill] sm:$0xff] }
 0x3b9   :  { %v11484_v36 = vrot.slane %v4762_v63, 2  ;;  %v4771_v60 = vrot.slane %v4763_v25, 2  ;;  %v11488_v57 = vrot.slane %v13150_v46, 2  ;;  %v2560_v5 = vmul.f32 %v14626_v29, %v14627_v16 }
 0x3ba   :  { %v2531_v34 = vadd.f32 %v2523_v22, %v2513_v49  ;;  %v2532_v10 = vadd.f32 %v2524_v61, %v2514_v0  ;;  %v2577_v26 = vmul.f32 %v14628_v9, %v14587_v53  ;;  %v2578_v42 = vmul.f32 %v14628_v9, %v14629_v41  ;;  %v14631_v22 = vld [vmem:[#allocation46_spill] sm:$0xff] }
 0x3bb   :  { %14624 = vst [vmem:[#allocation72_spill] sm:$0xff] %v11484_v36  ;;  %14625 = vst [vmem:[#allocation75_spill] sm:$0xff] %v11488_v57  ;;  %v4783_v39 = vsel %vm144_vm1, %v4771_v60, %v11488_v57  ;;  %v4784_v46 = vsel %vm144_vm1, %v11484_v36, %v4771_v60  ;;  %v2595_v61 = vmul.f32 %v14631_v22, %v14630_v35  ;;  %v14636_v60 = vld [vmem:[#allocation181_spill] sm:$0xff]  ;;  %v14637_v36 = vld [vmem:[#allocation162_spill] sm:$0xff] }
 0x3bc   :  { %v4786_v49 = vmax.f32 %v4762_v63, %v4784_v46  ;;  %v4787_v0 = vmax.f32 %v4763_v25, %v4783_v39  ;;  %v2549_v29 = vadd.f32 %v2541_v58, %v2531_v34  ;;  %v2550_v45 = vadd.f32 %v2542_v12, %v2532_v10  ;;  %v14638_v35 = vld [vmem:[#allocation182_spill] sm:$0xff]  ;;  %v14639_v10 = vld [vmem:[#allocation153_spill] sm:$0xff]  ;;  %v14641_v58 = vld [vmem:[#allocation59_spill] sm:$0xff] }
 0x3bd   :  { %v2596_v50 = vmul.f32 %v14631_v22, %v14632_v27  ;;  %v2613_v57 = vmul.f32 %v14634_v40, %v14633_v55  ;;  %v2631_v47 = vmul.f32 %v14637_v36, %v14636_v60  ;;  %v2632_v63 = vmul.f32 %v14637_v36, %v14638_v35  ;;  %v14640_v46 = vld [vmem:[#allocation166_spill] sm:$0xff]  ;;  %v14646_v36 = vld [vmem:[#allocation184_spill] sm:$0xff] }
 0x3be   :  { %v5626_v9 = vpack.c.bf16 %v4787_v0, %v4786_v49  ;;  %v2567_v33 = vadd.f32 %v2559_v7, %v2549_v29  ;;  %v2568_v20 = vadd.f32 %v2560_v5, %v2550_v45  ;;  %v2649_v25 = vmul.f32 %v14639_v10, %v14629_v41  ;;  %v14642_v34 = vld [vmem:[#allocation70_spill] sm:$0xff]  ;;  %v14643_v29 = vld [vmem:[#allocation183_spill] sm:$0xff]  ;;  %v14644_v45 = vld [vmem:[#allocation192_spill] sm:$0xff] }
 0x3bf   :  { %v2650_v39 = vmul.f32 %v14639_v10, %v14640_v46  ;;  %v2667_v12 = vmul.f32 %v14641_v58, %v14597_v19  ;;  %v2668_v40 = vmul.f32 %v14641_v58, %v14642_v34  ;;  %v2685_v7 = vmul.f32 %v14644_v45, %v14643_v29  ;;  %v14645_v5 = vld [vmem:[#allocation186_spill] sm:$0xff]  ;;  %v14647_v35 = vld [vmem:[#allocation156_spill] sm:$0xff]  ;;  %v14648_v10 = vld [vmem:[#allocation187_spill] sm:$0xff] }
 0x3c0   :  { %5627 = vmatprep.subr.bf16.mxu0 %v5626_v9  ;;  %v2585_v22 = vadd.f32 %v2577_v26, %v2567_v33  ;;  %v2586_v49 = vadd.f32 %v2578_v42, %v2568_v20  ;;  %v2686_v0 = vmul.f32 %v14644_v45, %v14645_v5  ;;  %v2703_v60 = vmul.f32 %v14647_v35, %v14646_v36  ;;  %v2795_v20 = vld [vmem:[#allocation12 + $0x60] sm:$0xff] }
 0x3c1   :  { %5629 = vmatpush3.bf16.msra.mxu0 %v5626_v9  ;;  %v2704_v46 = vmul.f32 %v14647_v35, %v14648_v10  ;;  %v4405_v19 = vmul.f32 %v11203_v30, %v14510_v3  ;;  %v4406_v33 = vmul.f32 %v11203_v30, %v14599_v24  ;;  %v4795_v42 = vld [vmem:[#allocation12 + $0xe0] sm:$0xff]  ;;  %v4415_v45 = vmul.f32 %v11215_v13, %v14600_v15 }
 0x3c2   :  { %v2603_v26 = vadd.f32 %v2595_v61, %v2585_v22  ;;  %v2604_v58 = vadd.f32 %v2596_v50, %v2586_v49  ;;  %v4416_v9 = vmul.f32 %v11215_v13, %v14602_v18  ;;  %5409 = vmatprep.mubr.msk.f32.mxu1 %vm1278_vm5, %v2795_v20  ;;  %v4433_v35 = vmul.f32 %v11218_v4, %v14603_v6  ;;  %v14649_v49 = vld [vmem:[#allocation185_spill] sm:$0xff]  ;;  %v14651_v10 = vld [vmem:[#allocation188_spill] sm:$0xff] }
 0x3c3   :  { %v4434_v3 = vmul.f32 %v11218_v4, %v14605_v2  ;;  %v4451_v30 = vmul.f32 %v11244_v59, %v14606_v8  ;;  %v4452_v50 = vmul.f32 %v11244_v59, %v14608_v1  ;;  %5497 = vmatprep.mubr.msk.f32.mxu0 %vm1278_vm5, %v4795_v42  ;;  %v4423_v61 = vadd.f32 %v4415_v45, %v4405_v19  ;;  %v14650_v20 = vld [vmem:[#allocation161_spill] sm:$0xff] }
 0x3c4   :  { %v2621_v15 = vadd.f32 %v2613_v57, %v2603_v26  ;;  %v2622_v22 = vadd.f32 %v2614_v44, %v2604_v58  ;;  %v4424_v18 = vadd.f32 %v4416_v9, %v4406_v33  ;;  %v2721_v13 = vmul.f32 %v14650_v20, %v14649_v49  ;;  %v14652_v44 = vld [vmem:[#allocation110_spill] sm:$0xff] }
 0x3c5   :  { %v2722_v6 = vmul.f32 %v14650_v20, %v14651_v10  ;;  %v4469_v2 = vmul.f32 %v11262_v38, %v14599_v24  ;;  %v4470_v8 = vmul.f32 %v11262_v38, %v14610_v21  ;;  %v4441_v59 = vadd.f32 %v4433_v35, %v4423_v61  ;;  %v14653_v57 = vld [vmem:[#allocation178_spill] sm:$0xff] }
 0x3c6   :  { %v2639_v4 = vadd.f32 %v2631_v47, %v2621_v15  ;;  %v2640_v1 = vadd.f32 %v2632_v63, %v2622_v22  ;;  %v4442_v42 = vadd.f32 %v4434_v3, %v4424_v18  ;;  %v2739_v19 = vmul.f32 %v14652_v44, %v14642_v34 }
 0x3c7   :  { %v2740_v58 = vmul.f32 %v14652_v44, %v14653_v57  ;;  %v4487_v45 = vmul.f32 %v11281_v31, %v14531_v43  ;;  %v4488_v33 = vmul.f32 %v11281_v31, %v14613_v56  ;;  %v4459_v9 = vadd.f32 %v4451_v30, %v4441_v59 }
 0x3c8   :  { %v2657_v24 = vadd.f32 %v2649_v25, %v2639_v4  ;;  %v2658_v26 = vadd.f32 %v2650_v39, %v2640_v1  ;;  %v4460_v20 = vadd.f32 %v4452_v50, %v4442_v42  ;;  %v4505_v47 = vmul.f32 %v11284_v52, %v14614_v62  ;;  %v14658_v1 = vld [vmem:[#allocation147_spill] sm:$0xff] }
 0x3c9   :  { %v4506_v35 = vmul.f32 %v11284_v52, %v14616_v48  ;;  %v4523_v63 = vmul.f32 %v11287_v23, %v14618_v32  ;;  %v4524_v3 = vmul.f32 %v11287_v23, %v14620_v11  ;;  %v4477_v22 = vadd.f32 %v4469_v2, %v4459_v9 }
 0x3ca   :  { %v2675_v43 = vadd.f32 %v2667_v12, %v2657_v24  ;;  %v2676_v15 = vadd.f32 %v2668_v40, %v2658_v26  ;;  %v4478_v61 = vadd.f32 %v4470_v8, %v4460_v20  ;;  %v4541_v4 = vmul.f32 %v11314_v51, %v14621_v14  ;;  %v14654_v14 = vld [vmem:[#allocation177_spill] sm:$0xff]  ;;  %v14655_v12 = vld [vmem:[#allocation146_spill] sm:$0xff] }
 0x3cb   :  { %v4542_v30 = vmul.f32 %v11314_v51, %v14623_v54  ;;  %v4559_v62 = vmul.f32 %v11317_v17, %v14613_v56  ;;  %v4560_v59 = vmul.f32 %v11317_v17, %v14627_v16  ;;  %v4495_v25 = vadd.f32 %v4487_v45, %v4477_v22  ;;  %v14659_v45 = vld [vmem:[#allocation182_spill] sm:$0xff] }
 0x3cc   :  { %v2693_v48 = vadd.f32 %v2685_v7, %v2675_v43  ;;  %v2694_v32 = vadd.f32 %v2686_v0, %v2676_v15  ;;  %v4496_v11 = vadd.f32 %v4488_v33, %v4478_v61  ;;  %v4577_v40 = vmul.f32 %v11320_v37, %v14587_v53  ;;  %v14656_v7 = vld [vmem:[#allocation149_spill] sm:$0xff]  ;;  %v14663_v43 = vld [vmem:[#allocation128_spill] sm:$0xff] }
 0x3cd   :  { %v4578_v39 = vmul.f32 %v11320_v37, %v14629_v41  ;;  %v4595_v50 = vmul.f32 %v14655_v12, %v14654_v14  ;;  %v4596_v54 = vmul.f32 %v14655_v12, %v14632_v27  ;;  %v4513_v20 = vadd.f32 %v4505_v47, %v4495_v25  ;;  %v14657_v53 = vld [vmem:[#allocation181_spill] sm:$0xff]  ;;  %v14661_v47 = vld [vmem:[#allocation166_spill] sm:$0xff]  ;;  %v14666_v25 = vld [vmem:[#allocation187_spill] sm:$0xff] }
 0x3ce   :  { %v2711_v56 = vadd.f32 %v2703_v60, %v2693_v48  ;;  %v2712_v18 = vadd.f32 %v2704_v46, %v2694_v32  ;;  %v4514_v2 = vadd.f32 %v4506_v35, %v4496_v11  ;;  %v4613_v0 = vmul.f32 %v14656_v7, %v14633_v55  ;;  %v14660_v60 = vld [vmem:[#allocation148_spill] sm:$0xff]  ;;  %v14662_v55 = vld [vmem:[#allocation81_spill] sm:$0xff]  ;;  %v14667_v14 = vld [vmem:[#allocation111_spill] sm:$0xff] }
 0x3cf   :  { %v4614_v8 = vmul.f32 %v14656_v7, %v14635_v28  ;;  %v4631_v42 = vmul.f32 %v14658_v1, %v14657_v53  ;;  %v4632_v33 = vmul.f32 %v14658_v1, %v14659_v45  ;;  %v4531_v9 = vadd.f32 %v4523_v63, %v4513_v20  ;;  %v14671_v20 = vld [vmem:[#allocation25_spill] sm:$0xff]  ;;  %v14673_v53 = vld [vmem:[#allocation24_spill] sm:$0xff]  ;;  %v14687_v7 = vld [vmem:[#allocation150_spill] sm:$0xff] }
 0x3d0   :  { %v2729_v24 = vadd.f32 %v2721_v13, %v2711_v56  ;;  %v2730_v26 = vadd.f32 %v2722_v6, %v2712_v18  ;;  %v4532_v27 = vadd.f32 %v4524_v3, %v4514_v2  ;;  %v4649_v46 = vmul.f32 %v14660_v60, %v14629_v41  ;;  %v14664_v13 = vld [vmem:[#allocation130_spill] sm:$0xff]  ;;  %v14665_v41 = vld [vmem:[#allocation37_spill] sm:$0xff] }
 0x3d1   :  { %v4650_v35 = vmul.f32 %v14660_v60, %v14661_v47  ;;  %v4667_v15 = vmul.f32 %v14663_v43, %v14662_v55  ;;  %v4668_v28 = vmul.f32 %v14663_v43, %v14642_v34  ;;  %v4549_v48 = vadd.f32 %v4541_v4, %v4531_v9  ;;  %v14670_v18 = vld [vmem:[#allocation190_spill] sm:$0xff]  ;;  %v14686_v60 = vld [vmem:[#allocation191_spill] sm:$0xff] }
 0x3d2   :  { %v2747_v22 = vadd.f32 %v2739_v19, %v2729_v24  ;;  %v2748_v61 = vadd.f32 %v2740_v58, %v2730_v26  ;;  %v4550_v32 = vadd.f32 %v4542_v30, %v4532_v27  ;;  %v4685_v6 = vmul.f32 %v14664_v13, %v14643_v29  ;;  %v14669_v29 = vld [vmem:[#allocation155_spill] sm:$0xff] }
 0x3d3   :  { %v4686_v63 = vmul.f32 %v14664_v13, %v14645_v5  ;;  %v11612_v3 = vmul.f32 %v14665_v41, %v14646_v36  ;;  %v11616_v11 = vmul.f32 %v14665_v41, %v14666_v25  ;;  %v4567_v58 = vadd.f32 %v4559_v62, %v4549_v48  ;;  %v14672_v36 = vld [vmem:[#allocation144_spill] sm:$0xff]  ;;  %v14676_v48 = vld [vmem:[#allocation26_spill] sm:$0xff] }
 0x3d4   :  { %v2757_v56 = vadd.f32 %v14667_v14, %v2747_v22  ;;  %v11620_v19 = vadd.f32 %v14667_v14, %v2748_v61  ;;  %v4568_v4 = vadd.f32 %v4560_v59, %v4550_v32  ;;  %v2407_v30 = vmul.f32 %v14669_v29, %v14610_v21  ;;  %v14674_v59 = vld [vmem:[#allocation27_spill] sm:$0xff]  ;;  %v14675_v22 = vld [vmem:[#allocation145_spill] sm:$0xff] }
 0x3d5   :  { %v2408_v5 = vmul.f32 %v14669_v29, %v14670_v18  ;;  %v2417_v2 = vmul.f32 %v14672_v36, %v14671_v20  ;;  %v2418_v45 = vmul.f32 %v14672_v36, %v14673_v53  ;;  %v4585_v9 = vadd.f32 %v4577_v40, %v4567_v58  ;;  %v14678_v29 = vld [vmem:[#allocation196_spill] sm:$0xff]  ;;  %v14679_v40 = vld [vmem:[#allocation125_spill] sm:$0xff] }
 0x3d6   :  { %14668 = vst [vmem:[#allocation129_spill] sm:$0xff] %v11620_v19  ;;  %v2765_v24 = vmax.f32 %v2757_v56, 0.0  ;;  %v13198_v26 = vmax.f32 %v11620_v19, 0.0  ;;  %v4586_v27 = vadd.f32 %v4578_v39, %v4568_v4  ;;  %v2435_v61 = vmul.f32 %v14675_v22, %v14674_v59  ;;  %v14680_v58 = vld [vmem:[#allocation28_spill] sm:$0xff] }
 0x3d7   :  { %v2425_v55 = vadd.f32 %v2417_v2, %v2407_v30  ;;  %v2426_v62 = vadd.f32 %v2418_v45, %v2408_v5  ;;  %v2436_v32 = vmul.f32 %v14675_v22, %v14676_v48  ;;  %v4603_v13 = vadd.f32 %v4595_v50, %v4585_v9  ;;  %v14682_v2 = vld [vmem:[#allocation121_spill] sm:$0xff]  ;;  %v4798_v30 = vld [vmem:[#allocation12 + $0xf8] sm:$0xff] }
 0x3d8   :  { %v2773_v25 = vrot.slane %v2765_v24, 2  ;;  %v11637_v41 = vrot.slane %v13198_v26, 2  ;;  %v4604_v43 = vadd.f32 %v4596_v54, %v4586_v27  ;;  %v2453_v39 = vmul.f32 %v14679_v40, %v14678_v29  ;;  %v14683_v50 = vld [vmem:[#allocation117_spill] sm:$0xff] }
 0x3d9   :  { %v2443_v56 = vadd.f32 %v2435_v61, %v2425_v55  ;;  %v2444_v36 = vadd.f32 %v2436_v32, %v2426_v62  ;;  %v2454_v4 = vmul.f32 %v14679_v40, %v14680_v58  ;;  %v4621_v26 = vadd.f32 %v4613_v0, %v4603_v13  ;;  %v14685_v40 = vld [vmem:[#allocation131_spill] sm:$0xff]  ;;  %v14688_v0 = vld [vmem:[#allocation193_spill] sm:$0xff] }
 0x3da   :  { %14677 = vst [vmem:[#allocation122_spill] sm:$0xff] %v11637_v41  ;;  %v2781_v5 = vsel %vm144_vm1, %v2773_v25, %v11637_v41  ;;  %v2782_v45 = vsel %vm144_vm1, %v14682_v2, %v2773_v25  ;;  %v4622_v19 = vadd.f32 %v4614_v8, %v4604_v43  ;;  %v14684_v54 = vmax.f32 %v14683_v50, 0.0  ;;  %v14689_v43 = vld [vmem:[#allocation30_spill] sm:$0xff]  ;;  %v14690_v13 = vld [vmem:[#allocation133_spill] sm:$0xff]  ;;  %v14695_v50 = vld [vmem:[#allocation31_spill] sm:$0xff] }
 0x3db   :  { %v2789_v27 = vmax.f32 %v2765_v24, %v2781_v5  ;;  %v2461_v55 = vadd.f32 %v2453_v39, %v2443_v56  ;;  %v2462_v62 = vadd.f32 %v2454_v4, %v2444_v36  ;;  %v4639_v61 = vadd.f32 %v4631_v42, %v4621_v26  ;;  %v14692_v39 = vld [vmem:[#allocation197_spill] sm:$0xff]  ;;  %v14693_v5 = vld [vmem:[#allocation32_spill] sm:$0xff]  ;;  %v14694_v2 = vld [vmem:[#allocation154_spill] sm:$0xff] }
 0x3dc   :  { %v2788_v9 = vmax.f32 %v14684_v54, %v2782_v45  ;;  %v4640_v32 = vadd.f32 %v4632_v33, %v4622_v19  ;;  %v2471_v22 = vmul.f32 %v14685_v40, %v14670_v18  ;;  %v2472_v41 = vmul.f32 %v14685_v40, %v14686_v60  ;;  %v14691_v19 = vld [vmem:[#allocation38_spill] sm:$0xff] }
 0x3dd   :  { %v2489_v25 = vmul.f32 %v14687_v7, %v14627_v16  ;;  %v2490_v8 = vmul.f32 %v14687_v7, %v14688_v0  ;;  %v2507_v24 = vmul.f32 %v14690_v13, %v14689_v43  ;;  %v4657_v56 = vadd.f32 %v4649_v46, %v4639_v61 }
 0x3de   :  { %v5566_v1 = vpack.c.bf16 %v2789_v27, %v2788_v9  ;;  %v4658_v36 = vadd.f32 %v4650_v35, %v4640_v32  ;;  %v2479_v42 = vadd.f32 %v2471_v22, %v2461_v55  ;;  %v2480_v33 = vadd.f32 %v2472_v41, %v2462_v62  ;;  %v14696_v22 = vld [vmem:[#allocation69_spill] sm:$0xff]  ;;  %v14697_v55 = vld [vmem:[#allocation198_spill] sm:$0xff]  ;;  %v14699_v32 = vld [vmem:[#allocation43_spill] sm:$0xff] }
 0x3df   :  { %v4721_v26 = vmul.f32 %v14691_v19, %v14649_v49  ;;  %v2508_v4 = vmul.f32 %v14690_v13, %v14692_v39  ;;  %v2525_v45 = vmul.f32 %v14694_v2, %v14693_v5  ;;  %v2526_v54 = vmul.f32 %v14694_v2, %v14695_v50  ;;  %v14698_v62 = vld [vmem:[#allocation141_spill] sm:$0xff] }
 0x3e0   :  { %5567 = vmatprep.subr.bf16.mxu1 %v5566_v1  ;;  %v4675_v9 = vadd.f32 %v4667_v15, %v4657_v56  ;;  %v4676_v27 = vadd.f32 %v4668_v28, %v4658_v36  ;;  %v2497_v46 = vadd.f32 %v2489_v25, %v2479_v42  ;;  %v2498_v35 = vadd.f32 %v2490_v8, %v2480_v33  ;;  %v14700_v28 = vld [vmem:[#allocation142_spill] sm:$0xff] }
 0x3e1   :  { %5569 = vmatpush3.bf16.msra.mxu1 %v5566_v1  ;;  %v4722_v41 = vmul.f32 %v14691_v19, %v14651_v10  ;;  %v4739_v49 = vmul.f32 %v14696_v22, %v14642_v34  ;;  %v2543_v61 = vmul.f32 %v14698_v62, %v14697_v55  ;;  %v2544_v13 = vmul.f32 %v14698_v62, %v14699_v32  ;;  %v14701_v10 = vld [vmem:[#allocation21_spill] sm:$0xff]  ;;  %v14702_v34 = vld [vmem:[#allocation143_spill] sm:$0xff] }
 0x3e2   :  { %v4693_v7 = vadd.f32 %v4685_v6, %v4675_v9  ;;  %v4694_v40 = vadd.f32 %v4686_v63, %v4676_v27  ;;  %v2515_v2 = vadd.f32 %v2507_v24, %v2497_v46  ;;  %v2516_v15 = vadd.f32 %v2508_v4, %v2498_v35  ;;  %v14703_v24 = vld [vmem:[#allocation194_spill] sm:$0xff]  ;;  %v14704_v4 = vld [vmem:[#allocation44_spill] sm:$0xff]  ;;  %v14707_v62 = vld [vmem:[#allocation53_spill] sm:$0xff] }
 0x3e3   :  { %v4740_v1 = vmul.f32 %v14696_v22, %v14653_v57  ;;  %v2561_v25 = vmul.f32 %v14700_v28, %v14688_v0  ;;  %v2562_v8 = vmul.f32 %v14700_v28, %v14701_v10  ;;  %v2579_v56 = vmul.f32 %v14702_v34, %v14661_v47  ;;  %v14705_v9 = vld [vmem:[#allocation46_spill] sm:$0xff]  ;;  %v14706_v46 = vld [vmem:[#allocation52_spill] sm:$0xff]  ;;  %v14708_v28 = vld [vmem:[#allocation33_spill] sm:$0xff] }
 0x3e4   :  { %v4711_v36 = vadd.f32 %v11612_v3, %v4693_v7  ;;  %v4712_v42 = vadd.f32 %v11616_v11, %v4694_v40  ;;  %v2533_v6 = vadd.f32 %v2525_v45, %v2515_v2  ;;  %v2534_v63 = vadd.f32 %v2526_v54, %v2516_v15  ;;  %v14709_v3 = vld [vmem:[#allocation29_spill] sm:$0xff]  ;;  %v14710_v40 = vld [vmem:[#allocation139_spill] sm:$0xff]  ;;  %v14711_v2 = vld [vmem:[#allocation162_spill] sm:$0xff] }
 0x3e5   :  { %v2580_v33 = vmul.f32 %v14702_v34, %v14703_v24  ;;  %v2597_v27 = vmul.f32 %v14705_v9, %v14704_v4  ;;  %v2598_v35 = vmul.f32 %v14705_v9, %v14706_v46  ;;  %v2615_v22 = vmul.f32 %v14708_v28, %v14707_v62  ;;  %v14712_v54 = vld [vmem:[#allocation54_spill] sm:$0xff]  ;;  %v14713_v34 = vld [vmem:[#allocation153_spill] sm:$0xff] }
 0x3e6   :  { %v4729_v19 = vadd.f32 %v4721_v26, %v4711_v36  ;;  %v4730_v12 = vadd.f32 %v4722_v41, %v4712_v42  ;;  %v2551_v14 = vadd.f32 %v2543_v61, %v2533_v6  ;;  %v2552_v7 = vadd.f32 %v2544_v13, %v2534_v63  ;;  %v14714_v26 = vld [vmem:[#allocation195_spill] sm:$0xff]  ;;  %v14716_v36 = vld [vmem:[#allocation40_spill] sm:$0xff]  ;;  %v14717_v6 = vld [vmem:[#allocation42_spill] sm:$0xff] }
 0x3e7   :  { %v2616_v11 = vmul.f32 %v14708_v28, %v14709_v3  ;;  %v2633_v45 = vmul.f32 %v14711_v2, %v14710_v40  ;;  %v2634_v15 = vmul.f32 %v14711_v2, %v14712_v54  ;;  %v2651_v4 = vmul.f32 %v14713_v34, %v14703_v24  ;;  %v14715_v13 = vld [vmem:[#allocation59_spill] sm:$0xff]  ;;  %v14718_v63 = vld [vmem:[#allocation192_spill] sm:$0xff] }
 0x3e8   :  { %v4747_v9 = vadd.f32 %v4739_v49, %v4729_v19  ;;  %v4748_v46 = vadd.f32 %v4740_v1, %v4730_v12  ;;  %v2569_v37 = vadd.f32 %v2561_v25, %v2551_v14  ;;  %v2570_v62 = vadd.f32 %v2562_v8, %v2552_v7  ;;  %v14719_v2 = vld [vmem:[#allocation124_spill] sm:$0xff]  ;;  %v14721_v19 = vld [vmem:[#allocation135_spill] sm:$0xff]  ;;  %v14724_v7 = vld [vmem:[#allocation58_spill] sm:$0xff] }
 0x3e9   :  { %v2652_v41 = vmul.f32 %v14713_v34, %v14714_v26  ;;  %v2669_v61 = vmul.f32 %v14715_v13, %v14653_v57  ;;  %v2670_v42 = vmul.f32 %v14715_v13, %v14716_v36  ;;  %v2687_v28 = vmul.f32 %v14718_v63, %v14717_v6  ;;  %v14722_v1 = vld [vmem:[#allocation56_spill] sm:$0xff] }
 0x3ea   :  { %v4757_v54 = vadd.f32 %v14719_v2, %v4747_v9  ;;  %v11713_v40 = vadd.f32 %v14719_v2, %v4748_v46  ;;  %v2587_v12 = vadd.f32 %v2579_v56, %v2569_v37  ;;  %v2588_v14 = vadd.f32 %v2580_v33, %v2570_v62  ;;  %v14723_v25 = vld [vmem:[#allocation156_spill] sm:$0xff]  ;;  %v14726_v62 = vld [vmem:[#allocation115_spill] sm:$0xff] }
 0x3eb   :  { %v2688_v49 = vmul.f32 %v14718_v63, %v14721_v19  ;;  %v2705_v8 = vmul.f32 %v14723_v25, %v14722_v1  ;;  %v2706_v34 = vmul.f32 %v14723_v25, %v14724_v7  ;;  %v14725_v13 = vld [vmem:[#allocation112_spill] sm:$0xff]  ;;  %v4417_v56 = vmul.f32 %v14726_v62, %v14671_v20  ;;  %v14729_v20 = vld [vmem:[#allocation119_spill] sm:$0xff] }
 0x3ec   :  { %14720 = vst [vmem:[#allocation67_spill] sm:$0xff] %v11713_v40  ;;  %v4407_v57 = vmul.f32 %v14725_v13, %v14610_v21  ;;  %v4765_v6 = vmax.f32 %v4757_v54, 0.0  ;;  %v13230_v9 = vmax.f32 %v11713_v40, 0.0  ;;  %v2605_v26 = vadd.f32 %v2597_v27, %v2587_v12  ;;  %v14727_v63 = vld [vmem:[#allocation116_spill] sm:$0xff] }
 0x3ed   :  { %v2606_v46 = vadd.f32 %v2598_v35, %v2588_v14  ;;  %v4408_v37 = vmul.f32 %v14725_v13, %v14670_v18  ;;  %v4418_v33 = vmul.f32 %v14726_v62, %v14673_v53  ;;  %v4435_v25 = vmul.f32 %v14727_v63, %v14674_v59  ;;  %v14730_v59 = vld [vmem:[#allocation75_spill] sm:$0xff] }
 0x3ee   :  { %v4773_v2 = vrot.slane %v4765_v6, 2  ;;  %v11734_v21 = vrot.slane %v13230_v9, 2  ;;  %v2623_v54 = vadd.f32 %v2615_v22, %v2605_v26  ;;  %v4425_v35 = vadd.f32 %v4417_v56, %v4407_v57  ;;  %v14731_v22 = vld [vmem:[#allocation71_spill] sm:$0xff] }
 0x3ef   :  { %v2624_v27 = vadd.f32 %v2616_v11, %v2606_v46  ;;  %v4426_v12 = vadd.f32 %v4418_v33, %v4408_v37  ;;  %v4436_v14 = vmul.f32 %v14727_v63, %v14676_v48  ;;  %v4453_v13 = vmul.f32 %v14729_v20, %v14678_v29 }
 0x3f0   :  { %14728 = vst [vmem:[#allocation132_spill] sm:$0xff] %v11734_v21  ;;  %v4781_v53 = vsel %vm144_vm1, %v4773_v2, %v11734_v21  ;;  %v4782_v40 = vsel %vm144_vm1, %v14730_v59, %v4773_v2  ;;  %v2641_v9 = vadd.f32 %v2633_v45, %v2623_v54  ;;  %v14732_v11 = vmax.f32 %v14731_v22, 0.0 }
 0x3f1   :  { %v2642_v62 = vadd.f32 %v2634_v15, %v2624_v27  ;;  %v4789_v26 = vmax.f32 %v4765_v6, %v4781_v53  ;;  %v4443_v46 = vadd.f32 %v4435_v25, %v4425_v35  ;;  %v4444_v37 = vadd.f32 %v4436_v14, %v4426_v12  ;;  %v14736_v35 = vld [vmem:[#allocation41_spill] sm:$0xff] }
 0x3f2   :  { %v4788_v57 = vmax.f32 %v14732_v11, %v4782_v40  ;;  %v2659_v48 = vadd.f32 %v2651_v4, %v2641_v9  ;;  %v4454_v29 = vmul.f32 %v14729_v20, %v14680_v58  ;;  %v4471_v33 = vmul.f32 %v11262_v38, %v14670_v18  ;;  %v14734_v58 = vld [vmem:[#allocation161_spill] sm:$0xff]  ;;  %v14735_v9 = vld [vmem:[#allocation158_spill] sm:$0xff] }
 0x3f3   :  { %v2660_v56 = vadd.f32 %v2652_v41, %v2642_v62  ;;  %v4461_v63 = vadd.f32 %v4453_v13, %v4443_v46  ;;  %v4472_v2 = vmul.f32 %v11262_v38, %v14686_v60  ;;  %v4489_v45 = vmul.f32 %v11281_v31, %v14627_v16  ;;  %v14733_v41 = vld [vmem:[#allocation34_spill] sm:$0xff] }
 0x3f4   :  { %v5630_v21 = vpack.c.bf16 %v4789_v26, %v4788_v57  ;;  %v2677_v40 = vadd.f32 %v2669_v61, %v2659_v48  ;;  %v4462_v6 = vadd.f32 %v4454_v29, %v4444_v37  ;;  %v4490_v4 = vmul.f32 %v11281_v31, %v14688_v0  ;;  %v14737_v48 = vld [vmem:[#allocation151_spill] sm:$0xff] }
 0x3f5   :  { %v2678_v15 = vadd.f32 %v2670_v42, %v2660_v56  ;;  %v2723_v25 = vmul.f32 %v14734_v58, %v14733_v41  ;;  %v2724_v18 = vmul.f32 %v14734_v58, %v14735_v9  ;;  %v4479_v13 = vadd.f32 %v4471_v33, %v4461_v63  ;;  %v14738_v56 = vld [vmem:[#allocation111_spill] sm:$0xff] }
 0x3f6   :  { %5631 = vmatprep.subr.bf16.mxu0 %v5630_v21  ;;  %v4507_v62 = vmul.f32 %v11284_v52, %v14689_v43  ;;  %v2695_v54 = vadd.f32 %v2687_v28, %v2677_v40  ;;  %v4480_v61 = vadd.f32 %v4472_v2, %v4462_v6  ;;  %v4508_v42 = vmul.f32 %v11284_v52, %v14692_v39  ;;  %v14740_v40 = vld [vmem:[#allocation146_spill] sm:$0xff]  ;;  %v14741_v6 = vld [vmem:[#allocation52_spill] sm:$0xff] }
 0x3f7   :  { %5633 = vmatpush3.bf16.msra.mxu0 %v5630_v21  ;;  %v2696_v16 = vadd.f32 %v2688_v49, %v2678_v15  ;;  %v2741_v27 = vmul.f32 %v14652_v44, %v14716_v36  ;;  %v2742_v12 = vmul.f32 %v14652_v44, %v14736_v35  ;;  %v4497_v14 = vadd.f32 %v4489_v45, %v4479_v13  ;;  %v14739_v45 = vld [vmem:[#allocation44_spill] sm:$0xff]  ;;  %v14742_v13 = vld [vmem:[#allocation53_spill] sm:$0xff] }
 0x3f8   :  { %v4525_v63 = vmul.f32 %v11287_v23, %v14693_v5  ;;  %v2713_v53 = vadd.f32 %v2705_v8, %v2695_v54  ;;  %v4498_v43 = vadd.f32 %v4490_v4, %v4480_v61  ;;  %v4526_v28 = vmul.f32 %v11287_v23, %v14695_v50 }
 0x3f9   :  { %v2714_v59 = vadd.f32 %v2706_v34, %v2696_v16  ;;  %v4515_v49 = vadd.f32 %v4507_v62, %v4497_v14  ;;  %v4543_v39 = vmul.f32 %v11314_v51, %v14697_v55  ;;  %v4544_v57 = vmul.f32 %v11314_v51, %v14699_v32  ;;  %v14743_v62 = vld [vmem:[#allocation149_spill] sm:$0xff]  ;;  %v14746_v14 = vld [vmem:[#allocation54_spill] sm:$0xff] }
 0x3fa   :  { %v2731_v21 = vadd.f32 %v2723_v25, %v2713_v53  ;;  %v4516_v11 = vadd.f32 %v4508_v42, %v4498_v43  ;;  %v4561_v5 = vmul.f32 %v11317_v17, %v14688_v0  ;;  %v4562_v50 = vmul.f32 %v11317_v17, %v14701_v10  ;;  %v14744_v42 = vld [vmem:[#allocation139_spill] sm:$0xff] }
 0x3fb   :  { %v2732_v22 = vadd.f32 %v2724_v18, %v2714_v59  ;;  %v4533_v26 = vadd.f32 %v4525_v63, %v4515_v49  ;;  %v4579_v55 = vmul.f32 %v14737_v48, %v14661_v47  ;;  %v4580_v2 = vmul.f32 %v14737_v48, %v14703_v24 }
 0x3fc   :  { %v2749_v8 = vadd.f32 %v2741_v27, %v2731_v21  ;;  %v4534_v46 = vadd.f32 %v4526_v28, %v4516_v11  ;;  %v4597_v15 = vmul.f32 %v14740_v40, %v14739_v45  ;;  %v4598_v4 = vmul.f32 %v14740_v40, %v14741_v6  ;;  %v14745_v27 = vld [vmem:[#allocation147_spill] sm:$0xff]  ;;  %v14747_v28 = vld [vmem:[#allocation148_spill] sm:$0xff] }
 0x3fd   :  { %v2750_v34 = vadd.f32 %v2742_v12, %v2732_v22  ;;  %v4551_v37 = vadd.f32 %v4543_v39, %v4533_v26  ;;  %v4615_v54 = vmul.f32 %v14743_v62, %v14742_v13  ;;  %v4616_v61 = vmul.f32 %v14743_v62, %v14709_v3  ;;  %v14748_v21 = vld [vmem:[#allocation155_spill] sm:$0xff]  ;;  %v14749_v3 = vld [vmem:[#allocation22_spill] sm:$0xff]  ;;  %v14750_v11 = vld [vmem:[#allocation144_spill] sm:$0xff] }
 0x3fe   :  { %v2759_v29 = vadd.f32 %v14738_v56, %v2749_v8  ;;  %v4552_v32 = vadd.f32 %v4544_v57, %v4534_v46  ;;  %v4633_v12 = vmul.f32 %v14745_v27, %v14744_v42  ;;  %v4634_v63 = vmul.f32 %v14745_v27, %v14746_v14  ;;  %v14751_v26 = vld [vmem:[#allocation68_spill] sm:$0xff]  ;;  %v14753_v46 = vld [vmem:[#allocation122_spill] sm:$0xff]  ;;  %v14758_v13 = vld [vmem:[#allocation195_spill] sm:$0xff] }
 0x3ff   :  { %v11786_v33 = vadd.f32 %v14738_v56, %v2750_v34  ;;  %v4569_v0 = vadd.f32 %v4561_v5, %v4551_v37  ;;  %v4651_v49 = vmul.f32 %v14747_v28, %v14703_v24  ;;  %v2409_v22 = vmul.f32 %v14748_v21, %v14686_v60  ;;  %v14752_v5 = vld [vmem:[#allocation145_spill] sm:$0xff]  ;;  %v14754_v24 = vld [vmem:[#allocation174_spill] sm:$0xff]  ;;  %v14760_v14 = vld [vmem:[#allocation128_spill] sm:$0xff] }
 0x400   :  { %v2767_v25 = vmax.f32 %v2759_v29, 0.0  ;;  %v4570_v47 = vadd.f32 %v4562_v50, %v4552_v32  ;;  %v2419_v57 = vmul.f32 %v14750_v11, %v14749_v3  ;;  %v2437_v8 = vmul.f32 %v14752_v5, %v14751_v26  ;;  %v14756_v32 = vld [vmem:[#allocation129_spill] sm:$0xff]  ;;  %v14759_v42 = vld [vmem:[#allocation178_spill] sm:$0xff] }
 0x401   :  { %v2768_v18 = vmax.f32 %v11786_v33, 0.0  ;;  %v4587_v16 = vadd.f32 %v4579_v55, %v4569_v0  ;;  %v14755_v55 = vld [vmem:[#allocation125_spill] sm:$0xff]  ;;  %v4669_v21 = vmul.f32 %v14760_v14, %v14759_v42  ;;  %v14771_v42 = vld [vmem:[#allocation154_spill] sm:$0xff] }
 0x402   :  { %v2775_v53 = vrot.slane %v2767_v25, 2  ;;  %v4588_v43 = vadd.f32 %v4580_v2, %v4570_v47  ;;  %v2455_v29 = vmul.f32 %v14755_v55, %v14754_v24  ;;  %v14757_v2 = vmax.f32 %v14756_v32, 0.0 }
 0x403   :  { %v11805_v59 = vrot.slane %v2768_v18, 2  ;;  %v4605_v39 = vadd.f32 %v4597_v15, %v4587_v16  ;;  %v2427_v6 = vadd.f32 %v2419_v57, %v2409_v22  ;;  %v4652_v16 = vmul.f32 %v14747_v28, %v14758_v13  ;;  %v14765_v57 = vld [vmem:[#allocation150_spill] sm:$0xff] }
 0x404   :  { %v2780_v50 = vsel %vm144_vm1, %v14753_v46, %v2775_v53  ;;  %v4606_v37 = vadd.f32 %v4598_v4, %v4588_v43  ;;  %v14761_v4 = vld [vmem:[#allocation36_spill] sm:$0xff]  ;;  %v14762_v43 = vld [vmem:[#allocation131_spill] sm:$0xff] }
 0x405   :  { %v2779_v34 = vsel %vm144_vm1, %v2775_v53, %v11805_v59  ;;  %v2790_v0 = vmax.f32 %v14757_v2, %v2780_v50  ;;  %v4623_v15 = vadd.f32 %v4615_v54, %v4605_v39  ;;  %v2445_v53 = vadd.f32 %v2437_v8, %v2427_v6  ;;  %v14763_v54 = vld [vmem:[#allocation42_spill] sm:$0xff]  ;;  %v14766_v8 = vld [vmem:[#allocation37_spill] sm:$0xff] }
 0x406   :  { %v2791_v45 = vmax.f32 %v2767_v25, %v2779_v34  ;;  %v4624_v47 = vadd.f32 %v4616_v61, %v4606_v37  ;;  %v2473_v46 = vmul.f32 %v14762_v43, %v14761_v4  ;;  %v4670_v50 = vmul.f32 %v14760_v14, %v14716_v36  ;;  %v14764_v61 = vld [vmem:[#allocation130_spill] sm:$0xff] }
 0x407   :  { %v4641_v5 = vadd.f32 %v4633_v12, %v4623_v15  ;;  %v4687_v39 = vmul.f32 %v14764_v61, %v14763_v54  ;;  %v2463_v22 = vadd.f32 %v2455_v29, %v2445_v53  ;;  %v2491_v34 = vmul.f32 %v14765_v57, %v14701_v10  ;;  %v14769_v6 = vld [vmem:[#allocation38_spill] sm:$0xff] }
 0x408   :  { %v5570_v11 = vpack.c.bf16 %v2791_v45, %v2790_v0  ;;  %v4642_v55 = vadd.f32 %v4634_v63, %v4624_v47  ;;  %v4688_v12 = vmul.f32 %v14764_v61, %v14721_v19  ;;  %v4705_v32 = vmul.f32 %v14766_v8, %v14722_v1  ;;  %v14767_v0 = vld [vmem:[#allocation73_spill] sm:$0xff]  ;;  %v14772_v19 = vld [vmem:[#allocation112_spill] sm:$0xff]  ;;  %v14776_v54 = vld [vmem:[#allocation134_spill] sm:$0xff] }
 0x409   :  { %v4659_v25 = vadd.f32 %v4651_v49, %v4641_v5  ;;  %v4706_v2 = vmul.f32 %v14766_v8, %v14724_v7  ;;  %v2481_v49 = vadd.f32 %v2473_v46, %v2463_v22  ;;  %v14768_v45 = vld [vmem:[#allocation133_spill] sm:$0xff]  ;;  %v4723_v47 = vmul.f32 %v14769_v6, %v14733_v41  ;;  %v14774_v7 = vld [vmem:[#allocation116_spill] sm:$0xff] }
 0x40a   :  { %5571 = vmatprep.subr.bf16.mxu1 %v5570_v11  ;;  %v4660_v37 = vadd.f32 %v4652_v16, %v4642_v55  ;;  %v2509_v15 = vmul.f32 %v14768_v45, %v14767_v0  ;;  %v14770_v16 = vld [vmem:[#allocation167_spill] sm:$0xff]  ;;  %v4409_v53 = vmul.f32 %v14772_v19, %v14686_v60  ;;  %v4437_v46 = vmul.f32 %v14774_v7, %v14751_v26  ;;  %v14775_v41 = vld [vmem:[#allocation69_spill] sm:$0xff] }
 0x40b   :  { %5573 = vmatpush3.bf16.msra.mxu1 %v5570_v11  ;;  %v4677_v63 = vadd.f32 %v4669_v21, %v4659_v25  ;;  %v2527_v5 = vmul.f32 %v14771_v42, %v14770_v16  ;;  %v2499_v11 = vadd.f32 %v2491_v34, %v2481_v49  ;;  %v14773_v21 = vld [vmem:[#allocation115_spill] sm:$0xff]  ;;  %v4741_v25 = vmul.f32 %v14775_v41, %v14716_v36  ;;  %v14777_v22 = vld [vmem:[#allocation141_spill] sm:$0xff] }
 0x40c   :  { %v4678_v29 = vadd.f32 %v4670_v50, %v4660_v37  ;;  %v4419_v43 = vmul.f32 %v14773_v21, %v14749_v3  ;;  %v4724_v50 = vmul.f32 %v14769_v6, %v14735_v9  ;;  %v2545_v57 = vmul.f32 %v14777_v22, %v14776_v54 }
 0x40d   :  { %v4695_v1 = vadd.f32 %v4687_v39, %v4677_v63  ;;  %v2517_v60 = vadd.f32 %v2509_v15, %v2499_v11  ;;  %v4455_v34 = vmul.f32 %v14729_v20, %v14754_v24  ;;  %v4742_v26 = vmul.f32 %v14775_v41, %v14736_v35  ;;  %v14779_v63 = vld [vmem:[#allocation142_spill] sm:$0xff] }
 0x40e   :  { %v4696_v55 = vadd.f32 %v4688_v12, %v4678_v29  ;;  %v4427_v39 = vadd.f32 %v4419_v43, %v4409_v53  ;;  %v14778_v12 = vld [vmem:[#allocation48_spill] sm:$0xff]  ;;  %v4473_v36 = vmul.f32 %v11262_v38, %v14761_v4  ;;  %v4491_v24 = vmul.f32 %v11281_v31, %v14701_v10  ;;  %v14782_v11 = vld [vmem:[#allocation46_spill] sm:$0xff] }
 0x40f   :  { %v4713_v37 = vadd.f32 %v4705_v32, %v4695_v1  ;;  %v2563_v49 = vmul.f32 %v14779_v63, %v14778_v12  ;;  %v2535_v45 = vadd.f32 %v2527_v5, %v2517_v60  ;;  %v14780_v32 = vld [vmem:[#allocation143_spill] sm:$0xff]  ;;  %v14781_v1 = vld [vmem:[#allocation136_spill] sm:$0xff]  ;;  %v4509_v38 = vmul.f32 %v11284_v52, %v14767_v0  ;;  %v14786_v60 = vld [vmem:[#allocation157_spill] sm:$0xff] }
 0x410   :  { %v4714_v3 = vadd.f32 %v4706_v2, %v4696_v55  ;;  %v4445_v29 = vadd.f32 %v4437_v46, %v4427_v39  ;;  %v2581_v15 = vmul.f32 %v14780_v32, %v14758_v13  ;;  %v2599_v21 = vmul.f32 %v14782_v11, %v14781_v1  ;;  %v876_v4 = vld [vmem:[%s11996_s6] sm:$0xff]  ;;  %v878_v46 = vld [vmem:[%s11996_s6 + $0x10] sm:$0xff]  ;;  %v14785_v55 = vld [vmem:[#allocation33_spill] sm:$0xff] }
 0x411   :  { %v4731_v9 = vadd.f32 %v4723_v47, %v4713_v37  ;;  %v2553_v53 = vadd.f32 %v2545_v57, %v2535_v45  ;;  %v14783_v47 = vld [vmem:[#allocation124_spill] sm:$0xff]  ;;  %v4527_v52 = vmul.f32 %v11287_v23, %v14770_v16  ;;  %v5830_v0 = vmov 0   ;;  %v14787_v39 = vld [vmem:[#allocation162_spill] sm:$0xff]  ;;  %v877_v23 = vld [vmem:[%s11996_s6 + $0x8] sm:$0xff] }
 0x412   :  { %v4732_v42 = vadd.f32 %v4724_v50, %v4714_v3  ;;  %v4463_v20 = vadd.f32 %v4455_v34, %v4445_v29  ;;  %v14784_v10 = vld [vmem:[#allocation140_spill] sm:$0xff]  ;;  %5693 = vset.pattern.permute.xlu0 %v5830_v0  ;;  %5694 = vset.pattern.permute.xlu1 %v5830_v0  ;;  %v2635_v34 = vmul.f32 %v14787_v39, %v14786_v60  ;;  %v879_v16 = vld [vmem:[%s11996_s6 + $0x18] sm:$0xff]  ;;  %v14788_v45 = vld [vmem:[#allocation61_spill] sm:$0xff] }
 0x413   :  { %v4749_v19 = vadd.f32 %v4741_v25, %v4731_v9  ;;  %v2571_v43 = vadd.f32 %v2563_v49, %v2553_v53  ;;  %v2617_v50 = vmul.f32 %v14785_v55, %v14784_v10  ;;  %1378 = vperm.xlu0 %5693, %v876_v4   ;;  %1388 = vperm.xlu1 %5694, %v878_v46   ;;  %v14789_v29 = vld [vmem:[#allocation153_spill] sm:$0xff]  ;;  %v14791_v53 = vld [vmem:[#allocation67_spill] sm:$0xff] }
 0x414   :  { %v4750_v2 = vadd.f32 %v4742_v26, %v4732_v42  ;;  %v4481_v7 = vadd.f32 %v4473_v36, %v4463_v20  ;;  %v4545_v49 = vmul.f32 %v11314_v51, %v14776_v54  ;;  %v2653_v36 = vmul.f32 %v14789_v29, %v14788_v45  ;;  %v14790_v42 = vld [vmem:[#allocation132_spill] sm:$0xff] }
 0x415   :  { %v4759_v5 = vadd.f32 %v14783_v47, %v4749_v19  ;;  %v2589_v22 = vadd.f32 %v2581_v15, %v2571_v43  ;;  %v4563_v15 = vmul.f32 %v11317_v17, %v14778_v12  ;;  %v14792_v20 = vmax.f32 %v14791_v53, 0.0  ;;  %v4905_v17 = vld [vmem:[%s11998_s8] sm:$0xff]  ;;  %v14794_v12 = vld [vmem:[#allocation55_spill] sm:$0xff] }
 0x416   :  { %v11885_v31 = vadd.f32 %v14783_v47, %v4750_v2  ;;  %v4499_v57 = vadd.f32 %v4491_v24, %v4481_v7  ;;  %v14793_v2 = vld [vmem:[#allocation59_spill] sm:$0xff]  ;;  %v4581_v7 = vmul.f32 %v14737_v48, %v14758_v13  ;;  %v4617_v13 = vmul.f32 %v14743_v62, %v14784_v10 }
 0x417   :  { %v4767_v25 = vmax.f32 %v4759_v5, 0.0  ;;  %v2607_v26 = vadd.f32 %v2599_v21, %v2589_v22  ;;  %v2671_v11 = vmul.f32 %v14793_v2, %v14736_v35  ;;  %1383 = vperm.xlu0 %5693, %v877_v23   ;;  %1393 = vperm.xlu1 %5694, %v879_v16   ;;  %v4599_v22 = vmul.f32 %v14740_v40, %v14781_v1  ;;  %v14799_v1 = vld [vmem:[#allocation76_spill] sm:$0xff]  ;;  %v2797_v2 = vld [vmem:[#allocation12 + $0x70] sm:$0xff] }
 0x418   :  { %v4768_v37 = vmax.f32 %v11885_v31, 0.0  ;;  %v4517_v63 = vadd.f32 %v4509_v38, %v4499_v57  ;;  %v14795_v38 = vld [vmem:[#allocation192_spill] sm:$0xff]  ;;  %v14796_v57 = vld [vmem:[#allocation65_spill] sm:$0xff]  ;;  %v4653_v16 = vmul.f32 %v14747_v28, %v14788_v45  ;;  %v4671_v62 = vmul.f32 %v14760_v14, %v14736_v35 }
 0x419   :  { %v4775_v3 = vrot.slane %v4767_v25, 2  ;;  %v2625_v51 = vadd.f32 %v2617_v50, %v2607_v26  ;;  %v2689_v4 = vmul.f32 %v14795_v38, %v14794_v12  ;;  %v4743_v35 = vmul.f32 %v14775_v41, %v14799_v1  ;;  %v2796_v41 = vld [vmem:[#allocation12 + $0x68] sm:$0xff] }
 0x41a   :  { %v11904_v9 = vrot.slane %v4768_v37, 2  ;;  %v4535_v54 = vadd.f32 %v4527_v52, %v4517_v63  ;;  %v14797_v52 = vld [vmem:[#allocation156_spill] sm:$0xff]  ;;  %v4635_v63 = vmul.f32 %v14745_v27, %v14786_v60  ;;  %v5833_v31 = vmov 0.0  }
 0x41b   :  { %v4780_v32 = vsel %vm144_vm1, %v14790_v42, %v4775_v3  ;;  %v2643_v5 = vadd.f32 %v2635_v34, %v2625_v51  ;;  %4908 = vperm.xlu0 %5693, %v4905_v17   ;;  %v2707_v0 = vmul.f32 %v14797_v52, %v14796_v57  ;;  %v14798_v34 = vld [vmem:[#allocation66_spill] sm:$0xff] }
 0x41c   :  { %v4779_v19 = vsel %vm144_vm1, %v4775_v3, %v11904_v9  ;;  %v4790_v24 = vmax.f32 %v14792_v20, %v4780_v32  ;;  %v4553_v43 = vadd.f32 %v4545_v49, %v4535_v54  ;;  %v2725_v3 = vmul.f32 %v14734_v58, %v14798_v34  ;;  %v4797_v17 = vld [vmem:[#allocation12 + $0xf0] sm:$0xff] }
 0x41d   :  { %v4791_v21 = vmax.f32 %v4767_v25, %v4779_v19  ;;  %v2661_v55 = vadd.f32 %v2653_v36, %v2643_v5  ;;  %v2743_v49 = vmul.f32 %v14652_v44, %v14799_v1  ;;  %v4689_v58 = vmul.f32 %v14764_v61, %v14794_v12  ;;  %v14800_v61 = vld [vmem:[#allocation120_spill] sm:$0xff] }
 0x41e   :  { %v4571_v50 = vadd.f32 %v4563_v15, %v4553_v43  ;;  %v4707_v44 = vmul.f32 %v14766_v8, %v14796_v57  ;;  %v4725_v28 = vmul.f32 %v14769_v6, %v14798_v34 }
 0x41f   :  { %v5634_v46 = vpack.c.bf16 %v4791_v21, %v4790_v24  ;;  %v2679_v25 = vadd.f32 %v2671_v11, %v2661_v55  ;;  %v14801_v21 = vld [vmem:[#allocation72_spill] sm:$0xff] }
 0x420   :  { %v4589_v48 = vadd.f32 %v4581_v7, %v4571_v50  ;;  %v4796_v7 = vld [vmem:[#allocation12 + $0xe8] sm:$0xff] }
 0x421   :  { %5635 = vmatprep.subr.bf16.mxu0 %v5634_v46  ;;  %v2697_v39 = vadd.f32 %v2689_v4, %v2679_v25 }
 0x422   :  { %5637 = vmatpush3.bf16.msra.mxu0 %v5634_v46  ;;  %v4607_v26 = vadd.f32 %v4599_v22, %v4589_v48 }
 0x423   :  { %v2715_v40 = vadd.f32 %v2707_v0, %v2697_v39 }
 0x424   :  { %v4625_v23 = vadd.f32 %v4617_v13, %v4607_v26 }
 0x425   :  { %v2733_v29 = vadd.f32 %v2725_v3, %v2715_v40 }
 0x426   :  { %v4643_v36 = vadd.f32 %v4635_v63, %v4625_v23 }
 0x427   :  { %v2751_v10 = vadd.f32 %v2743_v49, %v2733_v29 }
 0x428   :  { %v4661_v42 = vadd.f32 %v4653_v16, %v4643_v36 }
 0x429   :  { %v2761_v27 = vadd.f32 %v14738_v56, %v2751_v10 }
 0x42a   :  { %v4679_v60 = vadd.f32 %v4671_v62, %v4661_v42  ;;  %v4904_v62 = vld [vmem:[%s11997_s7] sm:$0xff] }
 0x42b   :  { %v2769_v32 = vmax.f32 %v2761_v27, 0.0 }
 0x42c   :  { %v4697_v51 = vadd.f32 %v4689_v58, %v4679_v60 }
 0x42d   :  { %v2777_v45 = vrot.slane %v2769_v32, 2 }
 0x42e   :  { %v4715_v54 = vadd.f32 %v4707_v44, %v4697_v51 }
 0x42f   :  { %v2778_v14 = vsel %vm144_vm1, %v11805_v59, %v2777_v45  ;;  %v2785_v56 = vsel %vm144_vm1, %v2777_v45, %v14800_v61 }
 0x430   :  { %v4733_v15 = vadd.f32 %v4725_v28, %v4715_v54  ;;  %v2792_v8 = vmax.f32 %v2768_v18, %v2778_v14  ;;  %v2793_v19 = vmax.f32 %v2769_v32, %v2785_v56  ;;  %v2798_v18 = vld [vmem:[#allocation12 + $0x78] sm:$0xff] }
 0x432   :  { %v4751_v53 = vadd.f32 %v4743_v35, %v4733_v15  ;;  %v5574_v6 = vpack.c.bf16 %v2793_v19, %v2792_v8 }
 0x434   :  { %v4761_v20 = vadd.f32 %v14783_v47, %v4751_v53  ;;  %5575 = vmatprep.subr.bf16.mxu1 %v5574_v6 }
 0x435   :  { %5577 = vmatpush3.bf16.msra.mxu1 %v5574_v6 }
 0x436   :  { %v4769_v24 = vmax.f32 %v4761_v20, 0.0 }
 0x438   :  { %v4777_v11 = vrot.slane %v4769_v24, 2  ;;  %5410 = vmatmul.mubr.msk.f32.vlgmr.msra.gmra.mrb[0].mxu1 %vm1278_vm5, %v2796_v41 }
 0x439   :  { %5412 = vmatprep.mubr.msk.f32.mxu1 %vm1278_vm5, %v2797_v2 }
 0x43a   :  { %v4778_v59 = vsel %vm144_vm1, %v11904_v9, %v4777_v11  ;;  %v4785_v33 = vsel %vm144_vm1, %v4777_v11, %v14801_v21  ;;  %v5831_v9 = vmov 0.0|0.0  }
 0x43b   :  { %v4792_v47 = vmax.f32 %v4768_v37, %v4778_v59  ;;  %v4793_v5 = vmax.f32 %v4769_v24, %v4785_v33  ;;  %5642 = vmatprep.subr.bf16.mxu1 %v5831_v9 }
 0x43c   :  { %5413 = vmatmul.mubr.msk.f32.gmra.mrb[2].mxu1 %vm1278_vm5, %v2798_v18 }
 0x43d   :  { %v5638_v43 = vpack.c.bf16 %v4793_v5, %v4792_v47  ;;  %5511 = vmatprep.mubr.msk.f32.mxu1 %vm5832_vm6, %v5833_v31 }
 0x43f   :  { %5639 = vmatprep.subr.bf16.mxu0 %v5638_v43 }
 0x440   :  { %5641 = vmatpush3.bf16.msra.mxu0 %v5638_v43 }
 0x443   :  { %5498 = vmatmul.mubr.msk.f32.vlgmr.msra.gmra.mrb[0].mxu0 %vm1278_vm5, %v4796_v7 }
 0x444   :  { %5500 = vmatprep.mubr.msk.f32.mxu0 %vm1278_vm5, %v4797_v17 }
 0x447   :  { %5501 = vmatmul.mubr.msk.f32.gmra.mrb[2].mxu0 %vm1278_vm5, %v4798_v30 }
 0x492   :  { %v1379_v37 = vpop.permute.xlu0 %1378  ;;  %v1389_v4 = vpop.permute.xlu1 %1388 }
 0x496   :  { %v1384_v50 = vpop.permute.xlu0 %1383  ;;  %v1394_v52 = vpop.permute.xlu1 %1393 }
 0x49a   :  { %v4909_v10 = vpop.permute.xlu0 %4908 }
 0x50b   :  { %v5411_v12 = vpop.f32.mrb[0].mxu1 }
 0x50c   :  { %v2877_v38 = vpop.f32.mrb[1].mxu1  ;;  %v5648_v22 = vadd.f32 %v5411_v12, %v1384_v50 }
 0x50d   :  { %v5650_v25 = vadd.f32 %v2877_v38, %v1379_v37 }
 0x50f   :  { %v5414_v46 = vpop.f32.mrb[2].mxu1 }
 0x510   :  { %v2887_v55 = vpop.f32.mrb[3].mxu1  ;;  %v5652_v13 = vadd.f32 %v5414_v46, %v1394_v52 }
 0x511   :  { %v5654_v34 = vadd.f32 %v2887_v55, %v1389_v4 }
 0x516   :  { %v5499_v57 = vpop.f32.mrb[0].mxu0 }
 0x517   :  { %v5649_v0 = vadd.f32 %v5648_v22, %v5499_v57  ;;  %v4877_v48 = vpop.f32.mrb[1].mxu0 }
 0x518   :  { %v5651_v39 = vadd.f32 %v5650_v25, %v4877_v48 }
 0x519   :  { %v4901_v3 = vmax.f32 %v5649_v0, 0.0 }
 0x51a   :  { %v4900_v26 = vmax.f32 %v5651_v39, 0.0  ;;  %v5502_v63 = vpop.f32.mrb[2].mxu0 }
 0x51b   :  { %v5653_v40 = vadd.f32 %v5652_v13, %v5502_v63  ;;  %v4887_v1 = vpop.f32.mrb[3].mxu0 }
 0x51c   :  { %v5643_v49 = vpack.c.bf16 %v4901_v3, %v4900_v26  ;;  %v5655_v23 = vadd.f32 %v5654_v34, %v4887_v1 }
 0x51d   :  { %v4903_v16 = vmax.f32 %v5653_v40, 0.0 }
 0x51e   :  { %v4902_v29 = vmax.f32 %v5655_v23, 0.0  ;;  %5644 = vmatpush3.bf16.msra.mxu1 %v5643_v49 }
 0x51f   :  { %5645 = vmatprep.subr.bf16.mxu1 %v5831_v9 }
 0x520   :  { %v5646_v36 = vpack.c.bf16 %v4903_v16, %v4902_v29 }
 0x522   :  { %5647 = vmatpush3.bf16.msra.mxu1 %v5646_v36 }
 0x525   :  { %5512 = vmatmul.mubr.msk.f32.vlgmr.msra.gmra.mrb[4].mxu1 %vm4911_vm7, %v4904_v62 }
 0x5f8   :  { %v4981_v42 = vpop.f32.mrb[4].mxu1 }
 0x5f9   :  { %v4982_v58 = vadd.f32 %v4981_v42, %v4909_v10  ;;  %v5513_v27 = vpop.f32.mrb[5].mxu1 }
 0x5fb   :  { %4985 = vst [vmem:[#allocation14] sm:$0xff] %v4982_v58 }
 0x5fc   :  { %5799 = shalt.err (!%p5796_p12)
}
 0x5fd   :  { %s5800_s7 = scalar_lea.hbm %s11999_s9, 128 }
 0x5fe   :  { %p5801_p13 = scmp.ne.s32.totalorder %s11999_s9, %s5800_s7  ;;  %p5804_p0 = scmp.lt.u32.totalorder %s5800_s7, %s11999_s9 }
 0x600   :  { %p5806_p1 = pnand %p5804_p0, %p5801_p13 }
 0x602   :  { %5809 = shalt.err (!%p5806_p1)
}
 0x603   :  { %4995 = dma.vmem_to_hbm [thread:$0]  %s4993_s17, 128, %s11999_s9, [#allocation4]  }
 0x604   :  { %5820 = dma.done.wait [#allocation4], 128  }
 0x605   :  { %5821 = vsyncadd [#allocation4], 4294967168 }
 0x606   :  { %4999 = vsyncpa [#allocation3], 1 }
 0x607   :  { %5000 = vsyncpa [#allocation13], 1 }
 0x608   :  { %5001 = vsyncpa [#allocation4], 1 }
 0x609   :  { %5002 = vsyncpa [#allocation5], 1 }
 0x60a   :  { %5003 = vsyncpa [#allocation8], 1 }
 0x60b   :  { %5004 = vsyncpa [#allocation11], 1 }

</bundles_post_ra>
